<compile_context>
chip_gen: v6e
topology: v6e:2x2x1
jax: 0.10.0
libtpu: 0.0.40
codegen_flags: <defaults>
</compile_context>

<pallas_src>
import functools
import math

import jax
import jax.numpy as jnp
from jax import lax
from jax.experimental import pallas as pl
from jax.experimental.pallas import tpu as pltpu

LN_EPS = 1e-5
# MXU matmul input dtype (accumulation is always f32 via preferred_element_type).
COMPUTE_DTYPE = jnp.bfloat16


def _layernorm(x, w, b):
    mu = jnp.mean(x, axis=-1, keepdims=True)
    var = jnp.mean((x - mu) ** 2, axis=-1, keepdims=True)
    return (x - mu) * lax.rsqrt(var + LN_EPS) * w + b


def _mm(a, b):
    return jnp.dot(a.astype(COMPUTE_DTYPE), b.astype(COMPUTE_DTYPE),
                   preferred_element_type=jnp.float32)


def sakt_fused_kernel(num_heads, num_blocks,
                      qsh_ref, x_ref, bias_ref,
                      wq_all_ref, bq_all_ref, wkv_ref, bkv_ref,
                      wo_ref, bo_ref, ln1w_ref, ln1b_ref,
                      w1_ref, b1_ref, w2_ref, b2_ref,
                      ln2w_ref, ln2b_ref,
                      pw_ref, pb_ref,
                      o_ref):
    """All SAKT encoder blocks + pred head for a (Bt, L) tile of sequences."""
    Bt, L, E = x_ref.shape
    H = num_heads
    hd = E // H
    scale = 1.0 / math.sqrt(hd)

    qsh2 = qsh_ref[...].reshape(Bt * L, E)   # query rows: fixed across blocks (f32)
    h = x_ref[...].reshape(Bt * L, E)        # key/value rows: updated per block (f32)
    bias3 = bias_ref[...][None]              # (1, L, L) causal bias, hoisted once

    # All-blocks fused query projection: one wide (Bt*L, E) x (E, N*E) matmul
    # replaces N narrow (E, E) ones (q input is block-invariant).
    qp_all = _mm(qsh2, wq_all_ref[...]) + bq_all_ref[...]      # (Bt*L, N*E) f32

    # Static unroll is fine for SAKT's small num_blocks (2); for deep stacks
    # switch to lax.fori_loop(..., unroll=True) to bound live ranges.
    for n in range(num_blocks):
        qp = qp_all[:, n * E:(n + 1) * E]
        kv = _mm(h, wkv_ref[n]) + bkv_ref[n]                   # fused K|V (Bt*L, 2E)
        kp, vp = kv[:, :E], kv[:, E:]

        qp3 = qp.reshape(Bt, L, E)
        kp3 = kp.reshape(Bt, L, E)
        vp3 = vp.reshape(Bt, L, E)
        w_o = wo_ref[n]                                        # (E, E) bf16

        # Per-head attention, batched over Bt with 3-D einsums.  The lane-axis
        # concat of head outputs is removed by folding the output projection
        # per head: ctx @ Wo == sum_h ctx_h @ Wo[h*hd:(h+1)*hd, :].
        attn = None
        for hh in range(H):
            lo = hh * hd
            qh = qp3[:, :, lo:lo + hd].astype(COMPUTE_DTYPE)
            kh = kp3[:, :, lo:lo + hd].astype(COMPUTE_DTYPE)
            vh = vp3[:, :, lo:lo + hd].astype(COMPUTE_DTYPE)
            s = jnp.einsum('bqd,bkd->bqk', qh, kh,
                           preferred_element_type=jnp.float32) * scale
            s = s + bias3                                      # f32 mask add
            s = s - jnp.max(s, axis=-1, keepdims=True)
            p = jnp.exp(s)
            p = p * pl.reciprocal(jnp.sum(p, axis=-1, keepdims=True), approx=True)
            ctx_h = jnp.einsum('bqk,bkd->bqd', p.astype(COMPUTE_DTYPE), vh,
                               preferred_element_type=jnp.float32)
            part = _mm(ctx_h.reshape(Bt * L, hd), w_o[lo:lo + hd, :])
            attn = part if attn is None else attn + part
        attn = attn + bo_ref[n]

        h1 = _layernorm(qsh2 + attn, ln1w_ref[n], ln1b_ref[n])

        # ---- FFN ----
        ff = jnp.maximum(_mm(h1, w1_ref[n]) + b1_ref[n], 0.0)
        ff = _mm(ff, w2_ref[n]) + b2_ref[n]
        h = _layernorm(h1 + ff, ln2w_ref[n], ln2b_ref[n])

    # Prediction head Linear(E,1) + sigmoid, emitted as a single lane-dense
    # (1, 1, Bt*L) row so the final store is an unmasked wide vst.
    logits = jnp.einsum('oe,me->om',
                        pw_ref[...].astype(COMPUTE_DTYPE),
                        h.astype(COMPUTE_DTYPE),
                        preferred_element_type=jnp.float32) + pb_ref[0, 0]
    o_ref[...] = jax.nn.sigmoid(logits).reshape(1, 1, Bt * L)


def sakt_forward(params, q, r, qry, num_c, num_heads, *, seq_per_step=None):
    B, L = q.shape
    E = params['exercise_emb'].shape[1]
    blk = params['blk']
    N = blk['wq_t'].shape[0]

    # embedding gathers (plain-JAX glue, same as torch base_emb)
    x_idx = jnp.where(q >= 0, q + num_c * r, num_c * 2)
    qry_idx = jnp.where(qry >= 0, qry, num_c)
    qshftemb = params['exercise_emb'][qry_idx]                              # (B, L, E)
    xemb = params['interaction_emb'][x_idx] + params['position_emb'][jnp.arange(L)][None]

    # per-grid-step tile of sequences
    if seq_per_step is not None:
        Bt = seq_per_step
    elif B <= 8:
        Bt = B                                  # one step: best for 1-TC v5e/v6e
    else:
        half = (B + 1) // 2                     # ~2 steps: feeds both v7x TCs,
        Bt = min(128, ((half + 7) // 8) * 8)    # near-free on 1-TC chips
    Bp = ((B + Bt - 1) // Bt) * Bt
    if Bp != B:
        pad = Bp - B
        qshftemb = jnp.pad(qshftemb, ((0, pad), (0, 0), (0, 0)))
        xemb = jnp.pad(xemb, ((0, pad), (0, 0), (0, 0)))
    steps = Bp // Bt

    # causal (upper-triangular) additive bias, built once and kept resident
    row = jnp.arange(L, dtype=jnp.int32)[:, None]
    col = jnp.arange(L, dtype=jnp.int32)[None, :]
    causal_bias = jnp.where(col > row, jnp.float32(-1e30), jnp.float32(0.0))

    # matmul weights as bf16 (MXU-native); biases / LN params stay f32
    cd = COMPUTE_DTYPE
    wq_all = jnp.moveaxis(blk['wq_t'], 0, 1).reshape(E, N * E).astype(cd)
    bq_all = blk['bq'].reshape(1, N * E)
    wkv = blk['wkv_t'].astype(cd)
    wo = blk['out_w_t'].astype(cd)
    w1 = blk['f1_w_t'].astype(cd)
    w2 = blk['f2_w_t'].astype(cd)

    act_spec = pl.BlockSpec((Bt, L, E), lambda b: (b, 0, 0))

    def full(arr):
        nd = arr.ndim
        return pl.BlockSpec(arr.shape, lambda b, _nd=nd: (0,) * _nd)

    kernel = functools.partial(sakt_fused_kernel, num_heads, N)
    out = pl.pallas_call(
        kernel,
        out_shape=jax.ShapeDtypeStruct((steps, 1, Bt * L), jnp.float32),
        grid=(steps,),
        in_specs=[act_spec, act_spec, full(causal_bias),
                  full(wq_all), full(bq_all),
                  full(wkv), full(blk['bkv']),
                  full(wo), full(blk['out_b']),
                  full(blk['ln1_w']), full(blk['ln1_b']),
                  full(w1), full(blk['f1_b']),
                  full(w2), full(blk['f2_b']),
                  full(blk['ln2_w']), full(blk['ln2_b']),
                  full(params['pred_w']), full(params['pred_b'])],
        out_specs=pl.BlockSpec((1, 1, Bt * L), lambda b: (b, 0, 0)),
        compiler_params=pltpu.CompilerParams(
            dimension_semantics=("parallel",),
            vmem_limit_bytes=32 * 1024 * 1024),
    )(qshftemb, xemb, causal_bias,
      wq_all, bq_all, wkv, blk['bkv'],
      wo, blk['out_b'], blk['ln1_w'], blk['ln1_b'],
      w1, blk['f1_b'], w2, blk['f2_b'],
      blk['ln2_w'], blk['ln2_b'],
      params['pred_w'], params['pred_b'])
    return out.reshape(Bp, L)[:B]


# ----------------------- pure-JAX reference (for sanity) -----------------------

def _ref_block(qsh, x, bw, num_heads):
    B, L, E = x.shape
    hd = E // num_heads
    qp = qsh @ bw['wq_t'] + bw['bq']
    kv = x @ bw['wkv_t'] + bw['bkv']
    kp, vp = kv[..., :E], kv[..., E:]
    row = jnp.arange(L)[:, None]
    col = jnp.arange(L)[None, :]
    bias = jnp.where(col > row, -1e30, 0.0).astype(jnp.float32)
    heads = []
    for h in range(num_heads):
        qh, kh, vh = (t[..., h * hd:(h + 1) * hd] for t in (qp, kp, vp))
        s = jnp.einsum('bqd,bkd->bqk', qh, kh) / math.sqrt(hd) + bias
        p = jax.nn.softmax(s, axis=-1)
        heads.append(jnp.einsum('bqk,bkd->bqd', p, vh))
    ctx = jnp.concatenate(heads, axis=-1)
    attn = ctx @ bw['out_w_t'] + bw['out_b']
    h1 = _layernorm(qsh + attn, bw['ln1_w'], bw['ln1_b'])
    ff = jnp.maximum(h1 @ bw['f1_w_t'] + bw['f1_b'], 0.0) @ bw['f2_w_t'] + bw['f2_b']
    return _layernorm(h1 + ff, bw['ln2_w'], bw['ln2_b'])


def sakt_forward_ref(params, q, r, qry, num_c, num_heads):
    L = q.shape[1]
    x_idx = jnp.where(q >= 0, q + num_c * r, num_c * 2)
    qry_idx = jnp.where(qry >= 0, qry, num_c)
    qshftemb = params['exercise_emb'][qry_idx]
    xemb = params['interaction_emb'][x_idx] + params['position_emb'][jnp.arange(L)][None]
    blk = params['blk']
    for n in range(blk['wq_t'].shape[0]):
        bw = {k: v[n] for k, v in blk.items()}
        xemb = _ref_block(qshftemb, xemb, bw, num_heads)
    logits = jnp.sum(xemb * params['pred_w'][None], axis=-1) + params['pred_b'][0, 0]
    return jax.nn.sigmoid(logits)


# --------------------------------- params init ---------------------------------

def init_params(key, num_c, seq_len, emb_size, num_en):
    E = emb_size
    ks = jax.random.split(key, 6)

    def normal(k, shape, scale=0.05):
        return (scale * jax.random.normal(k, shape)).astype(jnp.float32)

    bkeys = jax.random.split(ks[4], num_en)
    sub = [jax.random.split(bk, 10) for bk in bkeys]

    def stackw(j, shape, scale=0.05):
        return jnp.stack([normal(sub[i][j], shape, scale) for i in range(num_en)])

    blk = {
        'wq_t':    stackw(0, (E, E)),
        'bq':      stackw(1, (1, E), 0.01),
        'wkv_t':   stackw(2, (E, 2 * E)),
        'bkv':     stackw(3, (1, 2 * E), 0.01),
        'out_w_t': stackw(4, (E, E)),
        'out_b':   stackw(5, (1, E), 0.01),
        'ln1_w':   jnp.ones((num_en, 1, E), jnp.float32),
        'ln1_b':   jnp.zeros((num_en, 1, E), jnp.float32),
        'f1_w_t':  stackw(6, (E, E)),
        'f1_b':    stackw(7, (1, E), 0.01),
        'f2_w_t':  stackw(8, (E, E)),
        'f2_b':    stackw(9, (1, E), 0.01),
        'ln2_w':   jnp.ones((num_en, 1, E), jnp.float32),
        'ln2_b':   jnp.zeros((num_en, 1, E), jnp.float32),
    }
    return {
        'interaction_emb': normal(ks[0], (num_c * 2 + 1, E)),
        'exercise_emb':    normal(ks[1], (num_c + 1, E)),
        'position_emb':    normal(ks[2], (seq_len, E)),
        'pred_w':          normal(ks[3], (1, E)),
        'pred_b':          jnp.zeros((1, 1), jnp.float32),
        'blk':             blk,
    }


if __name__ == "__main__":
    # small but lane-friendly shapes: E multiple of 128, L multiple of 8
    num_c, seq_len, emb_size, num_heads, num_en = 32, 16, 128, 2, 2
    B = 16

    key = jax.random.PRNGKey(0)
    kp, kq, kr, kqry = jax.random.split(key, 4)
    params = init_params(kp, num_c, seq_len, emb_size, num_en)

    q = jax.random.randint(kq, (B, seq_len), 0, num_c, dtype=jnp.int32)
    r = jax.random.randint(kr, (B, seq_len), 0, 2, dtype=jnp.int32)
    qry = jax.random.randint(kqry, (B, seq_len), 0, num_c, dtype=jnp.int32)
    # exercise the padding (-1) branches of torch.where
    q = q.at[0, 0].set(-1)
    qry = qry.at[1, 0].set(-1)

    p = sakt_forward(params, q, r, qry, num_c, num_heads, seq_per_step=8)
    jax.block_until_ready(p)
    assert p.shape == (B, seq_len), p.shape
    assert bool(jnp.all(jnp.isfinite(p)))

    p_ref = sakt_forward_ref(params, q, r, qry, num_c, num_heads)
    # tolerance accounts for bf16 MXU inputs + EUP approximate-reciprocal softmax
    assert bool(jnp.allclose(p, p_ref, rtol=2e-2, atol=2e-2)), (p, p_ref)

    print("KERNEL_OK")
</pallas_src>

<mosaic_0001>
module attributes {stable_mosaic.version = 11 : i64} {
  func.func @sakt_fused_kernel(%arg0: i32, %arg1: memref<8x16x128xf32, #tpu.memory_space<vmem>>, %arg2: memref<8x16x128xf32, #tpu.memory_space<vmem>>, %arg3: memref<16x16xf32, #tpu.memory_space<vmem>>, %arg4: memref<128x256xbf16, #tpu.memory_space<vmem>>, %arg5: memref<1x256xf32, #tpu.memory_space<vmem>>, %arg6: memref<2x128x256xbf16, #tpu.memory_space<vmem>>, %arg7: memref<2x1x256xf32, #tpu.memory_space<vmem>>, %arg8: memref<2x128x128xbf16, #tpu.memory_space<vmem>>, %arg9: memref<2x1x128xf32, #tpu.memory_space<vmem>>, %arg10: memref<2x1x128xf32, #tpu.memory_space<vmem>>, %arg11: memref<2x1x128xf32, #tpu.memory_space<vmem>>, %arg12: memref<2x128x128xbf16, #tpu.memory_space<vmem>>, %arg13: memref<2x1x128xf32, #tpu.memory_space<vmem>>, %arg14: memref<2x128x128xbf16, #tpu.memory_space<vmem>>, %arg15: memref<2x1x128xf32, #tpu.memory_space<vmem>>, %arg16: memref<2x1x128xf32, #tpu.memory_space<vmem>>, %arg17: memref<2x1x128xf32, #tpu.memory_space<vmem>>, %arg18: memref<1x128xf32, #tpu.memory_space<vmem>>, %arg19: memref<1x1xf32, #tpu.memory_space<vmem>>, %arg20: memref<1x1x128xf32, #tpu.memory_space<vmem>>) attributes {dimension_semantics = [#tpu.dimension_semantics<parallel>], iteration_bounds = array<i64: 2>, scalar_prefetch = 0 : i64, scratch_operands = 0 : i64, tpu.core_type = #tpu.core_type<tc>, window_params = [{transform_indices = @transform_0, window_bounds = array<i64: 8, 16, 128>}, {transform_indices = @transform_1, window_bounds = array<i64: 8, 16, 128>}, {pipeline_mode = #tpu.pipeline_mode<synchronous>, transform_indices = @transform_2, window_bounds = array<i64: 16, 16>}, {pipeline_mode = #tpu.pipeline_mode<synchronous>, transform_indices = @transform_3, window_bounds = array<i64: 128, 256>}, {pipeline_mode = #tpu.pipeline_mode<synchronous>, transform_indices = @transform_4, window_bounds = array<i64: 1, 256>}, {pipeline_mode = #tpu.pipeline_mode<synchronous>, transform_indices = @transform_5, window_bounds = array<i64: 2, 128, 256>}, {pipeline_mode = #tpu.pipeline_mode<synchronous>, transform_indices = @transform_6, window_bounds = array<i64: 2, 1, 256>}, {pipeline_mode = #tpu.pipeline_mode<synchronous>, transform_indices = @transform_7, window_bounds = array<i64: 2, 128, 128>}, {pipeline_mode = #tpu.pipeline_mode<synchronous>, transform_indices = @transform_8, window_bounds = array<i64: 2, 1, 128>}, {pipeline_mode = #tpu.pipeline_mode<synchronous>, transform_indices = @transform_9, window_bounds = array<i64: 2, 1, 128>}, {pipeline_mode = #tpu.pipeline_mode<synchronous>, transform_indices = @transform_10, window_bounds = array<i64: 2, 1, 128>}, {pipeline_mode = #tpu.pipeline_mode<synchronous>, transform_indices = @transform_11, window_bounds = array<i64: 2, 128, 128>}, {pipeline_mode = #tpu.pipeline_mode<synchronous>, transform_indices = @transform_12, window_bounds = array<i64: 2, 1, 128>}, {pipeline_mode = #tpu.pipeline_mode<synchronous>, transform_indices = @transform_13, window_bounds = array<i64: 2, 128, 128>}, {pipeline_mode = #tpu.pipeline_mode<synchronous>, transform_indices = @transform_14, window_bounds = array<i64: 2, 1, 128>}, {pipeline_mode = #tpu.pipeline_mode<synchronous>, transform_indices = @transform_15, window_bounds = array<i64: 2, 1, 128>}, {pipeline_mode = #tpu.pipeline_mode<synchronous>, transform_indices = @transform_16, window_bounds = array<i64: 2, 1, 128>}, {pipeline_mode = #tpu.pipeline_mode<synchronous>, transform_indices = @transform_17, window_bounds = array<i64: 1, 128>}, {pipeline_mode = #tpu.pipeline_mode<synchronous>, transform_indices = @transform_18, window_bounds = array<i64: 1, 1>}, {transform_indices = @transform_19, window_bounds = array<i64: 1, 1, 128>}]} {
    %c0 = arith.constant 0 : index
    %c0_0 = arith.constant 0 : index
    %c0_1 = arith.constant 0 : index
    %0 = vector.load %arg1[%c0, %c0_0, %c0_1] : memref<8x16x128xf32, #tpu.memory_space<vmem>>, vector<8x16x128xf32>
    %1 = vector.shape_cast %0 : vector<8x16x128xf32> to vector<128x128xf32>
    %c0_2 = arith.constant 0 : index
    %c0_3 = arith.constant 0 : index
    %c0_4 = arith.constant 0 : index
    %2 = vector.load %arg2[%c0_2, %c0_3, %c0_4] : memref<8x16x128xf32, #tpu.memory_space<vmem>>, vector<8x16x128xf32>
    %3 = vector.shape_cast %2 : vector<8x16x128xf32> to vector<128x128xf32>
    %c0_5 = arith.constant 0 : index
    %c0_6 = arith.constant 0 : index
    %4 = vector.load %arg3[%c0_5, %c0_6] : memref<16x16xf32, #tpu.memory_space<vmem>>, vector<16x16xf32>
    %5 = vector.shape_cast %4 : vector<16x16xf32> to vector<1x16x16xf32>
    %c0_7 = arith.constant 0 : index
    %c0_8 = arith.constant 0 : index
    %6 = vector.load %arg4[%c0_7, %c0_8] : memref<128x256xbf16, #tpu.memory_space<vmem>>, vector<128x256xbf16>
    %7 = arith.truncf %1 : vector<128x128xf32> to vector<128x128xbf16>
    %cst = arith.constant dense<0.000000e+00> : vector<128x256xf32>
    %8 = tpu.matmul %7, %6, %cst {dimension_numbers = #tpu.dot_dimension_numbers<[1], [0], [0], [1], [0, 0, 1, 1], [], []>} : vector<128x128xbf16>, vector<128x256xbf16>, vector<128x256xf32> -> vector<128x256xf32>
    %c0_9 = arith.constant 0 : index
    %c0_10 = arith.constant 0 : index
    %9 = vector.load %arg5[%c0_9, %c0_10] : memref<1x256xf32, #tpu.memory_space<vmem>>, vector<1x256xf32>
    %10 = vector.broadcast %9 : vector<1x256xf32> to vector<128x256xf32>
    %11 = arith.addf %8, %10 : vector<128x256xf32>
    %12 = vector.extract_strided_slice %11 {offsets = [0, 0], sizes = [128, 128], strides = [1, 1]} : vector<128x256xf32> to vector<128x128xf32>
    %c0_11 = arith.constant 0 : index
    %c0_12 = arith.constant 0 : index
    %c0_13 = arith.constant 0 : index
    %13 = vector.load %arg6[%c0_11, %c0_12, %c0_13] : memref<2x128x256xbf16, #tpu.memory_space<vmem>>, vector<1x128x256xbf16>
    %14 = vector.shape_cast %13 : vector<1x128x256xbf16> to vector<128x256xbf16>
    %15 = arith.truncf %3 : vector<128x128xf32> to vector<128x128xbf16>
    %cst_14 = arith.constant dense<0.000000e+00> : vector<128x256xf32>
    %16 = tpu.matmul %15, %14, %cst_14 {dimension_numbers = #tpu.dot_dimension_numbers<[1], [0], [0], [1], [0, 0, 1, 1], [], []>} : vector<128x128xbf16>, vector<128x256xbf16>, vector<128x256xf32> -> vector<128x256xf32>
    %c0_15 = arith.constant 0 : index
    %c0_16 = arith.constant 0 : index
    %c0_17 = arith.constant 0 : index
    %17 = vector.load %arg7[%c0_15, %c0_16, %c0_17] : memref<2x1x256xf32, #tpu.memory_space<vmem>>, vector<1x1x256xf32>
    %18 = vector.shape_cast %17 : vector<1x1x256xf32> to vector<1x256xf32>
    %19 = vector.broadcast %18 : vector<1x256xf32> to vector<128x256xf32>
    %20 = arith.addf %16, %19 : vector<128x256xf32>
    %21 = vector.extract_strided_slice %20 {offsets = [0, 0], sizes = [128, 128], strides = [1, 1]} : vector<128x256xf32> to vector<128x128xf32>
    %22 = vector.extract_strided_slice %20 {offsets = [0, 128], sizes = [128, 128], strides = [1, 1]} : vector<128x256xf32> to vector<128x128xf32>
    %23 = vector.shape_cast %12 : vector<128x128xf32> to vector<8x16x128xf32>
    %24 = vector.shape_cast %21 : vector<128x128xf32> to vector<8x16x128xf32>
    %25 = vector.shape_cast %22 : vector<128x128xf32> to vector<8x16x128xf32>
    %c0_18 = arith.constant 0 : index
    %c0_19 = arith.constant 0 : index
    %c0_20 = arith.constant 0 : index
    %26 = vector.load %arg8[%c0_18, %c0_19, %c0_20] : memref<2x128x128xbf16, #tpu.memory_space<vmem>>, vector<1x128x128xbf16>
    %27 = vector.shape_cast %26 : vector<1x128x128xbf16> to vector<128x128xbf16>
    %28 = vector.extract_strided_slice %23 {offsets = [0, 0, 0], sizes = [8, 16, 64], strides = [1, 1, 1]} : vector<8x16x128xf32> to vector<8x16x64xf32>
    %29 = arith.truncf %28 : vector<8x16x64xf32> to vector<8x16x64xbf16>
    %30 = vector.extract_strided_slice %24 {offsets = [0, 0, 0], sizes = [8, 16, 64], strides = [1, 1, 1]} : vector<8x16x128xf32> to vector<8x16x64xf32>
    %31 = arith.truncf %30 : vector<8x16x64xf32> to vector<8x16x64xbf16>
    %32 = vector.extract_strided_slice %25 {offsets = [0, 0, 0], sizes = [8, 16, 64], strides = [1, 1, 1]} : vector<8x16x128xf32> to vector<8x16x64xf32>
    %33 = arith.truncf %32 : vector<8x16x64xf32> to vector<8x16x64xbf16>
    "tpu.trace_start"() <{level = 10 : i32, message = "bqd,bkd->bqk"}> : () -> ()
    %cst_21 = arith.constant dense<0.000000e+00> : vector<8x16x16xf32>
    %34 = tpu.matmul %29, %31, %cst_21 {dimension_numbers = #tpu.dot_dimension_numbers<[2], [2], [1], [1], [0, 0, 0, 1, 1, 1], [0], [0]>} : vector<8x16x64xbf16>, vector<8x16x64xbf16>, vector<8x16x16xf32> -> vector<8x16x16xf32>
    "tpu.trace_stop"() : () -> ()
    %cst_22 = arith.constant 1.250000e-01 : f32
    %35 = vector.broadcast %cst_22 : f32 to vector<8x16x16xf32>
    %36 = arith.mulf %34, %35 : vector<8x16x16xf32>
    %37 = vector.broadcast %5 : vector<1x16x16xf32> to vector<8x16x16xf32>
    %38 = arith.addf %36, %37 : vector<8x16x16xf32>
    %cst_23 = arith.constant dense<0xFF800000> : vector<8x16xf32>
    %39 = vector.multi_reduction <maximumf>, %38, %cst_23 [2] : vector<8x16x16xf32> to vector<8x16xf32>
    %40 = vector.shape_cast %39 : vector<8x16xf32> to vector<8x16x1xf32>
    %41 = vector.broadcast %40 : vector<8x16x1xf32> to vector<8x16x16xf32>
    %42 = arith.subf %38, %41 : vector<8x16x16xf32>
    %43 = math.exp %42 : vector<8x16x16xf32>
    %cst_24 = arith.constant dense<0.000000e+00> : vector<8x16xf32>
    %44 = vector.multi_reduction <add>, %43, %cst_24 [2] : vector<8x16x16xf32> to vector<8x16xf32>
    %45 = vector.shape_cast %44 : vector<8x16xf32> to vector<8x16x1xf32>
    %46 = tpu.reciprocal %45 {approx = true} : vector<8x16x1xf32> -> vector<8x16x1xf32>
    %47 = vector.broadcast %46 : vector<8x16x1xf32> to vector<8x16x16xf32>
    %48 = arith.mulf %43, %47 : vector<8x16x16xf32>
    %49 = arith.truncf %48 : vector<8x16x16xf32> to vector<8x16x16xbf16>
    "tpu.trace_start"() <{level = 10 : i32, message = "bqk,bkd->bqd"}> : () -> ()
    %cst_25 = arith.constant dense<0.000000e+00> : vector<8x16x64xf32>
    %50 = tpu.matmul %49, %33, %cst_25 {dimension_numbers = #tpu.dot_dimension_numbers<[2], [1], [1], [2], [0, 0, 0, 1, 1, 2], [0], [0]>} : vector<8x16x16xbf16>, vector<8x16x64xbf16>, vector<8x16x64xf32> -> vector<8x16x64xf32>
    "tpu.trace_stop"() : () -> ()
    %51 = vector.shape_cast %50 : vector<8x16x64xf32> to vector<128x64xf32>
    %52 = vector.extract_strided_slice %27 {offsets = [0, 0], sizes = [64, 128], strides = [1, 1]} : vector<128x128xbf16> to vector<64x128xbf16>
    %53 = arith.truncf %51 : vector<128x64xf32> to vector<128x64xbf16>
    %cst_26 = arith.constant dense<0.000000e+00> : vector<128x128xf32>
    %54 = tpu.matmul %53, %52, %cst_26 {dimension_numbers = #tpu.dot_dimension_numbers<[1], [0], [0], [1], [0, 0, 1, 1], [], []>} : vector<128x64xbf16>, vector<64x128xbf16>, vector<128x128xf32> -> vector<128x128xf32>
    %55 = vector.extract_strided_slice %23 {offsets = [0, 0, 64], sizes = [8, 16, 64], strides = [1, 1, 1]} : vector<8x16x128xf32> to vector<8x16x64xf32>
    %56 = arith.truncf %55 : vector<8x16x64xf32> to vector<8x16x64xbf16>
    %57 = vector.extract_strided_slice %24 {offsets = [0, 0, 64], sizes = [8, 16, 64], strides = [1, 1, 1]} : vector<8x16x128xf32> to vector<8x16x64xf32>
    %58 = arith.truncf %57 : vector<8x16x64xf32> to vector<8x16x64xbf16>
    %59 = vector.extract_strided_slice %25 {offsets = [0, 0, 64], sizes = [8, 16, 64], strides = [1, 1, 1]} : vector<8x16x128xf32> to vector<8x16x64xf32>
    %60 = arith.truncf %59 : vector<8x16x64xf32> to vector<8x16x64xbf16>
    "tpu.trace_start"() <{level = 10 : i32, message = "bqd,bkd->bqk"}> : () -> ()
    %cst_27 = arith.constant dense<0.000000e+00> : vector<8x16x16xf32>
    %61 = tpu.matmul %56, %58, %cst_27 {dimension_numbers = #tpu.dot_dimension_numbers<[2], [2], [1], [1], [0, 0, 0, 1, 1, 1], [0], [0]>} : vector<8x16x64xbf16>, vector<8x16x64xbf16>, vector<8x16x16xf32> -> vector<8x16x16xf32>
    "tpu.trace_stop"() : () -> ()
    %cst_28 = arith.constant 1.250000e-01 : f32
    %62 = vector.broadcast %cst_28 : f32 to vector<8x16x16xf32>
    %63 = arith.mulf %61, %62 : vector<8x16x16xf32>
    %64 = vector.broadcast %5 : vector<1x16x16xf32> to vector<8x16x16xf32>
    %65 = arith.addf %63, %64 : vector<8x16x16xf32>
    %cst_29 = arith.constant dense<0xFF800000> : vector<8x16xf32>
    %66 = vector.multi_reduction <maximumf>, %65, %cst_29 [2] : vector<8x16x16xf32> to vector<8x16xf32>
    %67 = vector.shape_cast %66 : vector<8x16xf32> to vector<8x16x1xf32>
    %68 = vector.broadcast %67 : vector<8x16x1xf32> to vector<8x16x16xf32>
    %69 = arith.subf %65, %68 : vector<8x16x16xf32>
    %70 = math.exp %69 : vector<8x16x16xf32>
    %cst_30 = arith.constant dense<0.000000e+00> : vector<8x16xf32>
    %71 = vector.multi_reduction <add>, %70, %cst_30 [2] : vector<8x16x16xf32> to vector<8x16xf32>
    %72 = vector.shape_cast %71 : vector<8x16xf32> to vector<8x16x1xf32>
    %73 = tpu.reciprocal %72 {approx = true} : vector<8x16x1xf32> -> vector<8x16x1xf32>
    %74 = vector.broadcast %73 : vector<8x16x1xf32> to vector<8x16x16xf32>
    %75 = arith.mulf %70, %74 : vector<8x16x16xf32>
    %76 = arith.truncf %75 : vector<8x16x16xf32> to vector<8x16x16xbf16>
    "tpu.trace_start"() <{level = 10 : i32, message = "bqk,bkd->bqd"}> : () -> ()
    %cst_31 = arith.constant dense<0.000000e+00> : vector<8x16x64xf32>
    %77 = tpu.matmul %76, %60, %cst_31 {dimension_numbers = #tpu.dot_dimension_numbers<[2], [1], [1], [2], [0, 0, 0, 1, 1, 2], [0], [0]>} : vector<8x16x16xbf16>, vector<8x16x64xbf16>, vector<8x16x64xf32> -> vector<8x16x64xf32>
    "tpu.trace_stop"() : () -> ()
    %78 = vector.shape_cast %77 : vector<8x16x64xf32> to vector<128x64xf32>
    %79 = vector.extract_strided_slice %27 {offsets = [64, 0], sizes = [64, 128], strides = [1, 1]} : vector<128x128xbf16> to vector<64x128xbf16>
    %80 = arith.truncf %78 : vector<128x64xf32> to vector<128x64xbf16>
    %cst_32 = arith.constant dense<0.000000e+00> : vector<128x128xf32>
    %81 = tpu.matmul %80, %79, %cst_32 {dimension_numbers = #tpu.dot_dimension_numbers<[1], [0], [0], [1], [0, 0, 1, 1], [], []>} : vector<128x64xbf16>, vector<64x128xbf16>, vector<128x128xf32> -> vector<128x128xf32>
    %82 = arith.addf %54, %81 : vector<128x128xf32>
    %c0_33 = arith.constant 0 : index
    %c0_34 = arith.constant 0 : index
    %c0_35 = arith.constant 0 : index
    %83 = vector.load %arg9[%c0_33, %c0_34, %c0_35] : memref<2x1x128xf32, #tpu.memory_space<vmem>>, vector<1x1x128xf32>
    %84 = vector.shape_cast %83 : vector<1x1x128xf32> to vector<1x128xf32>
    %85 = vector.broadcast %84 : vector<1x128xf32> to vector<128x128xf32>
    %86 = arith.addf %82, %85 : vector<128x128xf32>
    %87 = arith.addf %1, %86 : vector<128x128xf32>
    %c0_36 = arith.constant 0 : index
    %c0_37 = arith.constant 0 : index
    %c0_38 = arith.constant 0 : index
    %88 = vector.load %arg10[%c0_36, %c0_37, %c0_38] : memref<2x1x128xf32, #tpu.memory_space<vmem>>, vector<1x1x128xf32>
    %89 = vector.shape_cast %88 : vector<1x1x128xf32> to vector<1x128xf32>
    %c0_39 = arith.constant 0 : index
    %c0_40 = arith.constant 0 : index
    %c0_41 = arith.constant 0 : index
    %90 = vector.load %arg11[%c0_39, %c0_40, %c0_41] : memref<2x1x128xf32, #tpu.memory_space<vmem>>, vector<1x1x128xf32>
    %91 = vector.shape_cast %90 : vector<1x1x128xf32> to vector<1x128xf32>
    %cst_42 = arith.constant dense<0.000000e+00> : vector<128xf32>
    %92 = vector.multi_reduction <add>, %87, %cst_42 [1] : vector<128x128xf32> to vector<128xf32>
    %93 = vector.shape_cast %92 : vector<128xf32> to vector<128x1xf32>
    %cst_43 = arith.constant 1.280000e+02 : f32
    %94 = vector.broadcast %cst_43 : f32 to vector<128x1xf32>
    %95 = arith.divf %93, %94 : vector<128x1xf32>
    %96 = vector.broadcast %95 : vector<128x1xf32> to vector<128x128xf32>
    %97 = arith.subf %87, %96 : vector<128x128xf32>
    %98 = arith.mulf %97, %97 : vector<128x128xf32>
    %cst_44 = arith.constant dense<0.000000e+00> : vector<128xf32>
    %99 = vector.multi_reduction <add>, %98, %cst_44 [1] : vector<128x128xf32> to vector<128xf32>
    %100 = vector.shape_cast %99 : vector<128xf32> to vector<128x1xf32>
    %cst_45 = arith.constant 1.280000e+02 : f32
    %101 = vector.broadcast %cst_45 : f32 to vector<128x1xf32>
    %102 = arith.divf %100, %101 : vector<128x1xf32>
    %103 = vector.broadcast %95 : vector<128x1xf32> to vector<128x128xf32>
    %104 = arith.subf %87, %103 : vector<128x128xf32>
    %cst_46 = arith.constant 9.99999974E-6 : f32
    %105 = vector.broadcast %cst_46 : f32 to vector<128x1xf32>
    %106 = arith.addf %102, %105 : vector<128x1xf32>
    %107 = math.rsqrt %106 : vector<128x1xf32>
    %108 = vector.broadcast %107 : vector<128x1xf32> to vector<128x128xf32>
    %109 = arith.mulf %104, %108 : vector<128x128xf32>
    %110 = vector.broadcast %89 : vector<1x128xf32> to vector<128x128xf32>
    %111 = arith.mulf %109, %110 : vector<128x128xf32>
    %112 = vector.broadcast %91 : vector<1x128xf32> to vector<128x128xf32>
    %113 = arith.addf %111, %112 : vector<128x128xf32>
    %c0_47 = arith.constant 0 : index
    %c0_48 = arith.constant 0 : index
    %c0_49 = arith.constant 0 : index
    %114 = vector.load %arg12[%c0_47, %c0_48, %c0_49] : memref<2x128x128xbf16, #tpu.memory_space<vmem>>, vector<1x128x128xbf16>
    %115 = vector.shape_cast %114 : vector<1x128x128xbf16> to vector<128x128xbf16>
    %116 = arith.truncf %113 : vector<128x128xf32> to vector<128x128xbf16>
    %cst_50 = arith.constant dense<0.000000e+00> : vector<128x128xf32>
    %117 = tpu.matmul %116, %115, %cst_50 {dimension_numbers = #tpu.dot_dimension_numbers<[1], [0], [0], [1], [0, 0, 1, 1], [], []>} : vector<128x128xbf16>, vector<128x128xbf16>, vector<128x128xf32> -> vector<128x128xf32>
    %c0_51 = arith.constant 0 : index
    %c0_52 = arith.constant 0 : index
    %c0_53 = arith.constant 0 : index
    %118 = vector.load %arg13[%c0_51, %c0_52, %c0_53] : memref<2x1x128xf32, #tpu.memory_space<vmem>>, vector<1x1x128xf32>
    %119 = vector.shape_cast %118 : vector<1x1x128xf32> to vector<1x128xf32>
    %120 = vector.broadcast %119 : vector<1x128xf32> to vector<128x128xf32>
    %121 = arith.addf %117, %120 : vector<128x128xf32>
    %cst_54 = arith.constant 0.000000e+00 : f32
    %122 = vector.broadcast %cst_54 : f32 to vector<128x128xf32>
    %123 = arith.maximumf %121, %122 : vector<128x128xf32>
    %c0_55 = arith.constant 0 : index
    %c0_56 = arith.constant 0 : index
    %c0_57 = arith.constant 0 : index
    %124 = vector.load %arg14[%c0_55, %c0_56, %c0_57] : memref<2x128x128xbf16, #tpu.memory_space<vmem>>, vector<1x128x128xbf16>
    %125 = vector.shape_cast %124 : vector<1x128x128xbf16> to vector<128x128xbf16>
    %126 = arith.truncf %123 : vector<128x128xf32> to vector<128x128xbf16>
    %cst_58 = arith.constant dense<0.000000e+00> : vector<128x128xf32>
    %127 = tpu.matmul %126, %125, %cst_58 {dimension_numbers = #tpu.dot_dimension_numbers<[1], [0], [0], [1], [0, 0, 1, 1], [], []>} : vector<128x128xbf16>, vector<128x128xbf16>, vector<128x128xf32> -> vector<128x128xf32>
    %c0_59 = arith.constant 0 : index
    %c0_60 = arith.constant 0 : index
    %c0_61 = arith.constant 0 : index
    %128 = vector.load %arg15[%c0_59, %c0_60, %c0_61] : memref<2x1x128xf32, #tpu.memory_space<vmem>>, vector<1x1x128xf32>
    %129 = vector.shape_cast %128 : vector<1x1x128xf32> to vector<1x128xf32>
    %130 = vector.broadcast %129 : vector<1x128xf32> to vector<128x128xf32>
    %131 = arith.addf %127, %130 : vector<128x128xf32>
    %132 = arith.addf %113, %131 : vector<128x128xf32>
    %c0_62 = arith.constant 0 : index
    %c0_63 = arith.constant 0 : index
    %c0_64 = arith.constant 0 : index
    %133 = vector.load %arg16[%c0_62, %c0_63, %c0_64] : memref<2x1x128xf32, #tpu.memory_space<vmem>>, vector<1x1x128xf32>
    %134 = vector.shape_cast %133 : vector<1x1x128xf32> to vector<1x128xf32>
    %c0_65 = arith.constant 0 : index
    %c0_66 = arith.constant 0 : index
    %c0_67 = arith.constant 0 : index
    %135 = vector.load %arg17[%c0_65, %c0_66, %c0_67] : memref<2x1x128xf32, #tpu.memory_space<vmem>>, vector<1x1x128xf32>
    %136 = vector.shape_cast %135 : vector<1x1x128xf32> to vector<1x128xf32>
    %cst_68 = arith.constant dense<0.000000e+00> : vector<128xf32>
    %137 = vector.multi_reduction <add>, %132, %cst_68 [1] : vector<128x128xf32> to vector<128xf32>
    %138 = vector.shape_cast %137 : vector<128xf32> to vector<128x1xf32>
    %cst_69 = arith.constant 1.280000e+02 : f32
    %139 = vector.broadcast %cst_69 : f32 to vector<128x1xf32>
    %140 = arith.divf %138, %139 : vector<128x1xf32>
    %141 = vector.broadcast %140 : vector<128x1xf32> to vector<128x128xf32>
    %142 = arith.subf %132, %141 : vector<128x128xf32>
    %143 = arith.mulf %142, %142 : vector<128x128xf32>
    %cst_70 = arith.constant dense<0.000000e+00> : vector<128xf32>
    %144 = vector.multi_reduction <add>, %143, %cst_70 [1] : vector<128x128xf32> to vector<128xf32>
    %145 = vector.shape_cast %144 : vector<128xf32> to vector<128x1xf32>
    %cst_71 = arith.constant 1.280000e+02 : f32
    %146 = vector.broadcast %cst_71 : f32 to vector<128x1xf32>
    %147 = arith.divf %145, %146 : vector<128x1xf32>
    %148 = vector.broadcast %140 : vector<128x1xf32> to vector<128x128xf32>
    %149 = arith.subf %132, %148 : vector<128x128xf32>
    %cst_72 = arith.constant 9.99999974E-6 : f32
    %150 = vector.broadcast %cst_72 : f32 to vector<128x1xf32>
    %151 = arith.addf %147, %150 : vector<128x1xf32>
    %152 = math.rsqrt %151 : vector<128x1xf32>
    %153 = vector.broadcast %152 : vector<128x1xf32> to vector<128x128xf32>
    %154 = arith.mulf %149, %153 : vector<128x128xf32>
    %155 = vector.broadcast %134 : vector<1x128xf32> to vector<128x128xf32>
    %156 = arith.mulf %154, %155 : vector<128x128xf32>
    %157 = vector.broadcast %136 : vector<1x128xf32> to vector<128x128xf32>
    %158 = arith.addf %156, %157 : vector<128x128xf32>
    %159 = vector.extract_strided_slice %11 {offsets = [0, 128], sizes = [128, 128], strides = [1, 1]} : vector<128x256xf32> to vector<128x128xf32>
    %c1 = arith.constant 1 : index
    %c0_73 = arith.constant 0 : index
    %c0_74 = arith.constant 0 : index
    %160 = vector.load %arg6[%c1, %c0_73, %c0_74] : memref<2x128x256xbf16, #tpu.memory_space<vmem>>, vector<1x128x256xbf16>
    %161 = vector.shape_cast %160 : vector<1x128x256xbf16> to vector<128x256xbf16>
    %162 = arith.truncf %158 : vector<128x128xf32> to vector<128x128xbf16>
    %cst_75 = arith.constant dense<0.000000e+00> : vector<128x256xf32>
    %163 = tpu.matmul %162, %161, %cst_75 {dimension_numbers = #tpu.dot_dimension_numbers<[1], [0], [0], [1], [0, 0, 1, 1], [], []>} : vector<128x128xbf16>, vector<128x256xbf16>, vector<128x256xf32> -> vector<128x256xf32>
    %c1_76 = arith.constant 1 : index
    %c0_77 = arith.constant 0 : index
    %c0_78 = arith.constant 0 : index
    %164 = vector.load %arg7[%c1_76, %c0_77, %c0_78] : memref<2x1x256xf32, #tpu.memory_space<vmem>>, vector<1x1x256xf32>
    %165 = vector.shape_cast %164 : vector<1x1x256xf32> to vector<1x256xf32>
    %166 = vector.broadcast %165 : vector<1x256xf32> to vector<128x256xf32>
    %167 = arith.addf %163, %166 : vector<128x256xf32>
    %168 = vector.extract_strided_slice %167 {offsets = [0, 0], sizes = [128, 128], strides = [1, 1]} : vector<128x256xf32> to vector<128x128xf32>
    %169 = vector.extract_strided_slice %167 {offsets = [0, 128], sizes = [128, 128], strides = [1, 1]} : vector<128x256xf32> to vector<128x128xf32>
    %170 = vector.shape_cast %159 : vector<128x128xf32> to vector<8x16x128xf32>
    %171 = vector.shape_cast %168 : vector<128x128xf32> to vector<8x16x128xf32>
    %172 = vector.shape_cast %169 : vector<128x128xf32> to vector<8x16x128xf32>
    %c1_79 = arith.constant 1 : index
    %c0_80 = arith.constant 0 : index
    %c0_81 = arith.constant 0 : index
    %173 = vector.load %arg8[%c1_79, %c0_80, %c0_81] : memref<2x128x128xbf16, #tpu.memory_space<vmem>>, vector<1x128x128xbf16>
    %174 = vector.shape_cast %173 : vector<1x128x128xbf16> to vector<128x128xbf16>
    %175 = vector.extract_strided_slice %170 {offsets = [0, 0, 0], sizes = [8, 16, 64], strides = [1, 1, 1]} : vector<8x16x128xf32> to vector<8x16x64xf32>
    %176 = arith.truncf %175 : vector<8x16x64xf32> to vector<8x16x64xbf16>
    %177 = vector.extract_strided_slice %171 {offsets = [0, 0, 0], sizes = [8, 16, 64], strides = [1, 1, 1]} : vector<8x16x128xf32> to vector<8x16x64xf32>
    %178 = arith.truncf %177 : vector<8x16x64xf32> to vector<8x16x64xbf16>
    %179 = vector.extract_strided_slice %172 {offsets = [0, 0, 0], sizes = [8, 16, 64], strides = [1, 1, 1]} : vector<8x16x128xf32> to vector<8x16x64xf32>
    %180 = arith.truncf %179 : vector<8x16x64xf32> to vector<8x16x64xbf16>
    "tpu.trace_start"() <{level = 10 : i32, message = "bqd,bkd->bqk"}> : () -> ()
    %cst_82 = arith.constant dense<0.000000e+00> : vector<8x16x16xf32>
    %181 = tpu.matmul %176, %178, %cst_82 {dimension_numbers = #tpu.dot_dimension_numbers<[2], [2], [1], [1], [0, 0, 0, 1, 1, 1], [0], [0]>} : vector<8x16x64xbf16>, vector<8x16x64xbf16>, vector<8x16x16xf32> -> vector<8x16x16xf32>
    "tpu.trace_stop"() : () -> ()
    %cst_83 = arith.constant 1.250000e-01 : f32
    %182 = vector.broadcast %cst_83 : f32 to vector<8x16x16xf32>
    %183 = arith.mulf %181, %182 : vector<8x16x16xf32>
    %184 = vector.broadcast %5 : vector<1x16x16xf32> to vector<8x16x16xf32>
    %185 = arith.addf %183, %184 : vector<8x16x16xf32>
    %cst_84 = arith.constant dense<0xFF800000> : vector<8x16xf32>
    %186 = vector.multi_reduction <maximumf>, %185, %cst_84 [2] : vector<8x16x16xf32> to vector<8x16xf32>
    %187 = vector.shape_cast %186 : vector<8x16xf32> to vector<8x16x1xf32>
    %188 = vector.broadcast %187 : vector<8x16x1xf32> to vector<8x16x16xf32>
    %189 = arith.subf %185, %188 : vector<8x16x16xf32>
    %190 = math.exp %189 : vector<8x16x16xf32>
    %cst_85 = arith.constant dense<0.000000e+00> : vector<8x16xf32>
    %191 = vector.multi_reduction <add>, %190, %cst_85 [2] : vector<8x16x16xf32> to vector<8x16xf32>
    %192 = vector.shape_cast %191 : vector<8x16xf32> to vector<8x16x1xf32>
    %193 = tpu.reciprocal %192 {approx = true} : vector<8x16x1xf32> -> vector<8x16x1xf32>
    %194 = vector.broadcast %193 : vector<8x16x1xf32> to vector<8x16x16xf32>
    %195 = arith.mulf %190, %194 : vector<8x16x16xf32>
    %196 = arith.truncf %195 : vector<8x16x16xf32> to vector<8x16x16xbf16>
    "tpu.trace_start"() <{level = 10 : i32, message = "bqk,bkd->bqd"}> : () -> ()
    %cst_86 = arith.constant dense<0.000000e+00> : vector<8x16x64xf32>
    %197 = tpu.matmul %196, %180, %cst_86 {dimension_numbers = #tpu.dot_dimension_numbers<[2], [1], [1], [2], [0, 0, 0, 1, 1, 2], [0], [0]>} : vector<8x16x16xbf16>, vector<8x16x64xbf16>, vector<8x16x64xf32> -> vector<8x16x64xf32>
    "tpu.trace_stop"() : () -> ()
    %198 = vector.shape_cast %197 : vector<8x16x64xf32> to vector<128x64xf32>
    %199 = vector.extract_strided_slice %174 {offsets = [0, 0], sizes = [64, 128], strides = [1, 1]} : vector<128x128xbf16> to vector<64x128xbf16>
    %200 = arith.truncf %198 : vector<128x64xf32> to vector<128x64xbf16>
    %cst_87 = arith.constant dense<0.000000e+00> : vector<128x128xf32>
    %201 = tpu.matmul %200, %199, %cst_87 {dimension_numbers = #tpu.dot_dimension_numbers<[1], [0], [0], [1], [0, 0, 1, 1], [], []>} : vector<128x64xbf16>, vector<64x128xbf16>, vector<128x128xf32> -> vector<128x128xf32>
    %202 = vector.extract_strided_slice %170 {offsets = [0, 0, 64], sizes = [8, 16, 64], strides = [1, 1, 1]} : vector<8x16x128xf32> to vector<8x16x64xf32>
    %203 = arith.truncf %202 : vector<8x16x64xf32> to vector<8x16x64xbf16>
    %204 = vector.extract_strided_slice %171 {offsets = [0, 0, 64], sizes = [8, 16, 64], strides = [1, 1, 1]} : vector<8x16x128xf32> to vector<8x16x64xf32>
    %205 = arith.truncf %204 : vector<8x16x64xf32> to vector<8x16x64xbf16>
    %206 = vector.extract_strided_slice %172 {offsets = [0, 0, 64], sizes = [8, 16, 64], strides = [1, 1, 1]} : vector<8x16x128xf32> to vector<8x16x64xf32>
    %207 = arith.truncf %206 : vector<8x16x64xf32> to vector<8x16x64xbf16>
    "tpu.trace_start"() <{level = 10 : i32, message = "bqd,bkd->bqk"}> : () -> ()
    %cst_88 = arith.constant dense<0.000000e+00> : vector<8x16x16xf32>
    %208 = tpu.matmul %203, %205, %cst_88 {dimension_numbers = #tpu.dot_dimension_numbers<[2], [2], [1], [1], [0, 0, 0, 1, 1, 1], [0], [0]>} : vector<8x16x64xbf16>, vector<8x16x64xbf16>, vector<8x16x16xf32> -> vector<8x16x16xf32>
    "tpu.trace_stop"() : () -> ()
    %cst_89 = arith.constant 1.250000e-01 : f32
    %209 = vector.broadcast %cst_89 : f32 to vector<8x16x16xf32>
    %210 = arith.mulf %208, %209 : vector<8x16x16xf32>
    %211 = vector.broadcast %5 : vector<1x16x16xf32> to vector<8x16x16xf32>
    %212 = arith.addf %210, %211 : vector<8x16x16xf32>
    %cst_90 = arith.constant dense<0xFF800000> : vector<8x16xf32>
    %213 = vector.multi_reduction <maximumf>, %212, %cst_90 [2] : vector<8x16x16xf32> to vector<8x16xf32>
    %214 = vector.shape_cast %213 : vector<8x16xf32> to vector<8x16x1xf32>
    %215 = vector.broadcast %214 : vector<8x16x1xf32> to vector<8x16x16xf32>
    %216 = arith.subf %212, %215 : vector<8x16x16xf32>
    %217 = math.exp %216 : vector<8x16x16xf32>
    %cst_91 = arith.constant dense<0.000000e+00> : vector<8x16xf32>
    %218 = vector.multi_reduction <add>, %217, %cst_91 [2] : vector<8x16x16xf32> to vector<8x16xf32>
    %219 = vector.shape_cast %218 : vector<8x16xf32> to vector<8x16x1xf32>
    %220 = tpu.reciprocal %219 {approx = true} : vector<8x16x1xf32> -> vector<8x16x1xf32>
    %221 = vector.broadcast %220 : vector<8x16x1xf32> to vector<8x16x16xf32>
    %222 = arith.mulf %217, %221 : vector<8x16x16xf32>
    %223 = arith.truncf %222 : vector<8x16x16xf32> to vector<8x16x16xbf16>
    "tpu.trace_start"() <{level = 10 : i32, message = "bqk,bkd->bqd"}> : () -> ()
    %cst_92 = arith.constant dense<0.000000e+00> : vector<8x16x64xf32>
    %224 = tpu.matmul %223, %207, %cst_92 {dimension_numbers = #tpu.dot_dimension_numbers<[2], [1], [1], [2], [0, 0, 0, 1, 1, 2], [0], [0]>} : vector<8x16x16xbf16>, vector<8x16x64xbf16>, vector<8x16x64xf32> -> vector<8x16x64xf32>
    "tpu.trace_stop"() : () -> ()
    %225 = vector.shape_cast %224 : vector<8x16x64xf32> to vector<128x64xf32>
    %226 = vector.extract_strided_slice %174 {offsets = [64, 0], sizes = [64, 128], strides = [1, 1]} : vector<128x128xbf16> to vector<64x128xbf16>
    %227 = arith.truncf %225 : vector<128x64xf32> to vector<128x64xbf16>
    %cst_93 = arith.constant dense<0.000000e+00> : vector<128x128xf32>
    %228 = tpu.matmul %227, %226, %cst_93 {dimension_numbers = #tpu.dot_dimension_numbers<[1], [0], [0], [1], [0, 0, 1, 1], [], []>} : vector<128x64xbf16>, vector<64x128xbf16>, vector<128x128xf32> -> vector<128x128xf32>
    %229 = arith.addf %201, %228 : vector<128x128xf32>
    %c1_94 = arith.constant 1 : index
    %c0_95 = arith.constant 0 : index
    %c0_96 = arith.constant 0 : index
    %230 = vector.load %arg9[%c1_94, %c0_95, %c0_96] : memref<2x1x128xf32, #tpu.memory_space<vmem>>, vector<1x1x128xf32>
    %231 = vector.shape_cast %230 : vector<1x1x128xf32> to vector<1x128xf32>
    %232 = vector.broadcast %231 : vector<1x128xf32> to vector<128x128xf32>
    %233 = arith.addf %229, %232 : vector<128x128xf32>
    %234 = arith.addf %1, %233 : vector<128x128xf32>
    %c1_97 = arith.constant 1 : index
    %c0_98 = arith.constant 0 : index
    %c0_99 = arith.constant 0 : index
    %235 = vector.load %arg10[%c1_97, %c0_98, %c0_99] : memref<2x1x128xf32, #tpu.memory_space<vmem>>, vector<1x1x128xf32>
    %236 = vector.shape_cast %235 : vector<1x1x128xf32> to vector<1x128xf32>
    %c1_100 = arith.constant 1 : index
    %c0_101 = arith.constant 0 : index
    %c0_102 = arith.constant 0 : index
    %237 = vector.load %arg11[%c1_100, %c0_101, %c0_102] : memref<2x1x128xf32, #tpu.memory_space<vmem>>, vector<1x1x128xf32>
    %238 = vector.shape_cast %237 : vector<1x1x128xf32> to vector<1x128xf32>
    %cst_103 = arith.constant dense<0.000000e+00> : vector<128xf32>
    %239 = vector.multi_reduction <add>, %234, %cst_103 [1] : vector<128x128xf32> to vector<128xf32>
    %240 = vector.shape_cast %239 : vector<128xf32> to vector<128x1xf32>
    %cst_104 = arith.constant 1.280000e+02 : f32
    %241 = vector.broadcast %cst_104 : f32 to vector<128x1xf32>
    %242 = arith.divf %240, %241 : vector<128x1xf32>
    %243 = vector.broadcast %242 : vector<128x1xf32> to vector<128x128xf32>
    %244 = arith.subf %234, %243 : vector<128x128xf32>
    %245 = arith.mulf %244, %244 : vector<128x128xf32>
    %cst_105 = arith.constant dense<0.000000e+00> : vector<128xf32>
    %246 = vector.multi_reduction <add>, %245, %cst_105 [1] : vector<128x128xf32> to vector<128xf32>
    %247 = vector.shape_cast %246 : vector<128xf32> to vector<128x1xf32>
    %cst_106 = arith.constant 1.280000e+02 : f32
    %248 = vector.broadcast %cst_106 : f32 to vector<128x1xf32>
    %249 = arith.divf %247, %248 : vector<128x1xf32>
    %250 = vector.broadcast %242 : vector<128x1xf32> to vector<128x128xf32>
    %251 = arith.subf %234, %250 : vector<128x128xf32>
    %cst_107 = arith.constant 9.99999974E-6 : f32
    %252 = vector.broadcast %cst_107 : f32 to vector<128x1xf32>
    %253 = arith.addf %249, %252 : vector<128x1xf32>
    %254 = math.rsqrt %253 : vector<128x1xf32>
    %255 = vector.broadcast %254 : vector<128x1xf32> to vector<128x128xf32>
    %256 = arith.mulf %251, %255 : vector<128x128xf32>
    %257 = vector.broadcast %236 : vector<1x128xf32> to vector<128x128xf32>
    %258 = arith.mulf %256, %257 : vector<128x128xf32>
    %259 = vector.broadcast %238 : vector<1x128xf32> to vector<128x128xf32>
    %260 = arith.addf %258, %259 : vector<128x128xf32>
    %c1_108 = arith.constant 1 : index
    %c0_109 = arith.constant 0 : index
    %c0_110 = arith.constant 0 : index
    %261 = vector.load %arg12[%c1_108, %c0_109, %c0_110] : memref<2x128x128xbf16, #tpu.memory_space<vmem>>, vector<1x128x128xbf16>
    %262 = vector.shape_cast %261 : vector<1x128x128xbf16> to vector<128x128xbf16>
    %263 = arith.truncf %260 : vector<128x128xf32> to vector<128x128xbf16>
    %cst_111 = arith.constant dense<0.000000e+00> : vector<128x128xf32>
    %264 = tpu.matmul %263, %262, %cst_111 {dimension_numbers = #tpu.dot_dimension_numbers<[1], [0], [0], [1], [0, 0, 1, 1], [], []>} : vector<128x128xbf16>, vector<128x128xbf16>, vector<128x128xf32> -> vector<128x128xf32>
    %c1_112 = arith.constant 1 : index
    %c0_113 = arith.constant 0 : index
    %c0_114 = arith.constant 0 : index
    %265 = vector.load %arg13[%c1_112, %c0_113, %c0_114] : memref<2x1x128xf32, #tpu.memory_space<vmem>>, vector<1x1x128xf32>
    %266 = vector.shape_cast %265 : vector<1x1x128xf32> to vector<1x128xf32>
    %267 = vector.broadcast %266 : vector<1x128xf32> to vector<128x128xf32>
    %268 = arith.addf %264, %267 : vector<128x128xf32>
    %cst_115 = arith.constant 0.000000e+00 : f32
    %269 = vector.broadcast %cst_115 : f32 to vector<128x128xf32>
    %270 = arith.maximumf %268, %269 : vector<128x128xf32>
    %c1_116 = arith.constant 1 : index
    %c0_117 = arith.constant 0 : index
    %c0_118 = arith.constant 0 : index
    %271 = vector.load %arg14[%c1_116, %c0_117, %c0_118] : memref<2x128x128xbf16, #tpu.memory_space<vmem>>, vector<1x128x128xbf16>
    %272 = vector.shape_cast %271 : vector<1x128x128xbf16> to vector<128x128xbf16>
    %273 = arith.truncf %270 : vector<128x128xf32> to vector<128x128xbf16>
    %cst_119 = arith.constant dense<0.000000e+00> : vector<128x128xf32>
    %274 = tpu.matmul %273, %272, %cst_119 {dimension_numbers = #tpu.dot_dimension_numbers<[1], [0], [0], [1], [0, 0, 1, 1], [], []>} : vector<128x128xbf16>, vector<128x128xbf16>, vector<128x128xf32> -> vector<128x128xf32>
    %c1_120 = arith.constant 1 : index
    %c0_121 = arith.constant 0 : index
    %c0_122 = arith.constant 0 : index
    %275 = vector.load %arg15[%c1_120, %c0_121, %c0_122] : memref<2x1x128xf32, #tpu.memory_space<vmem>>, vector<1x1x128xf32>
    %276 = vector.shape_cast %275 : vector<1x1x128xf32> to vector<1x128xf32>
    %277 = vector.broadcast %276 : vector<1x128xf32> to vector<128x128xf32>
    %278 = arith.addf %274, %277 : vector<128x128xf32>
    %279 = arith.addf %260, %278 : vector<128x128xf32>
    %c1_123 = arith.constant 1 : index
    %c0_124 = arith.constant 0 : index
    %c0_125 = arith.constant 0 : index
    %280 = vector.load %arg16[%c1_123, %c0_124, %c0_125] : memref<2x1x128xf32, #tpu.memory_space<vmem>>, vector<1x1x128xf32>
    %281 = vector.shape_cast %280 : vector<1x1x128xf32> to vector<1x128xf32>
    %c1_126 = arith.constant 1 : index
    %c0_127 = arith.constant 0 : index
    %c0_128 = arith.constant 0 : index
    %282 = vector.load %arg17[%c1_126, %c0_127, %c0_128] : memref<2x1x128xf32, #tpu.memory_space<vmem>>, vector<1x1x128xf32>
    %283 = vector.shape_cast %282 : vector<1x1x128xf32> to vector<1x128xf32>
    %cst_129 = arith.constant dense<0.000000e+00> : vector<128xf32>
    %284 = vector.multi_reduction <add>, %279, %cst_129 [1] : vector<128x128xf32> to vector<128xf32>
    %285 = vector.shape_cast %284 : vector<128xf32> to vector<128x1xf32>
    %cst_130 = arith.constant 1.280000e+02 : f32
    %286 = vector.broadcast %cst_130 : f32 to vector<128x1xf32>
    %287 = arith.divf %285, %286 : vector<128x1xf32>
    %288 = vector.broadcast %287 : vector<128x1xf32> to vector<128x128xf32>
    %289 = arith.subf %279, %288 : vector<128x128xf32>
    %290 = arith.mulf %289, %289 : vector<128x128xf32>
    %cst_131 = arith.constant dense<0.000000e+00> : vector<128xf32>
    %291 = vector.multi_reduction <add>, %290, %cst_131 [1] : vector<128x128xf32> to vector<128xf32>
    %292 = vector.shape_cast %291 : vector<128xf32> to vector<128x1xf32>
    %cst_132 = arith.constant 1.280000e+02 : f32
    %293 = vector.broadcast %cst_132 : f32 to vector<128x1xf32>
    %294 = arith.divf %292, %293 : vector<128x1xf32>
    %295 = vector.broadcast %287 : vector<128x1xf32> to vector<128x128xf32>
    %296 = arith.subf %279, %295 : vector<128x128xf32>
    %cst_133 = arith.constant 9.99999974E-6 : f32
    %297 = vector.broadcast %cst_133 : f32 to vector<128x1xf32>
    %298 = arith.addf %294, %297 : vector<128x1xf32>
    %299 = math.rsqrt %298 : vector<128x1xf32>
    %300 = vector.broadcast %299 : vector<128x1xf32> to vector<128x128xf32>
    %301 = arith.mulf %296, %300 : vector<128x128xf32>
    %302 = vector.broadcast %281 : vector<1x128xf32> to vector<128x128xf32>
    %303 = arith.mulf %301, %302 : vector<128x128xf32>
    %304 = vector.broadcast %283 : vector<1x128xf32> to vector<128x128xf32>
    %305 = arith.addf %303, %304 : vector<128x128xf32>
    %c0_134 = arith.constant 0 : index
    %c0_135 = arith.constant 0 : index
    %306 = vector.load %arg18[%c0_134, %c0_135] : memref<1x128xf32, #tpu.memory_space<vmem>>, vector<1x128xf32>
    %307 = arith.truncf %306 : vector<1x128xf32> to vector<1x128xbf16>
    %308 = arith.truncf %305 : vector<128x128xf32> to vector<128x128xbf16>
    "tpu.trace_start"() <{level = 10 : i32, message = "oe,me->om"}> : () -> ()
    %cst_136 = arith.constant dense<0.000000e+00> : vector<1x128xf32>
    %309 = tpu.matmul %307, %308, %cst_136 {dimension_numbers = #tpu.dot_dimension_numbers<[1], [1], [0], [0], [0, 0, 1, 0], [], []>} : vector<1x128xbf16>, vector<128x128xbf16>, vector<1x128xf32> -> vector<1x128xf32>
    "tpu.trace_stop"() : () -> ()
    %c0_137 = arith.constant 0 : index
    %c0_138 = arith.constant 0 : index
    %310 = vector.load %arg19[%c0_137, %c0_138] : memref<1x1xf32, #tpu.memory_space<vmem>>, vector<1x1xf32>
    %311 = vector.extract %310[0, 0] : f32 from vector<1x1xf32>
    %312 = vector.broadcast %311 : f32 to vector<1x128xf32>
    %313 = arith.addf %309, %312 : vector<1x128xf32>
    %314 = arith.negf %313 : vector<1x128xf32>
    %315 = math.exp %314 : vector<1x128xf32>
    %cst_139 = arith.constant 1.000000e+00 : f32
    %316 = vector.broadcast %cst_139 : f32 to vector<1x128xf32>
    %317 = arith.addf %316, %315 : vector<1x128xf32>
    %318 = arith.divf %316, %317 : vector<1x128xf32>
    %319 = vector.shape_cast %318 : vector<1x128xf32> to vector<1x1x128xf32>
    %c0_140 = arith.constant 0 : index
    %c0_141 = arith.constant 0 : index
    %c0_142 = arith.constant 0 : index
    %320 = vector.load %arg20[%c0_140, %c0_141, %c0_142] : memref<1x1x128xf32, #tpu.memory_space<vmem>>, vector<1x1x128xf32>
    tpu.vector_store %arg20[%c0_140, %c0_141, %c0_142], %319 {strides = array<i32>} : memref<1x1x128xf32, #tpu.memory_space<vmem>>, vector<1x1x128xf32>,
    return
  }
  func.func @transform_0(%arg0: i32) -> (i32, i32, i32) {
    %c0_i32 = arith.constant 0 : i32
    %c0_i32_0 = arith.constant 0 : i32
    %c0_i32_1 = arith.constant 0 : i32
    return %arg0, %c0_i32, %c0_i32_0 : i32, i32, i32
  }
  func.func @transform_1(%arg0: i32) -> (i32, i32, i32) {
    %c0_i32 = arith.constant 0 : i32
    %c0_i32_0 = arith.constant 0 : i32
    %c0_i32_1 = arith.constant 0 : i32
    return %arg0, %c0_i32, %c0_i32_0 : i32, i32, i32
  }
  func.func @transform_2(%arg0: i32) -> (i32, i32) {
    %c0_i32 = arith.constant 0 : i32
    %c0_i32_0 = arith.constant 0 : i32
    %c0_i32_1 = arith.constant 0 : i32
    return %c0_i32, %c0_i32_0 : i32, i32
  }
  func.func @transform_3(%arg0: i32) -> (i32, i32) {
    %c0_i32 = arith.constant 0 : i32
    %c0_i32_0 = arith.constant 0 : i32
    %c0_i32_1 = arith.constant 0 : i32
    return %c0_i32, %c0_i32_0 : i32, i32
  }
  func.func @transform_4(%arg0: i32) -> (i32, i32) {
    %c0_i32 = arith.constant 0 : i32
    %c0_i32_0 = arith.constant 0 : i32
    %c0_i32_1 = arith.constant 0 : i32
    return %c0_i32, %c0_i32_0 : i32, i32
  }
  func.func @transform_5(%arg0: i32) -> (i32, i32, i32) {
    %c0_i32 = arith.constant 0 : i32
    %c0_i32_0 = arith.constant 0 : i32
    %c0_i32_1 = arith.constant 0 : i32
    %c0_i32_2 = arith.constant 0 : i32
    return %c0_i32, %c0_i32_0, %c0_i32_1 : i32, i32, i32
  }
  func.func @transform_6(%arg0: i32) -> (i32, i32, i32) {
    %c0_i32 = arith.constant 0 : i32
    %c0_i32_0 = arith.constant 0 : i32
    %c0_i32_1 = arith.constant 0 : i32
    %c0_i32_2 = arith.constant 0 : i32
    return %c0_i32, %c0_i32_0, %c0_i32_1 : i32, i32, i32
  }
  func.func @transform_7(%arg0: i32) -> (i32, i32, i32) {
    %c0_i32 = arith.constant 0 : i32
    %c0_i32_0 = arith.constant 0 : i32
    %c0_i32_1 = arith.constant 0 : i32
    %c0_i32_2 = arith.constant 0 : i32
    return %c0_i32, %c0_i32_0, %c0_i32_1 : i32, i32, i32
  }
  func.func @transform_8(%arg0: i32) -> (i32, i32, i32) {
    %c0_i32 = arith.constant 0 : i32
    %c0_i32_0 = arith.constant 0 : i32
    %c0_i32_1 = arith.constant 0 : i32
    %c0_i32_2 = arith.constant 0 : i32
    return %c0_i32, %c0_i32_0, %c0_i32_1 : i32, i32, i32
  }
  func.func @transform_9(%arg0: i32) -> (i32, i32, i32) {
    %c0_i32 = arith.constant 0 : i32
    %c0_i32_0 = arith.constant 0 : i32
    %c0_i32_1 = arith.constant 0 : i32
    %c0_i32_2 = arith.constant 0 : i32
    return %c0_i32, %c0_i32_0, %c0_i32_1 : i32, i32, i32
  }
  func.func @transform_10(%arg0: i32) -> (i32, i32, i32) {
    %c0_i32 = arith.constant 0 : i32
    %c0_i32_0 = arith.constant 0 : i32
    %c0_i32_1 = arith.constant 0 : i32
    %c0_i32_2 = arith.constant 0 : i32
    return %c0_i32, %c0_i32_0, %c0_i32_1 : i32, i32, i32
  }
  func.func @transform_11(%arg0: i32) -> (i32, i32, i32) {
    %c0_i32 = arith.constant 0 : i32
    %c0_i32_0 = arith.constant 0 : i32
    %c0_i32_1 = arith.constant 0 : i32
    %c0_i32_2 = arith.constant 0 : i32
    return %c0_i32, %c0_i32_0, %c0_i32_1 : i32, i32, i32
  }
  func.func @transform_12(%arg0: i32) -> (i32, i32, i32) {
    %c0_i32 = arith.constant 0 : i32
    %c0_i32_0 = arith.constant 0 : i32
    %c0_i32_1 = arith.constant 0 : i32
    %c0_i32_2 = arith.constant 0 : i32
    return %c0_i32, %c0_i32_0, %c0_i32_1 : i32, i32, i32
  }
  func.func @transform_13(%arg0: i32) -> (i32, i32, i32) {
    %c0_i32 = arith.constant 0 : i32
    %c0_i32_0 = arith.constant 0 : i32
    %c0_i32_1 = arith.constant 0 : i32
    %c0_i32_2 = arith.constant 0 : i32
    return %c0_i32, %c0_i32_0, %c0_i32_1 : i32, i32, i32
  }
  func.func @transform_14(%arg0: i32) -> (i32, i32, i32) {
    %c0_i32 = arith.constant 0 : i32
    %c0_i32_0 = arith.constant 0 : i32
    %c0_i32_1 = arith.constant 0 : i32
    %c0_i32_2 = arith.constant 0 : i32
    return %c0_i32, %c0_i32_0, %c0_i32_1 : i32, i32, i32
  }
  func.func @transform_15(%arg0: i32) -> (i32, i32, i32) {
    %c0_i32 = arith.constant 0 : i32
    %c0_i32_0 = arith.constant 0 : i32
    %c0_i32_1 = arith.constant 0 : i32
    %c0_i32_2 = arith.constant 0 : i32
    return %c0_i32, %c0_i32_0, %c0_i32_1 : i32, i32, i32
  }
  func.func @transform_16(%arg0: i32) -> (i32, i32, i32) {
    %c0_i32 = arith.constant 0 : i32
    %c0_i32_0 = arith.constant 0 : i32
    %c0_i32_1 = arith.constant 0 : i32
    %c0_i32_2 = arith.constant 0 : i32
    return %c0_i32, %c0_i32_0, %c0_i32_1 : i32, i32, i32
  }
  func.func @transform_17(%arg0: i32) -> (i32, i32) {
    %c0_i32 = arith.constant 0 : i32
    %c0_i32_0 = arith.constant 0 : i32
    %c0_i32_1 = arith.constant 0 : i32
    return %c0_i32, %c0_i32_0 : i32, i32
  }
  func.func @transform_18(%arg0: i32) -> (i32, i32) {
    %c0_i32 = arith.constant 0 : i32
    %c0_i32_0 = arith.constant 0 : i32
    %c0_i32_1 = arith.constant 0 : i32
    return %c0_i32, %c0_i32_0 : i32, i32
  }
  func.func @transform_19(%arg0: i32) -> (i32, i32, i32) {
    %c0_i32 = arith.constant 0 : i32
    %c0_i32_0 = arith.constant 0 : i32
    %c0_i32_1 = arith.constant 0 : i32
    return %arg0, %c0_i32, %c0_i32_0 : i32, i32, i32
  }
}

</mosaic_0001>

<bundles_post_ra>
// kernel: tpu_custom_call.1
= control target key start
LH: loop header
LB: loop body
LE: loop exit
PB: predicated region body
PF: predicated region fallthrough
CT: control target
= control target key end

     0   :  { %s13177_s0 = inlined_call_operand.hbm [shape: f32[16,16,128], index: 0, kind: input, shape index: {}]   ;;  %s13178_s1 = inlined_call_operand.hbm [shape: f32[16,16,128], index: 1, kind: input, shape index: {}]   ;;  %s13179_s2 = inlined_call_operand.hbm [shape: f32[16,16], index: 2, kind: input, shape index: {}]   ;;  %s13180_s3 = inlined_call_operand.hbm [shape: bf16[128,256], index: 3, kind: input, shape index: {}]   ;;  %s13181_s4 = inlined_call_operand.vmem [shape: f32[1,256], index: 4, kind: input, shape index: {}]   ;;  %s13182_s5 = inlined_call_operand.hbm [shape: bf16[2,128,256], index: 5, kind: input, shape index: {}]   ;;  %s13183_s6 = inlined_call_operand.vmem [shape: f32[2,1,256], index: 6, kind: input, shape index: {}]   ;;  %s13184_s7 = inlined_call_operand.hbm [shape: bf16[2,128,128], index: 7, kind: input, shape index: {}]   ;;  %s13185_s8 = inlined_call_operand.vmem [shape: f32[2,1,128], index: 8, kind: input, shape index: {}]   ;;  %s13186_s9 = inlined_call_operand.vmem [shape: f32[2,1,128], index: 9, kind: input, shape index: {}]   ;;  %s13187_s10 = inlined_call_operand.vmem [shape: f32[2,1,128], index: 10, kind: input, shape index: {}]   ;;  %s13188_s11 = inlined_call_operand.hbm [shape: bf16[2,128,128], index: 11, kind: input, shape index: {}]   ;;  %s13189_s12 = inlined_call_operand.vmem [shape: f32[2,1,128], index: 12, kind: input, shape index: {}]   ;;  %s13190_s13 = inlined_call_operand.hbm [shape: bf16[2,128,128], index: 13, kind: input, shape index: {}]   ;;  %s13191_s14 = inlined_call_operand.vmem [shape: f32[2,1,128], index: 14, kind: input, shape index: {}]   ;;  %s13192_s15 = inlined_call_operand.vmem [shape: f32[2,1,128], index: 15, kind: input, shape index: {}]   ;;  %s13193_s16 = inlined_call_operand.vmem [shape: f32[2,1,128], index: 16, kind: input, shape index: {}]   ;;  %s13194_s17 = inlined_call_operand.vmem [shape: f32[1,128], index: 17, kind: input, shape index: {}]   ;;  %s13195_s18 = inlined_call_operand.<no memory space> [shape: f32[1,1], index: 18, kind: input, shape index: {}]   ;;  %s13196_s19 = inlined_call_operand.hbm [shape: f32[2,1,128], index: 19, kind: output, shape index: {}]  }
   0x1   :  { %13221 = sst [smem:[#allocation32_spill]] %s13177_s0  ;;  %v24_v0 = vstv %s13195_s18 }
   0x2   :  { %13222 = sst [smem:[#allocation33_spill]] %s13178_s1  ;;  %25 = vst [vmem:[#allocation2] sm:$0x1] %v24_v0 }
   0x3   :  { %13223 = sst [smem:[#allocation34_spill]] %s13179_s2 }
   0x4   :  { %13224 = sst [smem:[#allocation35_spill]] %s13180_s3 }
   0x5   :  { %13225 = sst [smem:[#allocation36_spill]] %s13182_s5 }
   0x6   :  { %13226 = sst [smem:[#allocation37_spill]] %s13184_s7 }
   0x7   :  { %13227 = sst [smem:[#allocation38_spill]] %s13188_s11 }
   0x8   :  { %13228 = sst [smem:[#allocation39_spill]] %s13190_s13 }
   0x9   :  { %13229 = sst [smem:[#allocation40_spill]] %s13192_s15 }
   0xa   :  { %13230 = sst [smem:[#allocation41_spill]] %s13193_s16 }
   0xb   :  { %13231 = sst [smem:[#allocation42_spill]] %s13194_s17 }
   0xc   :  { %13232 = sst [smem:[#allocation43_spill]] %s13196_s19 }
   0xd   :  { %26 = vsyncpa [#allocation4], 0 }
   0xe   :  { %28 = vsyncpa [#allocation4 + $0x1], 0 }
   0xf   :  { %29 = vsyncpa [#allocation7], 0 }
  0x10   :  { %31 = vsyncpa [#allocation7 + $0x1], 0 }
  0x11   :  { %32 = vsyncpa [#allocation10], 0 }
  0x12   :  { %33 = vsyncpa [#allocation13], 0 }
  0x13   :  { %34 = vsyncpa [#allocation16], 0 }
  0x14   :  { %35 = vsyncpa [#allocation5], 0 }
  0x15   :  { %37 = vsyncpa [#allocation5 + $0x1], 0  ;;  %s10296_s20 = smov 0   ;;  %s10298_s21 = smov 0  }
  0x16   :  { %s10300_s1 = smov 0   ;;  %s10302_s22 = smov 0  }
  0x17 LB: > { %13233 = sst [smem:[#allocation25_spill]] %s10162_s20  ;;  %s10176_s18 = smov [#allocation8]   ;;  %s10174_s22 = sphi %s10302_s22, %s13285_s22   ;;  %s10170_s1 = sphi %s10300_s1, %s13287_s1   ;;  %s10166_s21 = sphi %s10298_s21, %s13289_s21   ;;  %s10162_s20 = sphi %s10296_s20, %s13288_s20  }
  0x18   : > { %13234 = sst [smem:[#allocation26_spill]] %s10170_s1  ;;  %s495_s2 = sshll.u32 %s10176_s18, 4  ;;  %s496_s2 = int_to_ptr.vmem [resolvable:$true] %s495_s2 }
  0x19   : > { %s10317_s23 = sadd.s32 4294967295, %s10174_s22   ;;  %p8072_p0 = scmp.ge.s32.totalorder %s10174_s22, 1 }
  0x1a   : > { %p13213_p1 = scmp.eq.s32.totalorder %s10317_s23, 0  ;;  %p483_p2 = scmp.lt.s32.totalorder %s10174_s22, 3 }
  0x1b   : > { %s10177_s25 = smov [#allocation9]   ;;  %s10178_s27 = smov [#allocation12]  }
  0x1c   : > { %p10322_p3 = pnand %p8072_p0, %p483_p2  ;;  %s508_s3 = sshll.u32 %s10177_s25, 4  ;;  %s10335_s3 = int_to_ptr.vmem [resolvable:$true] %s508_s3 }
  0x1d   : > { %s540_s28 = sshll.u32 %s10178_s27, 4  ;;  %s9889_s0 = scalar_lea.vmem %s496_s2, 256  ;;  %s10337_s28 = int_to_ptr.vmem [resolvable:$true] %s540_s28 }
  0x1e   : > { %p9244_p5 = pneg %p10322_p3  ;;  %p9890_p8 = scmp.ne.s32.totalorder %s496_s2, %s9889_s0 }
  0x1f   : > { %p9897_p11 = scmp.lt.s32.totalorder %s496_s2, %s496_s2  ;;  %p9898_p12 = scmp.lt.s32.totalorder %s9889_s0, %s9889_s0 }
  0x20   : > { %p10331_p6 = pnand %p9244_p5, %p13213_p1 }
  0x21   : > { %p9899_p13 = por %p9898_p12, %p9897_p11 }
  0x22   : > { %p10341_p7 = pneg %p10331_p6 }
  0x24   : > { %p9892_p9 = pnand %p9890_p8, %p10341_p7 }
  0x26   : > { %p9893_p10 = pneg %p9892_p9 }
  0x28   : > { %p9900_p0 = pnand %p9899_p13, %p9893_p10 }
  0x2a   : > { %9903 = shalt.err (!%p9900_p0)
}
  0x2b   : > { %s13200_s30 = smov 128   ;;  %s13202_s18 = smov 8  }
  0x2c   : > { %s13238_s19 = sld [smem:[#allocation34_spill]]  ;;  %s9915_s17 = scalar_lea.vmem %s10335_s3, 2048 }
  0x2d   : > { %p9916_p2 = scmp.ne.s32.totalorder %s10335_s3, %s9915_s17  ;;  %p9923_p9 = scmp.lt.s32.totalorder %s10335_s3, %s10335_s3 }
  0x2e   : > { %p9924_p10 = scmp.lt.s32.totalorder %s9915_s17, %s9915_s17 }
  0x2f   : > { %p9918_p5 = pnand %p9916_p2, %p10341_p7 }
  0x30   : > { %p9925_p11 = por %p9924_p10, %p9923_p9 }
  0x31   : > { %p9919_p8 = pneg %p9918_p5 }
  0x32   : > { %9247 = dma.hbm_to_vmem [thread:$0]  (!%p10331_p6), %s13238_s19, 256, %s496_s2, [#allocation7], %s13200_s30, %s13200_s30, %s13202_s18  }
  0x33   : > { %p9926_p12 = pnand %p9925_p11, %p9919_p8 }
  0x35   : > { %9929 = shalt.err (!%p9926_p12)
}
  0x36   : > { %s13239_s19 = sld [smem:[#allocation35_spill]]  ;;  %s9941_s2 = scalar_lea.vmem %s10337_s28, 2048 }
  0x37   : > { %p9942_p13 = scmp.ne.s32.totalorder %s10337_s28, %s9941_s2  ;;  %p9949_p5 = scmp.lt.s32.totalorder %s10337_s28, %s10337_s28 }
  0x38   : > { %p9950_p8 = scmp.lt.s32.totalorder %s9941_s2, %s9941_s2 }
  0x39   : > { %p9944_p0 = pnand %p9942_p13, %p10341_p7 }
  0x3a   : > { %p9951_p9 = por %p9950_p8, %p9949_p5 }
  0x3b   : > { %p9945_p2 = pneg %p9944_p0 }
  0x3c   : > { %9250 = dma.hbm_to_vmem [thread:$0]  (!%p10331_p6), %s13239_s19, 2048, %s10335_s3, [#allocation10], %s13200_s30, %s13200_s30, %s13202_s18  }
  0x3d   : > { %p9952_p10 = pnand %p9951_p9, %p9945_p2 }
  0x3f   : > { %9955 = shalt.err (!%p9952_p10)
}
  0x40   : > { %s10181_s17 = smov 64   ;;  %s10182_s27 = smov 4  }
  0x41   : > { %s13240_s7 = sld [smem:[#allocation37_spill]]  ;;  %s10183_s25 = smov [#allocation11]  }
  0x42   : > { %s524_s19 = sshll.u32 %s10183_s25, 4  ;;  %s10184_s2 = smov [#allocation14]   ;;  %s525_s19 = int_to_ptr.vmem [resolvable:$true] %s524_s19 }
  0x43   : > { %s562_s30 = sshll.u32 %s10184_s2, 4  ;;  %s9967_s18 = scalar_lea.vmem %s525_s19, 4096  ;;  %s563_s30 = int_to_ptr.vmem [resolvable:$true] %s562_s30 }
  0x44   : > { %p9968_p11 = scmp.ne.s32.totalorder %s525_s19, %s9967_s18  ;;  %p9975_p0 = scmp.lt.s32.totalorder %s525_s19, %s525_s19 }
  0x45   : > { %p9976_p2 = scmp.lt.s32.totalorder %s9967_s18, %s9967_s18 }
  0x46   : > { %p9970_p12 = pnand %p9968_p11, %p10341_p7 }
  0x47   : > { %9256 = dma.hbm_to_vmem [thread:$0]  (!%p10331_p6), %s13240_s7, 2048, %s10337_s28, [#allocation13], %s10181_s17, %s10181_s17, %s10182_s27  }
  0x48   : > { %p9971_p13 = pneg %p9970_p12  ;;  %p9977_p5 = por %p9976_p2, %p9975_p0 }
  0x4a   : > { %p9978_p8 = pnand %p9977_p5, %p9971_p13 }
  0x4c   : > { %9981 = shalt.err (!%p9978_p8)
}
  0x4d   : > { %s13241_s16 = smov 8   ;;  %s13242_s3 = smov 128  }
  0x4e   : > { %s13243_s5 = sld [smem:[#allocation36_spill]]  ;;  %s9993_s25 = scalar_lea.vmem %s563_s30, 2048 }
  0x4f   : > { %p9994_p9 = scmp.ne.s32.totalorder %s563_s30, %s9993_s25  ;;  %p10001_p12 = scmp.lt.s32.totalorder %s563_s30, %s563_s30 }
  0x50   : > { %p10002_p0 = scmp.lt.s32.totalorder %s9993_s25, %s9993_s25 }
  0x51   : > { %p9996_p10 = pnand %p9994_p9, %p10341_p7 }
  0x52   : > { %p10003_p13 = por %p10002_p0, %p10001_p12 }
  0x53   : > { %p9997_p11 = pneg %p9996_p10 }
  0x54   : > { %9253 = dma.hbm_to_vmem [thread:$0]  (!%p10331_p6), %s13243_s5, 4096, %s525_s19, [#allocation10], %s13242_s3, %s13242_s3, %s13241_s16  }
  0x55   : > { %p10004_p2 = pnand %p10003_p13, %p9997_p11 }
  0x57   : > { %10007 = shalt.err (!%p10004_p2)
}
  0x58   : > { %s13244_s11 = sld [smem:[#allocation38_spill]]  ;;  %s10185_s19 = smov [#allocation15]  }
  0x59   : > { %s578_s28 = sshll.u32 %s10185_s19, 4  ;;  %s579_s28 = int_to_ptr.vmem [resolvable:$true] %s578_s28 }
  0x5a   : > { %s10019_s0 = scalar_lea.vmem %s579_s28, 2048  ;;  %p10027_p10 = scmp.lt.s32.totalorder %s579_s28, %s579_s28 }
  0x5b   : > { %p10020_p5 = scmp.ne.s32.totalorder %s579_s28, %s10019_s0  ;;  %p10028_p11 = scmp.lt.s32.totalorder %s10019_s0, %s10019_s0 }
  0x5d   : > { %p10022_p8 = pnand %p10020_p5, %p10341_p7  ;;  %p10029_p12 = por %p10028_p11, %p10027_p10 }
  0x5e   : > { %9259 = dma.hbm_to_vmem [thread:$0]  (!%p10331_p6), %s13244_s11, 2048, %s563_s30, [#allocation13], %s10181_s17, %s10181_s17, %s10182_s27  }
  0x5f   : > { %p10023_p9 = pneg %p10022_p8 }
  0x61   : > { %p10030_p0 = pnand %p10029_p12, %p10023_p9 }
  0x63   : > { %10033 = shalt.err (!%p10030_p0)
}
  0x64   : > { %s13245_s13 = sld [smem:[#allocation39_spill]]  ;;  %s8071_s26 = sadd.s32 4294967294, %s10174_s22  }
  0x65   : > { %s10417_s29 = sadd.s32 1, %s10174_s22   ;;  %s50_s2 = sadd.s32 1, %s10170_s1 }
  0x66   : > { %13246 = sst [smem:[#allocation27_spill]] %s10417_s29  ;;  %s47_s18 = ssub.s32 %s10174_s22, %s10417_s29 }
  0x67   : > { %p48_p7 = scmp.eq.s32.totalorder %s47_s18, 0  ;;  %p57_p13 = scmp.ne.s32.totalorder %s10170_s1, %s10166_s21 }
  0x68   : > { %p58_p2 = scmp.eq.s32.totalorder %s10174_s22, 0  ;;  %p63_p5 = scmp.ne.s32.totalorder %s10166_s21, %s10162_s20 }
  0x69   : > { %s10428_s19 = scalar_select %p48_p7, %s10170_s1, %s50_s2  }
  0x6a   : > { %9262 = dma.hbm_to_vmem [thread:$0]  (!%p10331_p6), %s13245_s13, 2048, %s579_s28, [#allocation16], %s10181_s17, %s10181_s17, %s10182_s27  }
  0x6b   : > { %13247 = sst [smem:[#allocation28_spill]] %s10428_s19  ;;  %p10430_p8 = por %p58_p2, %p57_p13 }
  0x6c   : > { %p10436_p6 = por %p13213_p1, %p63_p5  ;;  %p470_p9 = scmp.eq.s32.totalorder %s10317_s23, 1 }
  0x6d   : > { %p476_p10 = scmp.eq.s32.totalorder %s8071_s26, 1  ;;  %p9280_p11 = scmp.lt.s32.totalorder %s10174_s22, 2 }
  0x6e   : > { %s13249_s17 = scalar_select %p10436_p6, 1, 0 }
  0x6f   : > { %s607_s27 = sand.u32 1, %s10170_s1   ;;  %p10443_p12 = por %p470_p9, %p57_p13 }
  0x70   : > { %p10447_p0 = por %p476_p10, %p63_p5  ;;  %s8080_s30 = sshll.u32 %s607_s27, 7 }
  0x71   : > { %s13250_s28 = scalar_select %p10443_p12, 1, 0 }
  0x72   : > { %s13252_s25 = scalar_select %p10447_p0, 1, 0 }
  0x73   : > { %13251 = sst [smem:[#allocation29_spill]] %s13250_s28  ;;  %s8316_s18 = sshll.u32 %s10174_s22, 11 }
  0x74   : > { %13253 = sst [smem:[#allocation30_spill]] %s13252_s25  ;;  %s611_s26 = scalar_lea.vmem [#allocation3], %s8080_s30 }
  0x75   : > { %s13254_s7 = sld [smem:[#allocation32_spill]]  ;;  %s619_s13 = sshll.u32 %s611_s26, 4  ;;  %s10457_s13 = int_to_ptr.vmem [resolvable:$true] %s619_s13 }
  0x76   : > { %p10461_p7 = pnand %p9280_p11, %p10430_p8  ;;  %s13256_s25 = sld [smem:[#allocation33_spill]] }
  0x77   : > { %s633_s2 = scalar_lea.vmem [#allocation6], %s8080_s30  ;;  %s10472_s28 = scalar_lea.sflag [#allocation4], %s607_s27 }
  0x78   : > { %s10470_s20 = sshll.u32 %s633_s2, 4  ;;  %p10036_p2 = pneg %p10461_p7  ;;  %s10503_s20 = int_to_ptr.vmem [resolvable:$true] %s10470_s20 }
  0x7b   : > { %s10455_s11 = scalar_lea.hbm %s13254_s7, %s8316_s18  ;;  %s10039_s1 = scalar_lea.hbm %s13254_s7, 4096 }
  0x7c   : > { %s10468_s5 = scalar_lea.hbm %s13256_s25, %s8316_s18  ;;  %s10034_s26 = scalar_lea.hbm %s10455_s11, 2048 }
  0x7d   : > { %p10035_p13 = scmp.ne.s32.totalorder %s10455_s11, %s10034_s26  ;;  %p10040_p9 = scmp.lt.s32.totalorder %s10455_s11, %s13254_s7 }
  0x7e   : > { %p10041_p10 = scmp.lt.s32.totalorder %s10039_s1, %s10034_s26 }
  0x7f   : > { %p10037_p5 = pnand %p10036_p2, %p10035_p13 }
  0x80   : > { %p10042_p11 = por %p10041_p10, %p10040_p9 }
  0x81   : > { %p10038_p8 = pneg %p10037_p5 }
  0x83   : > { %p10043_p4 = pnand %p10042_p11, %p10038_p8 }
  0x85   : > { %10046 = shalt.err (!%p10043_p4)
}
  0x86   : > { %s10047_s27 = scalar_lea.vmem %s10457_s13, 2048  ;;  %s10186_s15 = smov [#allocation3]  }
  0x87   : > { %p10048_p1 = scmp.ne.s32.totalorder %s10457_s13, %s10047_s27  ;;  %s10052_s30 = sshll.u32 %s10186_s15, 4  ;;  %s10053_s30 = int_to_ptr.vmem [resolvable:$false] %s10052_s30 }
  0x88   : > { %s10054_s2 = scalar_lea.vmem %s10053_s30, 4096  ;;  %p10055_p0 = scmp.lt.s32.totalorder %s10457_s13, %s10053_s30 }
  0x89   : > { %p10050_p13 = pnand %p10048_p1, %p10036_p2  ;;  %p10056_p12 = scmp.lt.s32.totalorder %s10054_s2, %s10047_s27 }
  0x8b   : > { %p10051_p5 = pneg %p10050_p13  ;;  %p10057_p6 = por %p10056_p12, %p10055_p0 }
  0x8d   : > { %p10058_p9 = pnand %p10057_p6, %p10051_p5 }
  0x8f   : > { %10061 = shalt.err (!%p10058_p9)
}
  0x90   : > { %9266 = dma.hbm_to_vmem [thread:$0]  (!%p10461_p7), %s10455_s11, 2048, %s10457_s13, %s10472_s28, %s13242_s3, %s13242_s3, %s13241_s16  }
  0x91   : > { %s629_s26 = sand.u32 1, %s10174_s22   ;;  %s10062_s1 = scalar_lea.hbm %s10468_s5, 2048 }
  0x92   : > { %s630_s0 = scalar_lea.sflag [#allocation7], %s629_s26  ;;  %p10063_p1 = scmp.ne.s32.totalorder %s10468_s5, %s10062_s1 }
  0x93   : > { %s10067_s27 = scalar_lea.hbm %s13256_s25, 4096  ;;  %p10068_p12 = scmp.lt.s32.totalorder %s10468_s5, %s13256_s25 }
  0x94   : > { %p10065_p4 = pnand %p10063_p1, %p10036_p2  ;;  %p10069_p0 = scmp.lt.s32.totalorder %s10067_s27, %s10062_s1 }
  0x96   : > { %p10066_p6 = pneg %p10065_p4  ;;  %p10070_p8 = por %p10069_p0, %p10068_p12 }
  0x98   : > { %p10071_p10 = pnand %p10070_p8, %p10066_p6 }
  0x9a   : > { %10074 = shalt.err (!%p10071_p10)
}
  0x9b   : > { %s10075_s11 = scalar_lea.vmem %s10503_s20, 2048  ;;  %s10187_s13 = smov [#allocation6]  }
  0x9c   : > { %p10076_p11 = scmp.ne.s32.totalorder %s10503_s20, %s10075_s11  ;;  %s10080_s28 = sshll.u32 %s10187_s13, 4  ;;  %s10081_s28 = int_to_ptr.vmem [resolvable:$false] %s10080_s28 }
  0x9d   : > { %s10082_s2 = scalar_lea.vmem %s10081_s28, 4096  ;;  %p10083_p9 = scmp.lt.s32.totalorder %s10503_s20, %s10081_s28 }
  0x9e   : > { %p10078_p13 = pnand %p10076_p11, %p10036_p2  ;;  %p10084_p1 = scmp.lt.s32.totalorder %s10082_s2, %s10075_s11 }
  0xa0   : > { %p10079_p5 = pneg %p10078_p13  ;;  %p10085_p4 = por %p10084_p1, %p10083_p9 }
  0xa2   : > { %p10086_p12 = pnand %p10085_p4, %p10079_p5 }
  0xa4   : > { %10089 = shalt.err (!%p10086_p12)
}
  0xa5   : > { %9269 = dma.hbm_to_vmem [thread:$0]  (!%p10461_p7), %s10468_s5, 2048, %s10503_s20, %s630_s0, %s13242_s3, %s13242_s3, %s13241_s16  }
  0xa6   : > { %653 = sbr.rel (%p10322_p3) target bundleno = 6255 (0x186f), region = 96 }
  0xab   : > { %s10534_s26 = sand.u32 1, %s10166_s21   ;;  %p13257_p2 = scmp.ne.s32.totalorder %s13249_s17, 0 }
  0xac   : > { %s8089_s1 = sshll.u32 %s10534_s26, 7  ;;  %s656_s29 = scalar_lea.sflag [#allocation4], %s10534_s26 }
  0xad   : > { %s10538_s18 = scalar_lea.vmem [#allocation3], %s8089_s1 }
  0xae   : > { %10133 = dma.done.wait (%p13257_p2), %s656_s29, 2048  }
  0xaf   : > { %10135 = vsyncadd (%p13257_p2), %s656_s29, 4294965248  ;;  %s664_s16 = sand.u32 1, %s10317_s23   ;;  %s10545_s24 = scalar_lea.vmem [#allocation6], %s8089_s1 }
  0xb0   : > { %s665_s20 = scalar_lea.sflag [#allocation7], %s664_s16 }
  0xb1   : > { %10137 = dma.done.wait (%p13257_p2), %s665_s20, 2048  }
  0xb2   : > { %10139 = vsyncadd (%p13257_p2), %s665_s20, 4294965248  ;;  %p13258_p3 = scmp.eq.s32.totalorder %s10317_s23, 0 }
  0xb4   : > { %10141 = dma.done.wait (%p13258_p3), [#allocation7], 256   ;;  %p13259_p7 = pmov %p13258_p3 }
  0xb5   : > { %p13260_p6 = pmov %p13258_p3 }
  0xb6   : > { %10143 = vsyncadd (%p13259_p7), [#allocation7], 4294967040 }
  0xb7   : > { %10145 = dma.done.wait (%p13260_p6), [#allocation10], 6144   ;;  %p13261_p0 = pmov %p13258_p3 }
  0xb9   : > { %10147 = vsyncadd (%p13261_p0), [#allocation10], 4294961152  ;;  %p13262_p8 = pmov %p13261_p0 }
  0xba   : > { %p13263_p10 = pmov %p13261_p0 }
  0xbb   : > { %10149 = dma.done.wait (%p13262_p8), [#allocation13], 4096  }
  0xbc   : > { %10151 = vsyncadd (%p13263_p10), [#allocation13], 4294963200  ;;  %p13264_p11 = pmov %p13261_p0 }
  0xbd   : > { %p13265_p13 = pmov %p13261_p0 }
  0xbe   : > { %10153 = dma.done.wait (%p13264_p11), [#allocation16], 2048  }
  0xbf   : > { %10155 = vsyncadd (%p13265_p13), [#allocation16], 4294965248  ;;  %v13216_v1 = vmov 0   ;;  %v9334_v2 = vld [vmem:[#allocation11 + $0x74] ss:$8 sps:$4 sm:$0xff]   ;;  %v772_v40 = vld [vmem:[%s10545_s24 + $0x10] sm:$0xff] }
  0xc0   : > { %1165 = vmatprep.mubr.bf16.mxu1 %v13216_v1  ;;  %936 = vmatprep.mubr.bf16.mxu0 %v13216_v1  ;;  %v9336_v3 = vld [vmem:[#allocation11 + $0x70] ss:$8 sps:$4 sm:$0xff]   ;;  %v9337_v4 = vld [vmem:[#allocation11 + $0x64] ss:$8 sps:$4 sm:$0xff]   ;;  %v9339_v5 = vld [vmem:[#allocation11 + $0x60] ss:$8 sps:$4 sm:$0xff]  }
  0xc1   : > { %1133 = vmatprep.subr.bf16.mxu1 %v9334_v2  ;;  %v9340_v6 = vld [vmem:[#allocation9 + $0x74] ss:$8 sps:$4 sm:$0xff]   ;;  %v9344_v8 = vld [vmem:[#allocation9 + $0x70] ss:$8 sps:$4 sm:$0xff]   ;;  %v9346_v9 = vld [vmem:[#allocation9 + $0x64] ss:$8 sps:$4 sm:$0xff]  }
  0xc2   : > { %1134 = vmatpush1.bf16.msra.mxu1 %v9336_v3  ;;  %v9342_v7 = vld [vmem:[#allocation11 + $0x54] ss:$8 sps:$4 sm:$0xff]   ;;  %904 = vmatprep.subr.bf16.mxu0 %v9340_v6  ;;  %v9345_v10 = vld [vmem:[#allocation11 + $0x50] ss:$8 sps:$4 sm:$0xff]   ;;  %v9348_v11 = vld [vmem:[#allocation11 + $0x44] ss:$8 sps:$4 sm:$0xff]  }
  0xc3   : > { %1135 = vmatprep.subr.bf16.mxu1 %v9337_v4  ;;  %905 = vmatpush1.bf16.msra.mxu0 %v9344_v8  ;;  %v9350_v12 = vld [vmem:[#allocation9 + $0x60] ss:$8 sps:$4 sm:$0xff]   ;;  %v9352_v13 = vld [vmem:[#allocation9 + $0x54] ss:$8 sps:$4 sm:$0xff]   ;;  %v9356_v15 = vld [vmem:[#allocation9 + $0x50] ss:$8 sps:$4 sm:$0xff]  }
  0xc4   : > { %906 = vmatprep.subr.bf16.mxu0 %v9346_v9  ;;  %v9351_v14 = vld [vmem:[#allocation11 + $0x40] ss:$8 sps:$4 sm:$0xff]   ;;  %v9358_v16 = vld [vmem:[#allocation9 + $0x44] ss:$8 sps:$4 sm:$0xff]   ;;  %v9354_v17 = vld [vmem:[#allocation11 + $0x34] ss:$8 sps:$4 sm:$0xff]  }
  0xc5   : > { %v9362_v18 = vld [vmem:[#allocation9 + $0x40] ss:$8 sps:$4 sm:$0xff]   ;;  %v9357_v19 = vld [vmem:[#allocation11 + $0x30] ss:$8 sps:$4 sm:$0xff]   ;;  %v9364_v20 = vld [vmem:[#allocation9 + $0x34] ss:$8 sps:$4 sm:$0xff]  }
  0xc6   : > { %1136 = vmatpush1.bf16.msra.mxu1 %v9339_v5  ;;  %v9360_v21 = vld [vmem:[#allocation11 + $0x24] ss:$8 sps:$4 sm:$0xff]   ;;  %v9368_v22 = vld [vmem:[#allocation9 + $0x30] ss:$8 sps:$4 sm:$0xff]   ;;  %v9363_v23 = vld [vmem:[#allocation11 + $0x20] ss:$8 sps:$4 sm:$0xff]  }
  0xc7   : > { %1137 = vmatprep.subr.bf16.mxu1 %v9342_v7  ;;  %907 = vmatpush1.bf16.msra.mxu0 %v9350_v12  ;;  %v9370_v24 = vld [vmem:[#allocation9 + $0x24] ss:$8 sps:$4 sm:$0xff]   ;;  %v9366_v25 = vld [vmem:[#allocation11 + $0x14] ss:$8 sps:$4 sm:$0xff]   ;;  %v9374_v26 = vld [vmem:[#allocation9 + $0x20] ss:$8 sps:$4 sm:$0xff]  }
  0xc8   : > { %908 = vmatprep.subr.bf16.mxu0 %v9352_v13  ;;  %v9369_v27 = vld [vmem:[#allocation11 + $0x10] ss:$8 sps:$4 sm:$0xff]   ;;  %v9376_v28 = vld [vmem:[#allocation9 + $0x14] ss:$8 sps:$4 sm:$0xff]   ;;  %v9372_v29 = vld [vmem:[#allocation11 + $0x4] ss:$8 sps:$4 sm:$0xff]  }
  0xc9   : > { %v9375_v30 = vld [vmem:[#allocation11] ss:$8 sps:$4 sm:$0xff]   ;;  %v9378_v31 = vld [vmem:[#allocation9 + $0x10] ss:$8 sps:$4 sm:$0xff]   ;;  %v9379_v34 = vld [vmem:[#allocation9 + $0x4] ss:$8 sps:$4 sm:$0xff]  }
  0xca   : > { %1138 = vmatpush1.bf16.msra.mxu1 %v9345_v10  ;;  %v770_v32 = vld [vmem:[%s10545_s24] sm:$0xff]  ;;  %v771_v33 = vld [vmem:[%s10545_s24 + $0x8] sm:$0xff]  ;;  %v9381_v36 = vld [vmem:[#allocation9] ss:$8 sps:$4 sm:$0xff]   ;;  %vm10190_vm0 = vmmov 0   ;;  %vm1286_vm1 = vcmask 523264  }
  0xcb   : > { %1139 = vmatprep.subr.bf16.mxu1 %v9348_v11  ;;  %909 = vmatpush1.bf16.msra.mxu0 %v9356_v15  ;;  %v1033_v35 = vpack.c.bf16 %v771_v33, %v770_v32  ;;  %v754_v37 = vld [vmem:[%s10538_s18] sm:$0xff]  ;;  %v755_v38 = vld [vmem:[%s10538_s18 + $0x8] sm:$0xff]  ;;  %v773_v41 = vld [vmem:[%s10545_s24 + $0x18] sm:$0xff]  ;;  %vm1695_vm2 = vcmask 130048   ;;  %s10191_s0 = smov 64   ;;  %s13274_s3 = sld [smem:[#allocation40_spill]] }
  0xcc   : > { %910 = vmatprep.subr.bf16.mxu0 %v9358_v16  ;;  %v804_v39 = vpack.c.bf16 %v755_v38, %v754_v37  ;;  %v756_v42 = vld [vmem:[%s10538_s18 + $0x10] sm:$0xff]  ;;  %v757_v43 = vld [vmem:[%s10538_s18 + $0x18] sm:$0xff]  ;;  %v1034_v44 = vpack.c.bf16 %v773_v41, %v772_v40  ;;  %v774_v46 = vld [vmem:[%s10545_s24 + $0x20] sm:$0xff]  ;;  %s13275_s5 = sld [smem:[#allocation41_spill]]  ;;  %s8312_s11 = sshll.u32 %s10317_s23, 4 }
  0xcd   : > { %v805_v45 = vpack.c.bf16 %v757_v43, %v756_v42  ;;  %v775_v47 = vld [vmem:[%s10545_s24 + $0x28] sm:$0xff]  ;;  %v758_v48 = vld [vmem:[%s10538_s18 + $0x20] sm:$0xff]  ;;  %v776_v52 = vld [vmem:[%s10545_s24 + $0x30] sm:$0xff]  ;;  %s750_s13 = scalar_lea.vmem [#allocation17], %s10534_s26  ;;  %s13279_s29 = sld [smem:[#allocation43_spill]] }
  0xce   : > { %1140 = vmatpush1.bf16.msra.mxu1 %v9351_v14  ;;  %v759_v49 = vld [vmem:[%s10538_s18 + $0x28] sm:$0xff]  ;;  %v1035_v50 = vpack.c.bf16 %v775_v47, %v774_v46  ;;  %v777_v53 = vld [vmem:[%s10545_s24 + $0x38] sm:$0xff]  ;;  %v760_v54 = vld [vmem:[%s10538_s18 + $0x30] sm:$0xff]  ;;  %s7925_s28 = sshll.u32 %s750_s13, 4  ;;  %s7913_s20 = scalar_lea.sflag [#allocation5], %s10534_s26  ;;  %s7926_s28 = int_to_ptr.vmem [resolvable:$true] %s7925_s28 }
  0xcf   : > { %1141 = vmatprep.subr.bf16.mxu1 %v9354_v17  ;;  %911 = vmatpush1.bf16.msra.mxu0 %v9362_v18  ;;  %v806_v51 = vpack.c.bf16 %v759_v49, %v758_v48  ;;  %v761_v55 = vld [vmem:[%s10538_s18 + $0x38] sm:$0xff]  ;;  %v1036_v56 = vpack.c.bf16 %v777_v53, %v776_v52  ;;  %v778_v58 = vld [vmem:[%s10545_s24 + $0x40] sm:$0xff]  ;;  %v779_v59 = vld [vmem:[%s10545_s24 + $0x48] sm:$0xff]  ;;  %s10192_s19 = smov [#allocation17]  }
  0xd0   : > { %912 = vmatprep.subr.bf16.mxu0 %v9364_v20  ;;  %v807_v57 = vpack.c.bf16 %v761_v55, %v760_v54  ;;  %v762_v60 = vld [vmem:[%s10538_s18 + $0x40] sm:$0xff]  ;;  %v763_v61 = vld [vmem:[%s10538_s18 + $0x48] sm:$0xff]  ;;  %v1037_v62 = vpack.c.bf16 %v779_v59, %v778_v58  ;;  %v780_v0 = vld [vmem:[%s10545_s24 + $0x50] sm:$0xff]  ;;  %v814_v20 = vlaneseq  ;;  %s10094_s17 = sshll.u32 %s10192_s19, 4  ;;  %s10095_s17 = int_to_ptr.vmem [resolvable:$false] %s10094_s17 }
  0xd1   : > { %v808_v63 = vpack.c.bf16 %v763_v61, %v762_v60  ;;  %v781_v2 = vld [vmem:[%s10545_s24 + $0x58] sm:$0xff]  ;;  %v764_v4 = vld [vmem:[%s10538_s18 + $0x50] sm:$0xff]  ;;  %v782_v7 = vld [vmem:[%s10545_s24 + $0x60] sm:$0xff]  ;;  %s10096_s23 = scalar_lea.vmem %s10095_s17, 32  ;;  %p10097_p12 = scmp.lt.s32.totalorder %s7926_s28, %s10095_s17 }
  0xd2   : > { %1142 = vmatpush1.bf16.msra.mxu1 %v9357_v19  ;;  %v1038_v3 = vpack.c.bf16 %v781_v2, %v780_v0  ;;  %v765_v5 = vld [vmem:[%s10538_s18 + $0x58] sm:$0xff]  ;;  %v783_v8 = vld [vmem:[%s10545_s24 + $0x68] sm:$0xff]  ;;  %v766_v10 = vld [vmem:[%s10538_s18 + $0x60] sm:$0xff]  ;;  %v13218_v19 = vmov 0.0  }
  0xd3   : > { %1143 = vmatprep.subr.bf16.mxu1 %v9360_v21  ;;  %913 = vmatpush1.bf16.msra.mxu0 %v9368_v22  ;;  %v809_v6 = vpack.c.bf16 %v765_v5, %v764_v4  ;;  %v1039_v9 = vpack.c.bf16 %v783_v8, %v782_v7  ;;  %v767_v11 = vld [vmem:[%s10538_s18 + $0x68] sm:$0xff]  ;;  %v784_v13 = vld [vmem:[%s10545_s24 + $0x70] sm:$0xff]  ;;  %v785_v14 = vld [vmem:[%s10545_s24 + $0x78] sm:$0xff]  ;;  %v815_v21 = vshrl.u32 %v814_v20, 7  ;;  %s13140_s16 = scalar_lea.hbm %s13279_s29, %s8312_s11  ;;  %s10090_s24 = scalar_lea.vmem %s7926_s28, 16 }
  0xd4   : > { %914 = vmatprep.subr.bf16.mxu0 %v9370_v24  ;;  %v810_v12 = vpack.c.bf16 %v767_v11, %v766_v10  ;;  %v1040_v15 = vpack.c.bf16 %v785_v14, %v784_v13  ;;  %v768_v16 = vld [vmem:[%s10538_s18 + $0x70] sm:$0xff]  ;;  %v769_v17 = vld [vmem:[%s10538_s18 + $0x78] sm:$0xff]  ;;  %p10091_p5 = scmp.ne.s32.totalorder %s7926_s28, %s10090_s24  ;;  %p10098_p2 = scmp.lt.s32.totalorder %s10096_s23, %s10090_s24 }
  0xd5   : > { %v811_v18 = vpack.c.bf16 %v769_v17, %v768_v16  ;;  %v10621_v22 = vsub.s32 0, %v815_v21  ;;  %v812_v24 = vld [vmem:[%s13181_s4] sm:$0x3] }
  0xd6   : > { %1144 = vmatpush1.bf16.msra.mxu1 %v9363_v23  ;;  %v1041_v23 = vld [vmem:[%s13183_s6] sm:$0x3]  ;;  %p10099_p3 = por %p10098_p2, %p10097_p12 }
  0xd7   : > { %1145 = vmatprep.subr.bf16.mxu1 %v9366_v25  ;;  %915 = vmatpush1.bf16.msra.mxu0 %v9374_v26  ;;  %v10629_v26 = vsub.s32 1, %v815_v21  ;;  %v10647_v38 = vrot.slane %v812_v24, %v10621_v22 }
  0xd8   : > { %916 = vmatprep.subr.bf16.mxu0 %v9376_v28 }
  0xd9   : > { %v10669_v59 = vrot.slane %v1041_v23, %v10629_v26 }
  0xda   : > { %1146 = vmatpush1.bf16.msra.mxu1 %v9369_v27  ;;  %v10632_v27 = vrot.slane %v1041_v23, %v10621_v22 }
  0xdb   : > { %1147 = vmatprep.subr.bf16.mxu1 %v9372_v29  ;;  %917 = vmatpush1.bf16.msra.mxu0 %v9378_v31  ;;  %v10637_v29 = vrot.slane %v812_v24, %v10629_v26 }
  0xdc   : > { %918 = vmatprep.subr.bf16.mxu0 %v9379_v34 }
  0xde   : > { %1148 = vmatpush1.bf16.msra.mxu1 %v9375_v30 }
  0xdf   : > { %919 = vmatpush1.bf16.msra.mxu0 %v9381_v36  ;;  %8574 = vmatprep.subr.bf16.mxu1 %v13218_v19 }
  0xe0   : > { %8568 = vmatprep.subr.bf16.mxu0 %v13218_v19 }
  0xe1   : > { %1166 = vmatmul.mubr.bf16.vlgmr.msra.gmra.mxu1 %v1033_v35 }
  0xe2   : > { %1175 = vmatprep.mubr.bf16.mxu1 %v13216_v1  ;;  %937 = vmatmul.mubr.bf16.vlgmr.msra.gmra.mxu0 %v804_v39 }
  0xe3   : > { %946 = vmatprep.mubr.bf16.mxu0 %v13216_v1 }
  0xe9   : > { %1176 = vmatmul.mubr.bf16.gmra.mxu1 %v1034_v44 }
  0xea   : > { %1185 = vmatprep.mubr.bf16.mxu1 %v13216_v1  ;;  %947 = vmatmul.mubr.bf16.gmra.mxu0 %v805_v45 }
  0xeb   : > { %956 = vmatprep.mubr.bf16.mxu0 %v13216_v1 }
  0xf1   : > { %1186 = vmatmul.mubr.bf16.gmra.mxu1 %v1035_v50 }
  0xf2   : > { %1195 = vmatprep.mubr.bf16.mxu1 %v13216_v1  ;;  %957 = vmatmul.mubr.bf16.gmra.mxu0 %v806_v51 }
  0xf3   : > { %966 = vmatprep.mubr.bf16.mxu0 %v13216_v1 }
  0xf9   : > { %1196 = vmatmul.mubr.bf16.gmra.mxu1 %v1036_v56 }
  0xfa   : > { %1205 = vmatprep.mubr.bf16.mxu1 %v13216_v1  ;;  %967 = vmatmul.mubr.bf16.gmra.mxu0 %v807_v57 }
  0xfb   : > { %976 = vmatprep.mubr.bf16.mxu0 %v13216_v1 }
 0x101   : > { %1206 = vmatmul.mubr.bf16.gmra.mxu1 %v1037_v62 }
 0x102   : > { %1215 = vmatprep.mubr.bf16.mxu1 %v13216_v1  ;;  %977 = vmatmul.mubr.bf16.gmra.mxu0 %v808_v63 }
 0x103   : > { %986 = vmatprep.mubr.bf16.mxu0 %v13216_v1 }
 0x109   : > { %1216 = vmatmul.mubr.bf16.gmra.mxu1 %v1038_v3 }
 0x10a   : > { %1225 = vmatprep.mubr.bf16.mxu1 %v13216_v1  ;;  %987 = vmatmul.mubr.bf16.gmra.mxu0 %v809_v6 }
 0x10b   : > { %996 = vmatprep.mubr.bf16.mxu0 %v13216_v1 }
 0x111   : > { %1226 = vmatmul.mubr.bf16.gmra.mxu1 %v1039_v9 }
 0x112   : > { %1235 = vmatprep.mubr.bf16.mxu1 %v13216_v1  ;;  %997 = vmatmul.mubr.bf16.gmra.mxu0 %v810_v12 }
 0x113   : > { %1006 = vmatprep.mubr.bf16.mxu0 %v13216_v1 }
 0x119   : > { %1236 = vmatmul.mubr.bf16.gmra.mxu1 %v1040_v15 }
 0x11a   : > { %1007 = vmatmul.mubr.bf16.gmra.mxu0 %v811_v18  ;;  %8576 = vmatprep.mubr.msk.bf16.mxu1 %vm10190_vm0, %v13218_v19 }
 0x11b   : > { %8570 = vmatprep.mubr.msk.bf16.mxu0 %vm10190_vm0, %v13218_v19 }
 0x1a1   : > { %v1167_v25 = vpop.f32.mrf.mxu1 }
 0x1a2   : > { %v938_v30 = vpop.f32.mrf.mxu0  ;;  %v1168_v32 = vadd.f32 %v1167_v25, %v10632_v27 }
 0x1a3   : > { %v10634_v28 = vpop.f32.mrf.mxu1  ;;  %v939_v45 = vadd.f32 %v938_v30, %v10647_v38 }
 0x1a4   : > { %v940_v34 = vpop.f32.mrf.mxu0 }
 0x1a5   : > { %v1171_v31 = vpop.f32.mrf.mxu1  ;;  %v941_v36 = vadd.f32 %v940_v34, %v10637_v29 }
 0x1a6   : > { %v1172_v33 = vadd.f32 %v1171_v31, %v10632_v27  ;;  %v942_v39 = vpop.f32.mrf.mxu0 }
 0x1a7   : > { %v10641_v35 = vpop.f32.mrf.mxu1  ;;  %v943_v46 = vadd.f32 %v942_v39, %v10647_v38 }
 0x1a8   : > { %v10644_v37 = vpack.c.bf16 %v1172_v33, %v1168_v32  ;;  %v944_v42 = vpop.f32.mrf.mxu0 }
 0x1a9   : > { %v1177_v40 = vpop.f32.mrf.mxu1  ;;  %v945_v44 = vadd.f32 %v944_v42, %v10637_v29  ;;  %v10664_v55 = vpack.c.bf16 %v943_v46, %v939_v45 }
 0x1aa   : > { %v1291_v41 = vsel %vm1286_vm1, %v10644_v37, 0  ;;  %v948_v47 = vpop.f32.mrf.mxu0  ;;  %v1178_v50 = vadd.f32 %v1177_v40, %v10632_v27 }
 0x1ab   : > { %v10651_v43 = vpop.f32.mrf.mxu1  ;;  %8569 = vmatpush3.bf16.xpose.msra.mxu0 %v1291_v41  ;;  %v10657_v49 = vpack.c.bf16 %v945_v44, %v941_v36  ;;  %v949_v0 = vadd.f32 %v948_v47, %v10647_v38 }
 0x1ac   : > { %8580 = vmatprep.subr.bf16.mxu0 %v13218_v19  ;;  %v950_v52 = vpop.f32.mrf.mxu0 }
 0x1ad   : > { %v1181_v48 = vpop.f32.mrf.mxu1  ;;  %v951_v54 = vadd.f32 %v950_v52, %v10637_v29 }
 0x1ae   : > { %v1182_v51 = vadd.f32 %v1181_v48, %v10632_v27  ;;  %v952_v57 = vpop.f32.mrf.mxu0 }
 0x1af   : > { %v10661_v53 = vpop.f32.mrf.mxu1  ;;  %v953_v3 = vadd.f32 %v952_v57, %v10647_v38 }
 0x1b0   : > { %v10666_v56 = vpack.c.bf16 %v1182_v51, %v1178_v50  ;;  %v954_v61 = vpop.f32.mrf.mxu0 }
 0x1b1   : > { %v1187_v58 = vpop.f32.mrf.mxu1  ;;  %v955_v63 = vadd.f32 %v954_v61, %v10637_v29  ;;  %v10687_v12 = vpack.c.bf16 %v953_v3, %v949_v0 }
 0x1b2   : > { %8571 = vmatmul.mubr.msk.bf16.vlgmr.msra.gmra.mxu0 %vm1286_vm1, %v10664_v55  ;;  %v1338_v60 = vsel %vm1286_vm1, %v10666_v56, 0  ;;  %v958_v4 = vpop.f32.mrf.mxu0  ;;  %v1188_v7 = vadd.f32 %v1187_v58, %v10632_v27 }
 0x1b3   : > { %v1189_v62 = vpop.f32.mrf.mxu1  ;;  %8575 = vmatpush3.bf16.xpose.msra.mxu1 %v1338_v60  ;;  %8582 = vmatprep.mubr.msk.bf16.mxu0 %vm10190_vm0, %v13218_v19  ;;  %v10682_v6 = vpack.c.bf16 %v955_v63, %v951_v54  ;;  %v959_v24 = vadd.f32 %v958_v4, %v10647_v38 }
 0x1b4   : > { %v1190_v2 = vadd.f32 %v1189_v62, %v10669_v59  ;;  %8586 = vmatprep.subr.bf16.mxu1 %v13218_v19  ;;  %v960_v9 = vpop.f32.mrf.mxu0 }
 0x1b5   : > { %v1191_v5 = vpop.f32.mrf.mxu1  ;;  %v961_v11 = vadd.f32 %v960_v9, %v10637_v29 }
 0x1b6   : > { %v1192_v8 = vadd.f32 %v1191_v5, %v10632_v27  ;;  %v962_v15 = vpop.f32.mrf.mxu0 }
 0x1b7   : > { %v1193_v10 = vpop.f32.mrf.mxu1  ;;  %v963_v30 = vadd.f32 %v962_v15, %v10647_v38 }
 0x1b8   : > { %v10689_v13 = vpack.c.bf16 %v1192_v8, %v1188_v7  ;;  %v1194_v14 = vadd.f32 %v1193_v10, %v10669_v59  ;;  %v964_v20 = vpop.f32.mrf.mxu0 }
 0x1b9   : > { %v1197_v16 = vpop.f32.mrf.mxu1  ;;  %v965_v23 = vadd.f32 %v964_v20, %v10637_v29  ;;  %v10710_v42 = vpack.c.bf16 %v963_v30, %v959_v24 }
 0x1ba   : > { %v10692_v17 = vpack.c.bf16 %v1194_v14, %v1190_v2  ;;  %8577 = vmatmul.mubr.msk.bf16.vlgmr.msra.gmra.mxu1 %vm1286_vm1, %v10687_v12  ;;  %v1385_v18 = vsel %vm1286_vm1, %v10689_v13, 0  ;;  %v968_v31 = vpop.f32.mrf.mxu0  ;;  %v1198_v34 = vadd.f32 %v1197_v16, %v10632_v27 }
 0x1bb   : > { %v1199_v21 = vpop.f32.mrf.mxu1  ;;  %8581 = vmatpush3.bf16.xpose.msra.mxu0 %v1385_v18  ;;  %8588 = vmatprep.mubr.msk.bf16.mxu1 %vm10190_vm0, %v13218_v19  ;;  %v10705_v33 = vpack.c.bf16 %v965_v23, %v961_v11  ;;  %v969_v57 = vadd.f32 %v968_v31, %v10647_v38 }
 0x1bc   : > { %v1200_v25 = vadd.f32 %v1199_v21, %v10669_v59  ;;  %8592 = vmatprep.subr.bf16.mxu0 %v13218_v19  ;;  %v970_v39 = vpop.f32.mrf.mxu0 }
 0x1bd   : > { %v1201_v32 = vpop.f32.mrf.mxu1  ;;  %v971_v41 = vadd.f32 %v970_v39, %v10637_v29 }
 0x1be   : > { %v1202_v36 = vadd.f32 %v1201_v32, %v10632_v27  ;;  %v972_v46 = vpop.f32.mrf.mxu0 }
 0x1bf   : > { %v1203_v40 = vpop.f32.mrf.mxu1  ;;  %v973_v60 = vadd.f32 %v972_v46, %v10647_v38 }
 0x1c0   : > { %v10712_v44 = vpack.c.bf16 %v1202_v36, %v1198_v34  ;;  %v1204_v45 = vadd.f32 %v1203_v40, %v10669_v59  ;;  %v974_v51 = vpop.f32.mrf.mxu0 }
 0x1c1   : > { %v1207_v47 = vpop.f32.mrf.mxu1  ;;  %v975_v54 = vadd.f32 %v974_v51, %v10637_v29  ;;  %v10733_v7 = vpack.c.bf16 %v973_v60, %v969_v57 }
 0x1c2   : > { %v10715_v48 = vpack.c.bf16 %v1204_v45, %v1200_v25  ;;  %8583 = vmatmul.mubr.msk.bf16.vlgmr.msra.gmra.mxu0 %vm1286_vm1, %v10710_v42  ;;  %v1432_v50 = vsel %vm1286_vm1, %v10712_v44, 0  ;;  %v978_v61 = vpop.f32.mrf.mxu0  ;;  %v1208_v0 = vadd.f32 %v1207_v47, %v10632_v27 }
 0x1c3   : > { %v1209_v52 = vpop.f32.mrf.mxu1  ;;  %8587 = vmatpush3.bf16.xpose.msra.mxu1 %v1432_v50  ;;  %8594 = vmatprep.mubr.msk.bf16.mxu0 %vm10190_vm0, %v13218_v19  ;;  %v10728_v63 = vpack.c.bf16 %v975_v54, %v971_v41  ;;  %v979_v21 = vadd.f32 %v978_v61, %v10647_v38 }
 0x1c4   : > { %v1210_v58 = vadd.f32 %v1209_v52, %v10669_v59  ;;  %8598 = vmatprep.subr.bf16.mxu1 %v13218_v19  ;;  %v980_v3 = vpop.f32.mrf.mxu0 }
 0x1c5   : > { %v1211_v62 = vpop.f32.mrf.mxu1  ;;  %v981_v5 = vadd.f32 %v980_v3, %v10637_v29 }
 0x1c6   : > { %v1212_v2 = vadd.f32 %v1211_v62, %v10632_v27  ;;  %v982_v10 = vpop.f32.mrf.mxu0 }
 0x1c7   : > { %v1213_v4 = vpop.f32.mrf.mxu1  ;;  %v983_v24 = vadd.f32 %v982_v10, %v10647_v38 }
 0x1c8   : > { %v10735_v8 = vpack.c.bf16 %v1212_v2, %v1208_v0  ;;  %v1214_v9 = vadd.f32 %v1213_v4, %v10669_v59  ;;  %v984_v16 = vpop.f32.mrf.mxu0 }
 0x1c9   : > { %v1217_v11 = vpop.f32.mrf.mxu1  ;;  %v985_v20 = vadd.f32 %v984_v16, %v10637_v29  ;;  %v10756_v41 = vpack.c.bf16 %v983_v24, %v979_v21 }
 0x1ca   : > { %v10738_v14 = vpack.c.bf16 %v1214_v9, %v1210_v58  ;;  %8589 = vmatmul.mubr.msk.bf16.vlgmr.msra.gmra.mxu1 %vm1286_vm1, %v10733_v7  ;;  %v1479_v15 = vsel %vm1286_vm1, %v10735_v8, 0  ;;  %v988_v25 = vpop.f32.mrf.mxu0  ;;  %v1218_v32 = vadd.f32 %v1217_v11, %v10632_v27 }
 0x1cb   : > { %v1219_v18 = vpop.f32.mrf.mxu1  ;;  %8593 = vmatpush3.bf16.xpose.msra.mxu0 %v1479_v15  ;;  %8600 = vmatprep.mubr.msk.bf16.mxu1 %vm10190_vm0, %v13218_v19  ;;  %v10751_v31 = vpack.c.bf16 %v985_v20, %v981_v5  ;;  %v989_v60 = vadd.f32 %v988_v25, %v10647_v38 }
 0x1cc   : > { %v1220_v23 = vadd.f32 %v1219_v18, %v10669_v59  ;;  %8604 = vmatprep.subr.bf16.mxu0 %v13218_v19  ;;  %v990_v36 = vpop.f32.mrf.mxu0 }
 0x1cd   : > { %v1221_v30 = vpop.f32.mrf.mxu1  ;;  %v991_v40 = vadd.f32 %v990_v36, %v10637_v29 }
 0x1ce   : > { %v1222_v34 = vadd.f32 %v1221_v30, %v10632_v27  ;;  %v992_v47 = vpop.f32.mrf.mxu0 }
 0x1cf   : > { %v1223_v39 = vpop.f32.mrf.mxu1  ;;  %v993_v62 = vadd.f32 %v992_v47, %v10647_v38  ;;  %v1174_v47 = vadd.f32 %v10641_v35, %v10669_v59 }
 0x1d0   : > { %v10758_v45 = vpack.c.bf16 %v1222_v34, %v1218_v32  ;;  %v1224_v46 = vadd.f32 %v1223_v39, %v10669_v59  ;;  %v994_v54 = vpop.f32.mrf.mxu0 }
 0x1d1   : > { %v1227_v50 = vpop.f32.mrf.mxu1  ;;  %v995_v58 = vadd.f32 %v994_v54, %v10637_v29  ;;  %v10779_v15 = vpack.c.bf16 %v993_v62, %v989_v60 }
 0x1d2   : > { %v10761_v51 = vpack.c.bf16 %v1224_v46, %v1220_v23  ;;  %8595 = vmatmul.mubr.msk.bf16.vlgmr.msra.gmra.mxu0 %vm1286_vm1, %v10756_v41  ;;  %v1526_v52 = vsel %vm1286_vm1, %v10758_v45, 0  ;;  %v998_v0 = vpop.f32.mrf.mxu0  ;;  %v1228_v4 = vadd.f32 %v1227_v50, %v10632_v27 }
 0x1d3   : > { %v1229_v57 = vpop.f32.mrf.mxu1  ;;  %8599 = vmatpush3.bf16.xpose.msra.mxu1 %v1526_v52  ;;  %8606 = vmatprep.mubr.msk.bf16.mxu0 %vm10190_vm0, %v13218_v19  ;;  %v10774_v3 = vpack.c.bf16 %v995_v58, %v991_v40  ;;  %v999_v34 = vadd.f32 %v998_v0, %v10647_v38  ;;  %v1170_v58 = vadd.f32 %v10634_v28, %v10669_v59 }
 0x1d4   : > { %v1230_v61 = vadd.f32 %v1229_v57, %v10669_v59  ;;  %8610 = vmatprep.subr.bf16.mxu1 %v13218_v19  ;;  %v1000_v9 = vpop.f32.mrf.mxu0 }
 0x1d5   : > { %v1231_v2 = vpop.f32.mrf.mxu1  ;;  %v1001_v11 = vadd.f32 %v1000_v9, %v10637_v29  ;;  %v10811_v35 = vpack.c.bf16 %v1174_v47, %v1170_v58 }
 0x1d6   : > { %v1232_v5 = vadd.f32 %v1231_v2, %v10632_v27  ;;  %v1002_v20 = vpop.f32.mrf.mxu0 }
 0x1d7   : > { %v1233_v10 = vpop.f32.mrf.mxu1  ;;  %v1003_v40 = vadd.f32 %v1002_v20, %v10647_v38 }
 0x1d8   : > { %v10781_v16 = vpack.c.bf16 %v1232_v5, %v1228_v4  ;;  %v1234_v18 = vadd.f32 %v1233_v10, %v10669_v59  ;;  %v1004_v25 = vpop.f32.mrf.mxu0 }
 0x1d9   : > { %v1237_v21 = vpop.f32.mrf.mxu1  ;;  %v1005_v32 = vadd.f32 %v1004_v25, %v10637_v29  ;;  %v10806_v62 = vpack.c.bf16 %v1003_v40, %v999_v34 }
 0x1da   : > { %v10784_v23 = vpack.c.bf16 %v1234_v18, %v1230_v61  ;;  %8601 = vmatmul.mubr.msk.bf16.vlgmr.msra.gmra.mxu1 %vm1286_vm1, %v10779_v15  ;;  %v1573_v24 = vsel %vm1286_vm1, %v10781_v16, 0  ;;  %v1238_v36 = vadd.f32 %v1237_v21, %v10632_v27  ;;  %v1008_v46 = vpop.f32.mrf.mxu0  ;;  %v1184_v18 = vadd.f32 %v10661_v53, %v10669_v59  ;;  %v10843_v53 = vld [vmem:[#allocation8] sm:$0xff] }
 0x1db   : > { %v1239_v30 = vpop.f32.mrf.mxu1  ;;  %8605 = vmatpush3.bf16.xpose.msra.mxu0 %v1573_v24  ;;  %8612 = vmatprep.mubr.msk.bf16.mxu1 %vm10190_vm0, %v13218_v19  ;;  %v10800_v52 = vpack.c.bf16 %v1005_v32, %v1001_v11  ;;  %v1009_v5 = vadd.f32 %v1008_v46, %v10647_v38  ;;  %v1180_v21 = vadd.f32 %v10651_v43, %v10669_v59  ;;  %v10848_v32 = vld [vmem:[#allocation8 + $0x8] sm:$0xff] }
 0x1dc   : > { %v1240_v39 = vadd.f32 %v1239_v30, %v10669_v59  ;;  %8616 = vmatprep.subr.bf16.mxu0 %v13218_v19  ;;  %v1010_v57 = vpop.f32.mrf.mxu0 }
 0x1dd   : > { %v1241_v50 = vpop.f32.mrf.mxu1  ;;  %v1011_v60 = vadd.f32 %v1010_v57, %v10637_v29  ;;  %v10835_v24 = vpack.c.bf16 %v1184_v18, %v1180_v21 }
 0x1de   : > { %v1242_v54 = vadd.f32 %v1241_v50, %v10632_v27  ;;  %v1012_v2 = vpop.f32.mrf.mxu0 }
 0x1df   : > { %v1243_v61 = vpop.f32.mrf.mxu1  ;;  %v1013_v28 = vadd.f32 %v1012_v2, %v10647_v38 }
 0x1e0   : > { %v10808_v0 = vpack.c.bf16 %v1242_v54, %v1238_v36  ;;  %v1244_v4 = vadd.f32 %v1243_v61, %v10669_v59  ;;  %v1014_v10 = vpop.f32.mrf.mxu0 }
 0x1e1   : > { %v1015_v11 = vadd.f32 %v1014_v10, %v10637_v29  ;;  %v10831_v38 = vpack.c.bf16 %v1013_v28, %v1009_v5 }
 0x1e2   : > { %8607 = vmatmul.mubr.msk.bf16.vlgmr.msra.gmra.mxu0 %vm1286_vm1, %v10806_v62  ;;  %v1620_v27 = vsel %vm1286_vm1, %v10808_v0, 0  ;;  %v10819_v9 = vpack.c.bf16 %v1244_v4, %v1240_v39 }
 0x1e3   : > { %8611 = vmatpush3.bf16.xpose.msra.mxu1 %v1620_v27  ;;  %8617 = vmatpush3.bf16.msra.mxu0 %v10811_v35  ;;  %v10828_v20 = vpack.c.bf16 %v1015_v11, %v1011_v60 }
 0x1e4   : > { %8622 = vmatprep.subr.bf16.mxu1 %v13218_v19  ;;  %8618 = vmatprep.mubr.msk.bf16.mxu0 %vm10190_vm0, %v13218_v19 }
 0x1e5   : > { %13266 = vst [vmem:[#allocation31_spill] sm:$0xff] %v10828_v20  ;;  %8628 = vmatprep.subr.bf16.mxu0 %v13218_v19 }
 0x1ea   : > { %8613 = vmatmul.mubr.msk.bf16.vlgmr.msra.gmra.mxu1 %vm1286_vm1, %v10831_v38 }
 0x1eb   : > { %8623 = vmatpush3.bf16.msra.mxu1 %v10835_v24  ;;  %8624 = vmatprep.mubr.msk.bf16.mxu1 %vm10190_vm0, %v13218_v19 }
 0x1ec   : > { %8634 = vmatprep.subr.bf16.mxu1 %v13218_v19 }
 0x272   : > { %v1327_v29 = vpop.f32.mrf.mxu0 }
 0x273   : > { %v1663_v25 = vmul.f32 0.125, %v1327_v29 }
 0x274   : > { %v8572_v30 = vpop.f32.mrf.mxu0 }
 0x275   : > { %v10846_v43 = vadd.f32 %v1663_v25, %v10843_v53 }
 0x276   : > { %v1330_v59 = vpop.f32.mrf.mxu0 }
 0x277   : > { %v1664_v34 = vmul.f32 0.125, %v1330_v59  ;;  %v1696_v36 = vsel %vm1695_vm2, %v10846_v43, -inf }
 0x278   : > { %1697 = vmax.xlane.f32.xlu0 %v1696_v36  ;;  %v8573_v39 = vpop.f32.mrf.mxu0 }
 0x279   : > { %v10853_v40 = vadd.f32 %v1664_v34, %v10848_v32 }
 0x27a   : > { %v1374_v46 = vpop.f32.mrf.mxu1 }
 0x27b   : > { %v1665_v47 = vmul.f32 0.125, %v1374_v46  ;;  %v1699_v50 = vsel %vm1695_vm2, %v10853_v40, -inf }
 0x27c   : > { %v8578_v54 = vpop.f32.mrf.mxu1  ;;  %1700 = vmax.xlane.f32.xlu0 %v1699_v50 }
 0x27d   : > { %v10858_v57 = vadd.f32 %v1665_v47, %v10843_v53 }
 0x27e   : > { %v1377_v58 = vpop.f32.mrf.mxu1 }
 0x27f   : > { %v1666_v60 = vmul.f32 0.125, %v1377_v58  ;;  %v1702_v61 = vsel %vm1695_vm2, %v10858_v57, -inf }
 0x280   : > { %1703 = vmax.xlane.f32.xlu1 %v1702_v61  ;;  %v8579_v2 = vpop.f32.mrf.mxu1 }
 0x281   : > { %v10863_v4 = vadd.f32 %v1666_v60, %v10848_v32 }
 0x282   : > { %v1421_v5 = vpop.f32.mrf.mxu0 }
 0x283   : > { %v1667_v27 = vmul.f32 0.125, %v1421_v5  ;;  %v1705_v28 = vsel %vm1695_vm2, %v10863_v4, -inf }
 0x284   : > { %1706 = vmax.xlane.f32.xlu1 %v1705_v28  ;;  %v8584_v10 = vpop.f32.mrf.mxu0 }
 0x285   : > { %v10868_v11 = vadd.f32 %v1667_v27, %v10843_v53 }
 0x286   : > { %v1424_v18 = vpop.f32.mrf.mxu0 }
 0x287   : > { %v1668_v21 = vmul.f32 0.125, %v1424_v18  ;;  %v1708_v29 = vsel %vm1695_vm2, %v10868_v11, -inf }
 0x288   : > { %1709 = vmax.xlane.f32.xlu0 %v1708_v29  ;;  %v8585_v25 = vpop.f32.mrf.mxu0 }
 0x289   : > { %v10873_v30 = vadd.f32 %v1668_v21, %v10848_v32 }
 0x28a   : > { %v1468_v59 = vpop.f32.mrf.mxu1 }
 0x28b   : > { %v1669_v34 = vmul.f32 0.125, %v1468_v59  ;;  %v1711_v36 = vsel %vm1695_vm2, %v10873_v30, -inf }
 0x28c   : > { %v8590_v39 = vpop.f32.mrf.mxu1  ;;  %1712 = vmax.xlane.f32.xlu1 %v1711_v36 }
 0x28d   : > { %v10878_v46 = vadd.f32 %v1669_v34, %v10843_v53 }
 0x28e   : > { %v1471_v47 = vpop.f32.mrf.mxu1 }
 0x28f   : > { %v1670_v50 = vmul.f32 0.125, %v1471_v47  ;;  %v1714_v54 = vsel %vm1695_vm2, %v10878_v46, -inf }
 0x290   : > { %1715 = vmax.xlane.f32.xlu0 %v1714_v54  ;;  %v8591_v58 = vpop.f32.mrf.mxu1 }
 0x291   : > { %v10883_v60 = vadd.f32 %v1670_v50, %v10848_v32 }
 0x292   : > { %v1515_v61 = vpop.f32.mrf.mxu0 }
 0x293   : > { %v1671_v2 = vmul.f32 0.125, %v1515_v61  ;;  %v1717_v5 = vsel %vm1695_vm2, %v10883_v60, -inf }
 0x294   : > { %1718 = vmax.xlane.f32.xlu1 %v1717_v5  ;;  %v8596_v27 = vpop.f32.mrf.mxu0 }
 0x295   : > { %v10888_v28 = vadd.f32 %v1671_v2, %v10843_v53 }
 0x296   : > { %v1518_v10 = vpop.f32.mrf.mxu0 }
 0x297   : > { %v1672_v18 = vmul.f32 0.125, %v1518_v10  ;;  %v1720_v21 = vsel %vm1695_vm2, %v10888_v28, -inf }
 0x298   : > { %1721 = vmax.xlane.f32.xlu0 %v1720_v21  ;;  %v8597_v29 = vpop.f32.mrf.mxu0 }
 0x299   : > { %v10893_v25 = vadd.f32 %v1672_v18, %v10848_v32 }
 0x29a   : > { %v1562_v59 = vpop.f32.mrf.mxu1 }
 0x29b   : > { %v1673_v34 = vmul.f32 0.125, %v1562_v59  ;;  %v1723_v36 = vsel %vm1695_vm2, %v10893_v25, -inf }
 0x29c   : > { %v8602_v39 = vpop.f32.mrf.mxu1  ;;  %1724 = vmax.xlane.f32.xlu1 %v1723_v36 }
 0x29d   : > { %v10898_v47 = vadd.f32 %v1673_v34, %v10843_v53 }
 0x29e   : > { %v1565_v50 = vpop.f32.mrf.mxu1 }
 0x29f   : > { %v1674_v54 = vmul.f32 0.125, %v1565_v50  ;;  %v1726_v58 = vsel %vm1695_vm2, %v10898_v47, -inf }
 0x2a0   : > { %1727 = vmax.xlane.f32.xlu0 %v1726_v58  ;;  %v8603_v61 = vpop.f32.mrf.mxu1 }
 0x2a1   : > { %v10903_v2 = vadd.f32 %v1674_v54, %v10848_v32 }
 0x2a2   : > { %v1609_v5 = vpop.f32.mrf.mxu0 }
 0x2a3   : > { %v1675_v27 = vmul.f32 0.125, %v1609_v5  ;;  %v1729_v10 = vsel %vm1695_vm2, %v10903_v2, -inf }
 0x2a4   : > { %1730 = vmax.xlane.f32.xlu1 %v1729_v10  ;;  %v8608_v18 = vpop.f32.mrf.mxu0 }
 0x2a5   : > { %v10908_v21 = vadd.f32 %v1675_v27, %v10843_v53 }
 0x2a6   : > { %v1612_v29 = vpop.f32.mrf.mxu0 }
 0x2a7   : > { %v1676_v59 = vmul.f32 0.125, %v1612_v29  ;;  %v1732_v34 = vsel %vm1695_vm2, %v10908_v21, -inf }
 0x2a8   : > { %1733 = vmax.xlane.f32.xlu0 %v1732_v34  ;;  %v8609_v36 = vpop.f32.mrf.mxu0 }
 0x2a9   : > { %v10913_v39 = vadd.f32 %v1676_v59, %v10848_v32 }
 0x2aa   : > { %v1656_v50 = vpop.f32.mrf.mxu1 }
 0x2ab   : > { %v1677_v54 = vmul.f32 0.125, %v1656_v50  ;;  %v1735_v58 = vsel %vm1695_vm2, %v10913_v39, -inf }
 0x2ac   : > { %v8614_v61 = vpop.f32.mrf.mxu1  ;;  %1736 = vmax.xlane.f32.xlu1 %v1735_v58 }
 0x2ad   : > { %v10918_v5 = vadd.f32 %v1677_v54, %v10843_v53 }
 0x2ae   : > { %v1659_v27 = vpop.f32.mrf.mxu1 }
 0x2af   : > { %v1678_v10 = vmul.f32 0.125, %v1659_v27  ;;  %v1738_v18 = vsel %vm1695_vm2, %v10918_v5, -inf }
 0x2b0   : > { %1739 = vmax.xlane.f32.xlu0 %v1738_v18  ;;  %v8615_v29 = vpop.f32.mrf.mxu1 }
 0x2b1   : > { %v10923_v59 = vadd.f32 %v1678_v10, %v10848_v32 }
 0x2b3   : > { %v1741_v34 = vsel %vm1695_vm2, %v10923_v59, -inf }
 0x2b4   : > { %1742 = vmax.xlane.f32.xlu1 %v1741_v34 }
 0x301   : > { %v1698_v36 = vpop.xlane.xlu0 %1697 }
 0x302   : > { %v1744_v50 = vsub.f32 %v10846_v43, %v1698_v36 }
 0x304   : > { %v1760_v58 = vmul.f32 1.442695, %v1744_v50 }
 0x305   : > { %v1701_v54 = vpop.xlane.xlu0 %1700 }
 0x306   : > { %9454 = vpow2.f32 %v1760_v58  ;;  %v1745_v61 = vsub.f32 %v10853_v40, %v1701_v54 }
 0x308   : > { %v1762_v27 = vmul.f32 1.442695, %v1745_v61 }
 0x309   : > { %v1704_v1 = vpop.xlane.xlu1 %1703 }
 0x30a   : > { %9456 = vpow2.f32 %v1762_v27  ;;  %v1746_v18 = vsub.f32 %v10858_v57, %v1704_v1 }
 0x30c   : > { %v1764_v29 = vmul.f32 1.442695, %v1746_v18 }
 0x30d   : > { %v1707_v10 = vpop.xlane.xlu1 %1706 }
 0x30e   : > { %9458 = vpow2.f32 %v1764_v29  ;;  %v1747_v19 = vsub.f32 %v10863_v4, %v1707_v10 }
 0x310   : > { %v1766_v20 = vmul.f32 1.442695, %v1747_v19 }
 0x311   : > { %v1710_v34 = vpop.xlane.xlu0 %1709 }
 0x312   : > { %9460 = vpow2.f32 %v1766_v20  ;;  %v1748_v43 = vsub.f32 %v10868_v11, %v1710_v34 }
 0x313   : > { %v10932_v36 = vpop.eup %9454 }
 0x314   : > { %v1768_v50 = vmul.f32 1.442695, %v1748_v43  ;;  %v1792_v40 = vsel %vm1695_vm2, %v10932_v36, 0.0 }
 0x315   : > { %v1713_v58 = vpop.xlane.xlu1 %1712  ;;  %1793 = vadd.xlane.f32.xlu0 %v1792_v40 }
 0x316   : > { %9462 = vpow2.f32 %v1768_v50  ;;  %v1749_v1 = vsub.f32 %v10873_v30, %v1713_v58 }
 0x317   : > { %v10937_v57 = vpop.eup %9456 }
 0x318   : > { %v1770_v54 = vmul.f32 1.442695, %v1749_v1  ;;  %v1795_v19 = vsel %vm1695_vm2, %v10937_v57, 0.0 }
 0x319   : > { %v1716_v20 = vpop.xlane.xlu0 %1715  ;;  %1796 = vadd.xlane.f32.xlu1 %v1795_v19 }
 0x31a   : > { %9464 = vpow2.f32 %v1770_v54  ;;  %v1750_v4 = vsub.f32 %v10878_v46, %v1716_v20 }
 0x31b   : > { %v10942_v11 = vpop.eup %9458 }
 0x31c   : > { %v1772_v61 = vmul.f32 1.442695, %v1750_v4  ;;  %v1798_v27 = vsel %vm1695_vm2, %v10942_v11, 0.0 }
 0x31d   : > { %v1719_v18 = vpop.xlane.xlu1 %1718  ;;  %1799 = vadd.xlane.f32.xlu0 %v1798_v27 }
 0x31e   : > { %9466 = vpow2.f32 %v1772_v61  ;;  %v1751_v30 = vsub.f32 %v10883_v60, %v1719_v18 }
 0x31f   : > { %v10947_v29 = vpop.eup %9460 }
 0x320   : > { %v1774_v10 = vmul.f32 1.442695, %v1751_v30  ;;  %v1801_v34 = vsel %vm1695_vm2, %v10947_v29, 0.0 }
 0x321   : > { %v1722_v43 = vpop.xlane.xlu0 %1721  ;;  %1802 = vadd.xlane.f32.xlu1 %v1801_v34 }
 0x322   : > { %9468 = vpow2.f32 %v1774_v10  ;;  %v1752_v46 = vsub.f32 %v10888_v28, %v1722_v43 }
 0x323   : > { %v10952_v50 = vpop.eup %9462 }
 0x324   : > { %v1776_v40 = vmul.f32 1.442695, %v1752_v46  ;;  %v1804_v58 = vsel %vm1695_vm2, %v10952_v50, 0.0 }
 0x325   : > { %v1725_v1 = vpop.xlane.xlu1 %1724  ;;  %1805 = vadd.xlane.f32.xlu0 %v1804_v58 }
 0x326   : > { %9470 = vpow2.f32 %v1776_v40  ;;  %v1753_v60 = vsub.f32 %v10893_v25, %v1725_v1 }
 0x327   : > { %v10957_v54 = vpop.eup %9464 }
 0x328   : > { %v1778_v19 = vmul.f32 1.442695, %v1753_v60  ;;  %v1807_v20 = vsel %vm1695_vm2, %v10957_v54, 0.0 }
 0x329   : > { %v1728_v4 = vpop.xlane.xlu0 %1727  ;;  %1808 = vadd.xlane.f32.xlu1 %v1807_v20 }
 0x32a   : > { %9472 = vpow2.f32 %v1778_v19  ;;  %v1754_v28 = vsub.f32 %v10898_v47, %v1728_v4 }
 0x32b   : > { %v10962_v61 = vpop.eup %9466 }
 0x32c   : > { %v1780_v27 = vmul.f32 1.442695, %v1754_v28  ;;  %v1810_v18 = vsel %vm1695_vm2, %v10962_v61, 0.0 }
 0x32d   : > { %v1731_v30 = vpop.xlane.xlu1 %1730  ;;  %1811 = vadd.xlane.f32.xlu0 %v1810_v18 }
 0x32e   : > { %9474 = vpow2.f32 %v1780_v27  ;;  %v1755_v25 = vsub.f32 %v10903_v2, %v1731_v30 }
 0x32f   : > { %v10967_v10 = vpop.eup %9468 }
 0x330   : > { %v1782_v34 = vmul.f32 1.442695, %v1755_v25  ;;  %v1813_v43 = vsel %vm1695_vm2, %v10967_v10, 0.0 }
 0x331   : > { %v1734_v46 = vpop.xlane.xlu0 %1733  ;;  %1814 = vadd.xlane.f32.xlu1 %v1813_v43 }
 0x332   : > { %9476 = vpow2.f32 %v1782_v34  ;;  %v1756_v47 = vsub.f32 %v10908_v21, %v1734_v46 }
 0x333   : > { %v10972_v40 = vpop.eup %9470 }
 0x334   : > { %v1784_v58 = vmul.f32 1.442695, %v1756_v47  ;;  %v1816_v1 = vsel %vm1695_vm2, %v10972_v40, 0.0 }
 0x335   : > { %1817 = vadd.xlane.f32.xlu0 %v1816_v1  ;;  %v1737_v60 = vpop.xlane.xlu1 %1736 }
 0x336   : > { %9478 = vpow2.f32 %v1784_v58  ;;  %v1757_v2 = vsub.f32 %v10913_v39, %v1737_v60 }
 0x337   : > { %v10977_v19 = vpop.eup %9472 }
 0x338   : > { %v1786_v20 = vmul.f32 1.442695, %v1757_v2  ;;  %v1819_v4 = vsel %vm1695_vm2, %v10977_v19, 0.0 }
 0x339   : > { %v1740_v28 = vpop.xlane.xlu0 %1739  ;;  %1820 = vadd.xlane.f32.xlu1 %v1819_v4 }
 0x33a   : > { %9480 = vpow2.f32 %v1786_v20  ;;  %v1758_v21 = vsub.f32 %v10918_v5, %v1740_v28 }
 0x33b   : > { %v10982_v27 = vpop.eup %9474 }
 0x33c   : > { %v1788_v18 = vmul.f32 1.442695, %v1758_v21  ;;  %v1822_v30 = vsel %vm1695_vm2, %v10982_v27, 0.0 }
 0x33d   : > { %1823 = vadd.xlane.f32.xlu0 %v1822_v30  ;;  %v1743_v1 = vpop.xlane.xlu1 %1742 }
 0x33e   : > { %9482 = vpow2.f32 %v1788_v18  ;;  %v1759_v60 = vsub.f32 %v10923_v59, %v1743_v1  ;;  %v13267_v59 = vmov 0.0  }
 0x33f   : > { %v10986_v39 = vpop.eup %9476 }
 0x340   : > { %v1825_v25 = vsel %vm1695_vm2, %v10986_v39, 0.0  ;;  %v1790_v2 = vmul.f32 1.442695, %v1759_v60 }
 0x341   : > { %1826 = vadd.xlane.f32.xlu1 %v1825_v25 }
 0x342   : > { %9484 = vpow2.f32 %v1790_v2 }
 0x343   : > { %v10990_v34 = vpop.eup %9478 }
 0x344   : > { %v1828_v43 = vsel %vm1695_vm2, %v10990_v34, 0.0 }
 0x345   : > { %1829 = vadd.xlane.f32.xlu0 %v1828_v43 }
 0x347   : > { %v10994_v5 = vpop.eup %9480 }
 0x348   : > { %v1831_v46 = vsel %vm1695_vm2, %v10994_v5, 0.0 }
 0x349   : > { %1832 = vadd.xlane.f32.xlu1 %v1831_v46 }
 0x34b   : > { %v10998_v47 = vpop.eup %9482 }
 0x34c   : > { %v1834_v58 = vsel %vm1695_vm2, %v10998_v47, 0.0 }
 0x34d   : > { %1835 = vadd.xlane.f32.xlu0 %v1834_v58 }
 0x35a   : > { %2297 = vrot.lane.b32.xlu1 %v10666_v56, %s10191_s0 }
 0x363   : > { %2244 = vrot.lane.b32.xlu0 %v10644_v37, %s10191_s0  ;;  %v11017_v37 = vpop.eup %9484 }
 0x364   : > { %v1837_v56 = vsel %vm1695_vm2, %v11017_v37, 0.0 }
 0x367   : > { %2350 = vrot.lane.b32.xlu0 %v10689_v13, %s10191_s0 }
 0x36b   : > { %2347 = vrot.lane.b32.xlu0 %v10710_v42, %s10191_s0 }
 0x36f   : > { %2456 = vrot.lane.b32.xlu0 %v10735_v8, %s10191_s0 }
 0x373   : > { %2453 = vrot.lane.b32.xlu0 %v10756_v41, %s10191_s0 }
 0x377   : > { %2562 = vrot.lane.b32.xlu0 %v10781_v16, %s10191_s0 }
 0x37b   : > { %2559 = vrot.lane.b32.xlu0 %v10806_v62, %s10191_s0 }
 0x37e   : > { %1838 = vadd.xlane.f32.xlu1 %v1837_v56 }
 0x38f   : > { %2241 = vrot.lane.b32.xlu1 %v10664_v55, %s10191_s0 }
 0x393   : > { %2294 = vrot.lane.b32.xlu1 %v10687_v12, %s10191_s0 }
 0x397   : > { %2403 = vrot.lane.b32.xlu1 %v10712_v44, %s10191_s0 }
 0x39b   : > { %2400 = vrot.lane.b32.xlu1 %v10733_v7, %s10191_s0 }
 0x39e   : > { %v1794_v13 = vpop.xlane.xlu0 %1793 }
 0x39f   : > { %2509 = vrot.lane.b32.xlu1 %v10758_v45, %s10191_s0  ;;  %9486 = vrcp.f32 %v1794_v13 }
 0x3a2   : > { %v1797_v42 = vpop.xlane.xlu1 %1796 }
 0x3a3   : > { %9488 = vrcp.f32 %v1797_v42  ;;  %2506 = vrot.lane.b32.xlu1 %v10779_v15, %s10191_s0 }
 0x3a6   : > { %v1800_v55 = vpop.xlane.xlu0 %1799 }
 0x3a7   : > { %2615 = vrot.lane.b32.xlu1 %v10808_v0, %s10191_s0  ;;  %9490 = vrcp.f32 %v1800_v55 }
 0x3aa   : > { %v1803_v12 = vpop.xlane.xlu1 %1802 }
 0x3ab   : > { %9492 = vrcp.f32 %v1803_v12  ;;  %2612 = vrot.lane.b32.xlu1 %v10831_v38, %s10191_s0 }
 0x3ac   : > { %v9487_v44 = vpop.eup %9486 }
 0x3ad   : > { %v1856_v41 = vmul.f32 %v9487_v44, %v10932_v36 }
 0x3ae   : > { %v1806_v7 = vpop.xlane.xlu0 %1805 }
 0x3af   : > { %9494 = vrcp.f32 %v1806_v7 }
 0x3b0   : > { %v9489_v8 = vpop.eup %9488 }
 0x3b1   : > { %v1857_v45 = vmul.f32 %v9489_v8, %v10937_v57 }
 0x3b2   : > { %v1809_v16 = vpop.xlane.xlu1 %1808 }
 0x3b3   : > { %9496 = vrcp.f32 %v1809_v16  ;;  %v1872_v15 = vpack.c.bf16 %v1857_v45, %v1856_v41 }
 0x3b4   : > { %v9491_v62 = vpop.eup %9490 }
 0x3b5   : > { %8619 = vmatmul.mubr.msk.bf16.vlgmr.msra.gmra.mxu0 %vm1695_vm2, %v1872_v15  ;;  %v1858_v36 = vmul.f32 %v9491_v62, %v10942_v11 }
 0x3b6   : > { %8629 = vmatpush3.bf16.msra.mxu0 %v10692_v17  ;;  %v1812_v0 = vpop.xlane.xlu0 %1811  ;;  %8630 = vmatprep.mubr.msk.bf16.mxu0 %vm10190_vm0, %v13267_v59 }
 0x3b7   : > { %8640 = vmatprep.subr.bf16.mxu0 %v13267_v59  ;;  %9498 = vrcp.f32 %v1812_v0 }
 0x3b8   : > { %v9493_v38 = vpop.eup %9492 }
 0x3b9   : > { %v1859_v57 = vmul.f32 %v9493_v38, %v10947_v29 }
 0x3ba   : > { %v1815_v20 = vpop.xlane.xlu1 %1814 }
 0x3bb   : > { %9500 = vrcp.f32 %v1815_v20  ;;  %v1873_v4 = vpack.c.bf16 %v1859_v57, %v1858_v36 }
 0x3bc   : > { %v9495_v28 = vpop.eup %9494 }
 0x3bd   : > { %8625 = vmatmul.mubr.msk.bf16.vlgmr.msra.gmra.mxu1 %vm1695_vm2, %v1873_v4  ;;  %v1860_v11 = vmul.f32 %v9495_v28, %v10952_v50 }
 0x3be   : > { %8635 = vmatpush3.bf16.msra.mxu1 %v10715_v48  ;;  %v1818_v21 = vpop.xlane.xlu0 %1817  ;;  %8636 = vmatprep.mubr.msk.bf16.mxu1 %vm10190_vm0, %v13267_v59 }
 0x3bf   : > { %8646 = vmatprep.subr.bf16.mxu1 %v13267_v59  ;;  %9502 = vrcp.f32 %v1818_v21 }
 0x3c0   : > { %v9497_v18 = vpop.eup %9496 }
 0x3c1   : > { %v1861_v29 = vmul.f32 %v9497_v18, %v10957_v54 }
 0x3c2   : > { %v1821_v30 = vpop.xlane.xlu1 %1820 }
 0x3c3   : > { %9504 = vrcp.f32 %v1821_v30  ;;  %v1874_v25 = vpack.c.bf16 %v1861_v29, %v1860_v11 }
 0x3c4   : > { %v9499_v43 = vpop.eup %9498 }
 0x3c5   : > { %8631 = vmatmul.mubr.msk.bf16.vlgmr.msra.gmra.mxu0 %vm1695_vm2, %v1874_v25  ;;  %v1862_v50 = vmul.f32 %v9499_v43, %v10962_v61 }
 0x3c6   : > { %8641 = vmatpush3.bf16.msra.mxu0 %v10738_v14  ;;  %v1824_v46 = vpop.xlane.xlu0 %1823  ;;  %8642 = vmatprep.mubr.msk.bf16.mxu0 %vm10190_vm0, %v13267_v59 }
 0x3c7   : > { %8652 = vmatprep.subr.bf16.mxu0 %v13267_v59  ;;  %9506 = vrcp.f32 %v1824_v46 }
 0x3c8   : > { %v9501_v58 = vpop.eup %9500 }
 0x3c9   : > { %v1863_v54 = vmul.f32 %v9501_v58, %v10967_v10 }
 0x3ca   : > { %v1827_v1 = vpop.xlane.xlu1 %1826 }
 0x3cb   : > { %9508 = vrcp.f32 %v1827_v1  ;;  %v1875_v60 = vpack.c.bf16 %v1863_v54, %v1862_v50 }
 0x3cc   : > { %v9503_v2 = vpop.eup %9502 }
 0x3cd   : > { %8637 = vmatmul.mubr.msk.bf16.vlgmr.msra.gmra.mxu1 %vm1695_vm2, %v1875_v60  ;;  %v1864_v61 = vmul.f32 %v9503_v2, %v10972_v40 }
 0x3ce   : > { %8647 = vmatpush3.bf16.msra.mxu1 %v10761_v51  ;;  %v1830_v56 = vpop.xlane.xlu0 %1829  ;;  %8648 = vmatprep.mubr.msk.bf16.mxu1 %vm10190_vm0, %v13267_v59 }
 0x3cf   : > { %8658 = vmatprep.subr.bf16.mxu1 %v13267_v59  ;;  %9510 = vrcp.f32 %v1830_v56 }
 0x3d0   : > { %v9505_v13 = vpop.eup %9504 }
 0x3d1   : > { %v1865_v10 = vmul.f32 %v9505_v13, %v10977_v19 }
 0x3d2   : > { %v1833_v42 = vpop.xlane.xlu1 %1832 }
 0x3d3   : > { %9512 = vrcp.f32 %v1833_v42  ;;  %v1876_v55 = vpack.c.bf16 %v1865_v10, %v1864_v61 }
 0x3d4   : > { %v9507_v12 = vpop.eup %9506 }
 0x3d5   : > { %8643 = vmatmul.mubr.msk.bf16.vlgmr.msra.gmra.mxu0 %vm1695_vm2, %v1876_v55  ;;  %v1866_v7 = vmul.f32 %v9507_v12, %v10982_v27 }
 0x3d6   : > { %8653 = vmatpush3.bf16.msra.mxu0 %v10784_v23  ;;  %8654 = vmatprep.mubr.msk.bf16.mxu0 %vm10190_vm0, %v13267_v59  ;;  %v1836_v19 = vpop.xlane.xlu0 %1835  ;;  %v2298_v38 = vpop.permute.xlu1 %2297 }
 0x3d7   : > { %8664 = vmatprep.subr.bf16.mxu0 %v13267_v59  ;;  %9514 = vrcp.f32 %v1836_v19  ;;  %v2303_v58 = vsel %vm1286_vm1, %v2298_v38, 0 }
 0x3d8   : > { %v9509_v44 = vpop.eup %9508 }
 0x3d9   : > { %v1867_v40 = vmul.f32 %v9509_v44, %v10986_v39 }
 0x3da   : > { %v2245_v27 = vpop.permute.xlu0 %2244 }
 0x3db   : > { %v1877_v8 = vpack.c.bf16 %v1867_v40, %v1866_v7  ;;  %v2250_v39 = vsel %vm1286_vm1, %v2245_v27, 0 }
 0x3dc   : > { %v9511_v41 = vpop.eup %9510 }
 0x3dd   : > { %8649 = vmatmul.mubr.msk.bf16.vlgmr.msra.gmra.mxu1 %vm1695_vm2, %v1877_v8  ;;  %v1868_v16 = vmul.f32 %v9511_v41, %v10990_v34 }
 0x3de   : > { %8659 = vmatpush3.bf16.msra.mxu1 %v10819_v9  ;;  %8660 = vmatprep.mubr.msk.bf16.mxu1 %vm10190_vm0, %v13267_v59  ;;  %v2351_v0 = vpop.permute.xlu0 %2350 }
 0x3df   : > { %8670 = vmatprep.subr.bf16.mxu1 %v13267_v59 }
 0x3e0   : > { %v9513_v45 = vpop.eup %9512 }
 0x3e1   : > { %v1869_v15 = vmul.f32 %v9513_v45, %v10994_v5  ;;  %v2356_v5 = vsel %vm1286_vm1, %v2351_v0, 0 }
 0x3e2   : > { %v2348_v36 = vpop.permute.xlu0 %2347 }
 0x3e3   : > { %v1878_v62 = vpack.c.bf16 %v1869_v15, %v1868_v16 }
 0x3e4   : > { %v9515_v28 = vpop.eup %9514 }
 0x3e5   : > { %8655 = vmatmul.mubr.msk.bf16.vlgmr.msra.gmra.mxu0 %vm1695_vm2, %v1878_v62  ;;  %v1870_v29 = vmul.f32 %v9515_v28, %v10998_v47 }
 0x3e6   : > { %8665 = vmatpush3.bf16.xpose.msra.mxu0 %v2250_v39  ;;  %8666 = vmatprep.mubr.msk.bf16.mxu0 %vm10190_vm0, %v13267_v59  ;;  %v2457_v20 = vpop.permute.xlu0 %2456 }
 0x3e7   : > { %8676 = vmatprep.subr.bf16.mxu0 %v13267_v59  ;;  %v2462_v18 = vsel %vm1286_vm1, %v2457_v20, 0 }
 0x3ea   : > { %v2454_v21 = vpop.permute.xlu0 %2453 }
 0x3ee   : > { %v2563_v46 = vpop.permute.xlu0 %2562 }
 0x3ef   : > { %v2568_v50 = vsel %vm1286_vm1, %v2563_v46, 0 }
 0x3f2   : > { %v2560_v54 = vpop.permute.xlu0 %2559 }
 0x407   : > { %v1839_v57 = vpop.xlane.xlu1 %1838 }
 0x408   : > { %9516 = vrcp.f32 %v1839_v57 }
 0x40b   : > { %v2242_v34 = vpop.permute.xlu1 %2241 }
 0x40c   : > { %8667 = vmatmul.mubr.msk.bf16.vlgmr.msra.gmra.mxu0 %vm1286_vm1, %v2242_v34 }
 0x40d   : > { %8677 = vmatpush3.bf16.xpose.msra.mxu0 %v2356_v5  ;;  %8678 = vmatprep.mubr.msk.bf16.mxu0 %vm10190_vm0, %v13267_v59 }
 0x40e   : > { %8688 = vmatprep.subr.bf16.mxu0 %v13267_v59 }
 0x40f   : > { %v2295_v4 = vpop.permute.xlu1 %2294 }
 0x413   : > { %v2404_v25 = vpop.permute.xlu1 %2403 }
 0x414   : > { %8679 = vmatmul.mubr.msk.bf16.vlgmr.msra.gmra.mxu0 %vm1286_vm1, %v2348_v36 }
 0x415   : > { %v9517_v11 = vpop.eup %9516  ;;  %8689 = vmatpush3.bf16.xpose.msra.mxu0 %v2462_v18  ;;  %8690 = vmatprep.mubr.msk.bf16.mxu0 %vm10190_vm0, %v13267_v59 }
 0x416   : > { %v1871_v30 = vmul.f32 %v9517_v11, %v11017_v37  ;;  %8700 = vmatprep.subr.bf16.mxu0 %v13267_v59  ;;  %v2409_v37 = vsel %vm1286_vm1, %v2404_v25, 0 }
 0x417   : > { %v2401_v47 = vpop.permute.xlu1 %2400 }
 0x418   : > { %v1879_v43 = vpack.c.bf16 %v1871_v30, %v1870_v29 }
 0x41a   : > { %8661 = vmatmul.mubr.msk.bf16.vlgmr.msra.gmra.mxu1 %vm1695_vm2, %v1879_v43 }
 0x41b   : > { %8671 = vmatpush3.bf16.xpose.msra.mxu1 %v2303_v58  ;;  %8672 = vmatprep.mubr.msk.bf16.mxu1 %vm10190_vm0, %v13267_v59  ;;  %v2510_v1 = vpop.permute.xlu1 %2509 }
 0x41c   : > { %8691 = vmatmul.mubr.msk.bf16.vlgmr.msra.gmra.mxu0 %vm1286_vm1, %v2454_v21  ;;  %8682 = vmatprep.subr.bf16.mxu1 %v13267_v59  ;;  %v2515_v2 = vsel %vm1286_vm1, %v2510_v1, 0 }
 0x41d   : > { %8701 = vmatpush3.bf16.xpose.msra.mxu0 %v2568_v50  ;;  %8702 = vmatprep.mubr.msk.bf16.mxu0 %vm10190_vm0, %v13267_v59 }
 0x41e   : > { %8712 = vmatprep.subr.bf16.mxu0 %v13267_v59 }
 0x41f   : > { %v2507_v60 = vpop.permute.xlu1 %2506 }
 0x422   : > { %8673 = vmatmul.mubr.msk.bf16.vlgmr.msra.gmra.mxu1 %vm1286_vm1, %v2295_v4 }
 0x423   : > { %8683 = vmatpush3.bf16.xpose.msra.mxu1 %v2409_v37  ;;  %8684 = vmatprep.mubr.msk.bf16.mxu1 %vm10190_vm0, %v13267_v59  ;;  %v2616_v56 = vpop.permute.xlu1 %2615 }
 0x424   : > { %8703 = vmatmul.mubr.msk.bf16.vlgmr.msra.gmra.mxu0 %vm1286_vm1, %v2560_v54  ;;  %8694 = vmatprep.subr.bf16.mxu1 %v13267_v59  ;;  %v2621_v13 = vsel %vm1286_vm1, %v2616_v56, 0 }
 0x425   : > { %8714 = vmatprep.mubr.msk.bf16.mxu0 %vm10190_vm0, %v13267_v59 }
 0x427   : > { %v2613_v61 = vpop.permute.xlu1 %2612 }
 0x42a   : > { %8685 = vmatmul.mubr.msk.bf16.vlgmr.msra.gmra.mxu1 %vm1286_vm1, %v2401_v47 }
 0x42b   : > { %8695 = vmatpush3.bf16.xpose.msra.mxu1 %v2515_v2  ;;  %8696 = vmatprep.mubr.msk.bf16.mxu1 %vm10190_vm0, %v13267_v59 }
 0x42c   : > { %8706 = vmatprep.subr.bf16.mxu1 %v13267_v59 }
 0x432   : > { %8697 = vmatmul.mubr.msk.bf16.vlgmr.msra.gmra.mxu1 %vm1286_vm1, %v2507_v60 }
 0x433   : > { %8707 = vmatpush3.bf16.xpose.msra.mxu1 %v2621_v13  ;;  %8708 = vmatprep.mubr.msk.bf16.mxu1 %vm10190_vm0, %v13267_v59 }
 0x434   : > { %8718 = vmatprep.subr.bf16.mxu1 %v13267_v59 }
 0x43a   : > { %8709 = vmatmul.mubr.msk.bf16.vlgmr.msra.gmra.mxu1 %vm1286_vm1, %v2613_v61 }
 0x43b   : > { %8720 = vmatprep.mubr.msk.bf16.mxu1 %vm10190_vm0, %v13267_v59 }
 0x475   : > { %v11131_v10 = vpop.f32.mrf.mxu0 }
 0x477   : > { %v8620_v42 = vpop.f32.mrf.mxu0 }
 0x479   : > { %v11133_v55 = vpop.f32.mrf.mxu0 }
 0x47a   : > { %v2232_v12 = vpack.c.bf16 %v11133_v55, %v11131_v10 }
 0x47b   : > { %v8621_v44 = vpop.f32.mrf.mxu0 }
 0x47d   : > { %v11137_v7 = vpop.f32.mrf.mxu1 }
 0x47f   : > { %v8626_v40 = vpop.f32.mrf.mxu1 }
 0x481   : > { %v11139_v8 = vpop.f32.mrf.mxu1 }
 0x482   : > { %v2233_v19 = vpack.c.bf16 %v11139_v8, %v11137_v7 }
 0x483   : > { %v8627_v41 = vpop.f32.mrf.mxu1 }
 0x485   : > { %v11143_v45 = vpop.f32.mrf.mxu0 }
 0x487   : > { %v8632_v16 = vpop.f32.mrf.mxu0 }
 0x489   : > { %v11145_v15 = vpop.f32.mrf.mxu0 }
 0x48a   : > { %v2234_v27 = vpack.c.bf16 %v11145_v15, %v11143_v45 }
 0x48b   : > { %v8633_v62 = vpop.f32.mrf.mxu0 }
 0x48d   : > { %v11149_v39 = vpop.f32.mrf.mxu1 }
 0x48f   : > { %v8638_v0 = vpop.f32.mrf.mxu1 }
 0x491   : > { %v11151_v38 = vpop.f32.mrf.mxu1 }
 0x492   : > { %v13268_v10 = vpack.c.bf16 %v11151_v38, %v11149_v39 }
 0x493   : > { %v8639_v57 = vpop.f32.mrf.mxu1 }
 0x495   : > { %v11155_v34 = vpop.f32.mrf.mxu0 }
 0x497   : > { %v8644_v5 = vpop.f32.mrf.mxu0 }
 0x499   : > { %v11157_v20 = vpop.f32.mrf.mxu0 }
 0x49a   : > { %v13269_v55 = vpack.c.bf16 %v11157_v20, %v11155_v34 }
 0x49b   : > { %v8645_v28 = vpop.f32.mrf.mxu0 }
 0x49d   : > { %v11161_v21 = vpop.f32.mrf.mxu1 }
 0x49f   : > { %v8650_v18 = vpop.f32.mrf.mxu1 }
 0x4a1   : > { %v11163_v11 = vpop.f32.mrf.mxu1 }
 0x4a3   : > { %v8651_v30 = vpop.f32.mrf.mxu1 }
 0x4a5   : > { %v11167_v25 = vpop.f32.mrf.mxu0 }
 0x4a7   : > { %v8656_v43 = vpop.f32.mrf.mxu0 }
 0x4a9   : > { %v11169_v46 = vpop.f32.mrf.mxu0 }
 0x4aa   : > { %v13271_v7 = vpack.c.bf16 %v11169_v46, %v11167_v25 }
 0x4ab   : > { %v8657_v50 = vpop.f32.mrf.mxu0 }
 0x4cc   : > { %v2286_v47 = vpop.f32.mrf.mxu0 }
 0x4cd   : > { %v2664_v37 = vmul.f32 0.125, %v2286_v47 }
 0x4ce   : > { %v8668_v54 = vpop.f32.mrf.mxu0 }
 0x4cf   : > { %v11174_v1 = vadd.f32 %v2664_v37, %v10843_v53 }
 0x4d0   : > { %v2289_v60 = vpop.f32.mrf.mxu0 }
 0x4d1   : > { %v2665_v2 = vmul.f32 0.125, %v2289_v60  ;;  %v2696_v56 = vsel %vm1695_vm2, %v11174_v1, -inf }
 0x4d2   : > { %2697 = vmax.xlane.f32.xlu0 %v2696_v56  ;;  %v8669_v13 = vpop.f32.mrf.mxu0 }
 0x4d3   : > { %v11179_v61 = vadd.f32 %v2665_v2, %v10848_v32 }
 0x4d4   : > { %v2392_v42 = vpop.f32.mrf.mxu0 }
 0x4d5   : > { %v2699_v44 = vsel %vm1695_vm2, %v11179_v61, -inf  ;;  %v2668_v2 = vmul.f32 0.125, %v2392_v42 }
 0x4d6   : > { %2700 = vmax.xlane.f32.xlu1 %v2699_v44  ;;  %v8680_v40 = vpop.f32.mrf.mxu0 }
 0x4d8   : > { %v2395_v41 = vpop.f32.mrf.mxu0 }
 0x4d9   : > { %v2669_v16 = vmul.f32 0.125, %v2395_v41 }
 0x4da   : > { %v11183_v62 = vpop.f32.mrf.mxu1  ;;  %v8681_v0 = vpop.f32.mrf.mxu0 }
 0x4db   : > { %v11186_v57 = vadd.f32 %v2669_v16, %v10848_v32 }
 0x4dc   : > { %v8662_v5 = vpop.f32.mrf.mxu1  ;;  %v11188_v28 = vpop.f32.mrf.mxu0 }
 0x4dd   : > { %v2711_v18 = vsel %vm1695_vm2, %v11186_v57, -inf }
 0x4de   : > { %v11192_v30 = vpop.f32.mrf.mxu1  ;;  %2712 = vmax.xlane.f32.xlu1 %v2711_v18  ;;  %v8692_v43 = vpop.f32.mrf.mxu0  ;;  %v11202_v18 = vadd.f32 %v2668_v2, %v10843_v53 }
 0x4df   : > { %v13272_v8 = vpack.c.bf16 %v11192_v30, %v11183_v62 }
 0x4e0   : > { %v8663_v47 = vpop.f32.mrf.mxu1  ;;  %v2501_v37 = vpop.f32.mrf.mxu0 }
 0x4e2   : > { %v2339_v54 = vpop.f32.mrf.mxu1  ;;  %v8693_v60 = vpop.f32.mrf.mxu0 }
 0x4e3   : > { %v2666_v56 = vmul.f32 0.125, %v2339_v54 }
 0x4e4   : > { %v8674_v13 = vpop.f32.mrf.mxu1  ;;  %v2604_v44 = vpop.f32.mrf.mxu0 }
 0x4e5   : > { %v11197_v40 = vadd.f32 %v2666_v56, %v10843_v53  ;;  %v2708_v13 = vsel %vm1695_vm2, %v11202_v18, -inf }
 0x4e6   : > { %v2342_v41 = vpop.f32.mrf.mxu1  ;;  %v8704_v16 = vpop.f32.mrf.mxu0 }
 0x4e7   : > { %v2667_v0 = vmul.f32 0.125, %v2342_v41  ;;  %v2702_v5 = vsel %vm1695_vm2, %v11197_v40, -inf }
 0x4e8   : > { %v8675_v43 = vpop.f32.mrf.mxu1  ;;  %2703 = vmax.xlane.f32.xlu0 %v2702_v5  ;;  %v2607_v47 = vpop.f32.mrf.mxu0 }
 0x4e9   : > { %v11207_v56 = vadd.f32 %v2667_v0, %v10848_v32 }
 0x4ea   : > { %v2445_v60 = vpop.f32.mrf.mxu1  ;;  %v8705_v42 = vpop.f32.mrf.mxu0 }
 0x4eb   : > { %v2670_v54 = vmul.f32 0.125, %v2445_v60  ;;  %v2705_v2 = vsel %vm1695_vm2, %v11207_v56, -inf }
 0x4ec   : > { %v8686_v16 = vpop.f32.mrf.mxu1  ;;  %2709 = vmax.xlane.f32.xlu0 %v2708_v13 }
 0x4ed   : > { %v11214_v5 = vadd.f32 %v2670_v54, %v10843_v53  ;;  %v2673_v54 = vmul.f32 0.125, %v2501_v37 }
 0x4ee   : > { %v2448_v41 = vpop.f32.mrf.mxu1 }
 0x4ef   : > { %2929 = vrot.lane.b32.xlu1 %v10835_v24, %s10191_s0  ;;  %v2714_v42 = vsel %vm1695_vm2, %v11214_v5, -inf  ;;  %v2671_v4 = vmul.f32 0.125, %v2448_v41 }
 0x4f0   : > { %v8687_v43 = vpop.f32.mrf.mxu1  ;;  %2706 = vmax.xlane.f32.xlu0 %v2705_v2 }
 0x4f1   : > { %v11221_v43 = vadd.f32 %v2671_v4, %v10848_v32 }
 0x4f2   : > { %v2551_v60 = vpop.f32.mrf.mxu1 }
 0x4f3   : > { %v2717_v36 = vsel %vm1695_vm2, %v11221_v43, -inf }
 0x4f4   : > { %v8698_v0 = vpop.f32.mrf.mxu1  ;;  %2715 = vmax.xlane.f32.xlu0 %v2714_v42  ;;  %v11226_v42 = vadd.f32 %v2673_v54, %v10848_v32  ;;  %v2676_v54 = vmul.f32 0.125, %v2604_v44 }
 0x4f5   : > { %v2677_v0 = vmul.f32 0.125, %v2607_v47  ;;  %v2672_v47 = vmul.f32 0.125, %v11188_v28 }
 0x4f6   : > { %v2554_v16 = vpop.f32.mrf.mxu1 }
 0x4f7   : > { %v2675_v2 = vmul.f32 0.125, %v2554_v16  ;;  %v11236_v37 = vadd.f32 %v2677_v0, %v10848_v32 }
 0x4f8   : > { %v8699_v13 = vpop.f32.mrf.mxu1 }
 0x4f9   : > { %v11231_v41 = vadd.f32 %v2675_v2, %v10848_v32  ;;  %v2735_v16 = vsel %vm1695_vm2, %v11236_v37, -inf }
 0x4fa   : > { %v2657_v50 = vpop.f32.mrf.mxu1 }
 0x4fb   : > { %v2729_v4 = vsel %vm1695_vm2, %v11231_v41, -inf }
 0x4fc   : > { %v8710_v58 = vpop.f32.mrf.mxu1 }
 0x4fd   : > { %v2723_v58 = vsel %vm1695_vm2, %v11226_v42, -inf }
 0x4fe   : > { %v2660_v29 = vpop.f32.mrf.mxu1 }
 0x500   : > { %v8711_v24 = vpop.f32.mrf.mxu1 }
 0x501   : > { %v11247_v24 = vadd.f32 %v2672_v47, %v10843_v53 }
 0x503   : > { %v2720_v2 = vsel %vm1695_vm2, %v11247_v24, -inf }
 0x50a   : > { %2881 = vrot.lane.b32.xlu0 %v10811_v35, %s10191_s0  ;;  %v2679_v35 = vmul.f32 0.125, %v2660_v29  ;;  %v2674_v29 = vmul.f32 0.125, %v2551_v60 }
 0x50c   : > { %v11252_v0 = vadd.f32 %v2674_v29, %v10843_v53 }
 0x50e   : > { %v2726_v28 = vsel %vm1695_vm2, %v11252_v0, -inf }
 0x513   : > { %2718 = vmax.xlane.f32.xlu1 %v2717_v36  ;;  %v11241_v36 = vadd.f32 %v2679_v35, %v10848_v32  ;;  %v2678_v32 = vmul.f32 0.125, %v2657_v50 }
 0x515   : > { %v2741_v13 = vsel %vm1695_vm2, %v11241_v36, -inf }
 0x517   : > { %2724 = vmax.xlane.f32.xlu1 %v2723_v58  ;;  %v9842_v58 = vld [vmem:[#allocation8] sm:$0xff] }
 0x518   : > { %v11256_v35 = vadd.f32 %v9842_v58, %v2676_v54 }
 0x51a   : > { %v2732_v60 = vsel %vm1695_vm2, %v11256_v35, -inf }
 0x51b   : > { %2730 = vmax.xlane.f32.xlu1 %v2729_v4  ;;  %v11260_v4 = vadd.f32 %v9842_v58, %v2678_v32 }
 0x51d   : > { %v2738_v44 = vsel %vm1695_vm2, %v11260_v4, -inf }
 0x51f   : > { %2736 = vmax.xlane.f32.xlu1 %v2735_v16 }
 0x523   : > { %2742 = vmax.xlane.f32.xlu1 %v2741_v13 }
 0x529   : > { %2721 = vmax.xlane.f32.xlu0 %v2720_v2 }
 0x52d   : > { %2727 = vmax.xlane.f32.xlu0 %v2726_v28 }
 0x531   : > { %2733 = vmax.xlane.f32.xlu0 %v2732_v60 }
 0x535   : > { %2739 = vmax.xlane.f32.xlu0 %v2738_v44 }
 0x55b   : > { %v2698_v53 = vpop.xlane.xlu0 %2697 }
 0x55c   : > { %v2744_v50 = vsub.f32 %v11174_v1, %v2698_v53 }
 0x55e   : > { %v2760_v16 = vmul.f32 1.442695, %v2744_v50 }
 0x55f   : > { %v2701_v47 = vpop.xlane.xlu1 %2700 }
 0x560   : > { %9518 = vpow2.f32 %v2760_v16  ;;  %v2745_v13 = vsub.f32 %v11179_v61, %v2701_v47 }
 0x562   : > { %v2762_v29 = vmul.f32 1.442695, %v2745_v13 }
 0x564   : > { %9520 = vpow2.f32 %v2762_v29 }
 0x567   : > { %v2713_v54 = vpop.xlane.xlu1 %2712 }
 0x56b   : > { %v2930_v2 = vpop.permute.xlu1 %2929 }
 0x56c   : > { %8719 = vmatpush3.bf16.msra.mxu1 %v2930_v2  ;;  %v2749_v2 = vsub.f32 %v11186_v57, %v2713_v54 }
 0x56d   : > { %v11266_v32 = vpop.eup %9518  ;;  %8730 = vmatprep.subr.bf16.mxu1 %v13267_v59 }
 0x56e   : > { %v2792_v28 = vsel %vm1695_vm2, %v11266_v32, 0.0 }
 0x56f   : > { %2793 = vadd.xlane.f32.xlu0 %v2792_v28 }
 0x571   : > { %v11271_v58 = vpop.eup %9520  ;;  %v2704_v1 = vpop.xlane.xlu0 %2703 }
 0x572   : > { %v2746_v60 = vsub.f32 %v11197_v40, %v2704_v1  ;;  %v2795_v61 = vsel %vm1695_vm2, %v11271_v58, 0.0  ;;  %v2770_v1 = vmul.f32 1.442695, %v2749_v2 }
 0x573   : > { %2796 = vadd.xlane.f32.xlu1 %v2795_v61 }
 0x574   : > { %v2764_v44 = vmul.f32 1.442695, %v2746_v60 }
 0x575   : > { %v2710_v53 = vpop.xlane.xlu0 %2709 }
 0x576   : > { %9522 = vpow2.f32 %v2764_v44  ;;  %v2748_v60 = vsub.f32 %v11202_v18, %v2710_v53 }
 0x579   : > { %v2707_v50 = vpop.xlane.xlu0 %2706 }
 0x57a   : > { %v2747_v29 = vsub.f32 %v11207_v56, %v2707_v50 }
 0x57c   : > { %v2766_v28 = vmul.f32 1.442695, %v2747_v29 }
 0x57d   : > { %v2716_v16 = vpop.xlane.xlu0 %2715 }
 0x57e   : > { %9524 = vpow2.f32 %v2766_v28 }
 0x57f   : > { %9526 = vpow2.f32 %v2770_v1 }
 0x581   : > { %v2882_v47 = vpop.permute.xlu0 %2881 }
 0x582   : > { %8713 = vmatpush3.bf16.msra.mxu0 %v2882_v47  ;;  %v2750_v47 = vsub.f32 %v11214_v5, %v2716_v16 }
 0x583   : > { %v11276_v13 = vpop.eup %9522  ;;  %8724 = vmatprep.subr.bf16.mxu0 %v13267_v59 }
 0x584   : > { %3025 = vrot.lane.b32.xlu1 %v10715_v48, %s10191_s0  ;;  %v2798_v40 = vsel %vm1695_vm2, %v11276_v13, 0.0  ;;  %v2768_v48 = vmul.f32 1.442695, %v2748_v60  ;;  %v2772_v54 = vmul.f32 1.442695, %v2750_v47 }
 0x585   : > { %2799 = vadd.xlane.f32.xlu0 %v2798_v40 }
 0x586   : > { %9528 = vpow2.f32 %v2768_v48 }
 0x587   : > { %9530 = vpow2.f32 %v2772_v54 }
 0x58b   : > { %v11288_v44 = vpop.eup %9524 }
 0x58c   : > { %v2801_v56 = vsel %vm1695_vm2, %v11288_v44, 0.0  ;;  %v11293_v57 = vpop.eup %9526 }
 0x593   : > { %v11300_v28 = vpop.eup %9528 }
 0x594   : > { %v11307_v54 = vpop.eup %9530 }
 0x59b   : > { %2977 = vrot.lane.b32.xlu0 %v10692_v17, %s10191_s0  ;;  %v2807_v17 = vsel %vm1695_vm2, %v11293_v57, 0.0 }
 0x59c   : > { %v2719_v61 = vpop.xlane.xlu1 %2718 }
 0x59d   : > { %v2751_v5 = vsub.f32 %v11221_v43, %v2719_v61 }
 0x59f   : > { %v2774_v1 = vmul.f32 1.442695, %v2751_v5 }
 0x5a0   : > { %v2725_v40 = vpop.xlane.xlu1 %2724 }
 0x5a1   : > { %v2753_v50 = vsub.f32 %v11226_v42, %v2725_v40  ;;  %v2804_v40 = vsel %vm1695_vm2, %v11300_v28, 0.0 }
 0x5a3   : > { %v2778_v53 = vmul.f32 1.442695, %v2753_v50 }
 0x5a4   : > { %v2731_v18 = vpop.xlane.xlu1 %2730 }
 0x5a5   : > { %9532 = vpow2.f32 %v2778_v53  ;;  %v2755_v43 = vsub.f32 %v11231_v41, %v2731_v18 }
 0x5a7   : > { %v2782_v50 = vmul.f32 1.442695, %v2755_v43 }
 0x5a8   : > { %2802 = vadd.xlane.f32.xlu1 %v2801_v56  ;;  %v2737_v16 = vpop.xlane.xlu1 %2736 }
 0x5a9   : > { %v2757_v60 = vsub.f32 %v11236_v37, %v2737_v16 }
 0x5ab   : > { %v2786_v61 = vmul.f32 1.442695, %v2757_v60 }
 0x5ac   : > { %2808 = vadd.xlane.f32.xlu1 %v2807_v17 }
 0x5b2   : > { %v2722_v29 = vpop.xlane.xlu0 %2721  ;;  %v11312_v53 = vpop.eup %9532 }
 0x5b3   : > { %v2752_v2 = vsub.f32 %v11247_v24, %v2722_v29  ;;  %v2819_v16 = vsel %vm1695_vm2, %v11312_v53, 0.0 }
 0x5b5   : > { %v2776_v42 = vmul.f32 1.442695, %v2752_v2 }
 0x5b6   : > { %v2728_v48 = vpop.xlane.xlu0 %2727 }
 0x5b7   : > { %9534 = vpow2.f32 %v2776_v42  ;;  %v2754_v47 = vsub.f32 %v11252_v0, %v2728_v48  ;;  %v2810_v0 = vsel %vm1695_vm2, %v11307_v54, 0.0 }
 0x5b8   : > { %9536 = vpow2.f32 %v2774_v1 }
 0x5b9   : > { %v2780_v56 = vmul.f32 1.442695, %v2754_v47 }
 0x5ba   : > { %2805 = vadd.xlane.f32.xlu0 %v2804_v40  ;;  %v2734_v24 = vpop.xlane.xlu0 %2733 }
 0x5bb   : > { %9538 = vpow2.f32 %v2780_v56  ;;  %v2756_v37 = vsub.f32 %v11256_v35, %v2734_v24 }
 0x5bc   : > { %9540 = vpow2.f32 %v2786_v61 }
 0x5bd   : > { %v2784_v17 = vmul.f32 1.442695, %v2756_v37  ;;  %v2743_v37 = vpop.xlane.xlu1 %2742 }
 0x5be   : > { %2811 = vadd.xlane.f32.xlu0 %v2810_v0  ;;  %v2740_v5 = vpop.xlane.xlu0 %2739 }
 0x5bf   : > { %9542 = vpow2.f32 %v2784_v17  ;;  %v2758_v41 = vsub.f32 %v11260_v4, %v2740_v5 }
 0x5c0   : > { %9544 = vpow2.f32 %v2782_v50  ;;  %v2759_v50 = vsub.f32 %v11241_v36, %v2743_v37 }
 0x5c1   : > { %v2788_v18 = vmul.f32 1.442695, %v2758_v41 }
 0x5c2   : > { %2820 = vadd.xlane.f32.xlu0 %v2819_v16  ;;  %v2790_v17 = vmul.f32 1.442695, %v2759_v50 }
 0x5c3   : > { %9546 = vpow2.f32 %v2788_v18 }
 0x5c4   : > { %v11317_v35 = vpop.eup %9534  ;;  %9548 = vpow2.f32 %v2790_v17 }
 0x5c5   : > { %v2816_v29 = vsel %vm1695_vm2, %v11317_v35, 0.0  ;;  %v11321_v2 = vpop.eup %9536 }
 0x5c6   : > { %2817 = vadd.xlane.f32.xlu1 %v2816_v29  ;;  %v2813_v60 = vsel %vm1695_vm2, %v11321_v2, 0.0 }
 0x5c8   : > { %v11323_v1 = vpop.eup %9538 }
 0x5c9   : > { %v2822_v4 = vsel %vm1695_vm2, %v11323_v1, 0.0  ;;  %v11329_v42 = vpop.eup %9540 }
 0x5ca   : > { %2823 = vadd.xlane.f32.xlu0 %v2822_v4  ;;  %2814 = vadd.xlane.f32.xlu1 %v2813_v60  ;;  %v2831_v40 = vsel %vm1695_vm2, %v11329_v42, 0.0 }
 0x5cc   : > { %v11331_v48 = vpop.eup %9542 }
 0x5cd   : > { %v2828_v47 = vsel %vm1695_vm2, %v11331_v48, 0.0  ;;  %v11337_v43 = vpop.eup %9544 }
 0x5ce   : > { %2829 = vadd.xlane.f32.xlu1 %v2828_v47  ;;  %2832 = vadd.xlane.f32.xlu0 %v2831_v40  ;;  %v2825_v56 = vsel %vm1695_vm2, %v11337_v43, 0.0 }
 0x5d0   : > { %v11339_v61 = vpop.eup %9546 }
 0x5d1   : > { %v2834_v24 = vsel %vm1695_vm2, %v11339_v61, 0.0  ;;  %v11352_v41 = vpop.eup %9548 }
 0x5d2   : > { %2826 = vadd.xlane.f32.xlu1 %v2825_v56  ;;  %2835 = vadd.xlane.f32.xlu0 %v2834_v24 }
 0x5e3   : > { %3121 = vrot.lane.b32.xlu1 %v10761_v51, %s10191_s0  ;;  %v2837_v51 = vsel %vm1695_vm2, %v11352_v41, 0.0 }
 0x5e7   : > { %3169 = vrot.lane.b32.xlu1 %v10784_v23, %s10191_s0 }
 0x5e8   : > { %3073 = vrot.lane.b32.xlu0 %v10738_v14, %s10191_s0 }
 0x5f8   : > { %v2794_v0 = vpop.xlane.xlu0 %2793 }
 0x5f9   : > { %9550 = vrcp.f32 %v2794_v0 }
 0x5fc   : > { %v2797_v5 = vpop.xlane.xlu1 %2796 }
 0x5fd   : > { %9552 = vrcp.f32 %v2797_v5 }
 0x600   : > { %v3026_v60 = vpop.permute.xlu1 %3025 }
 0x606   : > { %v9551_v18 = vpop.eup %9550 }
 0x607   : > { %v2856_v23 = vmul.f32 %v9551_v18, %v11266_v32 }
 0x60a   : > { %v9553_v16 = vpop.eup %9552 }
 0x60b   : > { %2838 = vadd.xlane.f32.xlu1 %v2837_v51  ;;  %v2857_v14 = vmul.f32 %v9553_v16, %v11271_v58 }
 0x60d   : > { %v2872_v29 = vpack.c.bf16 %v2857_v14, %v2856_v23 }
 0x60e   : > { %v2800_v36 = vpop.xlane.xlu0 %2799 }
 0x60f   : > { %8715 = vmatmul.mubr.msk.bf16.vlgmr.msra.gmra.mxu0 %vm1695_vm2, %v2872_v29  ;;  %9554 = vrcp.f32 %v2800_v36 }
 0x610   : > { %8726 = vmatprep.mubr.msk.bf16.mxu0 %vm10190_vm0, %v13267_v59 }
 0x612   : > { %v2978_v4 = vpop.permute.xlu0 %2977 }
 0x613   : > { %8725 = vmatpush3.bf16.msra.mxu0 %v2978_v4 }
 0x614   : > { %8736 = vmatprep.subr.bf16.mxu0 %v13267_v59 }
 0x61c   : > { %3217 = vrot.lane.b32.xlu1 %v10819_v9, %s10191_s0  ;;  %v9555_v32 = vpop.eup %9554 }
 0x61d   : > { %v2858_v56 = vmul.f32 %v9555_v32, %v11276_v13 }
 0x631   : > { %v2803_v47 = vpop.xlane.xlu1 %2802 }
 0x632   : > { %9556 = vrcp.f32 %v2803_v47 }
 0x635   : > { %v2809_v40 = vpop.xlane.xlu1 %2808 }
 0x636   : > { %9558 = vrcp.f32 %v2809_v40 }
 0x63f   : > { %v9557_v58 = vpop.eup %9556 }
 0x640   : > { %v2859_v24 = vmul.f32 %v9557_v58, %v11288_v44 }
 0x642   : > { %v2873_v37 = vpack.c.bf16 %v2859_v24, %v2858_v56  ;;  %v9386_v24 = vld [vmem:[#allocation12 + $0x38] sm:$0xff]  }
 0x643   : > { %v2806_v50 = vpop.xlane.xlu0 %2805  ;;  %v9559_v0 = vpop.eup %9558 }
 0x644   : > { %9560 = vrcp.f32 %v2806_v50  ;;  %8721 = vmatmul.mubr.msk.bf16.vlgmr.msra.gmra.mxu1 %vm1695_vm2, %v2873_v37  ;;  %v2861_v18 = vmul.f32 %v9559_v0, %v11293_v57 }
 0x645   : > { %8731 = vmatpush3.bf16.msra.mxu1 %v3026_v60  ;;  %8732 = vmatprep.mubr.msk.bf16.mxu1 %vm10190_vm0, %v13267_v59 }
 0x646   : > { %8742 = vmatprep.subr.bf16.mxu1 %v13267_v59 }
 0x647   : > { %v2812_v9 = vpop.xlane.xlu0 %2811 }
 0x64b   : > { %v2821_v17 = vpop.xlane.xlu0 %2820 }
 0x64c   : > { %9562 = vrcp.f32 %v2821_v17 }
 0x64f   : > { %v2818_v5 = vpop.xlane.xlu1 %2817 }
 0x650   : > { %9564 = vrcp.f32 %v2818_v5 }
 0x651   : > { %v9561_v13 = vpop.eup %9560  ;;  %9566 = vrcp.f32 %v2812_v9 }
 0x652   : > { %v2860_v44 = vmul.f32 %v9561_v13, %v11300_v28 }
 0x653   : > { %v2824_v16 = vpop.xlane.xlu0 %2823  ;;  %v2815_v51 = vpop.xlane.xlu1 %2814 }
 0x654   : > { %v2874_v23 = vpack.c.bf16 %v2861_v18, %v2860_v44  ;;  %9568 = vrcp.f32 %v2815_v51 }
 0x656   : > { %8727 = vmatmul.mubr.msk.bf16.vlgmr.msra.gmra.mxu0 %vm1695_vm2, %v2874_v23  ;;  %v9389_v23 = vld [vmem:[#allocation12 + $0x20] sm:$0xff]  }
 0x657   : > { %v2833_v14 = vpop.xlane.xlu0 %2832  ;;  %v2830_v29 = vpop.xlane.xlu1 %2829  ;;  %8738 = vmatprep.mubr.msk.bf16.mxu0 %vm10190_vm0, %v13267_v59 }
 0x658   : > { %9570 = vrcp.f32 %v2833_v14 }
 0x659   : > { %9572 = vrcp.f32 %v2830_v29  ;;  %v9563_v36 = vpop.eup %9562 }
 0x65a   : > { %9574 = vrcp.f32 %v2824_v16  ;;  %v2865_v47 = vmul.f32 %v9563_v36, %v11312_v53 }
 0x65b   : > { %v2836_v4 = vpop.xlane.xlu0 %2835  ;;  %v2827_v28 = vpop.xlane.xlu1 %2826 }
 0x65c   : > { %9576 = vrcp.f32 %v2827_v28 }
 0x65d   : > { %v9565_v60 = vpop.eup %9564  ;;  %9578 = vrcp.f32 %v2836_v4  ;;  %v9384_v4 = vld [vmem:[#allocation12 + $0x8] sm:$0xff]  }
 0x65e   : > { %v2864_v57 = vmul.f32 %v9565_v60, %v11317_v35  ;;  %v9567_v40 = vpop.eup %9566 }
 0x65f   : > { %v3074_v32 = vpop.permute.xlu0 %3073  ;;  %v3122_v58 = vpop.permute.xlu1 %3121  ;;  %v2862_v9 = vmul.f32 %v9567_v40, %v11307_v54 }
 0x660   : > { %8737 = vmatpush3.bf16.msra.mxu0 %v3074_v32  ;;  %v2876_v56 = vpack.c.bf16 %v2865_v47, %v2864_v57  ;;  %v9383_v47 = vld [vmem:[#allocation12 + $0x10] sm:$0xff]   ;;  %v9385_v32 = vld [vmem:[#allocation12] sm:$0xff]  }
 0x661   : > { %8748 = vmatprep.subr.bf16.mxu0 %v13267_v59  ;;  %v9569_v37 = vpop.eup %9568 }
 0x662   : > { %v2863_v17 = vmul.f32 %v9569_v37, %v11321_v2  ;;  %v9387_v2 = vld [vmem:[#allocation12 + $0x30] sm:$0xff]  }
 0x663   : > { %8739 = vmatmul.mubr.msk.bf16.vlgmr.msra.gmra.mxu0 %vm1695_vm2, %v2876_v56  ;;  %v3170_v50 = vpop.permute.xlu1 %3169 }
 0x664   : > { %8749 = vmatpush3.bf16.msra.mxu0 %v3170_v50  ;;  %8750 = vmatprep.mubr.msk.bf16.mxu0 %vm10190_vm0, %v13267_v59  ;;  %v2875_v35 = vpack.c.bf16 %v2863_v17, %v2862_v9 }
 0x665   : > { %v9571_v53 = vpop.eup %9570  ;;  %8760 = vmatprep.subr.bf16.mxu0 %v9386_v24 }
 0x666   : > { %v9573_v0 = vpop.eup %9572  ;;  %v2869_v5 = vmul.f32 %v9571_v53, %v11329_v42  ;;  %8733 = vmatmul.mubr.msk.bf16.vlgmr.msra.gmra.mxu1 %vm1695_vm2, %v2875_v35 }
 0x667   : > { %v2868_v13 = vmul.f32 %v9573_v0, %v11331_v48  ;;  %v9575_v44 = vpop.eup %9574  ;;  %8743 = vmatpush3.bf16.msra.mxu1 %v3122_v58  ;;  %8744 = vmatprep.mubr.msk.bf16.mxu1 %vm10190_vm0, %v13267_v59  ;;  %v9388_v48 = vld [vmem:[#allocation12 + $0x28] sm:$0xff]  }
 0x668   : > { %8754 = vmatprep.subr.bf16.mxu1 %v13267_v59  ;;  %v2866_v16 = vmul.f32 %v9575_v44, %v11323_v1  ;;  %v9382_v1 = vld [vmem:[#allocation12 + $0x18] sm:$0xff]  }
 0x669   : > { %v2878_v54 = vpack.c.bf16 %v2869_v5, %v2868_v13  ;;  %v9577_v18 = vpop.eup %9576 }
 0x66a   : > { %v2867_v42 = vmul.f32 %v9577_v18, %v11337_v43  ;;  %v9579_v29 = vpop.eup %9578 }
 0x66b   : > { %8751 = vmatmul.mubr.msk.bf16.vlgmr.msra.gmra.mxu0 %vm1695_vm2, %v2878_v54  ;;  %v2870_v28 = vmul.f32 %v9579_v29, %v11339_v61 }
 0x66c   : > { %8761 = vmatpush3.bf16.msra.mxu0 %v9386_v24  ;;  %v2877_v51 = vpack.c.bf16 %v2867_v42, %v2866_v16 }
 0x66d   : > { %8762 = vmatprep.subr.bf16.mxu0 %v9387_v2 }
 0x66e   : > { %8745 = vmatmul.mubr.msk.bf16.vlgmr.msra.gmra.mxu1 %vm1695_vm2, %v2877_v51 }
 0x66f   : > { %8756 = vmatprep.mubr.msk.bf16.mxu1 %vm10190_vm0, %v13267_v59 }
 0x670   : > { %8763 = vmatpush3.bf16.msra.mxu0 %v9387_v2 }
 0x671   : > { %8764 = vmatprep.subr.bf16.mxu0 %v9388_v48 }
 0x674   : > { %8765 = vmatpush3.bf16.msra.mxu0 %v9388_v48 }
 0x675   : > { %8766 = vmatprep.subr.bf16.mxu0 %v9389_v23 }
 0x678   : > { %8767 = vmatpush3.bf16.msra.mxu0 %v9389_v23 }
 0x694   : > { %v2839_v14 = vpop.xlane.xlu1 %2838 }
 0x695   : > { %9580 = vrcp.f32 %v2839_v14 }
 0x698   : > { %v3218_v43 = vpop.permute.xlu1 %3217 }
 0x699   : > { %8755 = vmatpush3.bf16.msra.mxu1 %v3218_v43 }
 0x69a   : > { %8784 = vmatprep.subr.bf16.mxu1 %v9382_v1 }
 0x6a2   : > { %v9581_v36 = vpop.eup %9580 }
 0x6a3   : > { %v2871_v60 = vmul.f32 %v9581_v36, %v11352_v41 }
 0x6a5   : > { %v2879_v57 = vpack.c.bf16 %v2871_v60, %v2870_v28 }
 0x6a7   : > { %8757 = vmatmul.mubr.msk.bf16.vlgmr.msra.gmra.mxu1 %vm1695_vm2, %v2879_v57 }
 0x6a8   : > { %8785 = vmatpush3.bf16.msra.mxu1 %v9382_v1  ;;  %8792 = vmatprep.mubr.msk.bf16.mxu1 %vm1286_vm1, %v2232_v12  ;;  %v13270_v12 = vpack.c.bf16 %v11163_v11, %v11161_v21 }
 0x6a9   : > { %8786 = vmatprep.subr.bf16.mxu1 %v9383_v47 }
 0x6ac   : > { %8787 = vmatpush3.bf16.msra.mxu1 %v9383_v47 }
 0x6ad   : > { %8788 = vmatprep.subr.bf16.mxu1 %v9384_v4 }
 0x6b0   : > { %8789 = vmatpush3.bf16.msra.mxu1 %v9384_v4  ;;  %v11441_v4 = vld [vmem:[%s13185_s8] ss:$0 sm:$0xff] }
 0x6b1   : > { %8790 = vmatprep.subr.bf16.mxu1 %v9385_v32 }
 0x6b4   : > { %8791 = vmatpush3.bf16.msra.mxu1 %v9385_v32 }
 0x6b7   : > { %8793 = vmatmul.mubr.msk.bf16.vlgmr.msra.gmra.mxu1 %vm1286_vm1, %v2233_v19 }
 0x6b8   : > { %8796 = vmatprep.mubr.msk.bf16.mxu1 %vm1286_vm1, %v2234_v27 }
 0x6bf   : > { %8797 = vmatmul.mubr.msk.bf16.gmra.mxu1 %vm1286_vm1, %v13268_v10 }
 0x6c0   : > { %8800 = vmatprep.mubr.msk.bf16.mxu1 %vm1286_vm1, %v13269_v55 }
 0x6c7   : > { %8801 = vmatmul.mubr.msk.bf16.gmra.mxu1 %vm1286_vm1, %v13270_v12 }
 0x6c8   : > { %8804 = vmatprep.mubr.msk.bf16.mxu1 %vm1286_vm1, %v13271_v7 }
 0x6cf   : > { %8805 = vmatmul.mubr.msk.bf16.gmra.mxu1 %vm1286_vm1, %v13272_v8  ;;  %v2921_v19 = vpop.f32.mrf.mxu0 }
 0x6d1   : > { %v8716_v45 = vpop.f32.mrf.mxu0 }
 0x6d2   : > { %v9843_v45 = vld [vmem:[%s10538_s18] sm:$0xff] }
 0x6d3   : > { %v2924_v15 = vpop.f32.mrf.mxu0 }
 0x6d4   : > { %v3264_v27 = vpack.c.bf16 %v2924_v15, %v2921_v19 }
 0x6d5   : > { %v8717_v39 = vpop.f32.mrf.mxu0 }
 0x6d6   : > { %8768 = vmatprep.mubr.msk.bf16.mxu0 %vm1286_vm1, %v3264_v27 }
 0x704   : > { %v2969_v38 = vpop.f32.mrf.mxu1 }
 0x706   : > { %v8722_v34 = vpop.f32.mrf.mxu1 }
 0x708   : > { %v2972_v20 = vpop.f32.mrf.mxu1 }
 0x709   : > { %v3265_v21 = vpack.c.bf16 %v2972_v20, %v2969_v38  ;;  %v9844_v38 = vld [vmem:[%s10538_s18 + $0x10] sm:$0xff]  ;;  %v9845_v20 = vld [vmem:[%s10538_s18 + $0x8] sm:$0xff] }
 0x70a   : > { %v8723_v11 = vpop.f32.mrf.mxu1 }
 0x70b   : > { %8769 = vmatmul.mubr.msk.bf16.vlgmr.msra.gmra.mxu0 %vm1286_vm1, %v3265_v21  ;;  %v9846_v11 = vld [vmem:[%s10538_s18 + $0x18] sm:$0xff] }
 0x716   : > { %v3017_v25 = vpop.f32.mrf.mxu0 }
 0x718   : > { %v8728_v46 = vpop.f32.mrf.mxu0 }
 0x71a   : > { %v3020_v61 = vpop.f32.mrf.mxu0 }
 0x71b   : > { %v3266_v62 = vpack.c.bf16 %v3020_v61, %v3017_v25 }
 0x71c   : > { %v8729_v30 = vpop.f32.mrf.mxu0 }
 0x71d   : > { %8772 = vmatprep.mubr.msk.bf16.mxu0 %vm1286_vm1, %v3266_v62 }
 0x723   : > { %v3113_v41 = vpop.f32.mrf.mxu0 }
 0x725   : > { %v8740_v58 = vpop.f32.mrf.mxu0 }
 0x726   : > { %v3065_v40 = vpop.f32.mrf.mxu1 }
 0x727   : > { %v3116_v56 = vpop.f32.mrf.mxu0 }
 0x728   : > { %v8734_v24 = vpop.f32.mrf.mxu1  ;;  %v3268_v53 = vpack.c.bf16 %v3116_v56, %v3113_v41 }
 0x729   : > { %v8741_v37 = vpop.f32.mrf.mxu0 }
 0x72a   : > { %v3068_v50 = vpop.f32.mrf.mxu1 }
 0x72b   : > { %v3209_v9 = vpop.f32.mrf.mxu0  ;;  %v3267_v17 = vpack.c.bf16 %v3068_v50, %v3065_v40 }
 0x72c   : > { %v8735_v35 = vpop.f32.mrf.mxu1 }
 0x72d   : > { %v8752_v0 = vpop.f32.mrf.mxu0  ;;  %8773 = vmatmul.mubr.msk.bf16.gmra.mxu0 %vm1286_vm1, %v3267_v17 }
 0x72e   : > { %v3161_v5 = vpop.f32.mrf.mxu1  ;;  %8776 = vmatprep.mubr.msk.bf16.mxu0 %vm1286_vm1, %v3268_v53 }
 0x72f   : > { %v3212_v13 = vpop.f32.mrf.mxu0 }
 0x730   : > { %v8746_v44 = vpop.f32.mrf.mxu1  ;;  %v3270_v16 = vpack.c.bf16 %v3212_v13, %v3209_v9 }
 0x731   : > { %v8753_v54 = vpop.f32.mrf.mxu0 }
 0x732   : > { %v3164_v2 = vpop.f32.mrf.mxu1 }
 0x733   : > { %v3269_v18 = vpack.c.bf16 %v3164_v2, %v3161_v5  ;;  %v9847_v5 = vld [vmem:[%s10538_s18 + $0x20] sm:$0xff] }
 0x734   : > { %v8747_v42 = vpop.f32.mrf.mxu1 }
 0x735   : > { %8777 = vmatmul.mubr.msk.bf16.gmra.mxu0 %vm1286_vm1, %v3269_v18 }
 0x736   : > { %8780 = vmatprep.mubr.msk.bf16.mxu0 %vm1286_vm1, %v3270_v16 }
 0x767   : > { %v3257_v51 = vpop.f32.mrf.mxu1 }
 0x769   : > { %v8758_v48 = vpop.f32.mrf.mxu1 }
 0x76a   : > { %v9848_v48 = vld [vmem:[%s10538_s18 + $0x30] sm:$0xff] }
 0x76b   : > { %v3260_v23 = vpop.f32.mrf.mxu1 }
 0x76c   : > { %v3271_v14 = vpack.c.bf16 %v3260_v23, %v3257_v51 }
 0x76d   : > { %v8759_v1 = vpop.f32.mrf.mxu1 }
 0x76e   : > { %8781 = vmatmul.mubr.msk.bf16.gmra.mxu0 %vm1286_vm1, %v3271_v14  ;;  %v9849_v14 = vld [vmem:[%s10538_s18 + $0x28] sm:$0xff] }
 0x777   : > { %v8794_v43 = vpop.f32.mrf.mxu1 }
 0x779   : > { %v3499_v29 = vpop.f32.mrf.mxu1 }
 0x77b   : > { %v8795_v28 = vpop.f32.mrf.mxu1 }
 0x77d   : > { %v3502_v55 = vpop.f32.mrf.mxu1 }
 0x77f   : > { %v8798_v46 = vpop.f32.mrf.mxu1 }
 0x781   : > { %v3515_v61 = vpop.f32.mrf.mxu1 }
 0x783   : > { %v8799_v62 = vpop.f32.mrf.mxu1 }
 0x785   : > { %v3518_v30 = vpop.f32.mrf.mxu1 }
 0x787   : > { %v8802_v58 = vpop.f32.mrf.mxu1 }
 0x789   : > { %v3531_v9 = vpop.f32.mrf.mxu1 }
 0x78b   : > { %v8803_v2 = vpop.f32.mrf.mxu1 }
 0x7cb   : > { %v8770_v36 = vpop.f32.mrf.mxu0 }
 0x7cc   : > { %v3508_v57 = vadd.f32 %v8794_v43, %v8770_v36  ;;  %v3534_v36 = vpop.f32.mrf.mxu1 }
 0x7cd   : > { %v3354_v60 = vpop.f32.mrf.mxu0 }
 0x7ce   : > { %v3500_v47 = vadd.f32 %v3499_v29, %v3354_v60  ;;  %v3571_v7 = vadd.f32 %v11441_v4, %v3508_v57  ;;  %v9850_v60 = vld [vmem:[%s10538_s18 + $0x38] sm:$0xff] }
 0x7cf   : > { %v8771_v32 = vpop.f32.mrf.mxu0 }
 0x7d0   : > { %v3569_v10 = vadd.f32 %v11441_v4, %v3500_v47  ;;  %v3511_v8 = vadd.f32 %v8795_v28, %v8771_v32  ;;  %v11452_v34 = vadd.f32 %v9844_v38, %v3571_v7  ;;  %v9854_v38 = vld [vmem:[%s10538_s18 + $0x58] sm:$0xff] }
 0x7d1   : > { %v3357_v12 = vpop.f32.mrf.mxu0 }
 0x7d2   : > { %v3503_v19 = vadd.f32 %v3502_v55, %v3357_v12  ;;  %v11446_v15 = vadd.f32 %v9843_v45, %v3569_v10  ;;  %v3572_v39 = vadd.f32 %v11441_v4, %v3511_v8  ;;  %v9851_v55 = vld [vmem:[%s10538_s18 + $0x40] sm:$0xff] }
 0x7d4   : > { %3603 = vadd.xlane.f32.xlu0 %v11446_v15  ;;  %v3570_v27 = vadd.f32 %v11441_v4, %v3503_v19  ;;  %v11460_v25 = vadd.f32 %v9846_v11, %v3572_v39  ;;  %v9852_v19 = vld [vmem:[%s10538_s18 + $0x50] sm:$0xff]  ;;  %v8806_v11 = vpop.f32.mrf.mxu1 }
 0x7d6   : > { %v11455_v21 = vadd.f32 %v9845_v20, %v3570_v27  ;;  %v9853_v27 = vld [vmem:[%s10538_s18 + $0x48] sm:$0xff] }
 0x7d8   : > { %3607 = vadd.xlane.f32.xlu0 %v11452_v34  ;;  %3605 = vadd.xlane.f32.xlu1 %v11455_v21 }
 0x7dc   : > { %3609 = vadd.xlane.f32.xlu0 %v11460_v25 }
 0x7ed   : > { %v8774_v41 = vpop.f32.mrf.mxu0 }
 0x7ee   : > { %v3524_v56 = vadd.f32 %v8798_v46, %v8774_v41  ;;  %v3547_v46 = vpop.f32.mrf.mxu1 }
 0x7ef   : > { %v3370_v40 = vpop.f32.mrf.mxu0 }
 0x7f0   : > { %v3516_v24 = vadd.f32 %v3515_v61, %v3370_v40  ;;  %v3575_v35 = vadd.f32 %v11441_v4, %v3524_v56 }
 0x7f1   : > { %v8775_v37 = vpop.f32.mrf.mxu0 }
 0x7f2   : > { %v3573_v50 = vadd.f32 %v11441_v4, %v3516_v24  ;;  %v3527_v17 = vadd.f32 %v8799_v62, %v8775_v37  ;;  %v11472_v23 = vadd.f32 %v9848_v48, %v3575_v35  ;;  %v8807_v62 = vpop.f32.mrf.mxu1 }
 0x7f3   : > { %v3373_v53 = vpop.f32.mrf.mxu0 }
 0x7f4   : > { %v3519_v0 = vadd.f32 %v3518_v30, %v3373_v53  ;;  %v11466_v13 = vadd.f32 %v9847_v5, %v3573_v50  ;;  %v3576_v18 = vadd.f32 %v11441_v4, %v3527_v17  ;;  %v3550_v24 = vpop.f32.mrf.mxu1  ;;  %v9855_v53 = vld [vmem:[%s10538_s18 + $0x60] sm:$0xff] }
 0x7f5   : > { %v8778_v44 = vpop.f32.mrf.mxu0 }
 0x7f6   : > { %3611 = vadd.xlane.f32.xlu0 %v11466_v13  ;;  %v3574_v54 = vadd.f32 %v11441_v4, %v3519_v0  ;;  %v3540_v42 = vadd.f32 %v8802_v58, %v8778_v44  ;;  %v11481_v57 = vadd.f32 %v9850_v60, %v3576_v18  ;;  %v9856_v44 = vld [vmem:[%s10538_s18 + $0x70] sm:$0xff] }
 0x7f7   : > { %v3386_v16 = vpop.f32.mrf.mxu0 }
 0x7f8   : > { %v3532_v51 = vadd.f32 %v3531_v9, %v3386_v16  ;;  %v11475_v1 = vadd.f32 %v9849_v14, %v3574_v54  ;;  %v3579_v47 = vadd.f32 %v11441_v4, %v3540_v42  ;;  %v9858_v16 = vld [vmem:[%s10538_s18 + $0x78] sm:$0xff] }
 0x7f9   : > { %v8779_v43 = vpop.f32.mrf.mxu0 }
 0x7fa   : > { %v3577_v29 = vadd.f32 %v11441_v4, %v3532_v51  ;;  %3615 = vadd.xlane.f32.xlu0 %v11472_v23  ;;  %3613 = vadd.xlane.f32.xlu1 %v11475_v1  ;;  %v3543_v32 = vadd.f32 %v8803_v2, %v8779_v43  ;;  %v11492_v45 = vadd.f32 %v9852_v19, %v3579_v47  ;;  %v9857_v2 = vld [vmem:[%s10538_s18 + $0x68] sm:$0xff]  ;;  %v9392_v19 = vld [vmem:[#allocation14 + $0x28] sm:$0xff]  }
 0x7fb   : > { %v3389_v28 = vpop.f32.mrf.mxu0 }
 0x7fc   : > { %v3535_v10 = vadd.f32 %v3534_v36, %v3389_v28  ;;  %v11485_v12 = vadd.f32 %v9851_v55, %v3577_v29  ;;  %v3580_v8 = vadd.f32 %v11441_v4, %v3543_v32 }
 0x7fe   : > { %3617 = vadd.xlane.f32.xlu1 %v11481_v57  ;;  %3619 = vadd.xlane.f32.xlu0 %v11485_v12  ;;  %v3578_v7 = vadd.f32 %v11441_v4, %v3535_v10  ;;  %v11500_v20 = vadd.f32 %v9854_v38, %v3580_v8  ;;  %v9391_v8 = vld [vmem:[#allocation14 + $0x30] sm:$0xff]   ;;  %v9394_v38 = vld [vmem:[#allocation14 + $0x18] sm:$0xff]  }
 0x800   : > { %v11495_v39 = vadd.f32 %v9853_v27, %v3578_v7  ;;  %v9393_v27 = vld [vmem:[#allocation14 + $0x20] sm:$0xff]  }
 0x802   : > { %3623 = vadd.xlane.f32.xlu0 %v11492_v45  ;;  %3621 = vadd.xlane.f32.xlu1 %v11495_v39 }
 0x806   : > { %3625 = vadd.xlane.f32.xlu1 %v11500_v20 }
 0x82e   : > { %v8782_v61 = vpop.f32.mrf.mxu0 }
 0x82f   : > { %v3556_v41 = vadd.f32 %v8806_v11, %v8782_v61 }
 0x830   : > { %v3402_v30 = vpop.f32.mrf.mxu0 }
 0x831   : > { %v3548_v58 = vadd.f32 %v3547_v46, %v3402_v30  ;;  %v3583_v50 = vadd.f32 %v11441_v4, %v3556_v41  ;;  %v9395_v30 = vld [vmem:[#allocation14 + $0x10] sm:$0xff]  }
 0x832   : > { %v8783_v40 = vpop.f32.mrf.mxu0 }
 0x833   : > { %v3581_v56 = vadd.f32 %v11441_v4, %v3548_v58  ;;  %v3559_v9 = vadd.f32 %v8807_v62, %v8783_v40  ;;  %v11512_v54 = vadd.f32 %v9856_v44, %v3583_v50  ;;  %v9396_v50 = vld [vmem:[#allocation14 + $0x8] sm:$0xff]  }
 0x834   : > { %v3405_v37 = vpop.f32.mrf.mxu0 }
 0x835   : > { %v3551_v17 = vadd.f32 %v3550_v24, %v3405_v37  ;;  %v11506_v35 = vadd.f32 %v9855_v53, %v3581_v56  ;;  %v3584_v5 = vadd.f32 %v11441_v4, %v3559_v9 }
 0x837   : > { %v3582_v0 = vadd.f32 %v11441_v4, %v3551_v17  ;;  %3627 = vadd.xlane.f32.xlu0 %v11506_v35  ;;  %v11520_v42 = vadd.f32 %v9858_v16, %v3584_v5  ;;  %v9397_v5 = vld [vmem:[#allocation14] sm:$0xff]  }
 0x839   : > { %v11515_v18 = vadd.f32 %v9857_v2, %v3582_v0 }
 0x83b   : > { %3631 = vadd.xlane.f32.xlu0 %v11512_v54  ;;  %3629 = vadd.xlane.f32.xlu1 %v11515_v18 }
 0x83f   : > { %3633 = vadd.xlane.f32.xlu1 %v11520_v42 }
 0x85d   : > { %v3604_v51 = vpop.xlane.xlu0 %3603 }
 0x85e   : > { %v3636_v48 = vmul.f32 0.0078125, %v3604_v51 }
 0x860   : > { %v11524_v14 = vsub.f32 %v11446_v15, %v3636_v48 }
 0x861   : > { %v3608_v4 = vpop.xlane.xlu0 %3607  ;;  %v3606_v43 = vpop.xlane.xlu1 %3605 }
 0x862   : > { %v3638_v29 = vmul.f32 0.0078125, %v3608_v4  ;;  %v3637_v36 = vmul.f32 0.0078125, %v3606_v43  ;;  %v3668_v28 = vmul.f32 %v11524_v14, %v11524_v14 }
 0x864   : > { %v11529_v60 = vsub.f32 %v11452_v34, %v3638_v29  ;;  %v11532_v47 = vsub.f32 %v11455_v21, %v3637_v36  ;;  %3684 = vadd.xlane.f32.xlu0 %v3668_v28  ;;  %v9390_v21 = vld [vmem:[#allocation14 + $0x38] sm:$0xff]  }
 0x865   : > { %v3610_v32 = vpop.xlane.xlu0 %3609  ;;  %8808 = vmatprep.subr.bf16.mxu0 %v9390_v21 }
 0x866   : > { %v3639_v10 = vmul.f32 0.0078125, %v3610_v32  ;;  %v3670_v15 = vmul.f32 %v11529_v60, %v11529_v60  ;;  %v3669_v55 = vmul.f32 %v11532_v47, %v11532_v47  ;;  %8809 = vmatpush3.bf16.msra.mxu0 %v9390_v21 }
 0x867   : > { %8810 = vmatprep.subr.bf16.mxu0 %v9391_v8 }
 0x868   : > { %v11539_v7 = vsub.f32 %v11460_v25, %v3639_v10  ;;  %3688 = vadd.xlane.f32.xlu0 %v3670_v15  ;;  %3686 = vadd.xlane.f32.xlu1 %v3669_v55 }
 0x86a   : > { %v3671_v34 = vmul.f32 %v11539_v7, %v11539_v7  ;;  %8811 = vmatpush3.bf16.msra.mxu0 %v9391_v8 }
 0x86b   : > { %8812 = vmatprep.subr.bf16.mxu0 %v9392_v19 }
 0x86c   : > { %3690 = vadd.xlane.f32.xlu1 %v3671_v34 }
 0x86e   : > { %8813 = vmatpush3.bf16.msra.mxu0 %v9392_v19 }
 0x86f   : > { %8814 = vmatprep.subr.bf16.mxu0 %v9393_v27 }
 0x872   : > { %8815 = vmatpush3.bf16.msra.mxu0 %v9393_v27 }
 0x873   : > { %8816 = vmatprep.subr.bf16.mxu0 %v9394_v38 }
 0x876   : > { %8817 = vmatpush3.bf16.msra.mxu0 %v9394_v38 }
 0x877   : > { %8818 = vmatprep.subr.bf16.mxu0 %v9395_v30 }
 0x87a   : > { %8819 = vmatpush3.bf16.msra.mxu0 %v9395_v30 }
 0x87b   : > { %8820 = vmatprep.subr.bf16.mxu0 %v9396_v50 }
 0x87e   : > { %8821 = vmatpush3.bf16.msra.mxu0 %v9396_v50  ;;  %v9399_v50 = vld [vmem:[#allocation15 + $0x30] sm:$0xff]  }
 0x87f   : > { %v3612_v25 = vpop.xlane.xlu0 %3611  ;;  %8822 = vmatprep.subr.bf16.mxu0 %v9397_v5 }
 0x880   : > { %v3640_v11 = vmul.f32 0.0078125, %v3612_v25 }
 0x882   : > { %v11544_v46 = vsub.f32 %v11466_v13, %v3640_v11  ;;  %8823 = vmatpush3.bf16.msra.mxu0 %v9397_v5 }
 0x883   : > { %v3616_v61 = vpop.xlane.xlu0 %3615  ;;  %v3614_v62 = vpop.xlane.xlu1 %3613 }
 0x884   : > { %v3642_v41 = vmul.f32 0.0078125, %v3616_v61  ;;  %v3641_v58 = vmul.f32 0.0078125, %v3614_v62  ;;  %v3672_v40 = vmul.f32 %v11544_v46, %v11544_v46 }
 0x886   : > { %v11549_v56 = vsub.f32 %v11472_v23, %v3642_v41  ;;  %v11552_v24 = vsub.f32 %v11475_v1, %v3641_v58  ;;  %3692 = vadd.xlane.f32.xlu0 %v3672_v40 }
 0x887   : > { %v3618_v13 = vpop.xlane.xlu1 %3617  ;;  %v3620_v37 = vpop.xlane.xlu0 %3619 }
 0x888   : > { %v3643_v9 = vmul.f32 0.0078125, %v3618_v13  ;;  %v3644_v17 = vmul.f32 0.0078125, %v3620_v37  ;;  %v3674_v53 = vmul.f32 %v11549_v56, %v11549_v56  ;;  %v3673_v0 = vmul.f32 %v11552_v24, %v11552_v24  ;;  %v9398_v37 = vld [vmem:[#allocation15 + $0x38] sm:$0xff]  }
 0x889   : > { %8840 = vmatprep.subr.bf16.mxu1 %v9398_v37 }
 0x88a   : > { %v11559_v23 = vsub.f32 %v11481_v57, %v3643_v9  ;;  %v11562_v1 = vsub.f32 %v11485_v12, %v3644_v17  ;;  %3696 = vadd.xlane.f32.xlu0 %v3674_v53  ;;  %3694 = vadd.xlane.f32.xlu1 %v3673_v0  ;;  %v9400_v0 = vld [vmem:[#allocation15 + $0x28] sm:$0xff]  }
 0x88b   : > { %v3624_v44 = vpop.xlane.xlu0 %3623  ;;  %v3622_v2 = vpop.xlane.xlu1 %3621  ;;  %8841 = vmatpush3.bf16.msra.mxu1 %v9398_v37 }
 0x88c   : > { %v3646_v16 = vmul.f32 0.0078125, %v3624_v44  ;;  %v3645_v51 = vmul.f32 0.0078125, %v3622_v2  ;;  %v3676_v48 = vmul.f32 %v11562_v1, %v11562_v1  ;;  %v3675_v4 = vmul.f32 %v11559_v23, %v11559_v23  ;;  %8842 = vmatprep.subr.bf16.mxu1 %v9399_v50  ;;  %v9401_v44 = vld [vmem:[#allocation15 + $0x20] sm:$0xff]  }
 0x88e   : > { %v11569_v57 = vsub.f32 %v11492_v45, %v3646_v16  ;;  %v11572_v12 = vsub.f32 %v11495_v39, %v3645_v51  ;;  %3700 = vadd.xlane.f32.xlu0 %v3676_v48  ;;  %3698 = vadd.xlane.f32.xlu1 %v3675_v4  ;;  %v9402_v16 = vld [vmem:[#allocation15 + $0x18] sm:$0xff]   ;;  %v11607_v48 = vld [vmem:[%s13186_s9] ss:$0 sm:$0xff] }
 0x88f   : > { %v3626_v43 = vpop.xlane.xlu1 %3625  ;;  %8843 = vmatpush3.bf16.msra.mxu1 %v9399_v50 }
 0x890   : > { %v3647_v29 = vmul.f32 0.0078125, %v3626_v43  ;;  %v3678_v36 = vmul.f32 %v11569_v57, %v11569_v57  ;;  %v3677_v28 = vmul.f32 %v11572_v12, %v11572_v12  ;;  %8844 = vmatprep.subr.bf16.mxu1 %v9400_v0 }
 0x892   : > { %v11579_v32 = vsub.f32 %v11500_v20, %v3647_v29  ;;  %3704 = vadd.xlane.f32.xlu0 %v3678_v36  ;;  %3702 = vadd.xlane.f32.xlu1 %v3677_v28 }
 0x893   : > { %8845 = vmatpush3.bf16.msra.mxu1 %v9400_v0 }
 0x894   : > { %v3679_v45 = vmul.f32 %v11579_v32, %v11579_v32  ;;  %8846 = vmatprep.subr.bf16.mxu1 %v9401_v44 }
 0x896   : > { %3706 = vadd.xlane.f32.xlu1 %v3679_v45  ;;  %v11615_v45 = vld [vmem:[%s13187_s10] ss:$0 sm:$0xff] }
 0x897   : > { %8847 = vmatpush3.bf16.msra.mxu1 %v9401_v44 }
 0x898   : > { %8848 = vmatprep.subr.bf16.mxu1 %v9402_v16 }
 0x89b   : > { %8849 = vmatpush3.bf16.msra.mxu1 %v9402_v16 }
 0x8c0   : > { %v3628_v39 = vpop.xlane.xlu0 %3627 }
 0x8c1   : > { %v3648_v10 = vmul.f32 0.0078125, %v3628_v39 }
 0x8c3   : > { %v11584_v15 = vsub.f32 %v11506_v35, %v3648_v10 }
 0x8c4   : > { %v3632_v55 = vpop.xlane.xlu0 %3631  ;;  %v3630_v34 = vpop.xlane.xlu1 %3629 }
 0x8c5   : > { %v3650_v21 = vmul.f32 0.0078125, %v3632_v55  ;;  %v3649_v8 = vmul.f32 0.0078125, %v3630_v34  ;;  %v3680_v19 = vmul.f32 %v11584_v15, %v11584_v15 }
 0x8c7   : > { %v11589_v20 = vsub.f32 %v11512_v54, %v3650_v21  ;;  %v11592_v27 = vsub.f32 %v11515_v18, %v3649_v8  ;;  %3708 = vadd.xlane.f32.xlu0 %v3680_v19 }
 0x8c8   : > { %v3634_v25 = vpop.xlane.xlu1 %3633 }
 0x8c9   : > { %v3651_v38 = vmul.f32 0.0078125, %v3634_v25  ;;  %v3682_v35 = vmul.f32 %v11589_v20, %v11589_v20  ;;  %v3681_v11 = vmul.f32 %v11592_v27, %v11592_v27 }
 0x8cb   : > { %v11599_v61 = vsub.f32 %v11520_v42, %v3651_v38  ;;  %3712 = vadd.xlane.f32.xlu0 %v3682_v35  ;;  %3710 = vadd.xlane.f32.xlu1 %v3681_v11 }
 0x8cd   : > { %v3683_v54 = vmul.f32 %v11599_v61, %v11599_v61 }
 0x8cf   : > { %3714 = vadd.xlane.f32.xlu1 %v3683_v54 }
 0x8ed   : > { %v3685_v18 = vpop.xlane.xlu0 %3684 }
 0x8ee   : > { %v3716_v62 = vmul.f32 0.0078125, %v3685_v18 }
 0x8f0   : > { %v3732_v30 = vadd.f32 1e-05, %v3716_v62 }
 0x8f1   : > { %v3689_v41 = vpop.xlane.xlu0 %3688  ;;  %v3687_v58 = vpop.xlane.xlu1 %3686 }
 0x8f2   : > { %9582 = vrsqrt.f32 %v3732_v30  ;;  %v3718_v40 = vmul.f32 0.0078125, %v3689_v41  ;;  %v3717_v13 = vmul.f32 0.0078125, %v3687_v58 }
 0x8f4   : > { %v3734_v9 = vadd.f32 1e-05, %v3718_v40  ;;  %v3733_v17 = vadd.f32 1e-05, %v3717_v13 }
 0x8f5   : > { %v3691_v42 = vpop.xlane.xlu1 %3690 }
 0x8f6   : > { %9584 = vrsqrt.f32 %v3734_v9  ;;  %v3719_v53 = vmul.f32 0.0078125, %v3691_v42 }
 0x8f7   : > { %9586 = vrsqrt.f32 %v3733_v17 }
 0x8f8   : > { %v3735_v5 = vadd.f32 1e-05, %v3719_v53 }
 0x8fa   : > { %9588 = vrsqrt.f32 %v3735_v5 }
 0x8ff   : > { %v9583_v2 = vpop.eup %9582 }
 0x900   : > { %v3764_v51 = vmul.f32 %v9583_v2, %v11524_v14 }
 0x902   : > { %v3786_v28 = vmul.f32 %v11607_v48, %v3764_v51 }
 0x903   : > { %v9585_v4 = vpop.eup %9584 }
 0x904   : > { %v9587_v43 = vpop.eup %9586  ;;  %v3766_v29 = vmul.f32 %v9585_v4, %v11529_v60  ;;  %v11621_v34 = vadd.f32 %v11615_v45, %v3786_v28 }
 0x905   : > { %v3765_v36 = vmul.f32 %v9587_v43, %v11532_v47 }
 0x906   : > { %v3788_v10 = vmul.f32 %v11607_v48, %v3766_v29 }
 0x907   : > { %v9589_v14 = vpop.eup %9588  ;;  %v3787_v39 = vmul.f32 %v11607_v48, %v3765_v36 }
 0x908   : > { %v3767_v55 = vmul.f32 %v9589_v14, %v11539_v7  ;;  %v11630_v8 = vadd.f32 %v11615_v45, %v3788_v10 }
 0x909   : > { %v11624_v60 = vadd.f32 %v11615_v45, %v3787_v39 }
 0x90a   : > { %v3789_v47 = vmul.f32 %v11607_v48, %v3767_v55 }
 0x90b   : > { %v3840_v21 = vpack.c.bf16 %v11624_v60, %v11621_v34 }
 0x90c   : > { %v11633_v19 = vadd.f32 %v11615_v45, %v3789_v47 }
 0x90d   : > { %8824 = vmatprep.mubr.bf16.mxu0 %v3840_v21 }
 0x90e   : > { %v3841_v7 = vpack.c.bf16 %v11633_v19, %v11630_v8 }
 0x90f   : > { %v3693_v25 = vpop.xlane.xlu0 %3692 }
 0x910   : > { %8825 = vmatmul.mubr.bf16.vlgmr.msra.gmra.mxu0 %v3841_v7  ;;  %v3720_v38 = vmul.f32 0.0078125, %v3693_v25 }
 0x912   : > { %v3736_v35 = vadd.f32 1e-05, %v3720_v38 }
 0x913   : > { %v3697_v11 = vpop.xlane.xlu0 %3696  ;;  %v3695_v54 = vpop.xlane.xlu1 %3694 }
 0x914   : > { %9590 = vrsqrt.f32 %v3736_v35  ;;  %v3722_v18 = vmul.f32 0.0078125, %v3697_v11  ;;  %v3721_v62 = vmul.f32 0.0078125, %v3695_v54 }
 0x916   : > { %v3738_v30 = vadd.f32 1e-05, %v3722_v18  ;;  %v3737_v41 = vadd.f32 1e-05, %v3721_v62 }
 0x917   : > { %v3701_v58 = vpop.xlane.xlu0 %3700  ;;  %v3699_v40 = vpop.xlane.xlu1 %3698 }
 0x918   : > { %9592 = vrsqrt.f32 %v3738_v30  ;;  %v3724_v13 = vmul.f32 0.0078125, %v3701_v58  ;;  %v3723_v37 = vmul.f32 0.0078125, %v3699_v40 }
 0x919   : > { %9594 = vrsqrt.f32 %v3737_v41 }
 0x91a   : > { %v3740_v50 = vadd.f32 1e-05, %v3724_v13  ;;  %v3739_v9 = vadd.f32 1e-05, %v3723_v37 }
 0x91b   : > { %v3705_v17 = vpop.xlane.xlu0 %3704  ;;  %v3703_v42 = vpop.xlane.xlu1 %3702 }
 0x91c   : > { %9596 = vrsqrt.f32 %v3740_v50  ;;  %v3726_v53 = vmul.f32 0.0078125, %v3705_v17  ;;  %v3725_v0 = vmul.f32 0.0078125, %v3703_v42 }
 0x91d   : > { %9598 = vrsqrt.f32 %v3739_v9 }
 0x91e   : > { %v3742_v5 = vadd.f32 1e-05, %v3726_v53  ;;  %v3741_v44 = vadd.f32 1e-05, %v3725_v0  ;;  %v9403_v0 = vld [vmem:[#allocation15 + $0x10] sm:$0xff]  }
 0x91f   : > { %v3707_v2 = vpop.xlane.xlu1 %3706  ;;  %8850 = vmatprep.subr.bf16.mxu1 %v9403_v0 }
 0x920   : > { %9600 = vrsqrt.f32 %v3742_v5  ;;  %v3727_v16 = vmul.f32 0.0078125, %v3707_v2  ;;  %8851 = vmatpush3.bf16.msra.mxu1 %v9403_v0 }
 0x921   : > { %v9591_v51 = vpop.eup %9590  ;;  %9602 = vrsqrt.f32 %v3741_v44 }
 0x922   : > { %v3743_v4 = vadd.f32 1e-05, %v3727_v16  ;;  %v3768_v43 = vmul.f32 %v9591_v51, %v11544_v46 }
 0x924   : > { %9604 = vrsqrt.f32 %v3743_v4  ;;  %v3790_v28 = vmul.f32 %v11607_v48, %v3768_v43  ;;  %v9404_v4 = vld [vmem:[#allocation15 + $0x8] sm:$0xff]  }
 0x925   : > { %v9593_v29 = vpop.eup %9592  ;;  %8852 = vmatprep.subr.bf16.mxu1 %v9404_v4 }
 0x926   : > { %v9595_v36 = vpop.eup %9594  ;;  %v3770_v39 = vmul.f32 %v9593_v29, %v11549_v56  ;;  %v11643_v21 = vadd.f32 %v11615_v45, %v3790_v28  ;;  %8853 = vmatpush3.bf16.msra.mxu1 %v9404_v4 }
 0x927   : > { %v3769_v14 = vmul.f32 %v9595_v36, %v11552_v24 }
 0x928   : > { %v3792_v25 = vmul.f32 %v11607_v48, %v3770_v39 }
 0x929   : > { %v9597_v10 = vpop.eup %9596  ;;  %v3791_v55 = vmul.f32 %v11607_v48, %v3769_v14  ;;  %v9405_v14 = vld [vmem:[#allocation15] sm:$0xff]  }
 0x92a   : > { %v9599_v47 = vpop.eup %9598  ;;  %v3772_v38 = vmul.f32 %v9597_v10, %v11562_v1  ;;  %v11656_v18 = vadd.f32 %v11615_v45, %v3792_v25  ;;  %8854 = vmatprep.subr.bf16.mxu1 %v9405_v14 }
 0x92b   : > { %v11646_v7 = vadd.f32 %v11615_v45, %v3791_v55  ;;  %v3771_v46 = vmul.f32 %v9599_v47, %v11559_v23  ;;  %8855 = vmatpush3.bf16.msra.mxu1 %v9405_v14 }
 0x92c   : > { %v3794_v1 = vmul.f32 %v11607_v48, %v3772_v38 }
 0x92d   : > { %v9601_v35 = vpop.eup %9600  ;;  %v3842_v56 = vpack.c.bf16 %v11646_v7, %v11643_v21  ;;  %v3793_v24 = vmul.f32 %v11607_v48, %v3771_v46 }
 0x92e   : > { %v9603_v11 = vpop.eup %9602  ;;  %v3774_v54 = vmul.f32 %v9601_v35, %v11569_v57  ;;  %v11669_v13 = vadd.f32 %v11615_v45, %v3794_v1 }
 0x92f   : > { %8828 = vmatprep.mubr.bf16.mxu0 %v3842_v56  ;;  %v11659_v62 = vadd.f32 %v11615_v45, %v3793_v24  ;;  %v3773_v23 = vmul.f32 %v9603_v11, %v11572_v12 }
 0x930   : > { %v3796_v57 = vmul.f32 %v11607_v48, %v3774_v54 }
 0x931   : > { %v9605_v30 = vpop.eup %9604  ;;  %v3843_v41 = vpack.c.bf16 %v11659_v62, %v11656_v18  ;;  %v3795_v58 = vmul.f32 %v11607_v48, %v3773_v23 }
 0x932   : > { %v3775_v40 = vmul.f32 %v9605_v30, %v11579_v32  ;;  %v11678_v9 = vadd.f32 %v11615_v45, %v3796_v57 }
 0x933   : > { %8829 = vmatmul.mubr.bf16.gmra.mxu0 %v3843_v41  ;;  %v11672_v37 = vadd.f32 %v11615_v45, %v3795_v58  ;;  %v13273_v41 = vmov 0  }
 0x934   : > { %v3797_v12 = vmul.f32 %v11607_v48, %v3775_v40 }
 0x935   : > { %v3844_v50 = vpack.c.bf16 %v11672_v37, %v11669_v13 }
 0x936   : > { %v11681_v17 = vadd.f32 %v11615_v45, %v3797_v12 }
 0x937   : > { %8832 = vmatprep.mubr.bf16.mxu0 %v3844_v50 }
 0x938   : > { %v3845_v32 = vpack.c.bf16 %v11681_v17, %v11678_v9 }
 0x93b   : > { %8833 = vmatmul.mubr.bf16.gmra.mxu0 %v3845_v32 }
 0x950   : > { %v3709_v42 = vpop.xlane.xlu0 %3708 }
 0x951   : > { %v3728_v53 = vmul.f32 0.0078125, %v3709_v42 }
 0x953   : > { %v3744_v5 = vadd.f32 1e-05, %v3728_v53 }
 0x954   : > { %v3713_v44 = vpop.xlane.xlu0 %3712  ;;  %v3711_v2 = vpop.xlane.xlu1 %3710 }
 0x955   : > { %9606 = vrsqrt.f32 %v3744_v5  ;;  %v3730_v16 = vmul.f32 0.0078125, %v3713_v44  ;;  %v3729_v51 = vmul.f32 0.0078125, %v3711_v2 }
 0x957   : > { %v3746_v43 = vadd.f32 1e-05, %v3730_v16  ;;  %v3745_v29 = vadd.f32 1e-05, %v3729_v51 }
 0x958   : > { %v3715_v36 = vpop.xlane.xlu1 %3714 }
 0x959   : > { %9608 = vrsqrt.f32 %v3746_v43  ;;  %v3731_v28 = vmul.f32 0.0078125, %v3715_v36 }
 0x95a   : > { %9610 = vrsqrt.f32 %v3745_v29 }
 0x95b   : > { %v3747_v39 = vadd.f32 1e-05, %v3731_v28 }
 0x95d   : > { %9612 = vrsqrt.f32 %v3747_v39 }
 0x962   : > { %v9607_v10 = vpop.eup %9606 }
 0x963   : > { %v3776_v55 = vmul.f32 %v9607_v10, %v11584_v15 }
 0x965   : > { %v3798_v35 = vmul.f32 %v11607_v48, %v3776_v55 }
 0x966   : > { %v9609_v47 = vpop.eup %9608 }
 0x967   : > { %v9611_v46 = vpop.eup %9610  ;;  %v3778_v25 = vmul.f32 %v9609_v47, %v11589_v20  ;;  %v11693_v23 = vadd.f32 %v11615_v45, %v3798_v35 }
 0x968   : > { %v3777_v38 = vmul.f32 %v9611_v46, %v11592_v27 }
 0x969   : > { %v3800_v54 = vmul.f32 %v11607_v48, %v3778_v25 }
 0x96a   : > { %v9613_v56 = vpop.eup %9612  ;;  %v3799_v24 = vmul.f32 %v11607_v48, %v3777_v38 }
 0x96b   : > { %v3779_v11 = vmul.f32 %v9613_v56, %v11599_v61  ;;  %v11702_v27 = vadd.f32 %v11615_v45, %v3800_v54 }
 0x96c   : > { %v11696_v15 = vadd.f32 %v11615_v45, %v3799_v24 }
 0x96d   : > { %v3801_v1 = vmul.f32 %v11607_v48, %v3779_v11  ;;  %v8188_v48 = vld [vmem:[%s13189_s12] ss:$0 sm:$0xff] }
 0x96e   : > { %v3846_v20 = vpack.c.bf16 %v11696_v15, %v11693_v23 }
 0x96f   : > { %v11705_v30 = vadd.f32 %v11615_v45, %v3801_v1 }
 0x970   : > { %8836 = vmatprep.mubr.bf16.mxu0 %v3846_v20 }
 0x971   : > { %v3847_v61 = vpack.c.bf16 %v11705_v30, %v11702_v27 }
 0x973   : > { %8837 = vmatmul.mubr.bf16.gmra.mxu0 %v3847_v61 }
 0x974   : > { %4580 = vmatprep.mubr.bf16.mxu0 %v13273_v41 }
 0x9d0   : > { %v8826_v58 = vpop.f32.mrf.mxu0 }
 0x9d1   : > { %v3946_v32 = vadd.f32 %v8826_v58, %v8188_v48 }
 0x9d2   : > { %v3937_v40 = vpop.f32.mrf.mxu0 }
 0x9d3   : > { %v3938_v12 = vadd.f32 %v8188_v48, %v3937_v40  ;;  %v4002_v44 = vmax.f32 %v3946_v32, 0.0 }
 0x9d4   : > { %v8827_v57 = vpop.f32.mrf.mxu0 }
 0x9d5   : > { %v3949_v50 = vadd.f32 %v8827_v57, %v8188_v48  ;;  %v4000_v0 = vmax.f32 %v3938_v12, 0.0 }
 0x9d6   : > { %v3940_v42 = vpop.f32.mrf.mxu0 }
 0x9d7   : > { %v3941_v45 = vadd.f32 %v8188_v48, %v3940_v42  ;;  %v4003_v53 = vmax.f32 %v3949_v50, 0.0 }
 0x9d9   : > { %v4001_v5 = vmax.f32 %v3941_v45, 0.0  ;;  %v4033_v16 = vpack.c.bf16 %v4003_v53, %v4002_v44 }
 0x9db   : > { %v4032_v2 = vpack.c.bf16 %v4001_v5, %v4000_v0 }
 0x9dd   : > { %8856 = vmatprep.mubr.bf16.mxu1 %v4032_v2 }
 0x9de   : > { %8857 = vmatmul.mubr.bf16.vlgmr.msra.gmra.mxu1 %v4033_v16 }
 0x9f3   : > { %v8830_v51 = vpop.f32.mrf.mxu0 }
 0x9f4   : > { %v3962_v28 = vadd.f32 %v8830_v51, %v8188_v48 }
 0x9f5   : > { %v3953_v4 = vpop.f32.mrf.mxu0 }
 0x9f6   : > { %v3954_v29 = vadd.f32 %v8188_v48, %v3953_v4  ;;  %v4006_v25 = vmax.f32 %v3962_v28, 0.0 }
 0x9f7   : > { %v8831_v43 = vpop.f32.mrf.mxu0 }
 0x9f8   : > { %v3965_v36 = vadd.f32 %v8831_v43, %v8188_v48  ;;  %v4004_v47 = vmax.f32 %v3954_v29, 0.0 }
 0x9f9   : > { %v3956_v14 = vpop.f32.mrf.mxu0 }
 0x9fa   : > { %v3957_v39 = vadd.f32 %v8188_v48, %v3956_v14  ;;  %v4007_v10 = vmax.f32 %v3965_v36, 0.0 }
 0x9fb   : > { %v8834_v55 = vpop.f32.mrf.mxu0 }
 0x9fc   : > { %v4005_v46 = vmax.f32 %v3957_v39, 0.0  ;;  %v4035_v56 = vpack.c.bf16 %v4007_v10, %v4006_v25  ;;  %v3978_v1 = vadd.f32 %v8834_v55, %v8188_v48  ;;  %v8197_v39 = vld [vmem:[%s13191_s14] ss:$0 sm:$0xff] }
 0x9fd   : > { %v3969_v38 = vpop.f32.mrf.mxu0 }
 0x9fe   : > { %v4034_v35 = vpack.c.bf16 %v4005_v46, %v4004_v47  ;;  %v3970_v11 = vadd.f32 %v8188_v48, %v3969_v38  ;;  %v4010_v12 = vmax.f32 %v3978_v1, 0.0 }
 0x9ff   : > { %v8835_v24 = vpop.f32.mrf.mxu0 }
 0xa00   : > { %v3981_v54 = vadd.f32 %v8835_v24, %v8188_v48  ;;  %8860 = vmatprep.mubr.bf16.mxu1 %v4034_v35  ;;  %v4008_v40 = vmax.f32 %v3970_v11, 0.0 }
 0xa01   : > { %v3972_v20 = vpop.f32.mrf.mxu0  ;;  %8861 = vmatmul.mubr.bf16.gmra.mxu1 %v4035_v56 }
 0xa02   : > { %v3973_v61 = vadd.f32 %v8188_v48, %v3972_v20  ;;  %v4011_v58 = vmax.f32 %v3981_v54, 0.0 }
 0xa04   : > { %v4009_v57 = vmax.f32 %v3973_v61, 0.0  ;;  %v4037_v32 = vpack.c.bf16 %v4011_v58, %v4010_v12 }
 0xa06   : > { %v4036_v50 = vpack.c.bf16 %v4009_v57, %v4008_v40 }
 0xa08   : > { %8864 = vmatprep.mubr.bf16.mxu1 %v4036_v50 }
 0xa09   : > { %8865 = vmatmul.mubr.bf16.gmra.mxu1 %v4037_v32 }
 0xa33   : > { %v8838_v42 = vpop.f32.mrf.mxu0 }
 0xa34   : > { %v3994_v44 = vadd.f32 %v8838_v42, %v8188_v48 }
 0xa35   : > { %v3985_v45 = vpop.f32.mrf.mxu0 }
 0xa36   : > { %v3986_v0 = vadd.f32 %v8188_v48, %v3985_v45  ;;  %v4014_v29 = vmax.f32 %v3994_v44, 0.0 }
 0xa37   : > { %v8839_v53 = vpop.f32.mrf.mxu0 }
 0xa38   : > { %v3997_v5 = vadd.f32 %v8839_v53, %v8188_v48  ;;  %v4012_v4 = vmax.f32 %v3986_v0, 0.0 }
 0xa39   : > { %v3988_v2 = vpop.f32.mrf.mxu0 }
 0xa3a   : > { %v3989_v16 = vadd.f32 %v8188_v48, %v3988_v2  ;;  %v4015_v51 = vmax.f32 %v3997_v5, 0.0 }
 0xa3c   : > { %v4013_v43 = vmax.f32 %v3989_v16, 0.0  ;;  %v4039_v28 = vpack.c.bf16 %v4015_v51, %v4014_v29 }
 0xa3e   : > { %v4038_v36 = vpack.c.bf16 %v4013_v43, %v4012_v4 }
 0xa40   : > { %8868 = vmatprep.mubr.bf16.mxu1 %v4038_v36 }
 0xa41   : > { %8869 = vmatmul.mubr.bf16.gmra.mxu1 %v4039_v28 }
 0xa42   : > { %4640 = vmatprep.mubr.bf16.mxu1 %v13273_v41 }
 0xa9e   : > { %v8858_v14 = vpop.f32.mrf.mxu1 }
 0xa9f   : > { %v4138_v46 = vadd.f32 %v8858_v14, %v8197_v39  ;;  %v9408_v14 = vld [vmem:[#allocation11 + $0xf4] ss:$8 sps:$4 sm:$0xff]  }
 0xaa0   : > { %v4129_v10 = vpop.f32.mrf.mxu1  ;;  %4548 = vmatprep.subr.bf16.mxu0 %v9408_v14  ;;  %9196 = vmatprep.subr.bf16.mxu1 %v9408_v14 }
 0xaa1   : > { %v4130_v55 = vadd.f32 %v8197_v39, %v4129_v10  ;;  %v11722_v35 = vadd.f32 %v4138_v46, %v11630_v8 }
 0xaa2   : > { %v8859_v47 = vpop.f32.mrf.mxu1 }
 0xaa3   : > { %v11718_v48 = vadd.f32 %v4130_v55, %v11621_v34  ;;  %v4141_v56 = vadd.f32 %v8859_v47, %v8197_v39 }
 0xaa4   : > { %v4132_v25 = vpop.f32.mrf.mxu1 }
 0xaa5   : > { %v4133_v38 = vadd.f32 %v8197_v39, %v4132_v25  ;;  %4210 = vadd.xlane.f32.xlu0 %v11718_v48  ;;  %v11730_v11 = vadd.f32 %v4141_v56, %v11633_v19 }
 0xaa7   : > { %v11725_v24 = vadd.f32 %v4133_v38, %v11624_v60 }
 0xaa9   : > { %4212 = vadd.xlane.f32.xlu1 %v11725_v24  ;;  %4214 = vadd.xlane.f32.xlu0 %v11722_v35 }
 0xaad   : > { %4216 = vadd.xlane.f32.xlu1 %v11730_v11 }
 0xac1   : > { %v8862_v34 = vpop.f32.mrf.mxu1 }
 0xac2   : > { %v4154_v61 = vadd.f32 %v8862_v34, %v8197_v39 }
 0xac3   : > { %v4145_v54 = vpop.f32.mrf.mxu1 }
 0xac4   : > { %v4146_v1 = vadd.f32 %v8197_v39, %v4145_v54  ;;  %v11738_v57 = vadd.f32 %v4154_v61, %v11656_v18  ;;  %v9414_v61 = vld [vmem:[#allocation11 + $0xd4] ss:$8 sps:$4 sm:$0xff]  }
 0xac5   : > { %v8863_v20 = vpop.f32.mrf.mxu1 }
 0xac6   : > { %v11734_v8 = vadd.f32 %v4146_v1, %v11643_v21  ;;  %v4157_v19 = vadd.f32 %v8863_v20, %v8197_v39  ;;  %v9409_v20 = vld [vmem:[#allocation11 + $0xe0] ss:$8 sps:$4 sm:$0xff]  }
 0xac7   : > { %v4148_v58 = vpop.f32.mrf.mxu1 }
 0xac8   : > { %v4149_v60 = vadd.f32 %v8197_v39, %v4148_v58  ;;  %4218 = vadd.xlane.f32.xlu0 %v11734_v8  ;;  %v11746_v42 = vadd.f32 %v4157_v19, %v11659_v62  ;;  %v9412_v58 = vld [vmem:[#allocation11 + $0xd0] ss:$8 sps:$4 sm:$0xff]  }
 0xac9   : > { %v8866_v40 = vpop.f32.mrf.mxu1  ;;  %v9418_v19 = vld [vmem:[#allocation11 + $0xb0] ss:$8 sps:$4 sm:$0xff]  }
 0xaca   : > { %v11741_v12 = vadd.f32 %v4149_v60, %v11646_v7  ;;  %v4170_v45 = vadd.f32 %v8866_v40, %v8197_v39  ;;  %v9415_v60 = vld [vmem:[#allocation11 + $0xc0] ss:$8 sps:$4 sm:$0xff]   ;;  %v9420_v40 = vld [vmem:[#allocation11 + $0xb4] ss:$8 sps:$4 sm:$0xff]  }
 0xacb   : > { %v4161_v50 = vpop.f32.mrf.mxu1 }
 0xacc   : > { %v4162_v32 = vadd.f32 %v8197_v39, %v4161_v50  ;;  %4220 = vadd.xlane.f32.xlu1 %v11741_v12  ;;  %4222 = vadd.xlane.f32.xlu0 %v11738_v57  ;;  %v11754_v7 = vadd.f32 %v4170_v45, %v11678_v9  ;;  %v9423_v50 = vld [vmem:[#allocation11 + $0xa4] ss:$8 sps:$4 sm:$0xff]  }
 0xacd   : > { %v8867_v21 = vpop.f32.mrf.mxu1 }
 0xace   : > { %v11749_v53 = vadd.f32 %v4162_v32, %v11669_v13  ;;  %v4173_v5 = vadd.f32 %v8867_v21, %v8197_v39  ;;  %v9421_v21 = vld [vmem:[#allocation11 + $0xa0] ss:$8 sps:$4 sm:$0xff]  }
 0xacf   : > { %v4164_v18 = vpop.f32.mrf.mxu1 }
 0xad0   : > { %v4165_v0 = vadd.f32 %v8197_v39, %v4164_v18  ;;  %4224 = vadd.xlane.f32.xlu1 %v11746_v42  ;;  %4226 = vadd.xlane.f32.xlu0 %v11749_v53  ;;  %v11762_v62 = vadd.f32 %v4173_v5, %v11681_v17 }
 0xad2   : > { %v11757_v44 = vadd.f32 %v4165_v0, %v11672_v37  ;;  %v9426_v0 = vld [vmem:[#allocation11 + $0x94] ss:$8 sps:$4 sm:$0xff]  }
 0xad4   : > { %4228 = vadd.xlane.f32.xlu1 %v11757_v44  ;;  %4230 = vadd.xlane.f32.xlu0 %v11754_v7 }
 0xad8   : > { %4232 = vadd.xlane.f32.xlu1 %v11762_v62 }
 0xb01   : > { %v8870_v13 = vpop.f32.mrf.mxu1 }
 0xb02   : > { %v4186_v4 = vadd.f32 %v8870_v13, %v8197_v39 }
 0xb03   : > { %v4177_v2 = vpop.f32.mrf.mxu1 }
 0xb04   : > { %v4178_v16 = vadd.f32 %v8197_v39, %v4177_v2  ;;  %v11770_v29 = vadd.f32 %v4186_v4, %v11702_v27  ;;  %v9424_v2 = vld [vmem:[#allocation11 + $0x90] ss:$8 sps:$4 sm:$0xff]  }
 0xb05   : > { %v8871_v51 = vpop.f32.mrf.mxu1 }
 0xb06   : > { %v11766_v9 = vadd.f32 %v4178_v16, %v11693_v23  ;;  %v4189_v36 = vadd.f32 %v8871_v51, %v8197_v39  ;;  %v9406_v23 = vld [vmem:[#allocation11 + $0xf0] ss:$8 sps:$4 sm:$0xff]  }
 0xb07   : > { %v4180_v43 = vpop.f32.mrf.mxu1  ;;  %4549 = vmatpush1.bf16.msra.mxu0 %v9406_v23  ;;  %9204 = vmatpush1.bf16.msra.mxu1 %v9406_v23 }
 0xb08   : > { %v4181_v37 = vadd.f32 %v8197_v39, %v4180_v43  ;;  %4234 = vadd.xlane.f32.xlu0 %v11766_v9  ;;  %v11778_v28 = vadd.f32 %v4189_v36, %v11705_v30  ;;  %v9427_v43 = vld [vmem:[#allocation11 + $0x80] ss:$8 sps:$4 sm:$0xff]  }
 0xb0a   : > { %v11773_v17 = vadd.f32 %v4181_v37, %v11696_v15  ;;  %v9429_v37 = vld [vmem:[#allocation11 + $0x84] ss:$8 sps:$4 sm:$0xff]  }
 0xb0c   : > { %4236 = vadd.xlane.f32.xlu1 %v11773_v17  ;;  %4238 = vadd.xlane.f32.xlu0 %v11770_v29 }
 0xb10   : > { %4240 = vadd.xlane.f32.xlu1 %v11778_v28 }
 0xb2e   : > { %v4211_v27 = vpop.xlane.xlu0 %4210 }
 0xb2f   : > { %v4242_v39 = vmul.f32 0.0078125, %v4211_v27 }
 0xb31   : > { %v11782_v15 = vsub.f32 %v11718_v48, %v4242_v39 }
 0xb32   : > { %v4215_v10 = vpop.xlane.xlu0 %4214  ;;  %v4213_v55 = vpop.xlane.xlu1 %4212 }
 0xb33   : > { %v4244_v47 = vmul.f32 0.0078125, %v4215_v10  ;;  %v4243_v46 = vmul.f32 0.0078125, %v4213_v55  ;;  %v4274_v30 = vmul.f32 %v11782_v15, %v11782_v15 }
 0xb35   : > { %v11787_v25 = vsub.f32 %v11722_v35, %v4244_v47  ;;  %v11790_v38 = vsub.f32 %v11725_v24, %v4243_v46  ;;  %4290 = vadd.xlane.f32.xlu0 %v4274_v30  ;;  %v9411_v24 = vld [vmem:[#allocation11 + $0xe4] ss:$8 sps:$4 sm:$0xff]  }
 0xb36   : > { %v4217_v56 = vpop.xlane.xlu1 %4216  ;;  %4550 = vmatprep.subr.bf16.mxu0 %v9411_v24  ;;  %9197 = vmatprep.subr.bf16.mxu1 %v9411_v24 }
 0xb37   : > { %v4245_v34 = vmul.f32 0.0078125, %v4217_v56  ;;  %v4276_v48 = vmul.f32 %v11787_v25, %v11787_v25  ;;  %v4275_v54 = vmul.f32 %v11790_v38, %v11790_v38  ;;  %4551 = vmatpush1.bf16.msra.mxu0 %v9409_v20  ;;  %9205 = vmatpush1.bf16.msra.mxu1 %v9409_v20 }
 0xb38   : > { %4552 = vmatprep.subr.bf16.mxu0 %v9414_v61  ;;  %9198 = vmatprep.subr.bf16.mxu1 %v9414_v61 }
 0xb39   : > { %v11797_v1 = vsub.f32 %v11730_v11, %v4245_v34  ;;  %4294 = vadd.xlane.f32.xlu0 %v4276_v48  ;;  %4292 = vadd.xlane.f32.xlu1 %v4275_v54  ;;  %v9417_v11 = vld [vmem:[#allocation11 + $0xc4] ss:$8 sps:$4 sm:$0xff]  }
 0xb3b   : > { %v4277_v35 = vmul.f32 %v11797_v1, %v11797_v1  ;;  %4553 = vmatpush1.bf16.msra.mxu0 %v9412_v58  ;;  %9206 = vmatpush1.bf16.msra.mxu1 %v9412_v58 }
 0xb3c   : > { %4554 = vmatprep.subr.bf16.mxu0 %v9417_v11  ;;  %9199 = vmatprep.subr.bf16.mxu1 %v9417_v11 }
 0xb3d   : > { %4296 = vadd.xlane.f32.xlu1 %v4277_v35 }
 0xb3f   : > { %4555 = vmatpush1.bf16.msra.mxu0 %v9415_v60  ;;  %9207 = vmatpush1.bf16.msra.mxu1 %v9415_v60 }
 0xb40   : > { %4556 = vmatprep.subr.bf16.mxu0 %v9420_v40  ;;  %9200 = vmatprep.subr.bf16.mxu1 %v9420_v40 }
 0xb43   : > { %4557 = vmatpush1.bf16.msra.mxu0 %v9418_v19  ;;  %9208 = vmatpush1.bf16.msra.mxu1 %v9418_v19 }
 0xb44   : > { %4558 = vmatprep.subr.bf16.mxu0 %v9423_v50  ;;  %9201 = vmatprep.subr.bf16.mxu1 %v9423_v50 }
 0xb47   : > { %4559 = vmatpush1.bf16.msra.mxu0 %v9421_v21  ;;  %9209 = vmatpush1.bf16.msra.mxu1 %v9421_v21 }
 0xb48   : > { %4560 = vmatprep.subr.bf16.mxu0 %v9426_v0  ;;  %9202 = vmatprep.subr.bf16.mxu1 %v9426_v0 }
 0xb4b   : > { %4561 = vmatpush1.bf16.msra.mxu0 %v9424_v2  ;;  %9210 = vmatpush1.bf16.msra.mxu1 %v9424_v2 }
 0xb4c   : > { %4562 = vmatprep.subr.bf16.mxu0 %v9429_v37  ;;  %9203 = vmatprep.subr.bf16.mxu1 %v9429_v37 }
 0xb4f   : > { %4563 = vmatpush1.bf16.msra.mxu0 %v9427_v43  ;;  %9211 = vmatpush1.bf16.msra.mxu1 %v9427_v43 }
 0xb50   : > { %8872 = vmatprep.subr.bf16.mxu1 %v13267_v59  ;;  %8920 = vmatprep.subr.bf16.mxu0 %v13267_v59 }
 0xb51   : > { %v4219_v32 = vpop.xlane.xlu0 %4218 }
 0xb52   : > { %v4246_v45 = vmul.f32 0.0078125, %v4219_v32 }
 0xb54   : > { %v11802_v18 = vsub.f32 %v11734_v8, %v4246_v45 }
 0xb55   : > { %v4223_v5 = vpop.xlane.xlu0 %4222  ;;  %v4221_v13 = vpop.xlane.xlu1 %4220 }
 0xb56   : > { %v4248_v16 = vmul.f32 0.0078125, %v4223_v5  ;;  %v4247_v51 = vmul.f32 0.0078125, %v4221_v13  ;;  %v4278_v4 = vmul.f32 %v11802_v18, %v11802_v18 }
 0xb58   : > { %v11807_v36 = vsub.f32 %v11738_v57, %v4248_v16  ;;  %v11810_v8 = vsub.f32 %v11741_v12, %v4247_v51  ;;  %4298 = vadd.xlane.f32.xlu0 %v4278_v4 }
 0xb59   : > { %v4227_v23 = vpop.xlane.xlu0 %4226  ;;  %v4225_v14 = vpop.xlane.xlu1 %4224 }
 0xb5a   : > { %v4250_v27 = vmul.f32 0.0078125, %v4227_v23  ;;  %v4249_v39 = vmul.f32 0.0078125, %v4225_v14  ;;  %v4280_v10 = vmul.f32 %v11807_v36, %v11807_v36  ;;  %v4279_v55 = vmul.f32 %v11810_v8, %v11810_v8 }
 0xb5c   : > { %v11817_v57 = vsub.f32 %v11749_v53, %v4250_v27  ;;  %v11820_v12 = vsub.f32 %v11746_v42, %v4249_v39  ;;  %4302 = vadd.xlane.f32.xlu0 %v4280_v10  ;;  %4300 = vadd.xlane.f32.xlu1 %v4279_v55 }
 0xb5d   : > { %v4231_v47 = vpop.xlane.xlu0 %4230  ;;  %v4229_v46 = vpop.xlane.xlu1 %4228 }
 0xb5e   : > { %v4252_v30 = vmul.f32 0.0078125, %v4231_v47  ;;  %v4251_v56 = vmul.f32 0.0078125, %v4229_v46  ;;  %v4282_v34 = vmul.f32 %v11817_v57, %v11817_v57  ;;  %v4281_v53 = vmul.f32 %v11820_v12, %v11820_v12  ;;  %v11867_v47 = vld [vmem:[%s13274_s3] ss:$0 sm:$0xff] }
 0xb60   : > { %v11829_v48 = vsub.f32 %v11754_v7, %v4252_v30  ;;  %v11832_v42 = vsub.f32 %v11757_v44, %v4251_v56  ;;  %4306 = vadd.xlane.f32.xlu0 %v4282_v34  ;;  %4304 = vadd.xlane.f32.xlu1 %v4281_v53  ;;  %v11874_v53 = vld [vmem:[%s13275_s5] ss:$0 sm:$0xff] }
 0xb61   : > { %v4233_v54 = vpop.xlane.xlu1 %4232 }
 0xb62   : > { %v4253_v35 = vmul.f32 0.0078125, %v4233_v54  ;;  %v4284_v24 = vmul.f32 %v11829_v48, %v11829_v48  ;;  %v4283_v20 = vmul.f32 %v11832_v42, %v11832_v42 }
 0xb64   : > { %v11839_v61 = vsub.f32 %v11762_v62, %v4253_v35  ;;  %4310 = vadd.xlane.f32.xlu0 %v4284_v24  ;;  %4308 = vadd.xlane.f32.xlu1 %v4283_v20 }
 0xb66   : > { %v4285_v7 = vmul.f32 %v11839_v61, %v11839_v61 }
 0xb68   : > { %4312 = vadd.xlane.f32.xlu1 %v4285_v7 }
 0xb91   : > { %v4235_v44 = vpop.xlane.xlu0 %4234 }
 0xb92   : > { %v4254_v58 = vmul.f32 0.0078125, %v4235_v44 }
 0xb94   : > { %v11844_v11 = vsub.f32 %v11766_v9, %v4254_v58 }
 0xb95   : > { %v4239_v60 = vpop.xlane.xlu0 %4238  ;;  %v4237_v40 = vpop.xlane.xlu1 %4236 }
 0xb96   : > { %v4256_v19 = vmul.f32 0.0078125, %v4239_v60  ;;  %v4255_v50 = vmul.f32 0.0078125, %v4237_v40  ;;  %v4286_v32 = vmul.f32 %v11844_v11, %v11844_v11 }
 0xb98   : > { %v11849_v62 = vsub.f32 %v11770_v29, %v4256_v19  ;;  %v11852_v21 = vsub.f32 %v11773_v17, %v4255_v50  ;;  %4314 = vadd.xlane.f32.xlu0 %v4286_v32 }
 0xb99   : > { %v4241_v45 = vpop.xlane.xlu1 %4240 }
 0xb9a   : > { %v4257_v0 = vmul.f32 0.0078125, %v4241_v45  ;;  %v4288_v9 = vmul.f32 %v11849_v62, %v11849_v62  ;;  %v4287_v5 = vmul.f32 %v11852_v21, %v11852_v21 }
 0xb9c   : > { %v11859_v13 = vsub.f32 %v11778_v28, %v4257_v0  ;;  %4318 = vadd.xlane.f32.xlu0 %v4288_v9  ;;  %4316 = vadd.xlane.f32.xlu1 %v4287_v5 }
 0xb9e   : > { %v4289_v29 = vmul.f32 %v11859_v13, %v11859_v13 }
 0xba0   : > { %4320 = vadd.xlane.f32.xlu1 %v4289_v29 }
 0xbbe   : > { %v4291_v17 = vpop.xlane.xlu0 %4290 }
 0xbbf   : > { %v4322_v2 = vmul.f32 0.0078125, %v4291_v17 }
 0xbc1   : > { %v4338_v16 = vadd.f32 1e-05, %v4322_v2 }
 0xbc2   : > { %v4295_v51 = vpop.xlane.xlu0 %4294  ;;  %v4293_v4 = vpop.xlane.xlu1 %4292 }
 0xbc3   : > { %9614 = vrsqrt.f32 %v4338_v16  ;;  %v4324_v43 = vmul.f32 0.0078125, %v4295_v51  ;;  %v4323_v37 = vmul.f32 0.0078125, %v4293_v4 }
 0xbc5   : > { %v4339_v23 = vadd.f32 1e-05, %v4323_v37  ;;  %v4340_v14 = vadd.f32 1e-05, %v4324_v43 }
 0xbc6   : > { %v4297_v27 = vpop.xlane.xlu1 %4296 }
 0xbc7   : > { %v4325_v39 = vmul.f32 0.0078125, %v4297_v27  ;;  %9616 = vrsqrt.f32 %v4339_v23 }
 0xbc8   : > { %9618 = vrsqrt.f32 %v4340_v14 }
 0xbc9   : > { %v4341_v28 = vadd.f32 1e-05, %v4325_v39 }
 0xbcb   : > { %9620 = vrsqrt.f32 %v4341_v28 }
 0xbd0   : > { %v9615_v10 = vpop.eup %9614 }
 0xbd1   : > { %v4370_v55 = vmul.f32 %v9615_v10, %v11782_v15 }
 0xbd3   : > { %v4392_v30 = vmul.f32 %v11867_v47, %v4370_v55 }
 0xbd4   : > { %v9617_v46 = vpop.eup %9616 }
 0xbd5   : > { %v4371_v56 = vmul.f32 %v9617_v46, %v11790_v38  ;;  %v9619_v34 = vpop.eup %9618  ;;  %v4414_v24 = vadd.f32 %v11874_v53, %v4392_v30 }
 0xbd6   : > { %v4372_v7 = vmul.f32 %v9619_v34, %v11787_v25 }
 0xbd7   : > { %v4393_v35 = vmul.f32 %v11867_v47, %v4371_v56 }
 0xbd8   : > { %v9621_v54 = vpop.eup %9620  ;;  %v4394_v58 = vmul.f32 %v11867_v47, %v4372_v7 }
 0xbd9   : > { %v4373_v15 = vmul.f32 %v9621_v54, %v11797_v1  ;;  %v4415_v20 = vadd.f32 %v11874_v53, %v4393_v35 }
 0xbda   : > { %v4416_v19 = vadd.f32 %v11874_v53, %v4394_v58 }
 0xbdb   : > { %v4447_v44 = vpack.c.bf16 %v4415_v20, %v4414_v24  ;;  %v4395_v38 = vmul.f32 %v11867_v47, %v4373_v15 }
 0xbdd   : > { %4581 = vmatmul.mubr.bf16.vlgmr.msra.gmra.mxu0 %v4447_v44  ;;  %v4417_v60 = vadd.f32 %v11874_v53, %v4395_v38 }
 0xbde   : > { %4590 = vmatprep.mubr.bf16.mxu0 %v13273_v41 }
 0xbdf   : > { %v4448_v50 = vpack.c.bf16 %v4417_v60, %v4416_v19 }
 0xbe1   : > { %v4299_v40 = vpop.xlane.xlu0 %4298 }
 0xbe2   : > { %v4326_v1 = vmul.f32 0.0078125, %v4299_v40 }
 0xbe4   : > { %v4342_v32 = vadd.f32 1e-05, %v4326_v1 }
 0xbe5   : > { %v4303_v45 = vpop.xlane.xlu0 %4302  ;;  %v4301_v0 = vpop.xlane.xlu1 %4300  ;;  %4591 = vmatmul.mubr.bf16.gmra.mxu0 %v4448_v50 }
 0xbe6   : > { %9622 = vrsqrt.f32 %v4342_v32  ;;  %v4328_v25 = vmul.f32 0.0078125, %v4303_v45  ;;  %v4327_v9 = vmul.f32 0.0078125, %v4301_v0  ;;  %4600 = vmatprep.mubr.bf16.mxu0 %v13273_v41 }
 0xbe8   : > { %v4343_v5 = vadd.f32 1e-05, %v4327_v9  ;;  %v4344_v29 = vadd.f32 1e-05, %v4328_v25 }
 0xbe9   : > { %v4305_v17 = vpop.xlane.xlu1 %4304  ;;  %v4307_v2 = vpop.xlane.xlu0 %4306 }
 0xbea   : > { %v4329_v16 = vmul.f32 0.0078125, %v4305_v17  ;;  %9624 = vrsqrt.f32 %v4343_v5  ;;  %v4330_v4 = vmul.f32 0.0078125, %v4307_v2 }
 0xbeb   : > { %9626 = vrsqrt.f32 %v4344_v29 }
 0xbec   : > { %v4345_v51 = vadd.f32 1e-05, %v4329_v16  ;;  %v4346_v14 = vadd.f32 1e-05, %v4330_v4 }
 0xbed   : > { %v4309_v43 = vpop.xlane.xlu1 %4308  ;;  %v4311_v27 = vpop.xlane.xlu0 %4310 }
 0xbee   : > { %v4331_v37 = vmul.f32 0.0078125, %v4309_v43  ;;  %9628 = vrsqrt.f32 %v4345_v51  ;;  %v4332_v55 = vmul.f32 0.0078125, %v4311_v27 }
 0xbf0   : > { %v4347_v23 = vadd.f32 1e-05, %v4331_v37  ;;  %v4348_v34 = vadd.f32 1e-05, %v4332_v55 }
 0xbf1   : > { %v4313_v39 = vpop.xlane.xlu1 %4312 }
 0xbf2   : > { %9630 = vrsqrt.f32 %v4347_v23  ;;  %v4333_v10 = vmul.f32 0.0078125, %v4313_v39 }
 0xbf3   : > { %v9623_v28 = vpop.eup %9622  ;;  %9632 = vrsqrt.f32 %v4346_v14 }
 0xbf4   : > { %v4374_v46 = vmul.f32 %v9623_v28, %v11802_v18  ;;  %v4349_v30 = vadd.f32 1e-05, %v4333_v10 }
 0xbf6   : > { %v4396_v35 = vmul.f32 %v11867_v47, %v4374_v46  ;;  %9634 = vrsqrt.f32 %v4349_v30 }
 0xbf7   : > { %v9625_v56 = vpop.eup %9624  ;;  %9636 = vrsqrt.f32 %v4348_v34 }
 0xbf8   : > { %v4375_v54 = vmul.f32 %v9625_v56, %v11810_v8  ;;  %v9627_v15 = vpop.eup %9626  ;;  %v4418_v7 = vadd.f32 %v11874_v53, %v4396_v35 }
 0xbf9   : > { %v4376_v38 = vmul.f32 %v9627_v15, %v11807_v36 }
 0xbfa   : > { %v4397_v24 = vmul.f32 %v11867_v47, %v4375_v54 }
 0xbfb   : > { %v9629_v20 = vpop.eup %9628  ;;  %v4398_v40 = vmul.f32 %v11867_v47, %v4376_v38 }
 0xbfc   : > { %v4419_v44 = vadd.f32 %v11874_v53, %v4397_v24  ;;  %v4377_v18 = vmul.f32 %v9629_v20, %v11820_v12 }
 0xbfd   : > { %v4420_v32 = vadd.f32 %v11874_v53, %v4398_v40 }
 0xbfe   : > { %v4449_v58 = vpack.c.bf16 %v4419_v44, %v4418_v7  ;;  %v4399_v60 = vmul.f32 %v11867_v47, %v4377_v18 }
 0xbff   : > { %v9631_v8 = vpop.eup %9630 }
 0xc00   : > { %4601 = vmatmul.mubr.bf16.gmra.mxu0 %v4449_v58  ;;  %v9633_v19 = vpop.eup %9632  ;;  %v4421_v1 = vadd.f32 %v11874_v53, %v4399_v60  ;;  %v4379_v50 = vmul.f32 %v9631_v8, %v11832_v42 }
 0xc01   : > { %4610 = vmatprep.mubr.bf16.mxu0 %v13273_v41  ;;  %v4378_v36 = vmul.f32 %v9633_v19, %v11817_v57 }
 0xc02   : > { %v4450_v45 = vpack.c.bf16 %v4421_v1, %v4420_v32  ;;  %v4401_v12 = vmul.f32 %v11867_v47, %v4379_v50 }
 0xc03   : > { %v9635_v0 = vpop.eup %9634  ;;  %v4400_v9 = vmul.f32 %v11867_v47, %v4378_v36 }
 0xc04   : > { %v9637_v25 = vpop.eup %9636  ;;  %v4423_v5 = vadd.f32 %v11874_v53, %v4401_v12  ;;  %v4381_v29 = vmul.f32 %v9635_v0, %v11839_v61 }
 0xc05   : > { %v4422_v42 = vadd.f32 %v11874_v53, %v4400_v9  ;;  %v4380_v17 = vmul.f32 %v9637_v25, %v11829_v48 }
 0xc06   : > { %v4403_v57 = vmul.f32 %v11867_v47, %v4381_v29 }
 0xc07   : > { %v4451_v2 = vpack.c.bf16 %v4423_v5, %v4422_v42  ;;  %v4402_v16 = vmul.f32 %v11867_v47, %v4380_v17 }
 0xc08   : > { %4611 = vmatmul.mubr.bf16.gmra.mxu0 %v4450_v45  ;;  %v4425_v51 = vadd.f32 %v11874_v53, %v4403_v57 }
 0xc09   : > { %4620 = vmatprep.mubr.bf16.mxu0 %v13273_v41  ;;  %v4424_v4 = vadd.f32 %v11874_v53, %v4402_v16 }
 0xc0b   : > { %v4452_v43 = vpack.c.bf16 %v4425_v51, %v4424_v4 }
 0xc10   : > { %4621 = vmatmul.mubr.bf16.gmra.mxu0 %v4451_v2 }
 0xc11   : > { %4630 = vmatprep.mubr.bf16.mxu0 %v13273_v41 }
 0xc18   : > { %4631 = vmatmul.mubr.bf16.gmra.mxu0 %v4452_v43 }
 0xc19   : > { %8922 = vmatprep.mubr.msk.bf16.mxu0 %vm10190_vm0, %v13267_v59 }
 0xc21   : > { %v4315_v61 = vpop.xlane.xlu0 %4314 }
 0xc22   : > { %v4334_v37 = vmul.f32 0.0078125, %v4315_v61 }
 0xc24   : > { %v4350_v48 = vadd.f32 1e-05, %v4334_v37 }
 0xc25   : > { %v4319_v23 = vpop.xlane.xlu0 %4318  ;;  %v4317_v14 = vpop.xlane.xlu1 %4316 }
 0xc26   : > { %9638 = vrsqrt.f32 %v4350_v48  ;;  %v4336_v27 = vmul.f32 0.0078125, %v4319_v23  ;;  %v4335_v39 = vmul.f32 0.0078125, %v4317_v14 }
 0xc28   : > { %v4351_v28 = vadd.f32 1e-05, %v4335_v39  ;;  %v4352_v10 = vadd.f32 1e-05, %v4336_v27 }
 0xc29   : > { %v4321_v55 = vpop.xlane.xlu1 %4320 }
 0xc2a   : > { %v4337_v46 = vmul.f32 0.0078125, %v4321_v55  ;;  %9640 = vrsqrt.f32 %v4351_v28 }
 0xc2b   : > { %9642 = vrsqrt.f32 %v4352_v10 }
 0xc2c   : > { %v4353_v30 = vadd.f32 1e-05, %v4337_v46 }
 0xc2e   : > { %9644 = vrsqrt.f32 %v4353_v30 }
 0xc33   : > { %v9639_v56 = vpop.eup %9638 }
 0xc34   : > { %v4382_v34 = vmul.f32 %v9639_v56, %v11844_v11 }
 0xc36   : > { %v4404_v35 = vmul.f32 %v11867_v47, %v4382_v34 }
 0xc37   : > { %v9641_v54 = vpop.eup %9640 }
 0xc38   : > { %v4383_v15 = vmul.f32 %v9641_v54, %v11852_v21  ;;  %v9643_v24 = vpop.eup %9642  ;;  %v4426_v38 = vadd.f32 %v11874_v53, %v4404_v35 }
 0xc39   : > { %v4384_v58 = vmul.f32 %v9643_v24, %v11849_v62  ;;  %v8208_v62 = vld [vmem:[%s13183_s6 + $0x2] sm:$0x3] }
 0xc3a   : > { %v4405_v7 = vmul.f32 %v11867_v47, %v4383_v15  ;;  %v11935_v1 = vrot.slane %v8208_v62, %v10621_v22 }
 0xc3b   : > { %v9645_v20 = vpop.eup %9644  ;;  %v4406_v8 = vmul.f32 %v11867_v47, %v4384_v58 }
 0xc3c   : > { %v4385_v44 = vmul.f32 %v9645_v20, %v11859_v13  ;;  %v4427_v18 = vadd.f32 %v11874_v53, %v4405_v7 }
 0xc3d   : > { %v4428_v40 = vadd.f32 %v11874_v53, %v4406_v8 }
 0xc3e   : > { %v4453_v60 = vpack.c.bf16 %v4427_v18, %v4426_v38  ;;  %v4407_v11 = vmul.f32 %v11867_v47, %v4385_v44 }
 0xc40   : > { %4641 = vmatmul.mubr.bf16.vlgmr.msra.gmra.mxu1 %v4453_v60  ;;  %v4429_v21 = vadd.f32 %v11874_v53, %v4407_v11 }
 0xc41   : > { %4650 = vmatprep.mubr.bf16.mxu1 %v13273_v41  ;;  %v11938_v41 = vrot.slane %v8208_v62, %v10629_v26 }
 0xc42   : > { %v4454_v19 = vpack.c.bf16 %v4429_v21, %v4428_v40 }
 0xc48   : > { %4651 = vmatmul.mubr.bf16.gmra.mxu1 %v4454_v19 }
 0xc49   : > { %8874 = vmatprep.mubr.msk.bf16.mxu1 %vm10190_vm0, %v13267_v59 }
 0xc9d   : > { %v4582_v13 = vpop.f32.mrf.mxu0 }
 0xc9e   : > { %v4583_v53 = vadd.f32 %v4582_v13, %v11935_v1 }
 0xc9f   : > { %v4584_v47 = vpop.f32.mrf.mxu0 }
 0xca0   : > { %v4585_v45 = vadd.f32 %v4584_v47, %v11938_v41 }
 0xca1   : > { %v4586_v50 = vpop.f32.mrf.mxu0 }
 0xca2   : > { %v4587_v32 = vadd.f32 %v4586_v50, %v11935_v1 }
 0xca3   : > { %v4588_v36 = vpop.f32.mrf.mxu0 }
 0xca4   : > { %v11943_v12 = vpack.c.bf16 %v4587_v32, %v4583_v53  ;;  %v4589_v0 = vadd.f32 %v4588_v36, %v11938_v41 }
 0xca5   : > { %v4592_v25 = vpop.f32.mrf.mxu0 }
 0xca6   : > { %v11946_v9 = vpack.c.bf16 %v4589_v0, %v4585_v45  ;;  %v4706_v22 = vsel %vm1286_vm1, %v11943_v12, 0  ;;  %v4593_v29 = vadd.f32 %v4592_v25, %v11935_v1 }
 0xca7   : > { %v4594_v26 = vpop.f32.mrf.mxu0  ;;  %8873 = vmatpush3.bf16.xpose.msra.mxu1 %v4706_v22 }
 0xca8   : > { %8921 = vmatpush3.bf16.msra.mxu0 %v11946_v9  ;;  %8878 = vmatprep.subr.bf16.mxu1 %v13267_v59  ;;  %v4595_v2 = vadd.f32 %v4594_v26, %v11938_v41 }
 0xca9   : > { %v4596_v5 = vpop.f32.mrf.mxu0  ;;  %8932 = vmatprep.subr.bf16.mxu0 %v13267_v59 }
 0xcaa   : > { %v4597_v42 = vadd.f32 %v4596_v5, %v11935_v1 }
 0xcab   : > { %v4598_v17 = vpop.f32.mrf.mxu0 }
 0xcac   : > { %v11956_v57 = vpack.c.bf16 %v4597_v42, %v4593_v29  ;;  %v4599_v16 = vadd.f32 %v4598_v17, %v11938_v41 }
 0xcae   : > { %v11959_v51 = vpack.c.bf16 %v4599_v16, %v4595_v2  ;;  %8875 = vmatmul.mubr.msk.bf16.vlgmr.msra.gmra.mxu1 %vm1286_vm1, %v10657_v49  ;;  %v4753_v4 = vsel %vm1286_vm1, %v11956_v57, 0 }
 0xcaf   : > { %8879 = vmatpush3.bf16.xpose.msra.mxu1 %v4753_v4  ;;  %8880 = vmatprep.mubr.msk.bf16.mxu1 %vm10190_vm0, %v13267_v59 }
 0xcb0   : > { %8884 = vmatprep.subr.bf16.mxu1 %v13267_v59 }
 0xcb6   : > { %8881 = vmatmul.mubr.msk.bf16.vlgmr.msra.gmra.mxu1 %vm1286_vm1, %v10682_v6 }
 0xcb7   : > { %8886 = vmatprep.mubr.msk.bf16.mxu1 %vm10190_vm0, %v13267_v59 }
 0xcc0   : > { %v4602_v43 = vpop.f32.mrf.mxu0 }
 0xcc1   : > { %v4603_v48 = vadd.f32 %v4602_v43, %v11935_v1 }
 0xcc2   : > { %v4604_v61 = vpop.f32.mrf.mxu0 }
 0xcc3   : > { %v4605_v27 = vadd.f32 %v4604_v61, %v11938_v41 }
 0xcc4   : > { %v4606_v37 = vpop.f32.mrf.mxu0 }
 0xcc5   : > { %v4607_v23 = vadd.f32 %v4606_v37, %v11935_v1 }
 0xcc6   : > { %v4608_v14 = vpop.f32.mrf.mxu0 }
 0xcc7   : > { %v11975_v39 = vpack.c.bf16 %v4607_v23, %v4603_v48  ;;  %v4609_v28 = vadd.f32 %v4608_v14, %v11938_v41  ;;  %v13276_v14 = vld [vmem:[#allocation31_spill] sm:$0xff] }
 0xcc8   : > { %v4612_v10 = vpop.f32.mrf.mxu0 }
 0xcc9   : > { %v11978_v55 = vpack.c.bf16 %v4609_v28, %v4605_v27  ;;  %v4800_v46 = vsel %vm1286_vm1, %v11975_v39, 0  ;;  %v4613_v34 = vadd.f32 %v4612_v10, %v11935_v1 }
 0xcca   : > { %v4614_v30 = vpop.f32.mrf.mxu0  ;;  %8885 = vmatpush3.bf16.xpose.msra.mxu1 %v4800_v46  ;;  %v12062_v46 = vld [vmem:[#allocation8] sm:$0xff] }
 0xccb   : > { %8890 = vmatprep.subr.bf16.mxu1 %v13267_v59  ;;  %v4615_v15 = vadd.f32 %v4614_v30, %v11938_v41 }
 0xccc   : > { %v4616_v56 = vpop.f32.mrf.mxu0 }
 0xccd   : > { %v4617_v54 = vadd.f32 %v4616_v56, %v11935_v1 }
 0xcce   : > { %v4618_v35 = vpop.f32.mrf.mxu0 }
 0xccf   : > { %v11986_v24 = vpack.c.bf16 %v4617_v54, %v4613_v34  ;;  %v4619_v20 = vadd.f32 %v4618_v35, %v11938_v41 }
 0xcd0   : > { %v4622_v7 = vpop.f32.mrf.mxu0 }
 0xcd1   : > { %v11989_v44 = vpack.c.bf16 %v4619_v20, %v4615_v15  ;;  %8887 = vmatmul.mubr.msk.bf16.vlgmr.msra.gmra.mxu1 %vm1286_vm1, %v10705_v33  ;;  %v4847_v38 = vsel %vm1286_vm1, %v11986_v24, 0  ;;  %v4623_v60 = vadd.f32 %v4622_v7, %v11935_v1  ;;  %v12069_v15 = vld [vmem:[#allocation8 + $0x8] sm:$0xff] }
 0xcd2   : > { %v4624_v18 = vpop.f32.mrf.mxu0  ;;  %8891 = vmatpush3.bf16.xpose.msra.mxu1 %v4847_v38  ;;  %8892 = vmatprep.mubr.msk.bf16.mxu1 %vm10190_vm0, %v13267_v59 }
 0xcd3   : > { %8896 = vmatprep.subr.bf16.mxu1 %v13267_v59  ;;  %v4625_v21 = vadd.f32 %v4624_v18, %v11938_v41 }
 0xcd4   : > { %v4626_v58 = vpop.f32.mrf.mxu0 }
 0xcd5   : > { %v4627_v11 = vadd.f32 %v4626_v58, %v11935_v1 }
 0xcd6   : > { %v4628_v8 = vpop.f32.mrf.mxu0 }
 0xcd7   : > { %v12001_v40 = vpack.c.bf16 %v4627_v11, %v4623_v60  ;;  %v4629_v19 = vadd.f32 %v4628_v8, %v11938_v41 }
 0xcd8   : > { %v4632_v62 = vpop.f32.mrf.mxu0 }
 0xcd9   : > { %v12004_v13 = vpack.c.bf16 %v4629_v19, %v4625_v21  ;;  %8893 = vmatmul.mubr.msk.bf16.vlgmr.msra.gmra.mxu1 %vm1286_vm1, %v10728_v63  ;;  %v4894_v47 = vsel %vm1286_vm1, %v12001_v40, 0  ;;  %v4633_v32 = vadd.f32 %v4632_v62, %v11935_v1 }
 0xcda   : > { %v12010_v50 = vpop.f32.mrf.mxu0  ;;  %8897 = vmatpush3.bf16.xpose.msra.mxu1 %v4894_v47  ;;  %8898 = vmatprep.mubr.msk.bf16.mxu1 %vm10190_vm0, %v13267_v59 }
 0xcdb   : > { %8902 = vmatprep.subr.bf16.mxu1 %v13267_v59 }
 0xcdc   : > { %v4636_v53 = vpop.f32.mrf.mxu0 }
 0xcdd   : > { %v4637_v36 = vadd.f32 %v4636_v53, %v11935_v1 }
 0xcdf   : > { %v12017_v45 = vpack.c.bf16 %v4637_v36, %v4633_v32 }
 0xce1   : > { %8899 = vmatmul.mubr.msk.bf16.vlgmr.msra.gmra.mxu1 %vm1286_vm1, %v10751_v31  ;;  %v4941_v0 = vsel %vm1286_vm1, %v12017_v45, 0 }
 0xce2   : > { %8903 = vmatpush3.bf16.xpose.msra.mxu1 %v4941_v0  ;;  %8904 = vmatprep.mubr.msk.bf16.mxu1 %vm10190_vm0, %v13267_v59 }
 0xce3   : > { %8908 = vmatprep.subr.bf16.mxu1 %v13267_v59 }
 0xce9   : > { %8905 = vmatmul.mubr.msk.bf16.vlgmr.msra.gmra.mxu1 %vm1286_vm1, %v10774_v3 }
 0xcea   : > { %8910 = vmatprep.mubr.msk.bf16.mxu1 %vm10190_vm0, %v13267_v59 }
 0xd00   : > { %v4642_v25 = vpop.f32.mrf.mxu1 }
 0xd01   : > { %v4643_v5 = vadd.f32 %v4642_v25, %v11935_v1 }
 0xd02   : > { %v12030_v22 = vpop.f32.mrf.mxu1 }
 0xd04   : > { %v4646_v26 = vpop.f32.mrf.mxu1 }
 0xd05   : > { %v4647_v29 = vadd.f32 %v4646_v26, %v11935_v1 }
 0xd06   : > { %v12034_v42 = vpop.f32.mrf.mxu1 }
 0xd07   : > { %v12036_v17 = vpack.c.bf16 %v4647_v29, %v4643_v5 }
 0xd08   : > { %v4652_v2 = vpop.f32.mrf.mxu1 }
 0xd09   : > { %v4988_v16 = vsel %vm1286_vm1, %v12036_v17, 0  ;;  %v4653_v61 = vadd.f32 %v4652_v2, %v11935_v1 }
 0xd0a   : > { %v12040_v4 = vpop.f32.mrf.mxu1  ;;  %8909 = vmatpush3.bf16.xpose.msra.mxu1 %v4988_v16 }
 0xd0b   : > { %8914 = vmatprep.subr.bf16.mxu1 %v13267_v59 }
 0xd0c   : > { %v4656_v43 = vpop.f32.mrf.mxu1 }
 0xd0d   : > { %v4657_v37 = vadd.f32 %v4656_v43, %v11935_v1 }
 0xd0e   : > { %v12060_v1 = vpop.f32.mrf.mxu1 }
 0xd0f   : > { %v12045_v48 = vpack.c.bf16 %v4657_v37, %v4653_v61 }
 0xd11   : > { %8911 = vmatmul.mubr.msk.bf16.vlgmr.msra.gmra.mxu1 %vm1286_vm1, %v10800_v52  ;;  %v5035_v23 = vsel %vm1286_vm1, %v12045_v48, 0 }
 0xd12   : > { %8915 = vmatpush3.bf16.xpose.msra.mxu1 %v5035_v23  ;;  %8916 = vmatprep.mubr.msk.bf16.mxu1 %vm10190_vm0, %v13267_v59 }
 0xd13   : > { %8926 = vmatprep.subr.bf16.mxu1 %v13267_v59 }
 0xd19   : > { %8917 = vmatmul.mubr.msk.bf16.vlgmr.msra.gmra.mxu1 %vm1286_vm1, %v13276_v14 }
 0xd1a   : > { %8927 = vmatpush3.bf16.msra.mxu1 %v11959_v51  ;;  %8928 = vmatprep.mubr.msk.bf16.mxu1 %vm10190_vm0, %v13267_v59 }
 0xd1b   : > { %8938 = vmatprep.subr.bf16.mxu1 %v13267_v59 }
 0xd6e   : > { %v4742_v27 = vpop.f32.mrf.mxu1 }
 0xd6f   : > { %v5078_v28 = vmul.f32 0.125, %v4742_v27 }
 0xd70   : > { %v8876_v10 = vpop.f32.mrf.mxu1 }
 0xd71   : > { %v12065_v30 = vadd.f32 %v12062_v46, %v5078_v28 }
 0xd72   : > { %v4745_v56 = vpop.f32.mrf.mxu1 }
 0xd73   : > { %v5079_v34 = vmul.f32 0.125, %v4745_v56  ;;  %v5110_v54 = vsel %vm1695_vm2, %v12065_v30, -inf }
 0xd74   : > { %5111 = vmax.xlane.f32.xlu0 %v5110_v54  ;;  %v8877_v35 = vpop.f32.mrf.mxu1 }
 0xd75   : > { %v12072_v20 = vadd.f32 %v12069_v15, %v5079_v34 }
 0xd76   : > { %v4789_v7 = vpop.f32.mrf.mxu1 }
 0xd77   : > { %v5080_v38 = vmul.f32 0.125, %v4789_v7  ;;  %v5113_v18 = vsel %vm1695_vm2, %v12072_v20, -inf }
 0xd78   : > { %5114 = vmax.xlane.f32.xlu1 %v5113_v18  ;;  %v8882_v58 = vpop.f32.mrf.mxu1 }
 0xd79   : > { %v12077_v60 = vadd.f32 %v12062_v46, %v5080_v38 }
 0xd7a   : > { %v4792_v11 = vpop.f32.mrf.mxu1 }
 0xd7b   : > { %v5081_v8 = vmul.f32 0.125, %v4792_v11  ;;  %v5116_v21 = vsel %vm1695_vm2, %v12077_v60, -inf }
 0xd7c   : > { %5117 = vmax.xlane.f32.xlu0 %v5116_v21  ;;  %v8883_v19 = vpop.f32.mrf.mxu1 }
 0xd7d   : > { %v12082_v62 = vadd.f32 %v12069_v15, %v5081_v8 }
 0xd7f   : > { %v5119_v47 = vsel %vm1695_vm2, %v12082_v62, -inf }
 0xd80   : > { %5120 = vmax.xlane.f32.xlu1 %v5119_v47 }
 0xd91   : > { %v4836_v53 = vpop.f32.mrf.mxu1 }
 0xd92   : > { %v5082_v32 = vmul.f32 0.125, %v4836_v53 }
 0xd93   : > { %v8888_v36 = vpop.f32.mrf.mxu1 }
 0xd94   : > { %v12087_v0 = vadd.f32 %v12062_v46, %v5082_v32 }
 0xd95   : > { %v4839_v25 = vpop.f32.mrf.mxu1 }
 0xd96   : > { %v5083_v26 = vmul.f32 0.125, %v4839_v25  ;;  %v5122_v5 = vsel %vm1695_vm2, %v12087_v0, -inf }
 0xd97   : > { %5123 = vmax.xlane.f32.xlu0 %v5122_v5  ;;  %v8889_v29 = vpop.f32.mrf.mxu1 }
 0xd98   : > { %v12092_v2 = vadd.f32 %v12069_v15, %v5083_v26 }
 0xd99   : > { %v4883_v16 = vpop.f32.mrf.mxu1 }
 0xd9a   : > { %v5084_v43 = vmul.f32 0.125, %v4883_v16  ;;  %v5125_v61 = vsel %vm1695_vm2, %v12092_v2, -inf }
 0xd9b   : > { %5126 = vmax.xlane.f32.xlu1 %v5125_v61  ;;  %v8894_v37 = vpop.f32.mrf.mxu1 }
 0xd9c   : > { %v12097_v23 = vadd.f32 %v12062_v46, %v5084_v43 }
 0xd9d   : > { %v4886_v27 = vpop.f32.mrf.mxu1 }
 0xd9e   : > { %v5085_v28 = vmul.f32 0.125, %v4886_v27  ;;  %v5128_v10 = vsel %vm1695_vm2, %v12097_v23, -inf }
 0xd9f   : > { %5129 = vmax.xlane.f32.xlu0 %v5128_v10  ;;  %v8895_v56 = vpop.f32.mrf.mxu1 }
 0xda0   : > { %v12102_v34 = vadd.f32 %v12069_v15, %v5085_v28 }
 0xda1   : > { %v4930_v54 = vpop.f32.mrf.mxu1 }
 0xda2   : > { %v5086_v35 = vmul.f32 0.125, %v4930_v54  ;;  %v5131_v7 = vsel %vm1695_vm2, %v12102_v34, -inf }
 0xda3   : > { %5132 = vmax.xlane.f32.xlu1 %v5131_v7  ;;  %v8900_v38 = vpop.f32.mrf.mxu1 }
 0xda4   : > { %v12107_v18 = vadd.f32 %v12062_v46, %v5086_v35 }
 0xda5   : > { %v4933_v58 = vpop.f32.mrf.mxu1 }
 0xda6   : > { %v5087_v11 = vmul.f32 0.125, %v4933_v58  ;;  %v5134_v8 = vsel %vm1695_vm2, %v12107_v18, -inf }
 0xda7   : > { %5135 = vmax.xlane.f32.xlu0 %v5134_v8  ;;  %v8901_v21 = vpop.f32.mrf.mxu1 }
 0xda8   : > { %v12112_v19 = vadd.f32 %v12069_v15, %v5087_v11 }
 0xda9   : > { %v4977_v47 = vpop.f32.mrf.mxu1 }
 0xdaa   : > { %v5088_v53 = vmul.f32 0.125, %v4977_v47  ;;  %v5137_v32 = vsel %vm1695_vm2, %v12112_v19, -inf }
 0xdab   : > { %5138 = vmax.xlane.f32.xlu1 %v5137_v32  ;;  %v8906_v36 = vpop.f32.mrf.mxu1 }
 0xdac   : > { %v12117_v25 = vadd.f32 %v12062_v46, %v5088_v53 }
 0xdad   : > { %v4980_v26 = vpop.f32.mrf.mxu1 }
 0xdae   : > { %v5089_v5 = vmul.f32 0.125, %v4980_v26  ;;  %v5140_v29 = vsel %vm1695_vm2, %v12117_v25, -inf }
 0xdaf   : > { %5141 = vmax.xlane.f32.xlu0 %v5140_v29  ;;  %v8907_v16 = vpop.f32.mrf.mxu1 }
 0xdb0   : > { %v12122_v43 = vadd.f32 %v12069_v15, %v5089_v5 }
 0xdb2   : > { %v5143_v61 = vsel %vm1695_vm2, %v12122_v43, -inf }
 0xdb3   : > { %5144 = vmax.xlane.f32.xlu1 %v5143_v61 }
 0xdd1   : > { %v5024_v37 = vpop.f32.mrf.mxu1 }
 0xdd2   : > { %v5090_v27 = vmul.f32 0.125, %v5024_v37 }
 0xdd3   : > { %v8912_v28 = vpop.f32.mrf.mxu1 }
 0xdd4   : > { %v12127_v10 = vadd.f32 %v12062_v46, %v5090_v27 }
 0xdd5   : > { %v5027_v56 = vpop.f32.mrf.mxu1 }
 0xdd6   : > { %v5091_v54 = vmul.f32 0.125, %v5027_v56  ;;  %v5146_v35 = vsel %vm1695_vm2, %v12127_v10, -inf }
 0xdd7   : > { %5147 = vmax.xlane.f32.xlu0 %v5146_v35  ;;  %v8913_v7 = vpop.f32.mrf.mxu1 }
 0xdd8   : > { %v12132_v38 = vadd.f32 %v12069_v15, %v5091_v54 }
 0xdd9   : > { %v5071_v58 = vpop.f32.mrf.mxu1 }
 0xdda   : > { %v5092_v11 = vmul.f32 0.125, %v5071_v58  ;;  %v5149_v8 = vsel %vm1695_vm2, %v12132_v38, -inf }
 0xddb   : > { %5150 = vmax.xlane.f32.xlu1 %v5149_v8  ;;  %v8918_v21 = vpop.f32.mrf.mxu1 }
 0xddc   : > { %v12137_v47 = vadd.f32 %v12062_v46, %v5092_v11 }
 0xddd   : > { %v5074_v53 = vpop.f32.mrf.mxu1 }
 0xdde   : > { %v5093_v32 = vmul.f32 0.125, %v5074_v53  ;;  %v5152_v36 = vsel %vm1695_vm2, %v12137_v47, -inf }
 0xddf   : > { %5153 = vmax.xlane.f32.xlu0 %v5152_v36  ;;  %v8919_v26 = vpop.f32.mrf.mxu1 }
 0xde0   : > { %v12142_v5 = vadd.f32 %v12069_v15, %v5093_v32 }
 0xde2   : > { %v5155_v29 = vsel %vm1695_vm2, %v12142_v5, -inf }
 0xde3   : > { %5156 = vmax.xlane.f32.xlu1 %v5155_v29 }
 0xdfd   : > { %v5112_v16 = vpop.xlane.xlu0 %5111 }
 0xdfe   : > { %v5158_v61 = vsub.f32 %v12065_v30, %v5112_v16 }
 0xe00   : > { %v5174_v37 = vmul.f32 1.442695, %v5158_v61 }
 0xe01   : > { %v5115_v27 = vpop.xlane.xlu1 %5114 }
 0xe02   : > { %9646 = vpow2.f32 %v5174_v37  ;;  %v5159_v28 = vsub.f32 %v12072_v20, %v5115_v27 }
 0xe04   : > { %v5176_v56 = vmul.f32 1.442695, %v5159_v28 }
 0xe05   : > { %v5118_v54 = vpop.xlane.xlu0 %5117 }
 0xe06   : > { %9648 = vpow2.f32 %v5176_v56  ;;  %v5160_v35 = vsub.f32 %v12077_v60, %v5118_v54 }
 0xe08   : > { %v5178_v7 = vmul.f32 1.442695, %v5160_v35 }
 0xe09   : > { %v5121_v58 = vpop.xlane.xlu1 %5120 }
 0xe0a   : > { %9650 = vpow2.f32 %v5178_v7  ;;  %v5161_v11 = vsub.f32 %v12082_v62, %v5121_v58 }
 0xe0c   : > { %v5180_v8 = vmul.f32 1.442695, %v5161_v11 }
 0xe0e   : > { %9652 = vpow2.f32 %v5180_v8 }
 0xe0f   : > { %v12150_v21 = vpop.eup %9646 }
 0xe10   : > { %v5206_v30 = vsel %vm1695_vm2, %v12150_v21, 0.0 }
 0xe11   : > { %5207 = vadd.xlane.f32.xlu0 %v5206_v30 }
 0xe13   : > { %v12154_v53 = vpop.eup %9648 }
 0xe14   : > { %v5209_v20 = vsel %vm1695_vm2, %v12154_v53, 0.0 }
 0xe15   : > { %5210 = vadd.xlane.f32.xlu1 %v5209_v20 }
 0xe17   : > { %v12158_v60 = vpop.eup %9650 }
 0xe18   : > { %v5212_v32 = vsel %vm1695_vm2, %v12158_v60, 0.0 }
 0xe19   : > { %5213 = vadd.xlane.f32.xlu0 %v5212_v32 }
 0xe1b   : > { %v12162_v62 = vpop.eup %9652 }
 0xe1c   : > { %v5215_v36 = vsel %vm1695_vm2, %v12162_v62, 0.0 }
 0xe1d   : > { %5216 = vadd.xlane.f32.xlu1 %v5215_v36 }
 0xe20   : > { %v5124_v26 = vpop.xlane.xlu0 %5123 }
 0xe21   : > { %v5162_v29 = vsub.f32 %v12087_v0, %v5124_v26 }
 0xe23   : > { %v5182_v16 = vmul.f32 1.442695, %v5162_v29 }
 0xe24   : > { %v5127_v61 = vpop.xlane.xlu1 %5126 }
 0xe25   : > { %9654 = vpow2.f32 %v5182_v16  ;;  %v5163_v37 = vsub.f32 %v12092_v2, %v5127_v61 }
 0xe27   : > { %v5184_v27 = vmul.f32 1.442695, %v5163_v37 }
 0xe28   : > { %v5130_v28 = vpop.xlane.xlu0 %5129 }
 0xe29   : > { %9656 = vpow2.f32 %v5184_v27  ;;  %v5164_v56 = vsub.f32 %v12097_v23, %v5130_v28 }
 0xe2b   : > { %v5186_v54 = vmul.f32 1.442695, %v5164_v56 }
 0xe2c   : > { %v5133_v35 = vpop.xlane.xlu1 %5132 }
 0xe2d   : > { %9658 = vpow2.f32 %v5186_v54  ;;  %v5165_v7 = vsub.f32 %v12102_v34, %v5133_v35 }
 0xe2f   : > { %v5188_v58 = vmul.f32 1.442695, %v5165_v7 }
 0xe30   : > { %v5136_v11 = vpop.xlane.xlu0 %5135 }
 0xe31   : > { %9660 = vpow2.f32 %v5188_v58  ;;  %v5166_v0 = vsub.f32 %v12107_v18, %v5136_v11 }
 0xe32   : > { %v12171_v8 = vpop.eup %9654 }
 0xe33   : > { %v5190_v30 = vmul.f32 1.442695, %v5166_v0  ;;  %v5218_v2 = vsel %vm1695_vm2, %v12171_v8, 0.0 }
 0xe34   : > { %v5139_v20 = vpop.xlane.xlu1 %5138  ;;  %5219 = vadd.xlane.f32.xlu0 %v5218_v2 }
 0xe35   : > { %9662 = vpow2.f32 %v5190_v30  ;;  %v5167_v23 = vsub.f32 %v12112_v19, %v5139_v20 }
 0xe36   : > { %v12176_v32 = vpop.eup %9656 }
 0xe37   : > { %v5192_v36 = vmul.f32 1.442695, %v5167_v23  ;;  %v5221_v34 = vsel %vm1695_vm2, %v12176_v32, 0.0 }
 0xe38   : > { %v5142_v26 = vpop.xlane.xlu0 %5141  ;;  %5222 = vadd.xlane.f32.xlu1 %v5221_v34 }
 0xe39   : > { %9664 = vpow2.f32 %v5192_v36  ;;  %v5168_v18 = vsub.f32 %v12117_v25, %v5142_v26 }
 0xe3a   : > { %v12181_v29 = vpop.eup %9658 }
 0xe3b   : > { %v5194_v16 = vmul.f32 1.442695, %v5168_v18  ;;  %v5224_v61 = vsel %vm1695_vm2, %v12181_v29, 0.0 }
 0xe3c   : > { %v5145_v37 = vpop.xlane.xlu1 %5144  ;;  %5225 = vadd.xlane.f32.xlu0 %v5224_v61 }
 0xe3d   : > { %9666 = vpow2.f32 %v5194_v16  ;;  %v5169_v19 = vsub.f32 %v12122_v43, %v5145_v37 }
 0xe3e   : > { %v12186_v27 = vpop.eup %9660 }
 0xe3f   : > { %v5196_v28 = vmul.f32 1.442695, %v5169_v19  ;;  %v5227_v56 = vsel %vm1695_vm2, %v12186_v27, 0.0 }
 0xe40   : > { %5228 = vadd.xlane.f32.xlu1 %v5227_v56 }
 0xe41   : > { %9668 = vpow2.f32 %v5196_v28 }
 0xe42   : > { %v12190_v25 = vpop.eup %9662 }
 0xe43   : > { %v5230_v54 = vsel %vm1695_vm2, %v12190_v25, 0.0 }
 0xe44   : > { %5231 = vadd.xlane.f32.xlu0 %v5230_v54 }
 0xe46   : > { %v12194_v35 = vpop.eup %9664 }
 0xe47   : > { %v5233_v7 = vsel %vm1695_vm2, %v12194_v35, 0.0 }
 0xe48   : > { %5234 = vadd.xlane.f32.xlu1 %v5233_v7 }
 0xe4a   : > { %v12198_v43 = vpop.eup %9666 }
 0xe4b   : > { %v5236_v58 = vsel %vm1695_vm2, %v12198_v43, 0.0 }
 0xe4c   : > { %5237 = vadd.xlane.f32.xlu0 %v5236_v58 }
 0xe4e   : > { %v12202_v11 = vpop.eup %9668 }
 0xe4f   : > { %v5239_v0 = vsel %vm1695_vm2, %v12202_v11, 0.0 }
 0xe50   : > { %5240 = vadd.xlane.f32.xlu1 %v5239_v0 }
 0xe60   : > { %v5148_v30 = vpop.xlane.xlu0 %5147 }
 0xe61   : > { %v5170_v2 = vsub.f32 %v12127_v10, %v5148_v30 }
 0xe63   : > { %v5198_v20 = vmul.f32 1.442695, %v5170_v2 }
 0xe64   : > { %v5151_v23 = vpop.xlane.xlu1 %5150 }
 0xe65   : > { %9670 = vpow2.f32 %v5198_v20  ;;  %v5171_v36 = vsub.f32 %v12132_v38, %v5151_v23 }
 0xe67   : > { %v5200_v34 = vmul.f32 1.442695, %v5171_v36 }
 0xe68   : > { %v5154_v26 = vpop.xlane.xlu0 %5153 }
 0xe69   : > { %9672 = vpow2.f32 %v5200_v34  ;;  %v5172_v18 = vsub.f32 %v12137_v47, %v5154_v26 }
 0xe6b   : > { %v5202_v16 = vmul.f32 1.442695, %v5172_v18 }
 0xe6c   : > { %v5157_v47 = vpop.xlane.xlu1 %5156 }
 0xe6d   : > { %9674 = vpow2.f32 %v5202_v16  ;;  %v5173_v56 = vsub.f32 %v12142_v5, %v5157_v47  ;;  %v4638_v16 = vpop.f32.mrf.mxu0 }
 0xe6f   : > { %v5204_v7 = vmul.f32 1.442695, %v5173_v56 }
 0xe72   : > { %v12209_v61 = vpop.eup %9670 }
 0xe73   : > { %v5242_v37 = vsel %vm1695_vm2, %v12209_v61, 0.0 }
 0xe74   : > { %5243 = vadd.xlane.f32.xlu0 %v5242_v37 }
 0xe76   : > { %v12213_v19 = vpop.eup %9672 }
 0xe77   : > { %v5245_v10 = vsel %vm1695_vm2, %v12213_v19, 0.0 }
 0xe78   : > { %5246 = vadd.xlane.f32.xlu1 %v5245_v10  ;;  %v4635_v10 = vadd.f32 %v12010_v50, %v11938_v41  ;;  %v4649_v50 = vadd.f32 %v12034_v42, %v11938_v41 }
 0xe7a   : > { %v12217_v38 = vpop.eup %9674 }
 0xe7b   : > { %v5248_v28 = vsel %vm1695_vm2, %v12217_v38, 0.0 }
 0xe7c   : > { %5249 = vadd.xlane.f32.xlu0 %v5248_v28 }
 0xe89   : > { %5711 = vrot.lane.b32.xlu1 %v11956_v57, %s10191_s0 }
 0xe8d   : > { %5655 = vrot.lane.b32.xlu1 %v10657_v49, %s10191_s0 }
 0xe92   : > { %5658 = vrot.lane.b32.xlu0 %v11943_v12, %s10191_s0 }
 0xe96   : > { %5708 = vrot.lane.b32.xlu0 %v10682_v6, %s10191_s0 }
 0xe9a   : > { %5761 = vrot.lane.b32.xlu0 %v10705_v33, %s10191_s0  ;;  %v5208_v54 = vpop.xlane.xlu0 %5207 }
 0xe9b   : > { %9676 = vrcp.f32 %v5208_v54  ;;  %v4645_v54 = vadd.f32 %v12030_v22, %v11938_v41 }
 0xe9e   : > { %5814 = vrot.lane.b32.xlu0 %v10728_v63, %s10191_s0  ;;  %v5211_v57 = vpop.xlane.xlu1 %5210 }
 0xe9f   : > { %9678 = vrcp.f32 %v5211_v57  ;;  %v12297_v57 = vpack.c.bf16 %v4649_v50, %v4645_v54 }
 0xea0   : > { %9680 = vpow2.f32 %v5204_v7 }
 0xea2   : > { %5867 = vrot.lane.b32.xlu0 %v10751_v31, %s10191_s0  ;;  %v5214_v49 = vpop.xlane.xlu0 %5213 }
 0xea3   : > { %9682 = vrcp.f32 %v5214_v49 }
 0xea6   : > { %5920 = vrot.lane.b32.xlu0 %v10774_v3, %s10191_s0  ;;  %v5217_v6 = vpop.xlane.xlu1 %5216 }
 0xea7   : > { %9684 = vrcp.f32 %v5217_v6  ;;  %v4655_v6 = vadd.f32 %v12040_v4, %v11938_v41 }
 0xea8   : > { %v9677_v33 = vpop.eup %9676 }
 0xea9   : > { %v5270_v63 = vmul.f32 %v9677_v33, %v12150_v21 }
 0xeaa   : > { %5973 = vrot.lane.b32.xlu0 %v10800_v52, %s10191_s0 }
 0xeac   : > { %v9679_v12 = vpop.eup %9678 }
 0xead   : > { %v12240_v5 = vpop.eup %9680  ;;  %v5271_v58 = vmul.f32 %v9679_v12, %v12154_v53 }
 0xeae   : > { %v5251_v31 = vsel %vm1695_vm2, %v12240_v5, 0.0 }
 0xeaf   : > { %v5286_v0 = vpack.c.bf16 %v5271_v58, %v5270_v63 }
 0xeb0   : > { %v9683_v3 = vpop.eup %9682 }
 0xeb1   : > { %5252 = vadd.xlane.f32.xlu1 %v5251_v31  ;;  %8923 = vmatmul.mubr.msk.bf16.vlgmr.msra.gmra.mxu0 %vm1695_vm2, %v5286_v0  ;;  %v5272_v21 = vmul.f32 %v9683_v3, %v12158_v60 }
 0xeb2   : > { %8933 = vmatpush3.bf16.msra.mxu0 %v11978_v55  ;;  %8934 = vmatprep.mubr.msk.bf16.mxu0 %vm10190_vm0, %v13267_v59 }
 0xeb3   : > { %8944 = vmatprep.subr.bf16.mxu0 %v13267_v59 }
 0xeb4   : > { %v9685_v52 = vpop.eup %9684 }
 0xeb5   : > { %v5273_v53 = vmul.f32 %v9685_v52, %v12162_v62 }
 0xeb7   : > { %v5287_v30 = vpack.c.bf16 %v5273_v53, %v5272_v21 }
 0xeb9   : > { %8929 = vmatmul.mubr.msk.bf16.vlgmr.msra.gmra.mxu1 %vm1695_vm2, %v5287_v30 }
 0xeba   : > { %8939 = vmatpush3.bf16.msra.mxu1 %v11989_v44  ;;  %8940 = vmatprep.mubr.msk.bf16.mxu1 %vm10190_vm0, %v13267_v59 }
 0xebb   : > { %8950 = vmatprep.subr.bf16.mxu1 %v13267_v59 }
 0xebd   : > { %v5220_v2 = vpop.xlane.xlu0 %5219 }
 0xebe   : > { %9686 = vrcp.f32 %v5220_v2 }
 0xec1   : > { %v5223_v20 = vpop.xlane.xlu1 %5222 }
 0xec2   : > { %5764 = vrot.lane.b32.xlu1 %v11975_v39, %s10191_s0  ;;  %9688 = vrcp.f32 %v5223_v20 }
 0xec5   : > { %v5226_v60 = vpop.xlane.xlu0 %5225 }
 0xec6   : > { %5817 = vrot.lane.b32.xlu1 %v11986_v24, %s10191_s0  ;;  %9690 = vrcp.f32 %v5226_v60 }
 0xec9   : > { %v5229_v62 = vpop.xlane.xlu1 %5228 }
 0xeca   : > { %5870 = vrot.lane.b32.xlu1 %v12001_v40, %s10191_s0  ;;  %9692 = vrcp.f32 %v5229_v62 }
 0xecb   : > { %v9687_v23 = vpop.eup %9686 }
 0xecc   : > { %v5274_v26 = vmul.f32 %v9687_v23, %v12171_v8 }
 0xecd   : > { %v5232_v36 = vpop.xlane.xlu0 %5231 }
 0xece   : > { %5923 = vrot.lane.b32.xlu1 %v12017_v45, %s10191_s0  ;;  %9694 = vrcp.f32 %v5232_v36 }
 0xecf   : > { %v9689_v34 = vpop.eup %9688 }
 0xed0   : > { %v5275_v39 = vmul.f32 %v9689_v34, %v12176_v32 }
 0xed1   : > { %v5235_v18 = vpop.xlane.xlu1 %5234 }
 0xed2   : > { %5976 = vrot.lane.b32.xlu1 %v12036_v17, %s10191_s0  ;;  %9696 = vrcp.f32 %v5235_v18  ;;  %v5288_v24 = vpack.c.bf16 %v5275_v39, %v5274_v26  ;;  %v4639_v17 = vadd.f32 %v4638_v16, %v11938_v41 }
 0xed3   : > { %v9691_v40 = vpop.eup %9690 }
 0xed4   : > { %8935 = vmatmul.mubr.msk.bf16.vlgmr.msra.gmra.mxu0 %vm1695_vm2, %v5288_v24  ;;  %v5276_v8 = vmul.f32 %v9691_v40, %v12181_v29  ;;  %v12284_v47 = vpack.c.bf16 %v4639_v17, %v4635_v10 }
 0xed5   : > { %8945 = vmatpush3.bf16.msra.mxu0 %v12004_v13  ;;  %v5238_v37 = vpop.xlane.xlu0 %5237  ;;  %8946 = vmatprep.mubr.msk.bf16.mxu0 %vm10190_vm0, %v13267_v59 }
 0xed6   : > { %6029 = vrot.lane.b32.xlu1 %v12045_v48, %s10191_s0  ;;  %8956 = vmatprep.subr.bf16.mxu0 %v13267_v59  ;;  %9698 = vrcp.f32 %v5238_v37 }
 0xed7   : > { %v9693_v45 = vpop.eup %9692 }
 0xed8   : > { %v5277_v32 = vmul.f32 %v9693_v45, %v12186_v27 }
 0xed9   : > { %v5241_v28 = vpop.xlane.xlu1 %5240 }
 0xeda   : > { %6026 = vrot.lane.b32.xlu1 %v13276_v14, %s10191_s0  ;;  %9700 = vrcp.f32 %v5241_v28  ;;  %v5289_v48 = vpack.c.bf16 %v5277_v32, %v5276_v8 }
 0xedb   : > { %v9695_v56 = vpop.eup %9694 }
 0xedc   : > { %8941 = vmatmul.mubr.msk.bf16.vlgmr.msra.gmra.mxu1 %vm1695_vm2, %v5289_v48  ;;  %v5278_v14 = vmul.f32 %v9695_v56, %v12190_v25  ;;  %v4659_v25 = vadd.f32 %v12060_v1, %v11938_v41 }
 0xedd   : > { %8951 = vmatpush3.bf16.msra.mxu1 %v12284_v47  ;;  %8952 = vmatprep.mubr.msk.bf16.mxu1 %vm10190_vm0, %v13267_v59 }
 0xede   : > { %8962 = vmatprep.subr.bf16.mxu1 %v13267_v59  ;;  %v12310_v12 = vpack.c.bf16 %v4659_v25, %v4655_v6 }
 0xedf   : > { %v9697_v29 = vpop.eup %9696 }
 0xee0   : > { %v5279_v27 = vmul.f32 %v9697_v29, %v12194_v35 }
 0xee2   : > { %v5290_v7 = vpack.c.bf16 %v5279_v27, %v5278_v14 }
 0xee3   : > { %v9699_v49 = vpop.eup %9698 }
 0xee4   : > { %8947 = vmatmul.mubr.msk.bf16.vlgmr.msra.gmra.mxu0 %vm1695_vm2, %v5290_v7  ;;  %v5280_v35 = vmul.f32 %v9699_v49, %v12198_v43 }
 0xee5   : > { %8957 = vmatpush3.bf16.msra.mxu0 %v12297_v57  ;;  %8958 = vmatprep.mubr.msk.bf16.mxu0 %vm10190_vm0, %v13267_v59 }
 0xee6   : > { %8968 = vmatprep.subr.bf16.mxu0 %v13267_v59 }
 0xee7   : > { %v9701_v42 = vpop.eup %9700 }
 0xee8   : > { %v5281_v22 = vmul.f32 %v9701_v42, %v12202_v11 }
 0xeea   : > { %v5291_v33 = vpack.c.bf16 %v5281_v22, %v5280_v35 }
 0xeec   : > { %8953 = vmatmul.mubr.msk.bf16.vlgmr.msra.gmra.mxu1 %vm1695_vm2, %v5291_v33 }
 0xeed   : > { %8963 = vmatpush3.bf16.msra.mxu1 %v12310_v12  ;;  %8964 = vmatprep.mubr.msk.bf16.mxu1 %vm10190_vm0, %v13267_v59 }
 0xeee   : > { %8974 = vmatprep.subr.bf16.mxu1 %v13267_v59 }
 0xefd   : > { %v5244_v1 = vpop.xlane.xlu0 %5243 }
 0xefe   : > { %9702 = vrcp.f32 %v5244_v1 }
 0xf01   : > { %v5247_v43 = vpop.xlane.xlu1 %5246 }
 0xf02   : > { %9704 = vrcp.f32 %v5247_v43 }
 0xf05   : > { %v5250_v11 = vpop.xlane.xlu0 %5249  ;;  %v5712_v52 = vpop.permute.xlu1 %5711 }
 0xf06   : > { %9706 = vrcp.f32 %v5250_v11  ;;  %v5717_v40 = vsel %vm1286_vm1, %v5712_v52, 0 }
 0xf09   : > { %v5659_v0 = vpop.permute.xlu0 %5658  ;;  %v5656_v21 = vpop.permute.xlu1 %5655 }
 0xf0a   : > { %v5664_v3 = vsel %vm1286_vm1, %v5659_v0, 0 }
 0xf0b   : > { %v9703_v63 = vpop.eup %9702 }
 0xf0c   : > { %v5282_v41 = vmul.f32 %v9703_v63, %v12209_v61 }
 0xf0d   : > { %v5709_v61 = vpop.permute.xlu0 %5708 }
 0xf0f   : > { %v9705_v58 = vpop.eup %9704 }
 0xf10   : > { %v5283_v4 = vmul.f32 %v9705_v58, %v12213_v19 }
 0xf11   : > { %v5762_v53 = vpop.permute.xlu0 %5761 }
 0xf12   : > { %v5292_v31 = vpack.c.bf16 %v5283_v4, %v5282_v41 }
 0xf13   : > { %v9707_v62 = vpop.eup %9706 }
 0xf14   : > { %8959 = vmatmul.mubr.msk.bf16.vlgmr.msra.gmra.mxu0 %vm1695_vm2, %v5292_v31  ;;  %v5284_v26 = vmul.f32 %v9707_v62, %v12217_v38 }
 0xf15   : > { %8969 = vmatpush3.bf16.xpose.msra.mxu0 %v5664_v3  ;;  %8970 = vmatprep.mubr.msk.bf16.mxu0 %vm10190_vm0, %v13267_v59  ;;  %v5815_v60 = vpop.permute.xlu0 %5814 }
 0xf16   : > { %8980 = vmatprep.subr.bf16.mxu0 %v13267_v59 }
 0xf19   : > { %v5868_v18 = vpop.permute.xlu0 %5867 }
 0xf1c   : > { %8971 = vmatmul.mubr.msk.bf16.vlgmr.msra.gmra.mxu0 %vm1286_vm1, %v5656_v21 }
 0xf1d   : > { %8982 = vmatprep.mubr.msk.bf16.mxu0 %vm10190_vm0, %v13267_v59  ;;  %v5921_v38 = vpop.permute.xlu0 %5920 }
 0xf21   : > { %v5974_v17 = vpop.permute.xlu0 %5973 }
 0xf3a   : > { %v5253_v19 = vpop.xlane.xlu1 %5252 }
 0xf3b   : > { %9708 = vrcp.f32 %v5253_v19 }
 0xf3e   : > { %v5765_v30 = vpop.permute.xlu1 %5764 }
 0xf3f   : > { %v5770_v2 = vsel %vm1286_vm1, %v5765_v30, 0 }
 0xf40   : > { %8981 = vmatpush3.bf16.xpose.msra.mxu0 %v5770_v2 }
 0xf41   : > { %8992 = vmatprep.subr.bf16.mxu0 %v13267_v59 }
 0xf42   : > { %v5818_v20 = vpop.permute.xlu1 %5817 }
 0xf46   : > { %v5871_v23 = vpop.permute.xlu1 %5870 }
 0xf47   : > { %v5876_v36 = vsel %vm1286_vm1, %v5871_v23, 0  ;;  %8983 = vmatmul.mubr.msk.bf16.vlgmr.msra.gmra.mxu0 %vm1286_vm1, %v5762_v53 }
 0xf48   : > { %v9709_v34 = vpop.eup %9708  ;;  %8993 = vmatpush3.bf16.xpose.msra.mxu0 %v5876_v36  ;;  %8994 = vmatprep.mubr.msk.bf16.mxu0 %vm10190_vm0, %v13267_v59 }
 0xf49   : > { %v5285_v39 = vmul.f32 %v9709_v34, %v12240_v5  ;;  %9004 = vmatprep.subr.bf16.mxu0 %v13267_v59  ;;  %v5823_v5 = vsel %vm1286_vm1, %v5818_v20, 0 }
 0xf4a   : > { %v5924_v24 = vpop.permute.xlu1 %5923 }
 0xf4b   : > { %v5293_v16 = vpack.c.bf16 %v5285_v39, %v5284_v26  ;;  %v5929_v8 = vsel %vm1286_vm1, %v5924_v24, 0 }
 0xf4d   : > { %8965 = vmatmul.mubr.msk.bf16.vlgmr.msra.gmra.mxu1 %vm1695_vm2, %v5293_v16 }
 0xf4e   : > { %8975 = vmatpush3.bf16.xpose.msra.mxu1 %v5717_v40  ;;  %v5977_v37 = vpop.permute.xlu1 %5976  ;;  %8976 = vmatprep.mubr.msk.bf16.mxu1 %vm10190_vm0, %v13267_v59 }
 0xf4f   : > { %v5982_v45 = vsel %vm1286_vm1, %v5977_v37, 0  ;;  %8995 = vmatmul.mubr.msk.bf16.vlgmr.msra.gmra.mxu0 %vm1286_vm1, %v5868_v18  ;;  %8986 = vmatprep.subr.bf16.mxu1 %v13267_v59 }
 0xf50   : > { %9005 = vmatpush3.bf16.xpose.msra.mxu0 %v5982_v45  ;;  %9006 = vmatprep.mubr.msk.bf16.mxu0 %vm10190_vm0, %v13267_v59 }
 0xf51   : > { %9016 = vmatprep.subr.bf16.mxu0 %v13267_v59 }
 0xf52   : > { %v6030_v32 = vpop.permute.xlu1 %6029 }
 0xf53   : > { %v6035_v10 = vsel %vm1286_vm1, %v6030_v32, 0 }
 0xf55   : > { %8977 = vmatmul.mubr.msk.bf16.vlgmr.msra.gmra.mxu1 %vm1286_vm1, %v5709_v61 }
 0xf56   : > { %8987 = vmatpush3.bf16.xpose.msra.mxu1 %v5823_v5  ;;  %8988 = vmatprep.mubr.msk.bf16.mxu1 %vm10190_vm0, %v13267_v59  ;;  %v6027_v28 = vpop.permute.xlu1 %6026 }
 0xf57   : > { %9007 = vmatmul.mubr.msk.bf16.vlgmr.msra.gmra.mxu0 %vm1286_vm1, %v5974_v17  ;;  %8998 = vmatprep.subr.bf16.mxu1 %v13267_v59 }
 0xf58   : > { %9018 = vmatprep.mubr.msk.bf16.mxu0 %vm10190_vm0, %v13267_v59 }
 0xf5d   : > { %8989 = vmatmul.mubr.msk.bf16.vlgmr.msra.gmra.mxu1 %vm1286_vm1, %v5815_v60 }
 0xf5e   : > { %8999 = vmatpush3.bf16.xpose.msra.mxu1 %v5929_v8  ;;  %9000 = vmatprep.mubr.msk.bf16.mxu1 %vm10190_vm0, %v13267_v59 }
 0xf5f   : > { %9010 = vmatprep.subr.bf16.mxu1 %v13267_v59 }
 0xf65   : > { %9001 = vmatmul.mubr.msk.bf16.vlgmr.msra.gmra.mxu1 %vm1286_vm1, %v5921_v38 }
 0xf66   : > { %9011 = vmatpush3.bf16.xpose.msra.mxu1 %v6035_v10  ;;  %9012 = vmatprep.mubr.msk.bf16.mxu1 %vm10190_vm0, %v13267_v59 }
 0xf67   : > { %9022 = vmatprep.subr.bf16.mxu1 %v13267_v59 }
 0xf6d   : > { %9013 = vmatmul.mubr.msk.bf16.vlgmr.msra.gmra.mxu1 %vm1286_vm1, %v6027_v28 }
 0xf6e   : > { %9024 = vmatprep.mubr.msk.bf16.mxu1 %vm10190_vm0, %v13267_v59 }
 0xf71   : > { %v12367_v48 = vpop.f32.mrf.mxu0 }
 0xf73   : > { %v8924_v56 = vpop.f32.mrf.mxu0 }
 0xf75   : > { %v12369_v29 = vpop.f32.mrf.mxu0 }
 0xf76   : > { %v5646_v50 = vpack.c.bf16 %v12369_v29, %v12367_v48 }
 0xf77   : > { %v8925_v14 = vpop.f32.mrf.mxu0 }
 0xf79   : > { %v12373_v27 = vpop.f32.mrf.mxu1 }
 0xf7b   : > { %v8930_v54 = vpop.f32.mrf.mxu1 }
 0xf7d   : > { %v12375_v7 = vpop.f32.mrf.mxu1 }
 0xf7e   : > { %v5647_v49 = vpack.c.bf16 %v12375_v7, %v12373_v27 }
 0xf7f   : > { %v8931_v42 = vpop.f32.mrf.mxu1 }
 0xf94   : > { %v12379_v25 = vpop.f32.mrf.mxu0 }
 0xf96   : > { %v8936_v35 = vpop.f32.mrf.mxu0 }
 0xf98   : > { %v12381_v22 = vpop.f32.mrf.mxu0 }
 0xf99   : > { %v5648_v6 = vpack.c.bf16 %v12381_v22, %v12379_v25 }
 0xf9a   : > { %v8937_v33 = vpop.f32.mrf.mxu0 }
 0xf9c   : > { %v12385_v1 = vpop.f32.mrf.mxu1 }
 0xf9e   : > { %v8942_v43 = vpop.f32.mrf.mxu1 }
 0xfa0   : > { %v12387_v11 = vpop.f32.mrf.mxu1 }
 0xfa1   : > { %v5649_v63 = vpack.c.bf16 %v12387_v11, %v12385_v1 }
 0xfa2   : > { %v8943_v58 = vpop.f32.mrf.mxu1 }
 0xfa4   : > { %v12391_v41 = vpop.f32.mrf.mxu0 }
 0xfa6   : > { %v8948_v4 = vpop.f32.mrf.mxu0 }
 0xfa8   : > { %v12393_v0 = vpop.f32.mrf.mxu0 }
 0xfa9   : > { %v5650_v31 = vpack.c.bf16 %v12393_v0, %v12391_v41 }
 0xfaa   : > { %v8949_v3 = vpop.f32.mrf.mxu0 }
 0xfac   : > { %v12397_v52 = vpop.f32.mrf.mxu1 }
 0xfae   : > { %v8954_v21 = vpop.f32.mrf.mxu1 }
 0xfb0   : > { %v12399_v61 = vpop.f32.mrf.mxu1 }
 0xfb1   : > { %v5651_v19 = vpack.c.bf16 %v12399_v61, %v12397_v52 }
 0xfb2   : > { %v8955_v53 = vpop.f32.mrf.mxu1 }
 0xfd4   : > { %v12403_v30 = vpop.f32.mrf.mxu0 }
 0xfd6   : > { %v8960_v2 = vpop.f32.mrf.mxu0 }
 0xfd8   : > { %v12405_v20 = vpop.f32.mrf.mxu0 }
 0xfd9   : > { %v5652_v60 = vpack.c.bf16 %v12405_v20, %v12403_v30 }
 0xfda   : > { %v8961_v62 = vpop.f32.mrf.mxu0 }
 0xfdc   : > { %v5700_v23 = vpop.f32.mrf.mxu0 }
 0xfdd   : > { %v6078_v36 = vmul.f32 0.125, %v5700_v23 }
 0xfde   : > { %v8972_v34 = vpop.f32.mrf.mxu0 }
 0xfdf   : > { %v12410_v26 = vadd.f32 %v12062_v46, %v6078_v36 }
 0xfe0   : > { %v5703_v39 = vpop.f32.mrf.mxu0 }
 0xfe1   : > { %v6079_v18 = vmul.f32 0.125, %v5703_v39  ;;  %v6110_v24 = vsel %vm1695_vm2, %v12410_v26, -inf }
 0xfe2   : > { %6111 = vmax.xlane.f32.xlu0 %v6110_v24  ;;  %v8973_v16 = vpop.f32.mrf.mxu0 }
 0xfe3   : > { %v12415_v40 = vadd.f32 %v12069_v15, %v6079_v18 }
 0xfe5   : > { %v6113_v37 = vsel %vm1695_vm2, %v12415_v40, -inf }
 0xfe6   : > { %6114 = vmax.xlane.f32.xlu1 %v6113_v37 }
0x1007   : > { %v5806_v45 = vpop.f32.mrf.mxu0 }
0x1008   : > { %v6082_v36 = vmul.f32 0.125, %v5806_v45 }
0x1009   : > { %v8984_v38 = vpop.f32.mrf.mxu0 }
0x100b   : > { %v5809_v5 = vpop.f32.mrf.mxu0 }
0x100c   : > { %v6083_v17 = vmul.f32 0.125, %v5809_v5  ;;  %v12439_v5 = vadd.f32 %v12062_v46, %v6082_v36 }
0x100d   : > { %v12419_v8 = vpop.f32.mrf.mxu1  ;;  %v8985_v32 = vpop.f32.mrf.mxu0 }
0x100e   : > { %v12422_v10 = vadd.f32 %v12069_v15, %v6083_v17 }
0x100f   : > { %v8966_v28 = vpop.f32.mrf.mxu1  ;;  %v5912_v56 = vpop.f32.mrf.mxu0 }
0x1010   : > { %v6125_v14 = vsel %vm1695_vm2, %v12422_v10, -inf  ;;  %v6086_v28 = vmul.f32 0.125, %v5912_v56 }
0x1011   : > { %6126 = vmax.xlane.f32.xlu1 %v6125_v14  ;;  %v12426_v54 = vpop.f32.mrf.mxu1  ;;  %v8996_v42 = vpop.f32.mrf.mxu0 }
0x1012   : > { %v5653_v35 = vpack.c.bf16 %v12426_v54, %v12419_v8 }
0x1013   : > { %v8967_v33 = vpop.f32.mrf.mxu1  ;;  %v5915_v43 = vpop.f32.mrf.mxu0 }
0x1014   : > { %v6087_v42 = vmul.f32 0.125, %v5915_v43 }
0x1015   : > { %v5753_v58 = vpop.f32.mrf.mxu1  ;;  %v8997_v4 = vpop.f32.mrf.mxu0 }
0x1016   : > { %v6080_v3 = vmul.f32 0.125, %v5753_v58  ;;  %v6122_v4 = vsel %vm1695_vm2, %v12439_v5, -inf  ;;  %v12455_v56 = vadd.f32 %v12069_v15, %v6087_v42 }
0x1017   : > { %v8978_v21 = vpop.f32.mrf.mxu1  ;;  %v6018_v53 = vpop.f32.mrf.mxu0 }
0x1018   : > { %v12431_v2 = vadd.f32 %v12062_v46, %v6080_v3 }
0x1019   : > { %v5756_v62 = vpop.f32.mrf.mxu1  ;;  %v9008_v23 = vpop.f32.mrf.mxu0 }
0x101a   : > { %v6081_v34 = vmul.f32 0.125, %v5756_v62  ;;  %v6116_v39 = vsel %vm1695_vm2, %v12431_v2, -inf  ;;  %v12452_v62 = vadd.f32 %v12062_v46, %v6086_v28  ;;  %v6137_v28 = vsel %vm1695_vm2, %v12455_v56, -inf }
0x101b   : > { %v6021_v18 = vpop.f32.mrf.mxu0  ;;  %6117 = vmax.xlane.f32.xlu0 %v6116_v39  ;;  %v8979_v24 = vpop.f32.mrf.mxu1 }
0x101c   : > { %v12436_v16 = vadd.f32 %v12069_v15, %v6081_v34  ;;  %v6090_v24 = vmul.f32 0.125, %v6018_v53 }
0x101d   : > { %v5859_v37 = vpop.f32.mrf.mxu1  ;;  %v9009_v38 = vpop.f32.mrf.mxu0 }
0x101e   : > { %v6084_v17 = vmul.f32 0.125, %v5859_v37  ;;  %v6119_v32 = vsel %vm1695_vm2, %v12436_v16, -inf  ;;  %v6134_v38 = vsel %vm1695_vm2, %v12452_v62, -inf  ;;  %v12472_v53 = vadd.f32 %v12062_v46, %v6090_v24 }
0x101f   : > { %6120 = vmax.xlane.f32.xlu0 %v6119_v32  ;;  %v8990_v45 = vpop.f32.mrf.mxu1 }
0x1020   : > { %v12444_v33 = vadd.f32 %v12062_v46, %v6084_v17  ;;  %v6091_v17 = vmul.f32 0.125, %v6021_v18 }
0x1021   : > { %v5862_v14 = vpop.f32.mrf.mxu1 }
0x1022   : > { %v6085_v58 = vmul.f32 0.125, %v5862_v14  ;;  %v6128_v36 = vsel %vm1695_vm2, %v12444_v33, -inf }
0x1023   : > { %6123 = vmax.xlane.f32.xlu0 %v6122_v4  ;;  %v8991_v3 = vpop.f32.mrf.mxu1  ;;  %v12475_v4 = vadd.f32 %v12069_v15, %v6091_v17 }
0x1024   : > { %v12449_v21 = vadd.f32 %v12069_v15, %v6085_v58 }
0x1025   : > { %v5965_v23 = vpop.f32.mrf.mxu1 }
0x1026   : > { %v6088_v43 = vmul.f32 0.125, %v5965_v23  ;;  %v6131_v34 = vsel %vm1695_vm2, %v12449_v21, -inf }
0x1027   : > { %6129 = vmax.xlane.f32.xlu0 %v6128_v36  ;;  %6132 = vmax.xlane.f32.xlu1 %v6131_v34  ;;  %v9002_v39 = vpop.f32.mrf.mxu1 }
0x1028   : > { %v12464_v32 = vadd.f32 %v12062_v46, %v6088_v43  ;;  %v6146_v39 = vsel %vm1695_vm2, %v12472_v53, -inf }
0x1029   : > { %v5968_v37 = vpop.f32.mrf.mxu1 }
0x102a   : > { %v6089_v45 = vmul.f32 0.125, %v5968_v37  ;;  %v6140_v3 = vsel %vm1695_vm2, %v12464_v32, -inf }
0x102b   : > { %6135 = vmax.xlane.f32.xlu0 %v6134_v38  ;;  %6138 = vmax.xlane.f32.xlu1 %v6137_v28  ;;  %v9003_v14 = vpop.f32.mrf.mxu1  ;;  %v9861_v38 = vld [vmem:[#allocation8 + $0x8] sm:$0xff] }
0x102c   : > { %v12469_v42 = vadd.f32 %v12069_v15, %v6089_v45  ;;  %v6149_v15 = vsel %vm1695_vm2, %v12475_v4, -inf }
0x102d   : > { %v6071_v58 = vpop.f32.mrf.mxu1 }
0x102e   : > { %v6092_v18 = vmul.f32 0.125, %v6071_v58  ;;  %v6143_v23 = vsel %vm1695_vm2, %v12469_v42, -inf }
0x102f   : > { %6141 = vmax.xlane.f32.xlu0 %v6140_v3  ;;  %6144 = vmax.xlane.f32.xlu1 %v6143_v23  ;;  %v9014_v43 = vpop.f32.mrf.mxu1 }
0x1030   : > { %v12482_v34 = vadd.f32 %v12062_v46, %v6092_v18 }
0x1031   : > { %v6074_v36 = vpop.f32.mrf.mxu1 }
0x1032   : > { %v6152_v37 = vsel %vm1695_vm2, %v12482_v34, -inf  ;;  %v6093_v46 = vmul.f32 0.125, %v6074_v36 }
0x1033   : > { %6147 = vmax.xlane.f32.xlu0 %v6146_v39  ;;  %6150 = vmax.xlane.f32.xlu1 %v6149_v15  ;;  %v9015_v24 = vpop.f32.mrf.mxu1 }
0x1034   : > { %v12500_v17 = vadd.f32 %v9861_v38, %v6093_v46 }
0x1037   : > { %6153 = vmax.xlane.f32.xlu0 %v6152_v37 }
0x1044   : > { %6343 = vrot.lane.b32.xlu1 %v11959_v51, %s10191_s0 }
0x1048   : > { %6391 = vrot.lane.b32.xlu1 %v11978_v55, %s10191_s0  ;;  %v6155_v55 = vsel %vm1695_vm2, %v12500_v17, -inf }
0x104c   : > { %6439 = vrot.lane.b32.xlu1 %v11989_v44, %s10191_s0 }
0x104d   : > { %6295 = vrot.lane.b32.xlu0 %v11946_v9, %s10191_s0 }
0x1051   : > { %6487 = vrot.lane.b32.xlu0 %v12004_v13, %s10191_s0 }
0x106b   : > { %v6112_v45 = vpop.xlane.xlu0 %6111 }
0x106c   : > { %v6158_v28 = vsub.f32 %v12410_v26, %v6112_v45 }
0x106e   : > { %v6174_v51 = vmul.f32 1.442695, %v6158_v28 }
0x106f   : > { %v6115_v13 = vpop.xlane.xlu1 %6114 }
0x1070   : > { %9710 = vpow2.f32 %v6174_v51  ;;  %6156 = vmax.xlane.f32.xlu1 %v6155_v55  ;;  %v6159_v14 = vsub.f32 %v12415_v40, %v6115_v13 }
0x1072   : > { %v6176_v58 = vmul.f32 1.442695, %v6159_v14 }
0x1074   : > { %9712 = vpow2.f32 %v6176_v58 }
0x107d   : > { %v12505_v44 = vpop.eup %9710 }
0x107e   : > { %v6206_v9 = vsel %vm1695_vm2, %v12505_v44, 0.0 }
0x107f   : > { %6207 = vadd.xlane.f32.xlu0 %v6206_v9 }
0x1081   : > { %6535 = vrot.lane.b32.xlu1 %v12284_v47, %s10191_s0  ;;  %v12512_v26 = vpop.eup %9712 }
0x1082   : > { %v6209_v23 = vsel %vm1695_vm2, %v12512_v26, 0.0 }
0x109a   : > { %v6127_v18 = vpop.xlane.xlu1 %6126 }
0x109b   : > { %v6163_v36 = vsub.f32 %v12422_v10, %v6127_v18 }
0x109d   : > { %v6184_v40 = vmul.f32 1.442695, %v6163_v36 }
0x10a4   : > { %v6118_v3 = vpop.xlane.xlu0 %6117 }
0x10a5   : > { %v6160_v43 = vsub.f32 %v12431_v2, %v6118_v3  ;;  %6210 = vadd.xlane.f32.xlu1 %v6209_v23 }
0x10a7   : > { %v6178_v39 = vmul.f32 1.442695, %v6160_v43 }
0x10a8   : > { %v6121_v15 = vpop.xlane.xlu0 %6120 }
0x10a9   : > { %9714 = vpow2.f32 %v6178_v39  ;;  %v6161_v47 = vsub.f32 %v12436_v16, %v6121_v15 }
0x10ab   : > { %v6180_v24 = vmul.f32 1.442695, %v6161_v47 }
0x10ac   : > { %v6124_v37 = vpop.xlane.xlu0 %6123 }
0x10ad   : > { %9716 = vpow2.f32 %v6180_v24  ;;  %v6162_v46 = vsub.f32 %v12439_v5, %v6124_v37 }
0x10ae   : > { %9718 = vpow2.f32 %v6184_v40 }
0x10af   : > { %v6182_v38 = vmul.f32 1.442695, %v6162_v46 }
0x10b0   : > { %v6130_v45 = vpop.xlane.xlu0 %6129  ;;  %v6133_v28 = vpop.xlane.xlu1 %6132 }
0x10b1   : > { %9720 = vpow2.f32 %v6182_v38  ;;  %v6164_v2 = vsub.f32 %v12444_v33, %v6130_v45  ;;  %v6165_v10 = vsub.f32 %v12449_v21, %v6133_v28 }
0x10b3   : > { %v6186_v51 = vmul.f32 1.442695, %v6164_v2  ;;  %v6188_v55 = vmul.f32 1.442695, %v6165_v10 }
0x10b4   : > { %v6136_v9 = vpop.xlane.xlu0 %6135  ;;  %v6139_v13 = vpop.xlane.xlu1 %6138 }
0x10b5   : > { %9722 = vpow2.f32 %v6186_v51  ;;  %v6166_v16 = vsub.f32 %v12452_v62, %v6136_v9  ;;  %v6167_v14 = vsub.f32 %v12455_v56, %v6139_v13 }
0x10b6   : > { %v12524_v58 = vpop.eup %9714  ;;  %9724 = vpow2.f32 %v6188_v55 }
0x10b7   : > { %v6190_v5 = vmul.f32 1.442695, %v6166_v16  ;;  %v6192_v18 = vmul.f32 1.442695, %v6167_v14  ;;  %v6212_v3 = vsel %vm1695_vm2, %v12524_v58, 0.0 }
0x10b8   : > { %v6142_v33 = vpop.xlane.xlu0 %6141  ;;  %v6145_v23 = vpop.xlane.xlu1 %6144  ;;  %6213 = vadd.xlane.f32.xlu0 %v6212_v3 }
0x10b9   : > { %9726 = vpow2.f32 %v6190_v5  ;;  %v6168_v21 = vsub.f32 %v12464_v32, %v6142_v33  ;;  %v6169_v43 = vsub.f32 %v12469_v42, %v6145_v23 }
0x10ba   : > { %v12530_v36 = vpop.eup %9716  ;;  %9728 = vpow2.f32 %v6192_v18 }
0x10bb   : > { %v6194_v62 = vmul.f32 1.442695, %v6168_v21  ;;  %v6196_v56 = vmul.f32 1.442695, %v6169_v43  ;;  %v6215_v39 = vsel %vm1695_vm2, %v12530_v36, 0.0  ;;  %v12534_v15 = vpop.eup %9718 }
0x10bc   : > { %v6148_v47 = vpop.xlane.xlu0 %6147  ;;  %v6151_v40 = vpop.xlane.xlu1 %6150  ;;  %6216 = vadd.xlane.f32.xlu1 %v6215_v39  ;;  %v6221_v45 = vsel %vm1695_vm2, %v12534_v15, 0.0 }
0x10bd   : > { %9730 = vpow2.f32 %v6194_v62  ;;  %v6170_v24 = vsub.f32 %v12472_v53, %v6148_v47  ;;  %v6171_v32 = vsub.f32 %v12475_v4, %v6151_v40 }
0x10be   : > { %v12538_v37 = vpop.eup %9720  ;;  %9732 = vpow2.f32 %v6196_v56 }
0x10bf   : > { %v6198_v42 = vmul.f32 1.442695, %v6170_v24  ;;  %v6200_v46 = vmul.f32 1.442695, %v6171_v32  ;;  %v6218_v38 = vsel %vm1695_vm2, %v12538_v37, 0.0 }
0x10c0   : > { %v6344_v28 = vpop.permute.xlu1 %6343  ;;  %6219 = vadd.xlane.f32.xlu0 %v6218_v38  ;;  %v6154_v2 = vpop.xlane.xlu0 %6153  ;;  %6222 = vadd.xlane.f32.xlu1 %v6221_v45 }
0x10c1   : > { %9734 = vpow2.f32 %v6198_v42  ;;  %v6172_v53 = vsub.f32 %v12482_v34, %v6154_v2  ;;  %9023 = vmatpush3.bf16.msra.mxu1 %v6344_v28 }
0x10c2   : > { %v12545_v4 = vpop.eup %9722  ;;  %9736 = vpow2.f32 %v6200_v46  ;;  %9034 = vmatprep.subr.bf16.mxu1 %v13267_v59 }
0x10c3   : > { %v12548_v10 = vpop.eup %9724  ;;  %v6202_v51 = vmul.f32 1.442695, %v6172_v53  ;;  %v6224_v55 = vsel %vm1695_vm2, %v12545_v4, 0.0 }
0x10c4   : > { %6225 = vadd.xlane.f32.xlu0 %v6224_v55  ;;  %v6296_v9 = vpop.permute.xlu0 %6295  ;;  %v6227_v13 = vsel %vm1695_vm2, %v12548_v10, 0.0  ;;  %v6392_v40 = vpop.permute.xlu1 %6391 }
0x10c5   : > { %9738 = vpow2.f32 %v6202_v51  ;;  %6228 = vadd.xlane.f32.xlu1 %v6227_v13  ;;  %9017 = vmatpush3.bf16.msra.mxu0 %v6296_v9 }
0x10c6   : > { %v12554_v34 = vpop.eup %9726  ;;  %9028 = vmatprep.subr.bf16.mxu0 %v13267_v59 }
0x10c7   : > { %v12557_v16 = vpop.eup %9728  ;;  %v6230_v14 = vsel %vm1695_vm2, %v12554_v34, 0.0 }
0x10c8   : > { %6231 = vadd.xlane.f32.xlu0 %v6230_v14  ;;  %v6233_v5 = vsel %vm1695_vm2, %v12557_v16, 0.0  ;;  %v6440_v24 = vpop.permute.xlu1 %6439  ;;  %v6488_v28 = vpop.permute.xlu0 %6487 }
0x10c9   : > { %6234 = vadd.xlane.f32.xlu1 %v6233_v5 }
0x10ca   : > { %v12563_v18 = vpop.eup %9730 }
0x10cb   : > { %v12565_v3 = vpop.eup %9732  ;;  %v6236_v33 = vsel %vm1695_vm2, %v12563_v18, 0.0 }
0x10cc   : > { %6237 = vadd.xlane.f32.xlu0 %v6236_v33  ;;  %v6239_v23 = vsel %vm1695_vm2, %v12565_v3, 0.0 }
0x10cd   : > { %6240 = vadd.xlane.f32.xlu1 %v6239_v23 }
0x10ce   : > { %v12571_v21 = vpop.eup %9734 }
0x10cf   : > { %v12573_v43 = vpop.eup %9736  ;;  %v6242_v62 = vsel %vm1695_vm2, %v12571_v21, 0.0 }
0x10d0   : > { %6243 = vadd.xlane.f32.xlu0 %v6242_v62  ;;  %v6245_v56 = vsel %vm1695_vm2, %v12573_v43, 0.0 }
0x10d1   : > { %6246 = vadd.xlane.f32.xlu1 %v6245_v56 }
0x10d2   : > { %v12579_v39 = vpop.eup %9738 }
0x10d3   : > { %v6248_v47 = vsel %vm1695_vm2, %v12579_v39, 0.0 }
0x10d4   : > { %6249 = vadd.xlane.f32.xlu0 %v6248_v47 }
0x10ea   : > { %6583 = vrot.lane.b32.xlu0 %v12297_v57, %s10191_s0 }
0x10f9   : > { %v6157_v32 = vpop.xlane.xlu1 %6156 }
0x10fa   : > { %v6173_v42 = vsub.f32 %v12500_v17, %v6157_v32 }
0x10fc   : > { %v6204_v46 = vmul.f32 1.442695, %v6173_v42 }
0x10fd   : > { %v12592_v2 = vpop.permute.xlu1 %6535 }
0x10fe   : > { %9740 = vpow2.f32 %v6204_v46 }
0x1108   : > { %v6208_v57 = vpop.xlane.xlu0 %6207 }
0x1109   : > { %9742 = vrcp.f32 %v6208_v57 }
0x110b   : > { %v12586_v38 = vpop.eup %9740 }
0x110c   : > { %v6251_v45 = vsel %vm1695_vm2, %v12586_v38, 0.0 }
0x110d   : > { %6252 = vadd.xlane.f32.xlu1 %v6251_v45 }
0x1116   : > { %v9743_v51 = vpop.eup %9742 }
0x1117   : > { %v6270_v55 = vmul.f32 %v9743_v51, %v12505_v44 }
0x111e   : > { %6631 = vrot.lane.b32.xlu1 %v12310_v12, %s10191_s0  ;;  %s13277_s0 = sld [smem:[#allocation42_spill]] }
0x112e   : > { %v6211_v53 = vpop.xlane.xlu1 %6210 }
0x112f   : > { %9744 = vrcp.f32 %v6211_v53 }
0x113c   : > { %v9745_v17 = vpop.eup %9744 }
0x113d   : > { %v6271_v9 = vmul.f32 %v9745_v17, %v12512_v26 }
0x113f   : > { %v6286_v13 = vpack.c.bf16 %v6271_v9, %v6270_v55 }
0x1141   : > { %v6214_v14 = vpop.xlane.xlu0 %6213  ;;  %9019 = vmatmul.mubr.msk.bf16.vlgmr.msra.gmra.mxu0 %vm1695_vm2, %v6286_v13 }
0x1142   : > { %9029 = vmatpush3.bf16.msra.mxu0 %v6392_v40  ;;  %9030 = vmatprep.mubr.msk.bf16.mxu0 %vm10190_vm0, %v13267_v59  ;;  %9746 = vrcp.f32 %v6214_v14 }
0x1143   : > { %9040 = vmatprep.subr.bf16.mxu0 %v13267_v59 }
0x1145   : > { %v6217_v12 = vpop.xlane.xlu1 %6216 }
0x1146   : > { %9748 = vrcp.f32 %v6217_v12 }
0x1149   : > { %v6220_v5 = vpop.xlane.xlu0 %6219  ;;  %v6223_v33 = vpop.xlane.xlu1 %6222 }
0x114a   : > { %9750 = vrcp.f32 %v6220_v5 }
0x114b   : > { %9752 = vrcp.f32 %v6223_v33 }
0x114d   : > { %v6226_v44 = vpop.xlane.xlu0 %6225 }
0x114e   : > { %9754 = vrcp.f32 %v6226_v44  ;;  %v6229_v26 = vpop.xlane.xlu1 %6228 }
0x114f   : > { %9756 = vrcp.f32 %v6229_v26  ;;  %v9747_v23 = vpop.eup %9746 }
0x1150   : > { %v6272_v40 = vmul.f32 %v9747_v23, %v12524_v58 }
0x1151   : > { %v6232_v62 = vpop.xlane.xlu0 %6231 }
0x1152   : > { %9758 = vrcp.f32 %v6232_v62  ;;  %v6235_v56 = vpop.xlane.xlu1 %6234 }
0x1153   : > { %v9749_v47 = vpop.eup %9748  ;;  %9760 = vrcp.f32 %v6235_v56 }
0x1154   : > { %v6273_v32 = vmul.f32 %v9749_v47, %v12530_v36 }
0x1155   : > { %v6238_v42 = vpop.xlane.xlu0 %6237 }
0x1156   : > { %v6287_v46 = vpack.c.bf16 %v6273_v32, %v6272_v40  ;;  %9762 = vrcp.f32 %v6238_v42  ;;  %v6241_v45 = vpop.xlane.xlu1 %6240  ;;  %v9435_v40 = vld [vmem:[#allocation12 + $0x70] sm:$0xff]   ;;  %v9436_v32 = vld [vmem:[#allocation12 + $0x68] sm:$0xff]  }
0x1157   : > { %v9751_v57 = vpop.eup %9750  ;;  %9764 = vrcp.f32 %v6241_v45 }
0x1158   : > { %v9753_v53 = vpop.eup %9752  ;;  %v6274_v51 = vmul.f32 %v9751_v57, %v12538_v37  ;;  %9025 = vmatmul.mubr.msk.bf16.vlgmr.msra.gmra.mxu1 %vm1695_vm2, %v6287_v46  ;;  %v9437_v46 = vld [vmem:[#allocation12 + $0x60] sm:$0xff]  }
0x1159   : > { %v6275_v17 = vmul.f32 %v9753_v53, %v12534_v15  ;;  %9035 = vmatpush3.bf16.msra.mxu1 %v6440_v24  ;;  %v6244_v55 = vpop.xlane.xlu0 %6243  ;;  %9036 = vmatprep.mubr.msk.bf16.mxu1 %vm10190_vm0, %v13267_v59 }
0x115a   : > { %9766 = vrcp.f32 %v6244_v55  ;;  %v6247_v58 = vpop.xlane.xlu1 %6246  ;;  %9046 = vmatprep.subr.bf16.mxu1 %v13267_v59  ;;  %v9431_v55 = vld [vmem:[#allocation12 + $0x50] sm:$0xff]  }
0x115b   : > { %v9755_v36 = vpop.eup %9754  ;;  %v6288_v9 = vpack.c.bf16 %v6275_v17, %v6274_v51  ;;  %9768 = vrcp.f32 %v6247_v58  ;;  %v9432_v58 = vld [vmem:[#allocation12 + $0x48] sm:$0xff]  }
0x115c   : > { %v9757_v13 = vpop.eup %9756  ;;  %v6276_v14 = vmul.f32 %v9755_v36, %v12545_v4  ;;  %v9433_v36 = vld [vmem:[#allocation12 + $0x40] sm:$0xff]  }
0x115d   : > { %v6277_v37 = vmul.f32 %v9757_v13, %v12548_v10  ;;  %9031 = vmatmul.mubr.msk.bf16.vlgmr.msra.gmra.mxu0 %vm1695_vm2, %v6288_v9  ;;  %v6250_v12 = vpop.xlane.xlu0 %6249 }
0x115e   : > { %9041 = vmatpush3.bf16.msra.mxu0 %v6488_v28  ;;  %9042 = vmatprep.mubr.msk.bf16.mxu0 %vm10190_vm0, %v13267_v59  ;;  %9770 = vrcp.f32 %v6250_v12 }
0x115f   : > { %v9759_v15 = vpop.eup %9758  ;;  %v6289_v24 = vpack.c.bf16 %v6277_v37, %v6276_v14  ;;  %9052 = vmatprep.subr.bf16.mxu0 %v13267_v59 }
0x1160   : > { %v9761_v5 = vpop.eup %9760  ;;  %v6278_v33 = vmul.f32 %v9759_v15, %v12554_v34 }
0x1161   : > { %v6279_v44 = vmul.f32 %v9761_v5, %v12557_v16  ;;  %9037 = vmatmul.mubr.msk.bf16.vlgmr.msra.gmra.mxu1 %vm1695_vm2, %v6289_v24  ;;  %v6584_v62 = vpop.permute.xlu0 %6583 }
0x1162   : > { %9047 = vmatpush3.bf16.msra.mxu1 %v12592_v2  ;;  %9048 = vmatprep.mubr.msk.bf16.mxu1 %vm10190_vm0, %v13267_v59 }
0x1163   : > { %v9763_v4 = vpop.eup %9762  ;;  %v6290_v10 = vpack.c.bf16 %v6279_v44, %v6278_v33  ;;  %9058 = vmatprep.subr.bf16.mxu1 %v13267_v59 }
0x1164   : > { %v9765_v28 = vpop.eup %9764  ;;  %v6280_v26 = vmul.f32 %v9763_v4, %v12563_v18 }
0x1165   : > { %v6281_v23 = vmul.f32 %v9765_v28, %v12565_v3  ;;  %9043 = vmatmul.mubr.msk.bf16.vlgmr.msra.gmra.mxu0 %vm1695_vm2, %v6290_v10  ;;  %v9434_v3 = vld [vmem:[#allocation12 + $0x78] sm:$0xff]  }
0x1166   : > { %9053 = vmatpush3.bf16.msra.mxu0 %v6584_v62  ;;  %9054 = vmatprep.mubr.msk.bf16.mxu0 %vm10190_vm0, %v13267_v59 }
0x1167   : > { %v9767_v34 = vpop.eup %9766  ;;  %v6291_v16 = vpack.c.bf16 %v6281_v23, %v6280_v26  ;;  %9064 = vmatprep.subr.bf16.mxu0 %v9434_v3 }
0x1168   : > { %v9769_v2 = vpop.eup %9768  ;;  %v6282_v56 = vmul.f32 %v9767_v34, %v12571_v21 }
0x1169   : > { %v6283_v47 = vmul.f32 %v9769_v2, %v12573_v43  ;;  %9049 = vmatmul.mubr.msk.bf16.vlgmr.msra.gmra.mxu1 %vm1695_vm2, %v6291_v16  ;;  %v9430_v43 = vld [vmem:[#allocation12 + $0x58] sm:$0xff]  }
0x116a   : > { %9060 = vmatprep.mubr.msk.bf16.mxu1 %vm10190_vm0, %v13267_v59 }
0x116b   : > { %v6292_v18 = vpack.c.bf16 %v6283_v47, %v6282_v56  ;;  %v9771_v45 = vpop.eup %9770 }
0x116c   : > { %v6284_v53 = vmul.f32 %v9771_v45, %v12579_v39 }
0x116d   : > { %9055 = vmatmul.mubr.msk.bf16.vlgmr.msra.gmra.mxu0 %vm1695_vm2, %v6292_v18 }
0x116e   : > { %9065 = vmatpush3.bf16.msra.mxu0 %v9434_v3 }
0x116f   : > { %9066 = vmatprep.subr.bf16.mxu0 %v9435_v40 }
0x1172   : > { %9067 = vmatpush3.bf16.msra.mxu0 %v9435_v40 }
0x1173   : > { %9068 = vmatprep.subr.bf16.mxu0 %v9436_v32 }
0x1176   : > { %9069 = vmatpush3.bf16.msra.mxu0 %v9436_v32 }
0x1177   : > { %9070 = vmatprep.subr.bf16.mxu0 %v9437_v46 }
0x117a   : > { %9071 = vmatpush3.bf16.msra.mxu0 %v9437_v46 }
0x1196   : > { %v6253_v21 = vpop.xlane.xlu1 %6252 }
0x1197   : > { %9772 = vrcp.f32 %v6253_v21  ;;  %v12678_v21 = vld [vmem:[%s13185_s8 + $0x1] ss:$0 sm:$0xff] }
0x119a   : > { %v6632_v42 = vpop.permute.xlu1 %6631 }
0x119b   : > { %9059 = vmatpush3.bf16.msra.mxu1 %v6632_v42 }
0x119c   : > { %9088 = vmatprep.subr.bf16.mxu1 %v9430_v43 }
0x11a4   : > { %v9773_v57 = vpop.eup %9772 }
0x11a5   : > { %v6285_v51 = vmul.f32 %v9773_v57, %v12586_v38 }
0x11a7   : > { %v6293_v17 = vpack.c.bf16 %v6285_v51, %v6284_v53 }
0x11a9   : > { %9061 = vmatmul.mubr.msk.bf16.vlgmr.msra.gmra.mxu1 %vm1695_vm2, %v6293_v17  ;;  %v9862_v17 = vld [vmem:[%s10538_s18] sm:$0xff] }
0x11aa   : > { %9089 = vmatpush3.bf16.msra.mxu1 %v9430_v43  ;;  %9096 = vmatprep.mubr.msk.bf16.mxu1 %vm1286_vm1, %v5646_v50 }
0x11ab   : > { %9090 = vmatprep.subr.bf16.mxu1 %v9431_v55 }
0x11ae   : > { %9091 = vmatpush3.bf16.msra.mxu1 %v9431_v55 }
0x11af   : > { %9092 = vmatprep.subr.bf16.mxu1 %v9432_v58 }
0x11b2   : > { %9093 = vmatpush3.bf16.msra.mxu1 %v9432_v58 }
0x11b3   : > { %9094 = vmatprep.subr.bf16.mxu1 %v9433_v36 }
0x11b6   : > { %9095 = vmatpush3.bf16.msra.mxu1 %v9433_v36 }
0x11b9   : > { %9097 = vmatmul.mubr.msk.bf16.vlgmr.msra.gmra.mxu1 %vm1286_vm1, %v5647_v49 }
0x11ba   : > { %9100 = vmatprep.mubr.msk.bf16.mxu1 %vm1286_vm1, %v5648_v6 }
0x11c1   : > { %9101 = vmatmul.mubr.msk.bf16.gmra.mxu1 %vm1286_vm1, %v5649_v63 }
0x11c2   : > { %9104 = vmatprep.mubr.msk.bf16.mxu1 %vm1286_vm1, %v5650_v31 }
0x11c9   : > { %9105 = vmatmul.mubr.msk.bf16.gmra.mxu1 %vm1286_vm1, %v5651_v19 }
0x11ca   : > { %9108 = vmatprep.mubr.msk.bf16.mxu1 %vm1286_vm1, %v5652_v60 }
0x11d1   : > { %9109 = vmatmul.mubr.msk.bf16.gmra.mxu1 %vm1286_vm1, %v5653_v35 }
0x1201   : > { %v6335_v48 = vpop.f32.mrf.mxu0 }
0x1203   : > { %v9020_v29 = vpop.f32.mrf.mxu0 }
0x1205   : > { %v6338_v50 = vpop.f32.mrf.mxu0 }
0x1206   : > { %v6678_v27 = vpack.c.bf16 %v6338_v50, %v6335_v48 }
0x1207   : > { %v9021_v7 = vpop.f32.mrf.mxu0 }
0x1208   : > { %9072 = vmatprep.mubr.msk.bf16.mxu0 %vm1286_vm1, %v6678_v27  ;;  %v9863_v27 = vld [vmem:[%s10538_s18 + $0x8] sm:$0xff] }
0x1218   : > { %v6383_v49 = vpop.f32.mrf.mxu1 }
0x121a   : > { %v9026_v25 = vpop.f32.mrf.mxu1 }
0x121c   : > { %v6386_v22 = vpop.f32.mrf.mxu1 }
0x121d   : > { %v6679_v6 = vpack.c.bf16 %v6386_v22, %v6383_v49  ;;  %v6431_v1 = vpop.f32.mrf.mxu0  ;;  %v9864_v49 = vld [vmem:[%s10538_s18 + $0x10] sm:$0xff] }
0x121e   : > { %v9027_v11 = vpop.f32.mrf.mxu1 }
0x121f   : > { %v9032_v63 = vpop.f32.mrf.mxu0  ;;  %9073 = vmatmul.mubr.msk.bf16.vlgmr.msra.gmra.mxu0 %vm1286_vm1, %v6679_v6 }
0x1221   : > { %v6434_v41 = vpop.f32.mrf.mxu0  ;;  %v6479_v0 = vpop.f32.mrf.mxu1 }
0x1222   : > { %v6680_v31 = vpack.c.bf16 %v6434_v41, %v6431_v1 }
0x1223   : > { %v9033_v52 = vpop.f32.mrf.mxu0  ;;  %v9038_v61 = vpop.f32.mrf.mxu1 }
0x1224   : > { %9076 = vmatprep.mubr.msk.bf16.mxu0 %vm1286_vm1, %v6680_v31 }
0x1225   : > { %v6482_v19 = vpop.f32.mrf.mxu1  ;;  %v6527_v30 = vpop.f32.mrf.mxu0 }
0x1226   : > { %v6681_v20 = vpack.c.bf16 %v6482_v19, %v6479_v0  ;;  %v9865_v0 = vld [vmem:[%s10538_s18 + $0x18] sm:$0xff] }
0x1227   : > { %v9039_v60 = vpop.f32.mrf.mxu1  ;;  %v9044_v8 = vpop.f32.mrf.mxu0 }
0x1228   : > { %9077 = vmatmul.mubr.msk.bf16.gmra.mxu0 %vm1286_vm1, %v6681_v20 }
0x1229   : > { %v6530_v54 = vpop.f32.mrf.mxu0  ;;  %v6575_v35 = vpop.f32.mrf.mxu1 }
0x122a   : > { %v6682_v39 = vpack.c.bf16 %v6530_v54, %v6527_v30  ;;  %v9866_v54 = vld [vmem:[%s10538_s18 + $0x20] sm:$0xff] }
0x122b   : > { %v9045_v38 = vpop.f32.mrf.mxu0  ;;  %v9050_v9 = vpop.f32.mrf.mxu1 }
0x122c   : > { %9080 = vmatprep.mubr.msk.bf16.mxu0 %vm1286_vm1, %v6682_v39  ;;  %v9867_v9 = vld [vmem:[%s10538_s18 + $0x28] sm:$0xff] }
0x122d   : > { %v6578_v13 = vpop.f32.mrf.mxu1  ;;  %v6623_v14 = vpop.f32.mrf.mxu0 }
0x122e   : > { %v6683_v37 = vpack.c.bf16 %v6578_v13, %v6575_v35 }
0x122f   : > { %v9051_v15 = vpop.f32.mrf.mxu1  ;;  %v9056_v24 = vpop.f32.mrf.mxu0 }
0x1230   : > { %9081 = vmatmul.mubr.msk.bf16.gmra.mxu0 %vm1286_vm1, %v6683_v37 }
0x1231   : > { %v6626_v12 = vpop.f32.mrf.mxu0 }
0x1232   : > { %v6684_v5 = vpack.c.bf16 %v6626_v12, %v6623_v14 }
0x1233   : > { %v9057_v33 = vpop.f32.mrf.mxu0 }
0x1234   : > { %9084 = vmatprep.mubr.msk.bf16.mxu0 %vm1286_vm1, %v6684_v5  ;;  %v9868_v5 = vld [vmem:[%s10538_s18 + $0x30] sm:$0xff] }
0x1269   : > { %v6671_v44 = vpop.f32.mrf.mxu1 }
0x126b   : > { %v9062_v4 = vpop.f32.mrf.mxu1 }
0x126d   : > { %v6674_v10 = vpop.f32.mrf.mxu1 }
0x126e   : > { %v6685_v28 = vpack.c.bf16 %v6674_v10, %v6671_v44  ;;  %v9869_v10 = vld [vmem:[%s10538_s18 + $0x38] sm:$0xff] }
0x126f   : > { %v9063_v26 = vpop.f32.mrf.mxu1 }
0x1270   : > { %9085 = vmatmul.mubr.msk.bf16.gmra.mxu0 %vm1286_vm1, %v6685_v28 }
0x1279   : > { %v9098_v23 = vpop.f32.mrf.mxu1 }
0x127b   : > { %v6913_v62 = vpop.f32.mrf.mxu1 }
0x127d   : > { %v9099_v34 = vpop.f32.mrf.mxu1 }
0x127f   : > { %v6916_v16 = vpop.f32.mrf.mxu1 }
0x1281   : > { %v9102_v2 = vpop.f32.mrf.mxu1 }
0x1283   : > { %v6929_v56 = vpop.f32.mrf.mxu1 }
0x1285   : > { %v9103_v3 = vpop.f32.mrf.mxu1 }
0x1287   : > { %v6932_v45 = vpop.f32.mrf.mxu1 }
0x1289   : > { %v9106_v48 = vpop.f32.mrf.mxu1 }
0x128b   : > { %v6945_v1 = vpop.f32.mrf.mxu1 }
0x128d   : > { %v9107_v20 = vpop.f32.mrf.mxu1 }
0x128f   : > { %v6948_v37 = vpop.f32.mrf.mxu1 }
0x12df   : > { %v9074_v47 = vpop.f32.mrf.mxu0 }
0x12e0   : > { %v6922_v40 = vadd.f32 %v9098_v23, %v9074_v47  ;;  %v9872_v47 = vld [vmem:[%s10538_s18 + $0x50] sm:$0xff] }
0x12e1   : > { %v6768_v18 = vpop.f32.mrf.mxu0 }
0x12e2   : > { %v6914_v32 = vadd.f32 %v6913_v62, %v6768_v18  ;;  %v6986_v57 = vadd.f32 %v12678_v21, %v6922_v40  ;;  %v9870_v62 = vld [vmem:[%s10538_s18 + $0x40] sm:$0xff] }
0x12e3   : > { %v9075_v43 = vpop.f32.mrf.mxu0 }
0x12e4   : > { %v6984_v42 = vadd.f32 %v12678_v21, %v6914_v32  ;;  %v6925_v53 = vadd.f32 %v9099_v34, %v9075_v43  ;;  %v12692_v25 = vadd.f32 %v9864_v49, %v6986_v57  ;;  %v9110_v32 = vpop.f32.mrf.mxu1 }
0x12e5   : > { %v6771_v46 = vpop.f32.mrf.mxu0 }
0x12e6   : > { %v6917_v51 = vadd.f32 %v6916_v16, %v6771_v46  ;;  %v12683_v55 = vadd.f32 %v9862_v17, %v6984_v42  ;;  %v6987_v29 = vadd.f32 %v12678_v21, %v6925_v53  ;;  %v6961_v43 = vpop.f32.mrf.mxu1 }
0x12e8   : > { %v6985_v58 = vadd.f32 %v12678_v21, %v6917_v51  ;;  %v9078_v36 = vpop.f32.mrf.mxu0  ;;  %7020 = vadd.xlane.f32.xlu0 %v12683_v55  ;;  %v12698_v31 = vadd.f32 %v9865_v0, %v6987_v29  ;;  %v9111_v46 = vpop.f32.mrf.mxu1  ;;  %v9877_v0 = vld [vmem:[%s10538_s18 + $0x78] sm:$0xff] }
0x12e9   : > { %v6938_v11 = vadd.f32 %v9102_v2, %v9078_v36  ;;  %v9871_v2 = vld [vmem:[%s10538_s18 + $0x48] sm:$0xff] }
0x12ea   : > { %v6784_v50 = vpop.f32.mrf.mxu0  ;;  %v12689_v7 = vadd.f32 %v9863_v27, %v6985_v58  ;;  %v6964_v58 = vpop.f32.mrf.mxu1  ;;  %v9874_v27 = vld [vmem:[%s10538_s18 + $0x60] sm:$0xff] }
0x12eb   : > { %v6930_v22 = vadd.f32 %v6929_v56, %v6784_v50  ;;  %v6990_v60 = vadd.f32 %v12678_v21, %v6938_v11 }
0x12ec   : > { %v9079_v6 = vpop.f32.mrf.mxu0  ;;  %7022 = vadd.xlane.f32.xlu1 %v12689_v7  ;;  %7024 = vadd.xlane.f32.xlu0 %v12692_v25 }
0x12ed   : > { %v6988_v63 = vadd.f32 %v12678_v21, %v6930_v22  ;;  %v6941_v52 = vadd.f32 %v9103_v3, %v9079_v6  ;;  %v12714_v33 = vadd.f32 %v9868_v5, %v6990_v60  ;;  %v9873_v3 = vld [vmem:[%s10538_s18 + $0x58] sm:$0xff] }
0x12ee   : > { %v6787_v41 = vpop.f32.mrf.mxu0 }
0x12ef   : > { %v6933_v61 = vadd.f32 %v6932_v45, %v6787_v41  ;;  %v12704_v35 = vadd.f32 %v9866_v54, %v6988_v63  ;;  %v6991_v39 = vadd.f32 %v12678_v21, %v6941_v52  ;;  %v9876_v63 = vld [vmem:[%s10538_s18 + $0x70] sm:$0xff] }
0x12f0   : > { %v9082_v19 = vpop.f32.mrf.mxu0  ;;  %7026 = vadd.xlane.f32.xlu0 %v12698_v31 }
0x12f1   : > { %v6989_v30 = vadd.f32 %v12678_v21, %v6933_v61  ;;  %v6954_v15 = vadd.f32 %v9106_v48, %v9082_v19  ;;  %v12717_v28 = vadd.f32 %v9869_v10, %v6991_v39 }
0x12f2   : > { %v6800_v8 = vpop.f32.mrf.mxu0 }
0x12f3   : > { %v6946_v38 = vadd.f32 %v6945_v1, %v6800_v8  ;;  %v12708_v13 = vadd.f32 %v9867_v9, %v6989_v30  ;;  %v6994_v23 = vadd.f32 %v12678_v21, %v6954_v15  ;;  %v9875_v1 = vld [vmem:[%s10538_s18 + $0x68] sm:$0xff]  ;;  %s13278_s18 = sld [smem:[#allocation29_spill]] }
0x12f4   : > { %v9083_v14 = vpop.f32.mrf.mxu0  ;;  %7028 = vadd.xlane.f32.xlu0 %v12704_v35 }
0x12f5   : > { %7030 = vadd.xlane.f32.xlu1 %v12708_v13  ;;  %v6992_v24 = vadd.f32 %v12678_v21, %v6946_v38  ;;  %v6957_v44 = vadd.f32 %v9107_v20, %v9083_v14  ;;  %v12733_v18 = vadd.f32 %v9872_v47, %v6994_v23  ;;  %v9438_v47 = vld [vmem:[#allocation14 + $0x78] sm:$0xff]  }
0x12f6   : > { %v6803_v12 = vpop.f32.mrf.mxu0  ;;  %9112 = vmatprep.subr.bf16.mxu0 %v9438_v47 }
0x12f7   : > { %v6949_v4 = vadd.f32 %v6948_v37, %v6803_v12  ;;  %v12724_v34 = vadd.f32 %v9870_v62, %v6992_v24  ;;  %v6995_v16 = vadd.f32 %v12678_v21, %v6957_v44  ;;  %9113 = vmatpush3.bf16.msra.mxu0 %v9438_v47 }
0x12f8   : > { %7032 = vadd.xlane.f32.xlu0 %v12714_v33 }
0x12f9   : > { %v6993_v26 = vadd.f32 %v12678_v21, %v6949_v4  ;;  %7034 = vadd.xlane.f32.xlu1 %v12717_v28  ;;  %v12736_v40 = vadd.f32 %v9873_v3, %v6995_v16  ;;  %p13280_p9 = scmp.ne.s32.totalorder %s13278_s18, 0 }
0x12fb   : > { %v12728_v56 = vadd.f32 %v9871_v2, %v6993_v26  ;;  %p10092_p1 = pnand %p10091_p5, %p13280_p9 }
0x12fc   : > { %7036 = vadd.xlane.f32.xlu0 %v12724_v34 }
0x12fd   : > { %7038 = vadd.xlane.f32.xlu1 %v12728_v56  ;;  %p10093_p4 = pneg %p10092_p1 }
0x12ff   : > { %p10100_p7 = pnand %p10099_p3, %p10093_p4 }
0x1300   : > { %7040 = vadd.xlane.f32.xlu0 %v12733_v18 }
0x1301   : > { %7042 = vadd.xlane.f32.xlu1 %v12736_v40 }
0x1330   : > { %v9086_v42 = vpop.f32.mrf.mxu0 }
0x1331   : > { %v6970_v57 = vadd.f32 %v9110_v32, %v9086_v42 }
0x1332   : > { %v6816_v45 = vpop.f32.mrf.mxu0 }
0x1333   : > { %v6962_v53 = vadd.f32 %v6961_v43, %v6816_v45  ;;  %v6998_v48 = vadd.f32 %v12678_v21, %v6970_v57  ;;  %v9439_v57 = vld [vmem:[#allocation14 + $0x70] sm:$0xff]  }
0x1334   : > { %v9087_v51 = vpop.f32.mrf.mxu0  ;;  %9114 = vmatprep.subr.bf16.mxu0 %v9439_v57 }
0x1335   : > { %v6996_v17 = vadd.f32 %v12678_v21, %v6962_v53  ;;  %v6973_v29 = vadd.f32 %v9111_v46, %v9087_v51  ;;  %v12752_v41 = vadd.f32 %v9876_v63, %v6998_v48  ;;  %9115 = vmatpush3.bf16.msra.mxu0 %v9439_v57  ;;  %v9440_v48 = vld [vmem:[#allocation14 + $0x68] sm:$0xff]  }
0x1336   : > { %v6819_v36 = vpop.f32.mrf.mxu0  ;;  %9116 = vmatprep.subr.bf16.mxu0 %v9440_v48 }
0x1337   : > { %v6965_v50 = vadd.f32 %v6964_v58, %v6819_v36  ;;  %v12743_v49 = vadd.f32 %v9874_v27, %v6996_v17  ;;  %v6999_v6 = vadd.f32 %v12678_v21, %v6973_v29  ;;  %v9441_v27 = vld [vmem:[#allocation14 + $0x60] sm:$0xff]  }
0x1339   : > { %v6997_v22 = vadd.f32 %v12678_v21, %v6965_v50  ;;  %7044 = vadd.xlane.f32.xlu0 %v12743_v49  ;;  %v12757_v52 = vadd.f32 %v9877_v0, %v6999_v6  ;;  %9117 = vmatpush3.bf16.msra.mxu0 %v9440_v48  ;;  %v9445_v6 = vld [vmem:[#allocation14 + $0x40] sm:$0xff]  }
0x133a   : > { %9118 = vmatprep.subr.bf16.mxu0 %v9441_v27 }
0x133b   : > { %v12749_v11 = vadd.f32 %v9875_v1, %v6997_v22  ;;  %v9444_v22 = vld [vmem:[#allocation14 + $0x48] sm:$0xff]  }
0x133d   : > { %7046 = vadd.xlane.f32.xlu1 %v12749_v11  ;;  %7048 = vadd.xlane.f32.xlu0 %v12752_v41 }
0x133e   : > { %9119 = vmatpush3.bf16.msra.mxu0 %v9441_v27 }
0x1341   : > { %7050 = vadd.xlane.f32.xlu1 %v12757_v52 }
0x1371   : > { %v7021_v61 = vpop.xlane.xlu0 %7020 }
0x1372   : > { %v7052_v19 = vmul.f32 0.0078125, %v7021_v61 }
0x1374   : > { %v12761_v30 = vsub.f32 %v12683_v55, %v7052_v19 }
0x1375   : > { %v7023_v21 = vpop.xlane.xlu1 %7022  ;;  %v7025_v20 = vpop.xlane.xlu0 %7024 }
0x1376   : > { %v7053_v60 = vmul.f32 0.0078125, %v7023_v21  ;;  %v7054_v8 = vmul.f32 0.0078125, %v7025_v20  ;;  %v7084_v54 = vmul.f32 %v12761_v30, %v12761_v30 }
0x1378   : > { %v12766_v39 = vsub.f32 %v12689_v7, %v7053_v60  ;;  %v12769_v38 = vsub.f32 %v12692_v25, %v7054_v8  ;;  %7100 = vadd.xlane.f32.xlu0 %v7084_v54 }
0x1379   : > { %v7027_v9 = vpop.xlane.xlu0 %7026 }
0x137a   : > { %v7055_v14 = vmul.f32 0.0078125, %v7027_v9  ;;  %v7085_v55 = vmul.f32 %v12766_v39, %v12766_v39  ;;  %v7086_v37 = vmul.f32 %v12769_v38, %v12769_v38 }
0x137c   : > { %v12776_v15 = vsub.f32 %v12698_v31, %v7055_v14  ;;  %7102 = vadd.xlane.f32.xlu1 %v7085_v55  ;;  %7104 = vadd.xlane.f32.xlu0 %v7086_v37 }
0x137d   : > { %v7029_v24 = vpop.xlane.xlu0 %7028 }
0x137e   : > { %v7031_v7 = vpop.xlane.xlu1 %7030  ;;  %v7056_v12 = vmul.f32 0.0078125, %v7029_v24  ;;  %v7087_v25 = vmul.f32 %v12776_v15, %v12776_v15  ;;  %v9447_v24 = vld [vmem:[#allocation15 + $0x70] sm:$0xff]  }
0x137f   : > { %v7057_v5 = vmul.f32 0.0078125, %v7031_v7  ;;  %v9448_v7 = vld [vmem:[#allocation15 + $0x68] sm:$0xff]  }
0x1380   : > { %v12781_v44 = vsub.f32 %v12704_v35, %v7056_v12  ;;  %7106 = vadd.xlane.f32.xlu1 %v7087_v25  ;;  %v9449_v12 = vld [vmem:[#allocation15 + $0x60] sm:$0xff]  }
0x1381   : > { %v12784_v4 = vsub.f32 %v12708_v13, %v7057_v5  ;;  %v7033_v10 = vpop.xlane.xlu0 %7032 }
0x1382   : > { %v7035_v26 = vpop.xlane.xlu1 %7034  ;;  %v7058_v31 = vmul.f32 0.0078125, %v7033_v10  ;;  %v7088_v23 = vmul.f32 %v12781_v44, %v12781_v44 }
0x1383   : > { %v7059_v62 = vmul.f32 0.0078125, %v7035_v26  ;;  %v7089_v16 = vmul.f32 %v12784_v4, %v12784_v4 }
0x1384   : > { %v12791_v2 = vsub.f32 %v12714_v33, %v7058_v31  ;;  %7108 = vadd.xlane.f32.xlu0 %v7088_v23 }
0x1385   : > { %v12794_v35 = vsub.f32 %v12717_v28, %v7059_v62  ;;  %7110 = vadd.xlane.f32.xlu1 %v7089_v16  ;;  %v7037_v13 = vpop.xlane.xlu0 %7036 }
0x1386   : > { %v7039_v3 = vpop.xlane.xlu1 %7038  ;;  %v7060_v32 = vmul.f32 0.0078125, %v7037_v13  ;;  %v7090_v43 = vmul.f32 %v12791_v2, %v12791_v2 }
0x1387   : > { %v7061_v42 = vmul.f32 0.0078125, %v7039_v3  ;;  %v7091_v46 = vmul.f32 %v12794_v35, %v12794_v35 }
0x1388   : > { %v12801_v33 = vsub.f32 %v12724_v34, %v7060_v32  ;;  %7112 = vadd.xlane.f32.xlu0 %v7090_v43 }
0x1389   : > { %v12804_v28 = vsub.f32 %v12728_v56, %v7061_v42  ;;  %7114 = vadd.xlane.f32.xlu1 %v7091_v46  ;;  %v7041_v45 = vpop.xlane.xlu0 %7040 }
0x138a   : > { %v7043_v53 = vpop.xlane.xlu1 %7042  ;;  %v7062_v51 = vmul.f32 0.0078125, %v7041_v45  ;;  %v7092_v17 = vmul.f32 %v12801_v33, %v12801_v33 }
0x138b   : > { %v7063_v58 = vmul.f32 0.0078125, %v7043_v53  ;;  %v7093_v36 = vmul.f32 %v12804_v28, %v12804_v28 }
0x138c   : > { %v12811_v34 = vsub.f32 %v12733_v18, %v7062_v51  ;;  %7116 = vadd.xlane.f32.xlu0 %v7092_v17  ;;  %v9442_v18 = vld [vmem:[#allocation14 + $0x58] sm:$0xff]  }
0x138d   : > { %v12814_v56 = vsub.f32 %v12736_v40, %v7063_v58  ;;  %7118 = vadd.xlane.f32.xlu1 %v7093_v36  ;;  %9120 = vmatprep.subr.bf16.mxu0 %v9442_v18  ;;  %v9443_v40 = vld [vmem:[#allocation14 + $0x50] sm:$0xff]  }
0x138e   : > { %v7094_v29 = vmul.f32 %v12811_v34, %v12811_v34  ;;  %9121 = vmatpush3.bf16.msra.mxu0 %v9442_v18 }
0x138f   : > { %v7095_v50 = vmul.f32 %v12814_v56, %v12814_v56  ;;  %9122 = vmatprep.subr.bf16.mxu0 %v9443_v40 }
0x1390   : > { %7120 = vadd.xlane.f32.xlu0 %v7094_v29  ;;  %v12844_v29 = vld [vmem:[%s13186_s9 + $0x1] ss:$0 sm:$0xff] }
0x1391   : > { %7122 = vadd.xlane.f32.xlu1 %v7095_v50 }
0x1392   : > { %9123 = vmatpush3.bf16.msra.mxu0 %v9443_v40 }
0x1393   : > { %9124 = vmatprep.subr.bf16.mxu0 %v9444_v22 }
0x1396   : > { %9125 = vmatpush3.bf16.msra.mxu0 %v9444_v22 }
0x1397   : > { %9126 = vmatprep.subr.bf16.mxu0 %v9445_v6 }
0x139a   : > { %9127 = vmatpush3.bf16.msra.mxu0 %v9445_v6 }
0x139b   : > { %9176 = vmatprep.subr.bf16.mxu0 %v13267_v59 }
0x13c2   : > { %v7045_v1 = vpop.xlane.xlu0 %7044 }
0x13c3   : > { %v7064_v63 = vmul.f32 0.0078125, %v7045_v1 }
0x13c5   : > { %v12822_v0 = vsub.f32 %v12743_v49, %v7064_v63 }
0x13c6   : > { %v7047_v61 = vpop.xlane.xlu1 %7046  ;;  %v7049_v19 = vpop.xlane.xlu0 %7048 }
0x13c7   : > { %v7065_v21 = vmul.f32 0.0078125, %v7047_v61  ;;  %v7066_v20 = vmul.f32 0.0078125, %v7049_v19  ;;  %v7096_v60 = vmul.f32 %v12822_v0, %v12822_v0 }
0x13c9   : > { %v12827_v8 = vsub.f32 %v12749_v11, %v7065_v21  ;;  %v12830_v54 = vsub.f32 %v12752_v41, %v7066_v20  ;;  %7124 = vadd.xlane.f32.xlu0 %v7096_v60  ;;  %v9446_v41 = vld [vmem:[#allocation15 + $0x78] sm:$0xff]   ;;  %v12851_v20 = vld [vmem:[%s13187_s10 + $0x1] ss:$0 sm:$0xff] }
0x13ca   : > { %v7051_v9 = vpop.xlane.xlu1 %7050  ;;  %9144 = vmatprep.subr.bf16.mxu1 %v9446_v41 }
0x13cb   : > { %v7067_v14 = vmul.f32 0.0078125, %v7051_v9  ;;  %v7097_v49 = vmul.f32 %v12827_v8, %v12827_v8  ;;  %v7098_v55 = vmul.f32 %v12830_v54, %v12830_v54  ;;  %9145 = vmatpush3.bf16.msra.mxu1 %v9446_v41 }
0x13cc   : > { %9146 = vmatprep.subr.bf16.mxu1 %v9447_v24 }
0x13cd   : > { %v12837_v37 = vsub.f32 %v12757_v52, %v7067_v14  ;;  %7126 = vadd.xlane.f32.xlu1 %v7097_v49  ;;  %7128 = vadd.xlane.f32.xlu0 %v7098_v55  ;;  %v9450_v52 = vld [vmem:[#allocation15 + $0x58] sm:$0xff]  }
0x13cf   : > { %v7099_v11 = vmul.f32 %v12837_v37, %v12837_v37  ;;  %9147 = vmatpush3.bf16.msra.mxu1 %v9447_v24 }
0x13d0   : > { %9148 = vmatprep.subr.bf16.mxu1 %v9448_v7 }
0x13d1   : > { %7130 = vadd.xlane.f32.xlu1 %v7099_v11 }
0x13d3   : > { %9149 = vmatpush3.bf16.msra.mxu1 %v9448_v7 }
0x13d4   : > { %9150 = vmatprep.subr.bf16.mxu1 %v9449_v12 }
0x13d7   : > { %9151 = vmatpush3.bf16.msra.mxu1 %v9449_v12 }
0x13d8   : > { %9152 = vmatprep.subr.bf16.mxu1 %v9450_v52 }
0x13db   : > { %9153 = vmatpush3.bf16.msra.mxu1 %v9450_v52 }
0x1401   : > { %v7101_v25 = vpop.xlane.xlu0 %7100 }
0x1402   : > { %v7132_v5 = vmul.f32 0.0078125, %v7101_v25 }
0x1404   : > { %v7148_v10 = vadd.f32 1e-05, %v7132_v5 }
0x1405   : > { %v7103_v26 = vpop.xlane.xlu1 %7102  ;;  %v7105_v31 = vpop.xlane.xlu0 %7104 }
0x1406   : > { %9774 = vrsqrt.f32 %v7148_v10  ;;  %v7133_v23 = vmul.f32 0.0078125, %v7103_v26  ;;  %v7134_v62 = vmul.f32 0.0078125, %v7105_v31 }
0x1408   : > { %v7149_v16 = vadd.f32 1e-05, %v7133_v23  ;;  %v7150_v13 = vadd.f32 1e-05, %v7134_v62 }
0x1409   : > { %v7107_v47 = vpop.xlane.xlu1 %7106 }
0x140a   : > { %9776 = vrsqrt.f32 %v7149_v16  ;;  %v7135_v3 = vmul.f32 0.0078125, %v7107_v47 }
0x140b   : > { %9778 = vrsqrt.f32 %v7150_v13 }
0x140c   : > { %v7151_v32 = vadd.f32 1e-05, %v7135_v3 }
0x140d   : > { %v7109_v43 = vpop.xlane.xlu0 %7108 }
0x140e   : > { %9780 = vrsqrt.f32 %v7151_v32  ;;  %v7111_v42 = vpop.xlane.xlu1 %7110  ;;  %v7136_v46 = vmul.f32 0.0078125, %v7109_v43 }
0x140f   : > { %v7137_v45 = vmul.f32 0.0078125, %v7111_v42 }
0x1410   : > { %v7152_v57 = vadd.f32 1e-05, %v7136_v46 }
0x1411   : > { %v7153_v53 = vadd.f32 1e-05, %v7137_v45  ;;  %v7113_v51 = vpop.xlane.xlu0 %7112 }
0x1412   : > { %9782 = vrsqrt.f32 %v7152_v57  ;;  %v7115_v17 = vpop.xlane.xlu1 %7114  ;;  %v7138_v58 = vmul.f32 0.0078125, %v7113_v51 }
0x1413   : > { %v9775_v36 = vpop.eup %9774  ;;  %9784 = vrsqrt.f32 %v7153_v53  ;;  %v7139_v48 = vmul.f32 0.0078125, %v7115_v17 }
0x1414   : > { %v7154_v50 = vadd.f32 1e-05, %v7138_v58  ;;  %v7180_v27 = vmul.f32 %v9775_v36, %v12761_v30 }
0x1415   : > { %v7155_v18 = vadd.f32 1e-05, %v7139_v48  ;;  %v7117_v40 = vpop.xlane.xlu0 %7116 }
0x1416   : > { %9786 = vrsqrt.f32 %v7154_v50  ;;  %v7119_v22 = vpop.xlane.xlu1 %7118  ;;  %v7140_v6 = vmul.f32 0.0078125, %v7117_v40  ;;  %v7202_v61 = vmul.f32 %v12844_v29, %v7180_v27 }
0x1417   : > { %v9777_v1 = vpop.eup %9776  ;;  %9788 = vrsqrt.f32 %v7155_v18  ;;  %v7141_v63 = vmul.f32 0.0078125, %v7119_v22 }
0x1418   : > { %v9779_v19 = vpop.eup %9778  ;;  %v7156_v21 = vadd.f32 1e-05, %v7140_v6  ;;  %v7181_v60 = vmul.f32 %v9777_v1, %v12766_v39  ;;  %v12857_v7 = vadd.f32 %v12851_v20, %v7202_v61 }
0x1419   : > { %v7182_v30 = vmul.f32 %v9779_v19, %v12769_v38  ;;  %v7157_v9 = vadd.f32 1e-05, %v7141_v63  ;;  %v7121_v14 = vpop.xlane.xlu0 %7120 }
0x141a   : > { %9790 = vrsqrt.f32 %v7156_v21  ;;  %v7123_v49 = vpop.xlane.xlu1 %7122  ;;  %v7142_v55 = vmul.f32 0.0078125, %v7121_v14  ;;  %v7203_v11 = vmul.f32 %v12844_v29, %v7181_v60 }
0x141b   : > { %v9781_v41 = vpop.eup %9780  ;;  %9792 = vrsqrt.f32 %v7157_v9  ;;  %v7143_v24 = vmul.f32 0.0078125, %v7123_v49  ;;  %v7204_v12 = vmul.f32 %v12844_v29, %v7182_v30 }
0x141c   : > { %v7183_v25 = vmul.f32 %v9781_v41, %v12776_v15  ;;  %v7158_v39 = vadd.f32 1e-05, %v7142_v55  ;;  %v12862_v38 = vadd.f32 %v12851_v20, %v7203_v11 }
0x141d   : > { %v7159_v52 = vadd.f32 1e-05, %v7143_v24  ;;  %v12868_v23 = vadd.f32 %v12851_v20, %v7204_v12 }
0x141e   : > { %v7205_v5 = vmul.f32 %v12844_v29, %v7183_v25  ;;  %9794 = vrsqrt.f32 %v7158_v39  ;;  %v7257_v10 = vpack.c.bf16 %v12862_v38, %v12857_v7 }
0x141f   : > { %v9783_v26 = vpop.eup %9782  ;;  %9796 = vrsqrt.f32 %v7159_v52 }
0x1420   : > { %v9785_v31 = vpop.eup %9784  ;;  %9128 = vmatprep.mubr.bf16.mxu0 %v7257_v10  ;;  %v12871_v15 = vadd.f32 %v12851_v20, %v7205_v5  ;;  %v7184_v62 = vmul.f32 %v9783_v26, %v12781_v44  ;;  %v9451_v5 = vld [vmem:[#allocation15 + $0x50] sm:$0xff]  }
0x1421   : > { %v7185_v16 = vmul.f32 %v9785_v31, %v12784_v4  ;;  %9154 = vmatprep.subr.bf16.mxu1 %v9451_v5 }
0x1422   : > { %v7258_v13 = vpack.c.bf16 %v12871_v15, %v12868_v23  ;;  %v7206_v47 = vmul.f32 %v12844_v29, %v7184_v62  ;;  %9155 = vmatpush3.bf16.msra.mxu1 %v9451_v5 }
0x1423   : > { %v9787_v3 = vpop.eup %9786  ;;  %v7207_v32 = vmul.f32 %v12844_v29, %v7185_v16 }
0x1424   : > { %v9789_v43 = vpop.eup %9788  ;;  %9129 = vmatmul.mubr.bf16.vlgmr.msra.gmra.mxu0 %v7258_v13  ;;  %v12880_v42 = vadd.f32 %v12851_v20, %v7206_v47  ;;  %v7186_v46 = vmul.f32 %v9787_v3, %v12791_v2  ;;  %v9452_v47 = vld [vmem:[#allocation15 + $0x48] sm:$0xff]  }
0x1425   : > { %v12884_v45 = vadd.f32 %v12851_v20, %v7207_v32  ;;  %v7187_v44 = vmul.f32 %v9789_v43, %v12794_v35  ;;  %9156 = vmatprep.subr.bf16.mxu1 %v9452_v47 }
0x1426   : > { %v7208_v4 = vmul.f32 %v12844_v29, %v7186_v46  ;;  %9157 = vmatpush3.bf16.msra.mxu1 %v9452_v47 }
0x1427   : > { %v9791_v57 = vpop.eup %9790  ;;  %v7259_v53 = vpack.c.bf16 %v12884_v45, %v12880_v42  ;;  %v7209_v51 = vmul.f32 %v12844_v29, %v7187_v44  ;;  %v9453_v44 = vld [vmem:[#allocation15 + $0x40] sm:$0xff]  }
0x1428   : > { %v9793_v17 = vpop.eup %9792  ;;  %v12892_v58 = vadd.f32 %v12851_v20, %v7208_v4  ;;  %v7188_v36 = vmul.f32 %v9791_v57, %v12801_v33  ;;  %9158 = vmatprep.subr.bf16.mxu1 %v9453_v44 }
0x1429   : > { %9132 = vmatprep.mubr.bf16.mxu0 %v7259_v53  ;;  %v12896_v2 = vadd.f32 %v12851_v20, %v7209_v51  ;;  %v7189_v35 = vmul.f32 %v9793_v17, %v12804_v28 }
0x142a   : > { %v7210_v48 = vmul.f32 %v12844_v29, %v7188_v36  ;;  %9159 = vmatpush3.bf16.msra.mxu1 %v9453_v44 }
0x142b   : > { %v9795_v50 = vpop.eup %9794  ;;  %v7260_v27 = vpack.c.bf16 %v12896_v2, %v12892_v58  ;;  %v7211_v18 = vmul.f32 %v12844_v29, %v7189_v35 }
0x142c   : > { %v9797_v40 = vpop.eup %9796  ;;  %v12904_v22 = vadd.f32 %v12851_v20, %v7210_v48  ;;  %v7190_v33 = vmul.f32 %v9795_v50, %v12811_v34 }
0x142d   : > { %9133 = vmatmul.mubr.bf16.gmra.mxu0 %v7260_v27  ;;  %v12908_v6 = vadd.f32 %v12851_v20, %v7211_v18  ;;  %v7191_v28 = vmul.f32 %v9797_v40, %v12814_v56 }
0x142e   : > { %v7212_v1 = vmul.f32 %v12844_v29, %v7190_v33 }
0x142f   : > { %v7261_v63 = vpack.c.bf16 %v12908_v6, %v12904_v22  ;;  %v7213_v61 = vmul.f32 %v12844_v29, %v7191_v28 }
0x1430   : > { %v12916_v19 = vadd.f32 %v12851_v20, %v7212_v1 }
0x1431   : > { %9136 = vmatprep.mubr.bf16.mxu0 %v7261_v63  ;;  %v12919_v21 = vadd.f32 %v12851_v20, %v7213_v61 }
0x1433   : > { %v7262_v34 = vpack.c.bf16 %v12919_v21, %v12916_v19 }
0x1435   : > { %9137 = vmatmul.mubr.bf16.gmra.mxu0 %v7262_v34 }
0x1452   : > { %v7125_v60 = vpop.xlane.xlu0 %7124 }
0x1453   : > { %v7144_v56 = vmul.f32 0.0078125, %v7125_v60 }
0x1455   : > { %v7160_v30 = vadd.f32 1e-05, %v7144_v56 }
0x1456   : > { %v7127_v9 = vpop.xlane.xlu1 %7126  ;;  %v7129_v14 = vpop.xlane.xlu0 %7128 }
0x1457   : > { %9798 = vrsqrt.f32 %v7160_v30  ;;  %v7145_v49 = vmul.f32 0.0078125, %v7127_v9  ;;  %v7146_v55 = vmul.f32 0.0078125, %v7129_v14 }
0x1459   : > { %v7161_v11 = vadd.f32 1e-05, %v7145_v49  ;;  %v7162_v41 = vadd.f32 1e-05, %v7146_v55 }
0x145a   : > { %v7131_v24 = vpop.xlane.xlu1 %7130 }
0x145b   : > { %9800 = vrsqrt.f32 %v7161_v11  ;;  %v7147_v12 = vmul.f32 0.0078125, %v7131_v24 }
0x145c   : > { %9802 = vrsqrt.f32 %v7162_v41 }
0x145d   : > { %v7163_v25 = vadd.f32 1e-05, %v7147_v12 }
0x145f   : > { %9804 = vrsqrt.f32 %v7163_v25 }
0x1464   : > { %v9799_v39 = vpop.eup %9798 }
0x1465   : > { %v7192_v52 = vmul.f32 %v9799_v39, %v12822_v0 }
0x1467   : > { %v7214_v62 = vmul.f32 %v12844_v29, %v7192_v52 }
0x1468   : > { %v9801_v10 = vpop.eup %9800 }
0x1469   : > { %v9803_v26 = vpop.eup %9802  ;;  %v7193_v31 = vmul.f32 %v9801_v10, %v12827_v8  ;;  %v12929_v32 = vadd.f32 %v12851_v20, %v7214_v62 }
0x146a   : > { %v7194_v16 = vmul.f32 %v9803_v26, %v12830_v54 }
0x146b   : > { %v7215_v13 = vmul.f32 %v12844_v29, %v7193_v31 }
0x146c   : > { %v9805_v3 = vpop.eup %9804  ;;  %v7216_v8 = vmul.f32 %v12844_v29, %v7194_v16 }
0x146d   : > { %v12932_v0 = vadd.f32 %v12851_v20, %v7215_v13  ;;  %v7195_v43 = vmul.f32 %v9805_v3, %v12837_v37 }
0x146e   : > { %v12940_v4 = vadd.f32 %v12851_v20, %v7216_v8 }
0x146f   : > { %v7263_v54 = vpack.c.bf16 %v12932_v0, %v12929_v32  ;;  %v7217_v46 = vmul.f32 %v12844_v29, %v7195_v43  ;;  %v8288_v29 = vld [vmem:[%s13189_s12 + $0x1] ss:$0 sm:$0xff] }
0x1471   : > { %9140 = vmatprep.mubr.bf16.mxu0 %v7263_v54  ;;  %v12943_v57 = vadd.f32 %v12851_v20, %v7217_v46 }
0x1473   : > { %v7264_v37 = vpack.c.bf16 %v12943_v57, %v12940_v4 }
0x1475   : > { %9141 = vmatmul.mubr.bf16.gmra.mxu0 %v7264_v37 }
0x1476   : > { %9192 = vmatprep.mubr.msk.bf16.mxu0 %vm10190_vm0, %v13267_v59 }
0x14e4   : > { %v9130_v53 = vpop.f32.mrf.mxu0 }
0x14e5   : > { %v7364_v20 = vadd.f32 %v9130_v53, %v8288_v29 }
0x14e6   : > { %v7355_v51 = vpop.f32.mrf.mxu0 }
0x14e7   : > { %v7356_v36 = vadd.f32 %v8288_v29, %v7355_v51  ;;  %v7420_v28 = vmax.f32 %v7364_v20, 0.0 }
0x14e8   : > { %v9131_v17 = vpop.f32.mrf.mxu0 }
0x14e9   : > { %v7367_v35 = vadd.f32 %v9131_v17, %v8288_v29  ;;  %v7418_v18 = vmax.f32 %v7356_v36, 0.0 }
0x14ea   : > { %v7358_v48 = vpop.f32.mrf.mxu0 }
0x14eb   : > { %v7359_v50 = vadd.f32 %v8288_v29, %v7358_v48  ;;  %v7421_v27 = vmax.f32 %v7367_v35, 0.0 }
0x14ed   : > { %v7419_v40 = vmax.f32 %v7359_v50, 0.0  ;;  %v9134_v33 = vpop.f32.mrf.mxu0  ;;  %v7452_v61 = vpack.c.bf16 %v7421_v27, %v7420_v28 }
0x14ee   : > { %v7380_v30 = vadd.f32 %v9134_v33, %v8288_v29 }
0x14ef   : > { %v7451_v1 = vpack.c.bf16 %v7419_v40, %v7418_v18  ;;  %v7371_v63 = vpop.f32.mrf.mxu0 }
0x14f0   : > { %v7372_v60 = vadd.f32 %v8288_v29, %v7371_v63  ;;  %v7424_v24 = vmax.f32 %v7380_v30, 0.0 }
0x14f1   : > { %v9135_v34 = vpop.f32.mrf.mxu0  ;;  %9160 = vmatprep.mubr.bf16.mxu1 %v7451_v1 }
0x14f2   : > { %v7383_v56 = vadd.f32 %v9135_v34, %v8288_v29  ;;  %9161 = vmatmul.mubr.bf16.vlgmr.msra.gmra.mxu1 %v7452_v61  ;;  %v7422_v11 = vmax.f32 %v7372_v60, 0.0 }
0x14f3   : > { %v7374_v9 = vpop.f32.mrf.mxu0 }
0x14f4   : > { %v7375_v14 = vadd.f32 %v8288_v29, %v7374_v9  ;;  %v7425_v49 = vmax.f32 %v7383_v56, 0.0 }
0x14f5   : > { %v9138_v55 = vpop.f32.mrf.mxu0 }
0x14f6   : > { %v7423_v41 = vmax.f32 %v7375_v14, 0.0  ;;  %v7454_v39 = vpack.c.bf16 %v7425_v49, %v7424_v24  ;;  %v7396_v26 = vadd.f32 %v9138_v55, %v8288_v29  ;;  %v8298_v14 = vld [vmem:[%s13191_s14 + $0x1] ss:$0 sm:$0xff] }
0x14f7   : > { %v7387_v12 = vpop.f32.mrf.mxu0 }
0x14f8   : > { %v7453_v25 = vpack.c.bf16 %v7423_v41, %v7422_v11  ;;  %v7388_v5 = vadd.f32 %v8288_v29, %v7387_v12  ;;  %v7428_v3 = vmax.f32 %v7396_v26, 0.0 }
0x14f9   : > { %v9139_v52 = vpop.f32.mrf.mxu0 }
0x14fa   : > { %v7399_v10 = vadd.f32 %v9139_v52, %v8288_v29  ;;  %9164 = vmatprep.mubr.bf16.mxu1 %v7453_v25  ;;  %v7426_v13 = vmax.f32 %v7388_v5, 0.0 }
0x14fb   : > { %v7390_v31 = vpop.f32.mrf.mxu0  ;;  %9165 = vmatmul.mubr.bf16.gmra.mxu1 %v7454_v39 }
0x14fc   : > { %v7391_v62 = vadd.f32 %v8288_v29, %v7390_v31  ;;  %v7429_v16 = vmax.f32 %v7399_v10, 0.0 }
0x14fe   : > { %v7427_v47 = vmax.f32 %v7391_v62, 0.0  ;;  %v7456_v8 = vpack.c.bf16 %v7429_v16, %v7428_v3 }
0x1500   : > { %v7455_v43 = vpack.c.bf16 %v7427_v47, %v7426_v13 }
0x1502   : > { %9168 = vmatprep.mubr.bf16.mxu1 %v7455_v43 }
0x1503   : > { %9169 = vmatmul.mubr.bf16.gmra.mxu1 %v7456_v8 }
0x1535   : > { %v9142_v54 = vpop.f32.mrf.mxu0 }
0x1536   : > { %v7412_v51 = vadd.f32 %v9142_v54, %v8288_v29 }
0x1537   : > { %v7403_v46 = vpop.f32.mrf.mxu0 }
0x1538   : > { %v7404_v37 = vadd.f32 %v8288_v29, %v7403_v46  ;;  %v7432_v50 = vmax.f32 %v7412_v51, 0.0 }
0x1539   : > { %v9143_v44 = vpop.f32.mrf.mxu0 }
0x153a   : > { %v7415_v53 = vadd.f32 %v9143_v44, %v8288_v29  ;;  %v7430_v20 = vmax.f32 %v7404_v37, 0.0 }
0x153b   : > { %v7406_v17 = vpop.f32.mrf.mxu0 }
0x153c   : > { %v7407_v36 = vadd.f32 %v8288_v29, %v7406_v17  ;;  %v7433_v35 = vmax.f32 %v7415_v53, 0.0 }
0x153e   : > { %v7431_v48 = vmax.f32 %v7407_v36, 0.0  ;;  %v7458_v18 = vpack.c.bf16 %v7433_v35, %v7432_v50 }
0x1540   : > { %v7457_v27 = vpack.c.bf16 %v7431_v48, %v7430_v20 }
0x1542   : > { %9172 = vmatprep.mubr.bf16.mxu1 %v7457_v27 }
0x1543   : > { %9173 = vmatmul.mubr.bf16.gmra.mxu1 %v7458_v18 }
0x15b2   : > { %v9162_v40 = vpop.f32.mrf.mxu1 }
0x15b4   : > { %v7549_v33 = vpop.f32.mrf.mxu1 }
0x15b5   : > { %v7550_v46 = vadd.f32 %v8298_v14, %v7549_v33 }
0x15b6   : > { %v9163_v28 = vpop.f32.mrf.mxu1 }
0x15b8   : > { %v7552_v1 = vpop.f32.mrf.mxu1 }
0x15b9   : > { %v7553_v37 = vadd.f32 %v8298_v14, %v7552_v1 }
0x15bb   : > { %v9166_v63 = vpop.f32.mrf.mxu1 }
0x15bd   : > { %v7565_v61 = vpop.f32.mrf.mxu1 }
0x15bf   : > { %v9167_v34 = vpop.f32.mrf.mxu1 }
0x15c0   : > { %v7577_v8 = vadd.f32 %v9167_v34, %v8298_v14 }
0x15c1   : > { %v7568_v60 = vpop.f32.mrf.mxu1 }
0x15c3   : > { %v9170_v56 = vpop.f32.mrf.mxu1 }
0x15c4   : > { %v7590_v52 = vadd.f32 %v9170_v56, %v8298_v14 }
0x15c5   : > { %v7581_v30 = vpop.f32.mrf.mxu1 }
0x15c6   : > { %v7622_v31 = vadd.f32 %v7590_v52, %v12916_v19  ;;  %v7582_v62 = vadd.f32 %v8298_v14, %v7581_v30 }
0x15c7   : > { %v9171_v9 = vpop.f32.mrf.mxu1 }
0x15c8   : > { %v7593_v16 = vadd.f32 %v9171_v9, %v8298_v14  ;;  %v7620_v47 = vadd.f32 %v7582_v62, %v12904_v22  ;;  %v12971_v22 = vadd.f32 %v7577_v8, %v12896_v2 }
0x15c9   : > { %v7584_v29 = vpop.f32.mrf.mxu1 }
0x15ca   : > { %v7623_v3 = vadd.f32 %v7593_v16, %v12919_v21  ;;  %v7585_v43 = vadd.f32 %v8298_v14, %v7584_v29  ;;  %v7569_v21 = vadd.f32 %v8298_v14, %v7568_v60 }
0x15cc   : > { %v7621_v19 = vadd.f32 %v7585_v43, %v12908_v6  ;;  %v7561_v6 = vadd.f32 %v9163_v28, %v8298_v14  ;;  %v12979_v44 = vadd.f32 %v7569_v21, %v12884_v45 }
0x15ce   : > { %v12987_v2 = vadd.f32 %v7561_v6, %v12871_v15 }
0x1603   : > { %v9174_v49 = vpop.f32.mrf.mxu1 }
0x1604   : > { %v7606_v55 = vadd.f32 %v9174_v49, %v8298_v14 }
0x1605   : > { %v7597_v11 = vpop.f32.mrf.mxu1 }
0x1606   : > { %v7626_v41 = vadd.f32 %v7606_v55, %v12940_v4  ;;  %v7598_v24 = vadd.f32 %v8298_v14, %v7597_v11  ;;  %v7574_v4 = vadd.f32 %v9166_v63, %v8298_v14 }
0x1607   : > { %v9175_v12 = vpop.f32.mrf.mxu1 }
0x1608   : > { %v7609_v25 = vadd.f32 %v9175_v12, %v8298_v14  ;;  %7660 = vadd.xlane.f32.xlu0 %v7626_v41  ;;  %v7624_v5 = vadd.f32 %v7598_v24, %v12929_v32  ;;  %v12963_v32 = vadd.f32 %v7574_v4, %v12892_v58 }
0x1609   : > { %v7600_v39 = vpop.f32.mrf.mxu1 }
0x160a   : > { %v7627_v10 = vadd.f32 %v7609_v25, %v12943_v57  ;;  %v7601_v26 = vadd.f32 %v8298_v14, %v7600_v39  ;;  %v7566_v57 = vadd.f32 %v8298_v14, %v7565_v61 }
0x160c   : > { %7662 = vadd.xlane.f32.xlu1 %v7627_v10  ;;  %7656 = vadd.xlane.f32.xlu0 %v7624_v5  ;;  %v7625_v13 = vadd.f32 %v7601_v26, %v12932_v0  ;;  %v7558_v0 = vadd.f32 %v9162_v40, %v8298_v14  ;;  %v12968_v54 = vadd.f32 %v7566_v57, %v12880_v42 }
0x160d   : > { %v12984_v42 = vadd.f32 %v7550_v46, %v12857_v7 }
0x160e   : > { %v12976_v58 = vadd.f32 %v7558_v0, %v12868_v23  ;;  %v12992_v23 = vadd.f32 %v7553_v37, %v12862_v38 }
0x1610   : > { %7658 = vadd.xlane.f32.xlu1 %v7625_v13  ;;  %7652 = vadd.xlane.f32.xlu0 %v7622_v31 }
0x1614   : > { %7654 = vadd.xlane.f32.xlu1 %v7623_v3  ;;  %7648 = vadd.xlane.f32.xlu0 %v7620_v47 }
0x1618   : > { %7650 = vadd.xlane.f32.xlu1 %v7621_v19  ;;  %7644 = vadd.xlane.f32.xlu0 %v12963_v32 }
0x161c   : > { %7646 = vadd.xlane.f32.xlu1 %v12971_v22  ;;  %7640 = vadd.xlane.f32.xlu0 %v12968_v54 }
0x1620   : > { %7642 = vadd.xlane.f32.xlu1 %v12979_v44  ;;  %7636 = vadd.xlane.f32.xlu0 %v12976_v58 }
0x1624   : > { %7638 = vadd.xlane.f32.xlu1 %v12987_v2  ;;  %7632 = vadd.xlane.f32.xlu0 %v12984_v42 }
0x1628   : > { %7634 = vadd.xlane.f32.xlu1 %v12992_v23 }
0x1691   : > { %v7661_v45 = vpop.xlane.xlu0 %7660 }
0x1692   : > { %v7678_v53 = vmul.f32 0.0078125, %v7661_v45 }
0x1694   : > { %v12995_v51 = vsub.f32 %v7626_v41, %v7678_v53 }
0x1695   : > { %v7663_v17 = vpop.xlane.xlu1 %7662  ;;  %v7657_v7 = vpop.xlane.xlu0 %7656 }
0x1696   : > { %v7679_v36 = vmul.f32 0.0078125, %v7663_v17  ;;  %v7676_v35 = vmul.f32 0.0078125, %v7657_v7  ;;  %v7710_v15 = vmul.f32 %v12995_v51, %v12995_v51 }
0x1698   : > { %v12999_v20 = vsub.f32 %v7627_v10, %v7679_v36  ;;  %v13001_v48 = vsub.f32 %v7624_v5, %v7676_v35  ;;  %7740 = vadd.xlane.f32.xlu0 %v7710_v15 }
0x1699   : > { %v7659_v38 = vpop.xlane.xlu1 %7658  ;;  %v7653_v50 = vpop.xlane.xlu0 %7652 }
0x169a   : > { %v7677_v27 = vmul.f32 0.0078125, %v7659_v38  ;;  %v7674_v18 = vmul.f32 0.0078125, %v7653_v50  ;;  %v7711_v40 = vmul.f32 %v12999_v20, %v12999_v20  ;;  %v7708_v33 = vmul.f32 %v13001_v48, %v13001_v48 }
0x169c   : > { %v13007_v28 = vsub.f32 %v7625_v13, %v7677_v27  ;;  %v13009_v1 = vsub.f32 %v7622_v31, %v7674_v18  ;;  %7742 = vadd.xlane.f32.xlu1 %v7711_v40  ;;  %7736 = vadd.xlane.f32.xlu0 %v7708_v33 }
0x169d   : > { %v7655_v63 = vpop.xlane.xlu1 %7654  ;;  %v7649_v61 = vpop.xlane.xlu0 %7648 }
0x169e   : > { %v7675_v34 = vmul.f32 0.0078125, %v7655_v63  ;;  %v7672_v60 = vmul.f32 0.0078125, %v7649_v61  ;;  %v7709_v56 = vmul.f32 %v13007_v28, %v13007_v28  ;;  %v7706_v30 = vmul.f32 %v13009_v1, %v13009_v1 }
0x16a0   : > { %v13015_v9 = vsub.f32 %v7623_v3, %v7675_v34  ;;  %v13017_v29 = vsub.f32 %v7620_v47, %v7672_v60  ;;  %7738 = vadd.xlane.f32.xlu1 %v7709_v56  ;;  %7732 = vadd.xlane.f32.xlu0 %v7706_v30 }
0x16a1   : > { %v7651_v14 = vpop.xlane.xlu1 %7650  ;;  %v7645_v49 = vpop.xlane.xlu0 %7644 }
0x16a2   : > { %v7673_v55 = vmul.f32 0.0078125, %v7651_v14  ;;  %v7670_v11 = vmul.f32 0.0078125, %v7645_v49  ;;  %v7707_v41 = vmul.f32 %v13015_v9, %v13015_v9  ;;  %v7704_v24 = vmul.f32 %v13017_v29, %v13017_v29 }
0x16a4   : > { %v13023_v12 = vsub.f32 %v7621_v19, %v7673_v55  ;;  %v13026_v25 = vsub.f32 %v12963_v32, %v7670_v11  ;;  %7734 = vadd.xlane.f32.xlu1 %v7707_v41  ;;  %7728 = vadd.xlane.f32.xlu0 %v7704_v24 }
0x16a5   : > { %v7647_v39 = vpop.xlane.xlu1 %7646  ;;  %v7641_v52 = vpop.xlane.xlu0 %7640 }
0x16a6   : > { %v7671_v5 = vmul.f32 0.0078125, %v7647_v39  ;;  %v7668_v10 = vmul.f32 0.0078125, %v7641_v52  ;;  %v7705_v26 = vmul.f32 %v13023_v12, %v13023_v12  ;;  %v7702_v31 = vmul.f32 %v13026_v25, %v13026_v25  ;;  %v13071_v52 = vld [vmem:[%s13274_s3 + $0x1] ss:$0 sm:$0xff] }
0x16a8   : > { %v13033_v62 = vsub.f32 %v12971_v22, %v7671_v5  ;;  %v13036_v16 = vsub.f32 %v12968_v54, %v7668_v10  ;;  %7730 = vadd.xlane.f32.xlu1 %v7705_v26  ;;  %7724 = vadd.xlane.f32.xlu0 %v7702_v31 }
0x16a9   : > { %v7643_v13 = vpop.xlane.xlu1 %7642  ;;  %v7637_v4 = vpop.xlane.xlu0 %7636 }
0x16aa   : > { %v7669_v47 = vmul.f32 0.0078125, %v7643_v13  ;;  %v7666_v3 = vmul.f32 0.0078125, %v7637_v4  ;;  %v7703_v43 = vmul.f32 %v13033_v62, %v13033_v62  ;;  %v7700_v32 = vmul.f32 %v13036_v16, %v13036_v16 }
0x16ac   : > { %v13043_v57 = vsub.f32 %v12979_v44, %v7669_v47  ;;  %v13046_v8 = vsub.f32 %v12976_v58, %v7666_v3  ;;  %7726 = vadd.xlane.f32.xlu1 %v7703_v43  ;;  %7720 = vadd.xlane.f32.xlu0 %v7700_v32  ;;  %v13078_v43 = vld [vmem:[%s13275_s5 + $0x1] ss:$0 sm:$0xff] }
0x16ad   : > { %v7639_v19 = vpop.xlane.xlu1 %7638  ;;  %v7633_v0 = vpop.xlane.xlu0 %7632 }
0x16ae   : > { %v7667_v54 = vmul.f32 0.0078125, %v7639_v19  ;;  %v7664_v22 = vmul.f32 0.0078125, %v7633_v0  ;;  %v7701_v21 = vmul.f32 %v13043_v57, %v13043_v57  ;;  %v7698_v46 = vmul.f32 %v13046_v8, %v13046_v8 }
0x16b0   : > { %v13053_v6 = vsub.f32 %v12987_v2, %v7667_v54  ;;  %v13056_v44 = vsub.f32 %v12984_v42, %v7664_v22  ;;  %7722 = vadd.xlane.f32.xlu1 %v7701_v21  ;;  %7716 = vadd.xlane.f32.xlu0 %v7698_v46  ;;  %v7862_v42 = vld [vmem:[#allocation2] sm:$0x1] }
0x16b1   : > { %v7635_v58 = vpop.xlane.xlu1 %7634  ;;  %9212 = vpush %v7862_v42 }
0x16b2   : > { %v7665_v37 = vmul.f32 0.0078125, %v7635_v58  ;;  %v7699_v45 = vmul.f32 %v13053_v6, %v13053_v6  ;;  %v7696_v53 = vmul.f32 %v13056_v44, %v13056_v44 }
0x16b4   : > { %v13063_v17 = vsub.f32 %v12992_v23, %v7665_v37  ;;  %7718 = vadd.xlane.f32.xlu1 %v7699_v45  ;;  %7712 = vadd.xlane.f32.xlu0 %v7696_v53 }
0x16b6   : > { %v7697_v2 = vmul.f32 %v13063_v17, %v13063_v17 }
0x16b8   : > { %7714 = vadd.xlane.f32.xlu1 %v7697_v2 }
0x16e2   : > { %s9213_s30 = spop %9212 }
0x1721   : > { %v7741_v7 = vpop.xlane.xlu0 %7740 }
0x1722   : > { %v7758_v36 = vmul.f32 0.0078125, %v7741_v7 }
0x1724   : > { %v7774_v35 = vadd.f32 1e-05, %v7758_v36 }
0x1725   : > { %v7743_v15 = vpop.xlane.xlu1 %7742  ;;  %v7737_v38 = vpop.xlane.xlu0 %7736 }
0x1726   : > { %9806 = vrsqrt.f32 %v7774_v35  ;;  %v7759_v50 = vmul.f32 0.0078125, %v7743_v15  ;;  %v7756_v27 = vmul.f32 0.0078125, %v7737_v38 }
0x1728   : > { %v7775_v18 = vadd.f32 1e-05, %v7759_v50  ;;  %v7772_v40 = vadd.f32 1e-05, %v7756_v27 }
0x1729   : > { %v7739_v23 = vpop.xlane.xlu1 %7738  ;;  %v7733_v33 = vpop.xlane.xlu0 %7732 }
0x172a   : > { %9808 = vrsqrt.f32 %v7775_v18  ;;  %v7757_v63 = vmul.f32 0.0078125, %v7739_v23  ;;  %v7754_v34 = vmul.f32 0.0078125, %v7733_v33 }
0x172b   : > { %9810 = vrsqrt.f32 %v7772_v40 }
0x172c   : > { %v7773_v61 = vadd.f32 1e-05, %v7757_v63  ;;  %v7770_v30 = vadd.f32 1e-05, %v7754_v34 }
0x172d   : > { %v7735_v60 = vpop.xlane.xlu1 %7734  ;;  %v7729_v49 = vpop.xlane.xlu0 %7728 }
0x172e   : > { %9812 = vrsqrt.f32 %v7773_v61  ;;  %v7755_v56 = vmul.f32 0.0078125, %v7735_v60  ;;  %v7752_v24 = vmul.f32 0.0078125, %v7729_v49 }
0x1730   : > { %v7771_v14 = vadd.f32 1e-05, %v7755_v56  ;;  %v7768_v26 = vadd.f32 1e-05, %v7752_v24 }
0x1731   : > { %v7731_v55 = vpop.xlane.xlu1 %7730  ;;  %v7725_v13 = vpop.xlane.xlu0 %7724 }
0x1732   : > { %9814 = vrsqrt.f32 %v7771_v14  ;;  %v7753_v11 = vmul.f32 0.0078125, %v7731_v55  ;;  %v7750_v0 = vmul.f32 0.0078125, %v7725_v13 }
0x1733   : > { %v9807_v41 = vpop.eup %9806  ;;  %9816 = vrsqrt.f32 %v7770_v30 }
0x1734   : > { %v7806_v39 = vmul.f32 %v9807_v41, %v12995_v51  ;;  %v7769_v5 = vadd.f32 1e-05, %v7753_v11  ;;  %v7766_v2 = vadd.f32 1e-05, %v7750_v0 }
0x1735   : > { %v7727_v31 = vpop.xlane.xlu1 %7726  ;;  %v7721_v36 = vpop.xlane.xlu0 %7720 }
0x1736   : > { %v7828_v47 = vmul.f32 %v13071_v52, %v7806_v39  ;;  %9818 = vrsqrt.f32 %v7769_v5  ;;  %v7751_v51 = vmul.f32 0.0078125, %v7727_v31  ;;  %v7748_v15 = vmul.f32 0.0078125, %v7721_v36 }
0x1737   : > { %v9809_v10 = vpop.eup %9808  ;;  %9820 = vrsqrt.f32 %v7768_v26 }
0x1738   : > { %v7807_v4 = vmul.f32 %v9809_v10, %v12999_v20  ;;  %v9811_v3 = vpop.eup %9810  ;;  %v7850_v54 = vadd.f32 %v13078_v43, %v7828_v47  ;;  %v7767_v46 = vadd.f32 1e-05, %v7751_v51  ;;  %v7764_v61 = vadd.f32 1e-05, %v7748_v15 }
0x1739   : > { %v7804_v20 = vmul.f32 %v9811_v3, %v13001_v48  ;;  %v7723_v45 = vpop.xlane.xlu1 %7722  ;;  %v7717_v60 = vpop.xlane.xlu0 %7716 }
0x173a   : > { %v7829_v32 = vmul.f32 %v13071_v52, %v7807_v4  ;;  %9822 = vrsqrt.f32 %v7767_v46  ;;  %v7749_v35 = vmul.f32 0.0078125, %v7723_v45  ;;  %v7746_v30 = vmul.f32 0.0078125, %v7717_v60 }
0x173b   : > { %v9813_v19 = vpop.eup %9812  ;;  %v7826_v42 = vmul.f32 %v13071_v52, %v7804_v20  ;;  %9824 = vrsqrt.f32 %v7766_v2 }
0x173c   : > { %v7851_v22 = vadd.f32 %v13078_v43, %v7829_v32  ;;  %v7805_v21 = vmul.f32 %v9813_v19, %v13007_v28  ;;  %v7765_v27 = vadd.f32 1e-05, %v7749_v35  ;;  %v7762_v5 = vadd.f32 1e-05, %v7746_v30 }
0x173d   : > { %v7848_v38 = vadd.f32 %v13078_v43, %v7826_v42  ;;  %v7719_v33 = vpop.xlane.xlu1 %7718  ;;  %v7713_v31 = vpop.xlane.xlu0 %7712 }
0x173e   : > { %v7861_v58 = vpack.c.bf16 %v7851_v22, %v7850_v54  ;;  %v7827_v53 = vmul.f32 %v13071_v52, %v7805_v21  ;;  %9826 = vrsqrt.f32 %v7765_v27  ;;  %v7744_v4 = vmul.f32 0.0078125, %v7713_v31 }
0x173f   : > { %v9815_v37 = vpop.eup %9814  ;;  %9828 = vrsqrt.f32 %v7764_v61  ;;  %v7864_v61 = vstv %s9213_s30 }
0x1740   : > { %9177 = vmatpush3.bf16.xpose.msra.mxu0 %v7861_v58  ;;  %v9817_v7 = vpop.eup %9816  ;;  %v7849_v48 = vadd.f32 %v13078_v43, %v7827_v53  ;;  %v7803_v28 = vmul.f32 %v9815_v37, %v13015_v9  ;;  %v7747_v9 = vmul.f32 0.0078125, %v7719_v33  ;;  %v7760_v54 = vadd.f32 1e-05, %v7744_v4 }
0x1741   : > { %9178 = vmatprep.subr.bf16.mxu0 %v13267_v59  ;;  %v7802_v50 = vmul.f32 %v9817_v7, %v13009_v1  ;;  %v7715_v39 = vpop.xlane.xlu1 %7714 }
0x1742   : > { %v7860_v18 = vpack.c.bf16 %v7849_v48, %v7848_v38  ;;  %v7825_v40 = vmul.f32 %v13071_v52, %v7803_v28  ;;  %v7763_v55 = vadd.f32 1e-05, %v7747_v9 }
0x1743   : > { %v9819_v23 = vpop.eup %9818  ;;  %v7824_v34 = vmul.f32 %v13071_v52, %v7802_v50 }
0x1744   : > { %v9821_v63 = vpop.eup %9820  ;;  %v7847_v56 = vadd.f32 %v13078_v43, %v7825_v40  ;;  %v7801_v1 = vmul.f32 %v9819_v23, %v13023_v12  ;;  %9830 = vrsqrt.f32 %v7763_v55  ;;  %v7745_v12 = vmul.f32 0.0078125, %v7715_v39 }
0x1745   : > { %v7846_v14 = vadd.f32 %v13078_v43, %v7824_v34  ;;  %v7800_v49 = vmul.f32 %v9821_v63, %v13017_v29  ;;  %9832 = vrsqrt.f32 %v7762_v5 }
0x1746   : > { %v7823_v41 = vmul.f32 %v13071_v52, %v7801_v1  ;;  %v7761_v51 = vadd.f32 1e-05, %v7745_v12 }
0x1747   : > { %v7859_v11 = vpack.c.bf16 %v7847_v56, %v7846_v14  ;;  %v9823_v24 = vpop.eup %9822  ;;  %v7822_v10 = vmul.f32 %v13071_v52, %v7800_v49 }
0x1748   : > { %9179 = vmatpush3.bf16.xpose.msra.mxu0 %v7860_v18  ;;  %v9825_v26 = vpop.eup %9824  ;;  %v7845_v13 = vadd.f32 %v13078_v43, %v7823_v41  ;;  %v7799_v29 = vmul.f32 %v9823_v24, %v13033_v62  ;;  %9834 = vrsqrt.f32 %v7761_v51 }
0x1749   : > { %9180 = vmatprep.subr.bf16.mxu0 %v13267_v59  ;;  %v7844_v47 = vadd.f32 %v13078_v43, %v7822_v10  ;;  %v7798_v3 = vmul.f32 %v9825_v26, %v13026_v25  ;;  %9836 = vrsqrt.f32 %v7760_v54 }
0x174a   : > { %v7821_v19 = vmul.f32 %v13071_v52, %v7799_v29 }
0x174b   : > { %v7858_v32 = vpack.c.bf16 %v7845_v13, %v7844_v47  ;;  %v9827_v0 = vpop.eup %9826  ;;  %v7820_v22 = vmul.f32 %v13071_v52, %v7798_v3 }
0x174c   : > { %v9829_v20 = vpop.eup %9828  ;;  %v7843_v62 = vadd.f32 %v13078_v43, %v7821_v19  ;;  %v7797_v21 = vmul.f32 %v9827_v0, %v13043_v57 }
0x174d   : > { %v7842_v25 = vadd.f32 %v13078_v43, %v7820_v22  ;;  %v7796_v46 = vmul.f32 %v9829_v20, %v13036_v16 }
0x174e   : > { %v7819_v37 = vmul.f32 %v13071_v52, %v7797_v21 }
0x174f   : > { %v7857_v58 = vpack.c.bf16 %v7843_v62, %v7842_v25  ;;  %v7818_v53 = vmul.f32 %v13071_v52, %v7796_v46 }
0x1750   : > { %9181 = vmatpush3.bf16.xpose.msra.mxu0 %v7859_v11  ;;  %v7841_v42 = vadd.f32 %v13078_v43, %v7819_v37 }
0x1751   : > { %9182 = vmatprep.subr.bf16.mxu0 %v13267_v59  ;;  %v9831_v45 = vpop.eup %9830  ;;  %v7840_v57 = vadd.f32 %v13078_v43, %v7818_v53 }
0x1752   : > { %v9833_v2 = vpop.eup %9832  ;;  %v7795_v7 = vmul.f32 %v9831_v45, %v13053_v6 }
0x1753   : > { %v7794_v36 = vmul.f32 %v9833_v2, %v13046_v8  ;;  %v7856_v35 = vpack.c.bf16 %v7841_v42, %v7840_v57 }
0x1754   : > { %v7817_v16 = vmul.f32 %v13071_v52, %v7795_v7 }
0x1755   : > { %v9835_v48 = vpop.eup %9834  ;;  %v7816_v28 = vmul.f32 %v13071_v52, %v7794_v36 }
0x1756   : > { %v9837_v15 = vpop.eup %9836  ;;  %v7839_v38 = vadd.f32 %v13078_v43, %v7817_v16  ;;  %v7793_v50 = vmul.f32 %v9835_v48, %v13063_v17  ;;  %v7852_v17 = vld [vmem:[%s13277_s0] sm:$0x1] }
0x1757   : > { %v7838_v6 = vadd.f32 %v13078_v43, %v7816_v28  ;;  %v7792_v27 = vmul.f32 %v9837_v15, %v13056_v44  ;;  %v7853_v44 = vpack.c.bf16 %v7852_v17, %v7852_v17 }
0x1758   : > { %9183 = vmatpush3.bf16.xpose.msra.mxu0 %v7858_v32  ;;  %v7815_v8 = vmul.f32 %v13071_v52, %v7793_v50 }
0x1759   : > { %9184 = vmatprep.subr.bf16.mxu0 %v13267_v59  ;;  %v7855_v18 = vpack.c.bf16 %v7839_v38, %v7838_v6  ;;  %v7814_v40 = vmul.f32 %v13071_v52, %v7792_v27 }
0x175a   : > { %v7837_v23 = vadd.f32 %v13078_v43, %v7815_v8 }
0x175b   : > { %v7836_v33 = vadd.f32 %v13078_v43, %v7814_v40 }
0x175d   : > { %v7854_v63 = vpack.c.bf16 %v7837_v23, %v7836_v33 }
0x1760   : > { %9185 = vmatpush3.bf16.xpose.msra.mxu0 %v7857_v58 }
0x1761   : > { %9186 = vmatprep.subr.bf16.mxu0 %v13267_v59 }
0x1768   : > { %9187 = vmatpush3.bf16.xpose.msra.mxu0 %v7856_v35 }
0x1769   : > { %9188 = vmatprep.subr.bf16.mxu0 %v13267_v59 }
0x1770   : > { %9189 = vmatpush3.bf16.xpose.msra.mxu0 %v7855_v18 }
0x1771   : > { %9190 = vmatprep.subr.bf16.mxu0 %v13267_v59 }
0x1778   : > { %9191 = vmatpush3.bf16.xpose.msra.mxu0 %v7854_v63 }
0x177f   : > { %9193 = vmatmul.mubr.bf16.vlgmr.msra.gmra.mxu0 %v7853_v44 }
0x183f   : > { %v7899_v34 = vpop.f32.mrf.mxu0 }
0x1840   : > { %v7900_v52 = vadd.f32 %v7899_v34, %v7864_v61 }
0x1841   : > { %v9194_v59 = vpop.f32.mrf.mxu0 }
0x1842   : > { %v8311_v60 = vmul.f32 -1.442695, %v7900_v52 }
0x1843   : > { %v7902_v9 = vpop.f32.mrf.mxu0 }
0x1844   : > { %9838 = vpow2.f32 %v8311_v60 }
0x1845   : > { %v9195_v43 = vpop.f32.mrf.mxu0 }
0x1851   : > { %v9839_v56 = vpop.eup %9838 }
0x1852   : > { %v7908_v1 = vadd.f32 1.0, %v9839_v56 }
0x1854   : > { %9840 = vrcp.f32 %v7908_v1 }
0x1861   : > { %v9841_v30 = vpop.eup %9840 }
0x1862   : > { %7911 = vst [vmem:[%s750_s13] sm:$0x1] %v9841_v30 }
0x1863   : > { %10103 = shalt.err (!%p10100_p7)
}
0x1864   : > { %s10104_s27 = scalar_lea.hbm %s13140_s16, 16  ;;  %s10108_s0 = scalar_lea.hbm %s13279_s29, 32 }
0x1865   : > { %p10105_p6 = scmp.ne.s32.totalorder %s13140_s16, %s10104_s27  ;;  %p10109_p10 = scmp.lt.s32.totalorder %s13140_s16, %s13279_s29 }
0x1866   : > { %p10110_p11 = scmp.lt.s32.totalorder %s10108_s0, %s10104_s27 }
0x1867   : > { %p10106_p0 = pnand %p10105_p6, %p13280_p9 }
0x1868   : > { %p10111_p13 = por %p10110_p11, %p10109_p10 }
0x1869   : > { %p10107_p8 = pneg %p10106_p0 }
0x186b   : > { %p10112_p5 = pnand %p10111_p13, %p10107_p8 }
0x186d   : > { %10115 = shalt.err (!%p10112_p5)
}
0x186e   : > { %9242 = dma.vmem_to_hbm [thread:$0]  (%p13280_p9), %s7926_s28, 16, %s13140_s16, %s7913_s20  }
0x186f PF: > { %s13281_s13 = sld [smem:[#allocation25_spill]]  ;;  %p13284_p4 = scmp.ge.s32.totalorder %s10174_s22, 2 }
0x1870   : > { %s13282_s2 = sld [smem:[#allocation30_spill]] }
0x1875   : > { %s7937_s1 = sand.u32 1, %s13281_s13  }
0x1876   : > { %p13283_p1 = scmp.ne.s32.totalorder %s13282_s2, 0  ;;  %s7938_s24 = scalar_lea.sflag [#allocation5], %s7937_s1 }
0x1878   : > { %p9271_p12 = pnand %p13284_p4, %p13283_p1 }
0x187a   : > { %p9272_p2 = pneg %p9271_p12 }
0x187c   : > { %10157 = dma.done.wait (%p9272_p2), %s7938_s24, 16  }
0x187d   : > { %10159 = vsyncadd (%p9272_p2), %s7938_s24, 4294967280  ;;  %s13285_s22 = sld [smem:[#allocation27_spill]]  ;;  %s13288_s20 = smov %s10166_s21 }
0x187e   : > { %s13286_s19 = sld [smem:[#allocation26_spill]] }
0x187f   : > { %s13287_s1 = sld [smem:[#allocation28_spill]] }
0x1883   : > { %p40_p3 = scmp.ge.s32.totalorder %s13285_s22, 4  }
0x1884   : > { %s13289_s21 = smov %s13286_s19 }
0x1885   :  { %42 = sbr.rel (!%p40_p3) target bundleno = 23 (0x17), region = 190 }
0x188a   :  { %7942 = vsyncpa [#allocation4], 1 }
0x188b   :  { %7944 = vsyncpa [#allocation4 + $0x1], 1 }
0x188c   :  { %7945 = vsyncpa [#allocation7], 1 }
0x188d   :  { %7947 = vsyncpa [#allocation7 + $0x1], 1 }
0x188e   :  { %7948 = vsyncpa [#allocation10], 1 }
0x188f   :  { %7949 = vsyncpa [#allocation13], 1 }
0x1890   :  { %7950 = vsyncpa [#allocation16], 1 }
0x1891   :  { %7951 = vsyncpa [#allocation5], 1 }
0x1892   :  { %7953 = vsyncpa [#allocation5 + $0x1], 1 }

</bundles_post_ra>
